<compile_context>
chip_gen: v7x
topology: tpu7x:2x2x1
jax: 0.10.0
libtpu: 0.0.40
codegen_flags: <defaults>
</compile_context>

<pallas_src>
import functools

import jax
import jax.numpy as jnp
from jax.experimental import pallas as pl
from jax.experimental.pallas import tpu as pltpu

EPS = 1e-5
COMPUTE_DTYPE = jnp.bfloat16   # MXU operand / HBM-intermediate dtype (accumulation is f32)


# ----------------------------- Pallas kernel bodies ------------------------------ #

def _conv3x3_body(x, edge_ref, w_ref, b_ref, y_ref, st_ref, xe_ref, slab_ref, H, W):
    """3x3 same-conv of one image via 3 stacked-K matmuls.

    x: (HW, Cin) f32 register value (already BN+ReLU'd if fused upstream).
    w_ref: (3, 3*Cin, Cout) bf16 with rows ordered (kw, ci) for each kh.
    Writes y_ref[0] (bf16) and per-image BN partial stats st_ref[0] (f32).
    """
    HW = H * W
    cin = x.shape[-1]
    cdt = slab_ref.dtype

    # Small zero-extended copy of x for the +-1 column shifts (kept in f32 so all
    # element-wise work stays f32; only the final slab write is bf16).
    xe_ref[0:1, :] = jnp.zeros((1, cin), jnp.float32)
    xe_ref[1 + HW:2 + HW, :] = jnp.zeros((1, cin), jnp.float32)
    xe_ref[1:1 + HW, :] = x

    m_lo = edge_ref[:, 0:1]             # 0 where w == 0     (left tap invalid)
    m_hi = edge_ref[:, 1:2]             # 0 where w == W - 1 (right tap invalid)
    x_m1 = xe_ref[0:HW, :] * m_lo       # x[r-1]; row-wrap killed by the mask
    x_p1 = xe_ref[2:2 + HW, :] * m_hi   # x[r+1]

    # Stack the three dw shifts along lanes: (HW, 3*Cin), masks applied exactly once.
    stacked = jnp.concatenate([x_m1, x, x_p1], axis=1).astype(cdt)

    # Tall slab with W zero border rows on each side: the three kh taps become three
    # row-shifted full-width reads (no per-tap masking, no lane-subrange stores).
    slab_ref[0:W, :] = jnp.zeros((W, 3 * cin), cdt)
    slab_ref[W + HW:2 * W + HW, :] = jnp.zeros((W, 3 * cin), cdt)
    slab_ref[W:W + HW, :] = stacked

    cout = y_ref.shape[-1]
    acc = jnp.zeros((HW, cout), jnp.float32)
    for kh in range(3):                 # 3 MXU matmuls with K = 3*Cin (was 9 with K = Cin)
        acc = acc + jnp.dot(slab_ref[kh * W:kh * W + HW, :], w_ref[kh],
                            preferred_element_type=jnp.float32)
    acc = acc + b_ref[...]

    y_ref[0] = acc.astype(y_ref.dtype)  # bf16 intermediate at real channel width

    # per-image partial BN stats from the f32 accumulator -> grid axis stays "parallel"
    st_ref[0, 0:1, :] = jnp.sum(acc, axis=0, keepdims=True)
    st_ref[0, 1:2, :] = jnp.sum(acc * acc, axis=0, keepdims=True)


def _bn_relu_pool_part(x_ref, sc_ref, sh_ref, skip_ref, rm_ref, H, W):
    """BN + ReLU (f32), skip write, 2x2/stride-2 max pool; returns pooled (HW/4, C) f32."""
    H2, W2 = H // 2, W // 2
    a = jnp.maximum(x_ref[0].astype(jnp.float32) * sc_ref[...] + sh_ref[...], 0.0)
    skip_ref[0] = a
    # rows (H direction) first: contiguous W-row slabs, pairwise max into scratch
    for i in range(H2):
        r0 = a[(2 * i) * W:(2 * i + 1) * W, :]
        r1 = a[(2 * i + 1) * W:(2 * i + 2) * W, :]
        rm_ref[i * W:(i + 1) * W, :] = jnp.maximum(r0, r1)
    # columns (W direction): W is even, so flat parity == column parity
    even = rm_ref[pl.ds(0, H2 * W2, 2), :]
    odd = rm_ref[pl.ds(1, H2 * W2, 2), :]
    return jnp.maximum(even, odd)


def _make_conv_kernel(H, W, fuse_bn_relu):
    """Conv2d(3x3, pad=1, bias) with optional fused input BatchNorm+ReLU."""
    def kernel(*refs):
        if fuse_bn_relu:
            (x_ref, edge_ref, w_ref, b_ref, sc_ref, sh_ref,
             y_ref, st_ref, xe_ref, slab_ref) = refs
        else:
            (x_ref, edge_ref, w_ref, b_ref, y_ref, st_ref, xe_ref, slab_ref) = refs
        x = x_ref[0].astype(jnp.float32)
        if fuse_bn_relu:
            x = jnp.maximum(x * sc_ref[...] + sh_ref[...], 0.0)
        _conv3x3_body(x, edge_ref, w_ref, b_ref, y_ref, st_ref, xe_ref, slab_ref, H, W)
    return kernel


def _make_pool_conv_kernel(H, W):
    """Fused: BN+ReLU of previous level's conv2 output -> skip write -> 2x2 max pool
    (VMEM only, never hits HBM) -> next level's 3x3 conv1 (+ BN partial stats)."""
    H2, W2 = H // 2, W // 2

    def kernel(x_ref, sc_ref, sh_ref, edge_ref, w_ref, b_ref,
               skip_ref, y_ref, st_ref, rm_ref, xe_ref, slab_ref):
        pooled = _bn_relu_pool_part(x_ref, sc_ref, sh_ref, skip_ref, rm_ref, H, W)
        _conv3x3_body(pooled, edge_ref, w_ref, b_ref, y_ref, st_ref,
                      xe_ref, slab_ref, H2, W2)
    return kernel


def _make_bn_relu_pool_kernel(H, W):
    """Standalone BN + ReLU + skip + 2x2 max pool (last level only)."""
    def kernel(x_ref, sc_ref, sh_ref, skip_ref, pool_ref, rm_ref):
        pool_ref[0] = _bn_relu_pool_part(x_ref, sc_ref, sh_ref, skip_ref, rm_ref, H, W)
    return kernel


# ------------------------------ JAX wrappers -------------------------------- #

def _edge_mask(H, W):
    """(H*W, 2) f32: [:,0] = (w > 0), [:,1] = (w < W-1) for the +-1 column shifts."""
    col = jnp.arange(H * W, dtype=jnp.int32) % W
    return jnp.stack([col > 0, col < W - 1], axis=1).astype(jnp.float32)


def _pack_weights(w, b):
    """Torch (Cout, Cin, 3, 3) -> (3, 3*Cin, Cout) bf16 with rows ordered (kw, ci)."""
    cout, cin = w.shape[0], w.shape[1]
    wk = jnp.transpose(w, (2, 3, 1, 0)).reshape(3, 3 * cin, cout).astype(COMPUTE_DTYPE)
    bp = b.reshape(1, cout).astype(jnp.float32)
    return wk, bp


def _finalize_stats(st, count):
    mean = jnp.sum(st[:, 0, :], axis=0) / count
    msq = jnp.sum(st[:, 1, :], axis=0) / count
    var = jnp.maximum(msq - mean * mean, 0.0)   # TODO(synk): Welford for large N*H*W
    return mean, var


def _scale_shift(gamma, beta, mean, var):
    scale = gamma.astype(jnp.float32) * jax.lax.rsqrt(var + EPS)
    shift = beta.astype(jnp.float32) - mean * scale
    return scale, shift


def _to_nchw(flat, H, W):
    N, _, C = flat.shape
    return jnp.transpose(flat.reshape(N, H, W, C), (0, 3, 1, 2))


def conv3x3(x, H, W, w, b, edge, bn_in=None):
    """Conv2d(3x3, pad=1, bias); optional fused BN+ReLU on the input; emits batch stats.

    x: (N, H*W, Cin); w: (Cout, Cin, 3, 3); returns (y bf16 (N, H*W, Cout), mean, var).
    """
    N, HW, Cin = x.shape
    Cout = w.shape[0]
    wk, bp = _pack_weights(w, b)

    fuse = bn_in is not None
    inputs = [x, edge, wk, bp]
    in_specs = [pl.BlockSpec((1, HW, Cin), lambda n: (n, 0, 0)),
                pl.BlockSpec((HW, 2), lambda n: (0, 0)),
                pl.BlockSpec((3, 3 * Cin, Cout), lambda n: (0, 0, 0)),
                pl.BlockSpec((1, Cout), lambda n: (0, 0))]
    if fuse:
        sc, sh = bn_in
        inputs += [sc.reshape(1, Cin).astype(jnp.float32),
                   sh.reshape(1, Cin).astype(jnp.float32)]
        in_specs += [pl.BlockSpec((1, Cin), lambda n: (0, 0)),
                     pl.BlockSpec((1, Cin), lambda n: (0, 0))]

    y, st = pl.pallas_call(
        _make_conv_kernel(H, W, fuse),
        out_shape=(jax.ShapeDtypeStruct((N, HW, Cout), COMPUTE_DTYPE),
                   jax.ShapeDtypeStruct((N, 2, Cout), jnp.float32)),
        grid=(N,),
        in_specs=in_specs,
        out_specs=(pl.BlockSpec((1, HW, Cout), lambda n: (n, 0, 0)),
                   pl.BlockSpec((1, 2, Cout), lambda n: (n, 0, 0))),
        scratch_shapes=[pltpu.VMEM((HW + 2, Cin), jnp.float32),
                        pltpu.VMEM((HW + 2 * W, 3 * Cin), COMPUTE_DTYPE)],
        compiler_params=pltpu.CompilerParams(dimension_semantics=("parallel",)),
    )(*inputs)

    mean, var = _finalize_stats(st, jnp.float32(N * HW))
    return y, mean, var


def pool_conv(y_prev, H, W, scale, shift, w, b, edge2):
    """Fused BN+ReLU(y_prev) -> skip (f32), 2x2 max pool (VMEM only) -> next conv1."""
    N, HW, Cp = y_prev.shape
    assert H % 2 == 0 and W % 2 == 0 and HW == H * W
    H2, W2 = H // 2, W // 2
    HW2 = H2 * W2
    Cn = w.shape[0]
    wk, bp = _pack_weights(w, b)

    skip, y, st = pl.pallas_call(
        _make_pool_conv_kernel(H, W),
        out_shape=(jax.ShapeDtypeStruct((N, HW, Cp), jnp.float32),
                   jax.ShapeDtypeStruct((N, HW2, Cn), COMPUTE_DTYPE),
                   jax.ShapeDtypeStruct((N, 2, Cn), jnp.float32)),
        grid=(N,),
        in_specs=[pl.BlockSpec((1, HW, Cp), lambda n: (n, 0, 0)),
                  pl.BlockSpec((1, Cp), lambda n: (0, 0)),
                  pl.BlockSpec((1, Cp), lambda n: (0, 0)),
                  pl.BlockSpec((HW2, 2), lambda n: (0, 0)),
                  pl.BlockSpec((3, 3 * Cp, Cn), lambda n: (0, 0, 0)),
                  pl.BlockSpec((1, Cn), lambda n: (0, 0))],
        out_specs=(pl.BlockSpec((1, HW, Cp), lambda n: (n, 0, 0)),
                   pl.BlockSpec((1, HW2, Cn), lambda n: (n, 0, 0)),
                   pl.BlockSpec((1, 2, Cn), lambda n: (n, 0, 0))),
        scratch_shapes=[pltpu.VMEM((H2 * W, Cp), jnp.float32),
                        pltpu.VMEM((HW2 + 2, Cp), jnp.float32),
                        pltpu.VMEM((HW2 + 2 * W2, 3 * Cp), COMPUTE_DTYPE)],
        compiler_params=pltpu.CompilerParams(dimension_semantics=("parallel",)),
    )(y_prev, scale.reshape(1, Cp).astype(jnp.float32),
      shift.reshape(1, Cp).astype(jnp.float32), edge2, wk, bp)

    mean, var = _finalize_stats(st, jnp.float32(N * HW2))
    return skip, y, mean, var


def bn_relu_pool(y_prev, H, W, scale, shift):
    """Standalone BN+ReLU (skip, full res) + 2x2 max pool (final encoder output)."""
    N, HW, C = y_prev.shape
    assert H % 2 == 0 and W % 2 == 0 and HW == H * W
    H2, W2 = H // 2, W // 2
    skip, pooled = pl.pallas_call(
        _make_bn_relu_pool_kernel(H, W),
        out_shape=(jax.ShapeDtypeStruct((N, HW, C), jnp.float32),
                   jax.ShapeDtypeStruct((N, H2 * W2, C), jnp.float32)),
        grid=(N,),
        in_specs=[pl.BlockSpec((1, HW, C), lambda n: (n, 0, 0)),
                  pl.BlockSpec((1, C), lambda n: (0, 0)),
                  pl.BlockSpec((1, C), lambda n: (0, 0))],
        out_specs=(pl.BlockSpec((1, HW, C), lambda n: (n, 0, 0)),
                   pl.BlockSpec((1, H2 * W2, C), lambda n: (n, 0, 0))),
        scratch_shapes=[pltpu.VMEM((H2 * W, C), jnp.float32)],
        compiler_params=pltpu.CompilerParams(dimension_semantics=("parallel",)),
    )(y_prev, scale.reshape(1, C).astype(jnp.float32),
      shift.reshape(1, C).astype(jnp.float32))
    return skip, pooled


def unet_encoder(x_nchw, params):
    """Matches UNetEncoder.forward: returns (x, skip_connections), both NCHW."""
    N, C0, H, W = x_nchw.shape
    x = jnp.transpose(x_nchw, (0, 2, 3, 1)).astype(jnp.float32).reshape(N, H * W, C0)

    skips = []
    h, w_sp = H, W
    y2 = sc2 = sh2 = None
    h_prev = w_prev = None
    for li, p in enumerate(params):
        assert h % 2 == 0 and w_sp % 2 == 0, "MaxPool2d(2,2) needs even H and W per level"
        edge = _edge_mask(h, w_sp)
        if li == 0:
            y1, m1, v1 = conv3x3(x, h, w_sp, p["w1"], p["b1"], edge)
        else:
            # level (li-1)'s BN2+ReLU + skip + pool fused into level li's conv1
            skip_prev, y1, m1, v1 = pool_conv(y2, h_prev, w_prev, sc2, sh2,
                                              p["w1"], p["b1"], edge)
            skips.append(_to_nchw(skip_prev, h_prev, w_prev))
        sc1, sh1 = _scale_shift(p["g1"], p["be1"], m1, v1)
        # conv2 with conv1's BN+ReLU fused into its input stage
        y2, m2, v2 = conv3x3(y1, h, w_sp, p["w2"], p["b2"], edge, bn_in=(sc1, sh1))
        sc2, sh2 = _scale_shift(p["g2"], p["be2"], m2, v2)
        h_prev, w_prev = h, w_sp
        h, w_sp = h // 2, w_sp // 2

    # last level: standalone BN2+ReLU + skip + pool
    skip_last, x_out = bn_relu_pool(y2, h_prev, w_prev, sc2, sh2)
    skips.append(_to_nchw(skip_last, h_prev, w_prev))
    return _to_nchw(x_out, h, w_sp), skips


def init_params(key, in_channels, features):
    params = []
    c_in = in_channels
    for f in features:
        level = {}
        for idx, (ci, co) in enumerate([(c_in, f), (f, f)], start=1):
            key, kw, kb, kg, kbe = jax.random.split(key, 5)
            std = 1.0 / jnp.sqrt(jnp.float32(ci * 9))
            level[f"w{idx}"] = jax.random.normal(kw, (co, ci, 3, 3), jnp.float32) * std
            level[f"b{idx}"] = 0.01 * jax.random.normal(kb, (co,), jnp.float32)
            level[f"g{idx}"] = 1.0 + 0.1 * jax.random.normal(kg, (co,), jnp.float32)
            level[f"be{idx}"] = 0.1 * jax.random.normal(kbe, (co,), jnp.float32)
        params.append(level)
        c_in = f
    return params


if __name__ == "__main__":
    key = jax.random.PRNGKey(0)
    kx, kp = jax.random.split(key)

    # Small shapes: batch=2, in_channels=4, spatial=16x16; scaled-down UNet features.
    in_channels = 4
    features = [16, 32, 64, 128]
    x = jax.random.normal(kx, (2, in_channels, 16, 16), jnp.float32)   # NCHW like PyTorch
    params = init_params(kp, in_channels, features)

    run = jax.jit(functools.partial(unet_encoder, params=params))
    out, skips = run(x)
    jax.block_until_ready((out, skips))

    # Sanity: shapes mirror the PyTorch module (4 skips, halved spatial each level).
    assert out.shape == (2, features[-1], 1, 1), out.shape
    assert [s.shape for s in skips] == [
        (2, 16, 16, 16), (2, 32, 8, 8), (2, 64, 4, 4), (2, 128, 2, 2)
    ], [s.shape for s in skips]
    assert bool(jnp.all(jnp.isfinite(out)))
    assert all(bool(jnp.all(jnp.isfinite(s))) for s in skips)

    print("KERNEL_OK")
</pallas_src>

<mosaic_0001>
module attributes {stable_mosaic.version = 11 : i64} {
  func.func @kernel(%arg0: i32, %arg1: memref<1x256x4xf32, #tpu.memory_space<vmem>>, %arg2: memref<256x2xf32, #tpu.memory_space<vmem>>, %arg3: memref<3x12x16xbf16, #tpu.memory_space<vmem>>, %arg4: memref<1x16xf32, #tpu.memory_space<vmem>>, %arg5: memref<1x256x16xbf16, #tpu.memory_space<vmem>>, %arg6: memref<1x2x16xf32, #tpu.memory_space<vmem>>, %arg7: memref<258x4xf32, #tpu.memory_space<vmem>>, %arg8: memref<288x12xbf16, #tpu.memory_space<vmem>>) attributes {dimension_semantics = [#tpu.dimension_semantics<parallel>], iteration_bounds = array<i64: 2>, scalar_prefetch = 0 : i64, scratch_operands = 2 : i64, tpu.core_type = #tpu.core_type<tc>, window_params = [{transform_indices = @transform_0, window_bounds = array<i64: 1, 256, 4>}, {pipeline_mode = #tpu.pipeline_mode<synchronous>, transform_indices = @transform_1, window_bounds = array<i64: 256, 2>}, {pipeline_mode = #tpu.pipeline_mode<synchronous>, transform_indices = @transform_2, window_bounds = array<i64: 3, 12, 16>}, {pipeline_mode = #tpu.pipeline_mode<synchronous>, transform_indices = @transform_3, window_bounds = array<i64: 1, 16>}, {transform_indices = @transform_4, window_bounds = array<i64: 1, 256, 16>}, {transform_indices = @transform_5, window_bounds = array<i64: 1, 2, 16>}]} {
    %c0 = arith.constant 0 : index
    %c0_0 = arith.constant 0 : index
    %c0_1 = arith.constant 0 : index
    %0 = vector.load %arg1[%c0, %c0_0, %c0_1] : memref<1x256x4xf32, #tpu.memory_space<vmem>>, vector<1x256x4xf32>
    %1 = vector.shape_cast %0 : vector<1x256x4xf32> to vector<256x4xf32>
    %cst = arith.constant 0.000000e+00 : f32
    %2 = vector.broadcast %cst : f32 to vector<1x4xf32>
    %c0_2 = arith.constant 0 : index
    %c0_3 = arith.constant 0 : index
    %3 = vector.load %arg7[%c0_2, %c0_3] : memref<258x4xf32, #tpu.memory_space<vmem>>, vector<1x4xf32>
    tpu.vector_store %arg7[%c0_2, %c0_3], %2 {strides = array<i32>} : memref<258x4xf32, #tpu.memory_space<vmem>>, vector<1x4xf32>,
    %cst_4 = arith.constant 0.000000e+00 : f32
    %4 = vector.broadcast %cst_4 : f32 to vector<1x4xf32>
    %c257 = arith.constant 257 : index
    %c0_5 = arith.constant 0 : index
    %5 = vector.load %arg7[%c257, %c0_5] : memref<258x4xf32, #tpu.memory_space<vmem>>, vector<1x4xf32>
    tpu.vector_store %arg7[%c257, %c0_5], %4 {strides = array<i32>} : memref<258x4xf32, #tpu.memory_space<vmem>>, vector<1x4xf32>,
    %c1 = arith.constant 1 : index
    %c0_6 = arith.constant 0 : index
    %6 = vector.load %arg7[%c1, %c0_6] : memref<258x4xf32, #tpu.memory_space<vmem>>, vector<256x4xf32>
    tpu.vector_store %arg7[%c1, %c0_6], %1 {strides = array<i32>} : memref<258x4xf32, #tpu.memory_space<vmem>>, vector<256x4xf32>,
    %c0_7 = arith.constant 0 : index
    %c0_8 = arith.constant 0 : index
    %7 = vector.load %arg2[%c0_7, %c0_8] : memref<256x2xf32, #tpu.memory_space<vmem>>, vector<256x1xf32>
    %c0_9 = arith.constant 0 : index
    %c1_10 = arith.constant 1 : index
    %8 = vector.load %arg2[%c0_9, %c1_10] : memref<256x2xf32, #tpu.memory_space<vmem>>, vector<256x1xf32>
    %c0_11 = arith.constant 0 : index
    %c0_12 = arith.constant 0 : index
    %9 = vector.load %arg7[%c0_11, %c0_12] : memref<258x4xf32, #tpu.memory_space<vmem>>, vector<256x4xf32>
    %10 = vector.broadcast %7 : vector<256x1xf32> to vector<256x4xf32>
    %11 = arith.mulf %9, %10 : vector<256x4xf32>
    %c2 = arith.constant 2 : index
    %c0_13 = arith.constant 0 : index
    %12 = vector.load %arg7[%c2, %c0_13] : memref<258x4xf32, #tpu.memory_space<vmem>>, vector<256x4xf32>
    %13 = vector.broadcast %8 : vector<256x1xf32> to vector<256x4xf32>
    %14 = arith.mulf %12, %13 : vector<256x4xf32>
    %15 = tpu.concatenate %11, %1, %14 in 1 : vector<256x4xf32>, vector<256x4xf32>, vector<256x4xf32> -> vector<256x12xf32>
    %16 = arith.truncf %15 : vector<256x12xf32> to vector<256x12xbf16>
    %cst_14 = arith.constant 0.000000e+00 : bf16
    %17 = vector.broadcast %cst_14 : bf16 to vector<16x12xbf16>
    %c0_15 = arith.constant 0 : index
    %c0_16 = arith.constant 0 : index
    %18 = vector.load %arg8[%c0_15, %c0_16] : memref<288x12xbf16, #tpu.memory_space<vmem>>, vector<16x12xbf16>
    tpu.vector_store %arg8[%c0_15, %c0_16], %17 {strides = array<i32>} : memref<288x12xbf16, #tpu.memory_space<vmem>>, vector<16x12xbf16>,
    %cst_17 = arith.constant 0.000000e+00 : bf16
    %19 = vector.broadcast %cst_17 : bf16 to vector<16x12xbf16>
    %c272 = arith.constant 272 : index
    %c0_18 = arith.constant 0 : index
    %20 = vector.load %arg8[%c272, %c0_18] : memref<288x12xbf16, #tpu.memory_space<vmem>>, vector<16x12xbf16>
    tpu.vector_store %arg8[%c272, %c0_18], %19 {strides = array<i32>} : memref<288x12xbf16, #tpu.memory_space<vmem>>, vector<16x12xbf16>,
    %c16 = arith.constant 16 : index
    %c0_19 = arith.constant 0 : index
    %21 = vector.load %arg8[%c16, %c0_19] : memref<288x12xbf16, #tpu.memory_space<vmem>>, vector<256x12xbf16>
    tpu.vector_store %arg8[%c16, %c0_19], %16 {strides = array<i32>} : memref<288x12xbf16, #tpu.memory_space<vmem>>, vector<256x12xbf16>,
    %cst_20 = arith.constant 0.000000e+00 : f32
    %22 = vector.broadcast %cst_20 : f32 to vector<256x16xf32>
    %c0_21 = arith.constant 0 : index
    %c0_22 = arith.constant 0 : index
    %23 = vector.load %arg8[%c0_21, %c0_22] : memref<288x12xbf16, #tpu.memory_space<vmem>>, vector<256x12xbf16>
    %c0_23 = arith.constant 0 : index
    %c0_24 = arith.constant 0 : index
    %c0_25 = arith.constant 0 : index
    %24 = vector.load %arg3[%c0_23, %c0_24, %c0_25] : memref<3x12x16xbf16, #tpu.memory_space<vmem>>, vector<1x12x16xbf16>
    %25 = vector.shape_cast %24 : vector<1x12x16xbf16> to vector<12x16xbf16>
    %cst_26 = arith.constant dense<0.000000e+00> : vector<256x16xf32>
    %26 = tpu.matmul %23, %25, %cst_26 {dimension_numbers = #tpu.dot_dimension_numbers<[1], [0], [0], [1], [0, 0, 1, 1], [], []>} : vector<256x12xbf16>, vector<12x16xbf16>, vector<256x16xf32> -> vector<256x16xf32>
    %27 = arith.addf %22, %26 : vector<256x16xf32>
    %c16_27 = arith.constant 16 : index
    %c0_28 = arith.constant 0 : index
    %28 = vector.load %arg8[%c16_27, %c0_28] : memref<288x12xbf16, #tpu.memory_space<vmem>>, vector<256x12xbf16>
    %c1_29 = arith.constant 1 : index
    %c0_30 = arith.constant 0 : index
    %c0_31 = arith.constant 0 : index
    %29 = vector.load %arg3[%c1_29, %c0_30, %c0_31] : memref<3x12x16xbf16, #tpu.memory_space<vmem>>, vector<1x12x16xbf16>
    %30 = vector.shape_cast %29 : vector<1x12x16xbf16> to vector<12x16xbf16>
    %cst_32 = arith.constant dense<0.000000e+00> : vector<256x16xf32>
    %31 = tpu.matmul %28, %30, %cst_32 {dimension_numbers = #tpu.dot_dimension_numbers<[1], [0], [0], [1], [0, 0, 1, 1], [], []>} : vector<256x12xbf16>, vector<12x16xbf16>, vector<256x16xf32> -> vector<256x16xf32>
    %32 = arith.addf %27, %31 : vector<256x16xf32>
    %c32 = arith.constant 32 : index
    %c0_33 = arith.constant 0 : index
    %33 = vector.load %arg8[%c32, %c0_33] : memref<288x12xbf16, #tpu.memory_space<vmem>>, vector<256x12xbf16>
    %c2_34 = arith.constant 2 : index
    %c0_35 = arith.constant 0 : index
    %c0_36 = arith.constant 0 : index
    %34 = vector.load %arg3[%c2_34, %c0_35, %c0_36] : memref<3x12x16xbf16, #tpu.memory_space<vmem>>, vector<1x12x16xbf16>
    %35 = vector.shape_cast %34 : vector<1x12x16xbf16> to vector<12x16xbf16>
    %cst_37 = arith.constant dense<0.000000e+00> : vector<256x16xf32>
    %36 = tpu.matmul %33, %35, %cst_37 {dimension_numbers = #tpu.dot_dimension_numbers<[1], [0], [0], [1], [0, 0, 1, 1], [], []>} : vector<256x12xbf16>, vector<12x16xbf16>, vector<256x16xf32> -> vector<256x16xf32>
    %37 = arith.addf %32, %36 : vector<256x16xf32>
    %c0_38 = arith.constant 0 : index
    %c0_39 = arith.constant 0 : index
    %38 = vector.load %arg4[%c0_38, %c0_39] : memref<1x16xf32, #tpu.memory_space<vmem>>, vector<1x16xf32>
    %39 = vector.broadcast %38 : vector<1x16xf32> to vector<256x16xf32>
    %40 = arith.addf %37, %39 : vector<256x16xf32>
    %41 = arith.truncf %40 : vector<256x16xf32> to vector<256x16xbf16>
    %c0_40 = arith.constant 0 : index
    %c0_41 = arith.constant 0 : index
    %c0_42 = arith.constant 0 : index
    %42 = vector.load %arg5[%c0_40, %c0_41, %c0_42] : memref<1x256x16xbf16, #tpu.memory_space<vmem>>, vector<1x256x16xbf16>
    %43 = vector.shape_cast %42 : vector<1x256x16xbf16> to vector<256x16xbf16>
    %44 = vector.shape_cast %41 : vector<256x16xbf16> to vector<1x256x16xbf16>
    tpu.vector_store %arg5[%c0_40, %c0_41, %c0_42], %44 {strides = array<i32>} : memref<1x256x16xbf16, #tpu.memory_space<vmem>>, vector<1x256x16xbf16>,
    %cst_43 = arith.constant dense<0.000000e+00> : vector<16xf32>
    %45 = vector.multi_reduction <add>, %40, %cst_43 [0] : vector<256x16xf32> to vector<16xf32>
    %46 = vector.shape_cast %45 : vector<16xf32> to vector<1x16xf32>
    %c0_44 = arith.constant 0 : index
    %c0_45 = arith.constant 0 : index
    %c0_46 = arith.constant 0 : index
    %47 = vector.load %arg6[%c0_44, %c0_45, %c0_46] : memref<1x2x16xf32, #tpu.memory_space<vmem>>, vector<1x1x16xf32>
    %48 = vector.shape_cast %47 : vector<1x1x16xf32> to vector<1x16xf32>
    %49 = vector.shape_cast %46 : vector<1x16xf32> to vector<1x1x16xf32>
    tpu.vector_store %arg6[%c0_44, %c0_45, %c0_46], %49 {strides = array<i32>} : memref<1x2x16xf32, #tpu.memory_space<vmem>>, vector<1x1x16xf32>,
    %50 = arith.mulf %40, %40 : vector<256x16xf32>
    %cst_47 = arith.constant dense<0.000000e+00> : vector<16xf32>
    %51 = vector.multi_reduction <add>, %50, %cst_47 [0] : vector<256x16xf32> to vector<16xf32>
    %52 = vector.shape_cast %51 : vector<16xf32> to vector<1x16xf32>
    %c0_48 = arith.constant 0 : index
    %c1_49 = arith.constant 1 : index
    %c0_50 = arith.constant 0 : index
    %53 = vector.load %arg6[%c0_48, %c1_49, %c0_50] : memref<1x2x16xf32, #tpu.memory_space<vmem>>, vector<1x1x16xf32>
    %54 = vector.shape_cast %53 : vector<1x1x16xf32> to vector<1x16xf32>
    %55 = vector.shape_cast %52 : vector<1x16xf32> to vector<1x1x16xf32>
    tpu.vector_store %arg6[%c0_48, %c1_49, %c0_50], %55 {strides = array<i32>} : memref<1x2x16xf32, #tpu.memory_space<vmem>>, vector<1x1x16xf32>,
    return
  }
  func.func @transform_0(%arg0: i32) -> (i32, i32, i32) {
    %c0_i32 = arith.constant 0 : i32
    %c0_i32_0 = arith.constant 0 : i32
    %c0_i32_1 = arith.constant 0 : i32
    return %arg0, %c0_i32, %c0_i32_0 : i32, i32, i32
  }
  func.func @transform_1(%arg0: i32) -> (i32, i32) {
    %c0_i32 = arith.constant 0 : i32
    %c0_i32_0 = arith.constant 0 : i32
    %c0_i32_1 = arith.constant 0 : i32
    return %c0_i32, %c0_i32_0 : i32, i32
  }
  func.func @transform_2(%arg0: i32) -> (i32, i32, i32) {
    %c0_i32 = arith.constant 0 : i32
    %c0_i32_0 = arith.constant 0 : i32
    %c0_i32_1 = arith.constant 0 : i32
    %c0_i32_2 = arith.constant 0 : i32
    return %c0_i32, %c0_i32_0, %c0_i32_1 : i32, i32, i32
  }
  func.func @transform_3(%arg0: i32) -> (i32, i32) {
    %c0_i32 = arith.constant 0 : i32
    %c0_i32_0 = arith.constant 0 : i32
    %c0_i32_1 = arith.constant 0 : i32
    return %c0_i32, %c0_i32_0 : i32, i32
  }
  func.func @transform_4(%arg0: i32) -> (i32, i32, i32) {
    %c0_i32 = arith.constant 0 : i32
    %c0_i32_0 = arith.constant 0 : i32
    %c0_i32_1 = arith.constant 0 : i32
    return %arg0, %c0_i32, %c0_i32_0 : i32, i32, i32
  }
  func.func @transform_5(%arg0: i32) -> (i32, i32, i32) {
    %c0_i32 = arith.constant 0 : i32
    %c0_i32_0 = arith.constant 0 : i32
    %c0_i32_1 = arith.constant 0 : i32
    return %arg0, %c0_i32, %c0_i32_0 : i32, i32, i32
  }
}

module attributes {stable_mosaic.version = 11 : i64} {
  func.func @kernel(%arg0: i32, %arg1: memref<1x256x16xbf16, #tpu.memory_space<vmem>>, %arg2: memref<256x2xf32, #tpu.memory_space<vmem>>, %arg3: memref<3x48x16xbf16, #tpu.memory_space<vmem>>, %arg4: memref<1x16xf32, #tpu.memory_space<vmem>>, %arg5: memref<1x16xf32, #tpu.memory_space<vmem>>, %arg6: memref<1x16xf32, #tpu.memory_space<vmem>>, %arg7: memref<1x256x16xbf16, #tpu.memory_space<vmem>>, %arg8: memref<1x2x16xf32, #tpu.memory_space<vmem>>, %arg9: memref<258x16xf32, #tpu.memory_space<vmem>>, %arg10: memref<288x48xbf16, #tpu.memory_space<vmem>>) attributes {dimension_semantics = [#tpu.dimension_semantics<parallel>], iteration_bounds = array<i64: 2>, scalar_prefetch = 0 : i64, scratch_operands = 2 : i64, tpu.core_type = #tpu.core_type<tc>, window_params = [{transform_indices = @transform_0, window_bounds = array<i64: 1, 256, 16>}, {pipeline_mode = #tpu.pipeline_mode<synchronous>, transform_indices = @transform_1, window_bounds = array<i64: 256, 2>}, {pipeline_mode = #tpu.pipeline_mode<synchronous>, transform_indices = @transform_2, window_bounds = array<i64: 3, 48, 16>}, {pipeline_mode = #tpu.pipeline_mode<synchronous>, transform_indices = @transform_3, window_bounds = array<i64: 1, 16>}, {pipeline_mode = #tpu.pipeline_mode<synchronous>, transform_indices = @transform_4, window_bounds = array<i64: 1, 16>}, {pipeline_mode = #tpu.pipeline_mode<synchronous>, transform_indices = @transform_5, window_bounds = array<i64: 1, 16>}, {transform_indices = @transform_6, window_bounds = array<i64: 1, 256, 16>}, {transform_indices = @transform_7, window_bounds = array<i64: 1, 2, 16>}]} {
    %c0 = arith.constant 0 : index
    %c0_0 = arith.constant 0 : index
    %c0_1 = arith.constant 0 : index
    %0 = vector.load %arg1[%c0, %c0_0, %c0_1] : memref<1x256x16xbf16, #tpu.memory_space<vmem>>, vector<1x256x16xbf16>
    %1 = vector.shape_cast %0 : vector<1x256x16xbf16> to vector<256x16xbf16>
    %2 = arith.extf %1 : vector<256x16xbf16> to vector<256x16xf32>
    %c0_2 = arith.constant 0 : index
    %c0_3 = arith.constant 0 : index
    %3 = vector.load %arg5[%c0_2, %c0_3] : memref<1x16xf32, #tpu.memory_space<vmem>>, vector<1x16xf32>
    %4 = vector.broadcast %3 : vector<1x16xf32> to vector<256x16xf32>
    %5 = arith.mulf %2, %4 : vector<256x16xf32>
    %c0_4 = arith.constant 0 : index
    %c0_5 = arith.constant 0 : index
    %6 = vector.load %arg6[%c0_4, %c0_5] : memref<1x16xf32, #tpu.memory_space<vmem>>, vector<1x16xf32>
    %7 = vector.broadcast %6 : vector<1x16xf32> to vector<256x16xf32>
    %8 = arith.addf %5, %7 : vector<256x16xf32>
    %cst = arith.constant 0.000000e+00 : f32
    %9 = vector.broadcast %cst : f32 to vector<256x16xf32>
    %10 = arith.maximumf %8, %9 : vector<256x16xf32>
    %cst_6 = arith.constant 0.000000e+00 : f32
    %11 = vector.broadcast %cst_6 : f32 to vector<1x16xf32>
    %c0_7 = arith.constant 0 : index
    %c0_8 = arith.constant 0 : index
    %12 = vector.load %arg9[%c0_7, %c0_8] : memref<258x16xf32, #tpu.memory_space<vmem>>, vector<1x16xf32>
    tpu.vector_store %arg9[%c0_7, %c0_8], %11 {strides = array<i32>} : memref<258x16xf32, #tpu.memory_space<vmem>>, vector<1x16xf32>,
    %cst_9 = arith.constant 0.000000e+00 : f32
    %13 = vector.broadcast %cst_9 : f32 to vector<1x16xf32>
    %c257 = arith.constant 257 : index
    %c0_10 = arith.constant 0 : index
    %14 = vector.load %arg9[%c257, %c0_10] : memref<258x16xf32, #tpu.memory_space<vmem>>, vector<1x16xf32>
    tpu.vector_store %arg9[%c257, %c0_10], %13 {strides = array<i32>} : memref<258x16xf32, #tpu.memory_space<vmem>>, vector<1x16xf32>,
    %c1 = arith.constant 1 : index
    %c0_11 = arith.constant 0 : index
    %15 = vector.load %arg9[%c1, %c0_11] : memref<258x16xf32, #tpu.memory_space<vmem>>, vector<256x16xf32>
    tpu.vector_store %arg9[%c1, %c0_11], %10 {strides = array<i32>} : memref<258x16xf32, #tpu.memory_space<vmem>>, vector<256x16xf32>,
    %c0_12 = arith.constant 0 : index
    %c0_13 = arith.constant 0 : index
    %16 = vector.load %arg2[%c0_12, %c0_13] : memref<256x2xf32, #tpu.memory_space<vmem>>, vector<256x1xf32>
    %c0_14 = arith.constant 0 : index
    %c1_15 = arith.constant 1 : index
    %17 = vector.load %arg2[%c0_14, %c1_15] : memref<256x2xf32, #tpu.memory_space<vmem>>, vector<256x1xf32>
    %c0_16 = arith.constant 0 : index
    %c0_17 = arith.constant 0 : index
    %18 = vector.load %arg9[%c0_16, %c0_17] : memref<258x16xf32, #tpu.memory_space<vmem>>, vector<256x16xf32>
    %19 = vector.broadcast %16 : vector<256x1xf32> to vector<256x16xf32>
    %20 = arith.mulf %18, %19 : vector<256x16xf32>
    %c2 = arith.constant 2 : index
    %c0_18 = arith.constant 0 : index
    %21 = vector.load %arg9[%c2, %c0_18] : memref<258x16xf32, #tpu.memory_space<vmem>>, vector<256x16xf32>
    %22 = vector.broadcast %17 : vector<256x1xf32> to vector<256x16xf32>
    %23 = arith.mulf %21, %22 : vector<256x16xf32>
    %24 = tpu.concatenate %20, %10, %23 in 1 : vector<256x16xf32>, vector<256x16xf32>, vector<256x16xf32> -> vector<256x48xf32>
    %25 = arith.truncf %24 : vector<256x48xf32> to vector<256x48xbf16>
    %cst_19 = arith.constant 0.000000e+00 : bf16
    %26 = vector.broadcast %cst_19 : bf16 to vector<16x48xbf16>
    %c0_20 = arith.constant 0 : index
    %c0_21 = arith.constant 0 : index
    %27 = vector.load %arg10[%c0_20, %c0_21] : memref<288x48xbf16, #tpu.memory_space<vmem>>, vector<16x48xbf16>
    tpu.vector_store %arg10[%c0_20, %c0_21], %26 {strides = array<i32>} : memref<288x48xbf16, #tpu.memory_space<vmem>>, vector<16x48xbf16>,
    %cst_22 = arith.constant 0.000000e+00 : bf16
    %28 = vector.broadcast %cst_22 : bf16 to vector<16x48xbf16>
    %c272 = arith.constant 272 : index
    %c0_23 = arith.constant 0 : index
    %29 = vector.load %arg10[%c272, %c0_23] : memref<288x48xbf16, #tpu.memory_space<vmem>>, vector<16x48xbf16>
    tpu.vector_store %arg10[%c272, %c0_23], %28 {strides = array<i32>} : memref<288x48xbf16, #tpu.memory_space<vmem>>, vector<16x48xbf16>,
    %c16 = arith.constant 16 : index
    %c0_24 = arith.constant 0 : index
    %30 = vector.load %arg10[%c16, %c0_24] : memref<288x48xbf16, #tpu.memory_space<vmem>>, vector<256x48xbf16>
    tpu.vector_store %arg10[%c16, %c0_24], %25 {strides = array<i32>} : memref<288x48xbf16, #tpu.memory_space<vmem>>, vector<256x48xbf16>,
    %cst_25 = arith.constant 0.000000e+00 : f32
    %31 = vector.broadcast %cst_25 : f32 to vector<256x16xf32>
    %c0_26 = arith.constant 0 : index
    %c0_27 = arith.constant 0 : index
    %32 = vector.load %arg10[%c0_26, %c0_27] : memref<288x48xbf16, #tpu.memory_space<vmem>>, vector<256x48xbf16>
    %c0_28 = arith.constant 0 : index
    %c0_29 = arith.constant 0 : index
    %c0_30 = arith.constant 0 : index
    %33 = vector.load %arg3[%c0_28, %c0_29, %c0_30] : memref<3x48x16xbf16, #tpu.memory_space<vmem>>, vector<1x48x16xbf16>
    %34 = vector.shape_cast %33 : vector<1x48x16xbf16> to vector<48x16xbf16>
    %cst_31 = arith.constant dense<0.000000e+00> : vector<256x16xf32>
    %35 = tpu.matmul %32, %34, %cst_31 {dimension_numbers = #tpu.dot_dimension_numbers<[1], [0], [0], [1], [0, 0, 1, 1], [], []>} : vector<256x48xbf16>, vector<48x16xbf16>, vector<256x16xf32> -> vector<256x16xf32>
    %36 = arith.addf %31, %35 : vector<256x16xf32>
    %c16_32 = arith.constant 16 : index
    %c0_33 = arith.constant 0 : index
    %37 = vector.load %arg10[%c16_32, %c0_33] : memref<288x48xbf16, #tpu.memory_space<vmem>>, vector<256x48xbf16>
    %c1_34 = arith.constant 1 : index
    %c0_35 = arith.constant 0 : index
    %c0_36 = arith.constant 0 : index
    %38 = vector.load %arg3[%c1_34, %c0_35, %c0_36] : memref<3x48x16xbf16, #tpu.memory_space<vmem>>, vector<1x48x16xbf16>
    %39 = vector.shape_cast %38 : vector<1x48x16xbf16> to vector<48x16xbf16>
    %cst_37 = arith.constant dense<0.000000e+00> : vector<256x16xf32>
    %40 = tpu.matmul %37, %39, %cst_37 {dimension_numbers = #tpu.dot_dimension_numbers<[1], [0], [0], [1], [0, 0, 1, 1], [], []>} : vector<256x48xbf16>, vector<48x16xbf16>, vector<256x16xf32> -> vector<256x16xf32>
    %41 = arith.addf %36, %40 : vector<256x16xf32>
    %c32 = arith.constant 32 : index
    %c0_38 = arith.constant 0 : index
    %42 = vector.load %arg10[%c32, %c0_38] : memref<288x48xbf16, #tpu.memory_space<vmem>>, vector<256x48xbf16>
    %c2_39 = arith.constant 2 : index
    %c0_40 = arith.constant 0 : index
    %c0_41 = arith.constant 0 : index
    %43 = vector.load %arg3[%c2_39, %c0_40, %c0_41] : memref<3x48x16xbf16, #tpu.memory_space<vmem>>, vector<1x48x16xbf16>
    %44 = vector.shape_cast %43 : vector<1x48x16xbf16> to vector<48x16xbf16>
    %cst_42 = arith.constant dense<0.000000e+00> : vector<256x16xf32>
    %45 = tpu.matmul %42, %44, %cst_42 {dimension_numbers = #tpu.dot_dimension_numbers<[1], [0], [0], [1], [0, 0, 1, 1], [], []>} : vector<256x48xbf16>, vector<48x16xbf16>, vector<256x16xf32> -> vector<256x16xf32>
    %46 = arith.addf %41, %45 : vector<256x16xf32>
    %c0_43 = arith.constant 0 : index
    %c0_44 = arith.constant 0 : index
    %47 = vector.load %arg4[%c0_43, %c0_44] : memref<1x16xf32, #tpu.memory_space<vmem>>, vector<1x16xf32>
    %48 = vector.broadcast %47 : vector<1x16xf32> to vector<256x16xf32>
    %49 = arith.addf %46, %48 : vector<256x16xf32>
    %50 = arith.truncf %49 : vector<256x16xf32> to vector<256x16xbf16>
    %c0_45 = arith.constant 0 : index
    %c0_46 = arith.constant 0 : index
    %c0_47 = arith.constant 0 : index
    %51 = vector.load %arg7[%c0_45, %c0_46, %c0_47] : memref<1x256x16xbf16, #tpu.memory_space<vmem>>, vector<1x256x16xbf16>
    %52 = vector.shape_cast %51 : vector<1x256x16xbf16> to vector<256x16xbf16>
    %53 = vector.shape_cast %50 : vector<256x16xbf16> to vector<1x256x16xbf16>
    tpu.vector_store %arg7[%c0_45, %c0_46, %c0_47], %53 {strides = array<i32>} : memref<1x256x16xbf16, #tpu.memory_space<vmem>>, vector<1x256x16xbf16>,
    %cst_48 = arith.constant dense<0.000000e+00> : vector<16xf32>
    %54 = vector.multi_reduction <add>, %49, %cst_48 [0] : vector<256x16xf32> to vector<16xf32>
    %55 = vector.shape_cast %54 : vector<16xf32> to vector<1x16xf32>
    %c0_49 = arith.constant 0 : index
    %c0_50 = arith.constant 0 : index
    %c0_51 = arith.constant 0 : index
    %56 = vector.load %arg8[%c0_49, %c0_50, %c0_51] : memref<1x2x16xf32, #tpu.memory_space<vmem>>, vector<1x1x16xf32>
    %57 = vector.shape_cast %56 : vector<1x1x16xf32> to vector<1x16xf32>
    %58 = vector.shape_cast %55 : vector<1x16xf32> to vector<1x1x16xf32>
    tpu.vector_store %arg8[%c0_49, %c0_50, %c0_51], %58 {strides = array<i32>} : memref<1x2x16xf32, #tpu.memory_space<vmem>>, vector<1x1x16xf32>,
    %59 = arith.mulf %49, %49 : vector<256x16xf32>
    %cst_52 = arith.constant dense<0.000000e+00> : vector<16xf32>
    %60 = vector.multi_reduction <add>, %59, %cst_52 [0] : vector<256x16xf32> to vector<16xf32>
    %61 = vector.shape_cast %60 : vector<16xf32> to vector<1x16xf32>
    %c0_53 = arith.constant 0 : index
    %c1_54 = arith.constant 1 : index
    %c0_55 = arith.constant 0 : index
    %62 = vector.load %arg8[%c0_53, %c1_54, %c0_55] : memref<1x2x16xf32, #tpu.memory_space<vmem>>, vector<1x1x16xf32>
    %63 = vector.shape_cast %62 : vector<1x1x16xf32> to vector<1x16xf32>
    %64 = vector.shape_cast %61 : vector<1x16xf32> to vector<1x1x16xf32>
    tpu.vector_store %arg8[%c0_53, %c1_54, %c0_55], %64 {strides = array<i32>} : memref<1x2x16xf32, #tpu.memory_space<vmem>>, vector<1x1x16xf32>,
    return
  }
  func.func @transform_0(%arg0: i32) -> (i32, i32, i32) {
    %c0_i32 = arith.constant 0 : i32
    %c0_i32_0 = arith.constant 0 : i32
    %c0_i32_1 = arith.constant 0 : i32
    return %arg0, %c0_i32, %c0_i32_0 : i32, i32, i32
  }
  func.func @transform_1(%arg0: i32) -> (i32, i32) {
    %c0_i32 = arith.constant 0 : i32
    %c0_i32_0 = arith.constant 0 : i32
    %c0_i32_1 = arith.constant 0 : i32
    return %c0_i32, %c0_i32_0 : i32, i32
  }
  func.func @transform_2(%arg0: i32) -> (i32, i32, i32) {
    %c0_i32 = arith.constant 0 : i32
    %c0_i32_0 = arith.constant 0 : i32
    %c0_i32_1 = arith.constant 0 : i32
    %c0_i32_2 = arith.constant 0 : i32
    return %c0_i32, %c0_i32_0, %c0_i32_1 : i32, i32, i32
  }
  func.func @transform_3(%arg0: i32) -> (i32, i32) {
    %c0_i32 = arith.constant 0 : i32
    %c0_i32_0 = arith.constant 0 : i32
    %c0_i32_1 = arith.constant 0 : i32
    return %c0_i32, %c0_i32_0 : i32, i32
  }
  func.func @transform_4(%arg0: i32) -> (i32, i32) {
    %c0_i32 = arith.constant 0 : i32
    %c0_i32_0 = arith.constant 0 : i32
    %c0_i32_1 = arith.constant 0 : i32
    return %c0_i32, %c0_i32_0 : i32, i32
  }
  func.func @transform_5(%arg0: i32) -> (i32, i32) {
    %c0_i32 = arith.constant 0 : i32
    %c0_i32_0 = arith.constant 0 : i32
    %c0_i32_1 = arith.constant 0 : i32
    return %c0_i32, %c0_i32_0 : i32, i32
  }
  func.func @transform_6(%arg0: i32) -> (i32, i32, i32) {
    %c0_i32 = arith.constant 0 : i32
    %c0_i32_0 = arith.constant 0 : i32
    %c0_i32_1 = arith.constant 0 : i32
    return %arg0, %c0_i32, %c0_i32_0 : i32, i32, i32
  }
  func.func @transform_7(%arg0: i32) -> (i32, i32, i32) {
    %c0_i32 = arith.constant 0 : i32
    %c0_i32_0 = arith.constant 0 : i32
    %c0_i32_1 = arith.constant 0 : i32
    return %arg0, %c0_i32, %c0_i32_0 : i32, i32, i32
  }
}

module attributes {stable_mosaic.version = 11 : i64} {
  func.func @kernel(%arg0: i32, %arg1: memref<1x256x16xbf16, #tpu.memory_space<vmem>>, %arg2: memref<1x16xf32, #tpu.memory_space<vmem>>, %arg3: memref<1x16xf32, #tpu.memory_space<vmem>>, %arg4: memref<64x2xf32, #tpu.memory_space<vmem>>, %arg5: memref<3x48x32xbf16, #tpu.memory_space<vmem>>, %arg6: memref<1x32xf32, #tpu.memory_space<vmem>>, %arg7: memref<1x256x16xf32, #tpu.memory_space<vmem>>, %arg8: memref<1x64x32xbf16, #tpu.memory_space<vmem>>, %arg9: memref<1x2x32xf32, #tpu.memory_space<vmem>>, %arg10: memref<128x16xf32, #tpu.memory_space<vmem>>, %arg11: memref<66x16xf32, #tpu.memory_space<vmem>>, %arg12: memref<80x48xbf16, #tpu.memory_space<vmem>>) attributes {dimension_semantics = [#tpu.dimension_semantics<parallel>], iteration_bounds = array<i64: 2>, scalar_prefetch = 0 : i64, scratch_operands = 3 : i64, tpu.core_type = #tpu.core_type<tc>, window_params = [{transform_indices = @transform_0, window_bounds = array<i64: 1, 256, 16>}, {pipeline_mode = #tpu.pipeline_mode<synchronous>, transform_indices = @transform_1, window_bounds = array<i64: 1, 16>}, {pipeline_mode = #tpu.pipeline_mode<synchronous>, transform_indices = @transform_2, window_bounds = array<i64: 1, 16>}, {pipeline_mode = #tpu.pipeline_mode<synchronous>, transform_indices = @transform_3, window_bounds = array<i64: 64, 2>}, {pipeline_mode = #tpu.pipeline_mode<synchronous>, transform_indices = @transform_4, window_bounds = array<i64: 3, 48, 32>}, {pipeline_mode = #tpu.pipeline_mode<synchronous>, transform_indices = @transform_5, window_bounds = array<i64: 1, 32>}, {transform_indices = @transform_6, window_bounds = array<i64: 1, 256, 16>}, {transform_indices = @transform_7, window_bounds = array<i64: 1, 64, 32>}, {transform_indices = @transform_8, window_bounds = array<i64: 1, 2, 32>}]} {
    %c0 = arith.constant 0 : index
    %c0_0 = arith.constant 0 : index
    %c0_1 = arith.constant 0 : index
    %0 = vector.load %arg1[%c0, %c0_0, %c0_1] : memref<1x256x16xbf16, #tpu.memory_space<vmem>>, vector<1x256x16xbf16>
    %1 = vector.shape_cast %0 : vector<1x256x16xbf16> to vector<256x16xbf16>
    %2 = arith.extf %1 : vector<256x16xbf16> to vector<256x16xf32>
    %c0_2 = arith.constant 0 : index
    %c0_3 = arith.constant 0 : index
    %3 = vector.load %arg2[%c0_2, %c0_3] : memref<1x16xf32, #tpu.memory_space<vmem>>, vector<1x16xf32>
    %4 = vector.broadcast %3 : vector<1x16xf32> to vector<256x16xf32>
    %5 = arith.mulf %2, %4 : vector<256x16xf32>
    %c0_4 = arith.constant 0 : index
    %c0_5 = arith.constant 0 : index
    %6 = vector.load %arg3[%c0_4, %c0_5] : memref<1x16xf32, #tpu.memory_space<vmem>>, vector<1x16xf32>
    %7 = vector.broadcast %6 : vector<1x16xf32> to vector<256x16xf32>
    %8 = arith.addf %5, %7 : vector<256x16xf32>
    %cst = arith.constant 0.000000e+00 : f32
    %9 = vector.broadcast %cst : f32 to vector<256x16xf32>
    %10 = arith.maximumf %8, %9 : vector<256x16xf32>
    %c0_6 = arith.constant 0 : index
    %c0_7 = arith.constant 0 : index
    %c0_8 = arith.constant 0 : index
    %11 = vector.load %arg7[%c0_6, %c0_7, %c0_8] : memref<1x256x16xf32, #tpu.memory_space<vmem>>, vector<1x256x16xf32>
    %12 = vector.shape_cast %11 : vector<1x256x16xf32> to vector<256x16xf32>
    %13 = vector.shape_cast %10 : vector<256x16xf32> to vector<1x256x16xf32>
    tpu.vector_store %arg7[%c0_6, %c0_7, %c0_8], %13 {strides = array<i32>} : memref<1x256x16xf32, #tpu.memory_space<vmem>>, vector<1x256x16xf32>,
    %14 = vector.extract_strided_slice %10 {offsets = [0, 0], sizes = [16, 16], strides = [1, 1]} : vector<256x16xf32> to vector<16x16xf32>
    %15 = vector.extract_strided_slice %10 {offsets = [16, 0], sizes = [16, 16], strides = [1, 1]} : vector<256x16xf32> to vector<16x16xf32>
    %16 = arith.maximumf %14, %15 : vector<16x16xf32>
    %c0_9 = arith.constant 0 : index
    %c0_10 = arith.constant 0 : index
    %17 = vector.load %arg10[%c0_9, %c0_10] : memref<128x16xf32, #tpu.memory_space<vmem>>, vector<16x16xf32>
    tpu.vector_store %arg10[%c0_9, %c0_10], %16 {strides = array<i32>} : memref<128x16xf32, #tpu.memory_space<vmem>>, vector<16x16xf32>,
    %18 = vector.extract_strided_slice %10 {offsets = [32, 0], sizes = [16, 16], strides = [1, 1]} : vector<256x16xf32> to vector<16x16xf32>
    %19 = vector.extract_strided_slice %10 {offsets = [48, 0], sizes = [16, 16], strides = [1, 1]} : vector<256x16xf32> to vector<16x16xf32>
    %20 = arith.maximumf %18, %19 : vector<16x16xf32>
    %c16 = arith.constant 16 : index
    %c0_11 = arith.constant 0 : index
    %21 = vector.load %arg10[%c16, %c0_11] : memref<128x16xf32, #tpu.memory_space<vmem>>, vector<16x16xf32>
    tpu.vector_store %arg10[%c16, %c0_11], %20 {strides = array<i32>} : memref<128x16xf32, #tpu.memory_space<vmem>>, vector<16x16xf32>,
    %22 = vector.extract_strided_slice %10 {offsets = [64, 0], sizes = [16, 16], strides = [1, 1]} : vector<256x16xf32> to vector<16x16xf32>
    %23 = vector.extract_strided_slice %10 {offsets = [80, 0], sizes = [16, 16], strides = [1, 1]} : vector<256x16xf32> to vector<16x16xf32>
    %24 = arith.maximumf %22, %23 : vector<16x16xf32>
    %c32 = arith.constant 32 : index
    %c0_12 = arith.constant 0 : index
    %25 = vector.load %arg10[%c32, %c0_12] : memref<128x16xf32, #tpu.memory_space<vmem>>, vector<16x16xf32>
    tpu.vector_store %arg10[%c32, %c0_12], %24 {strides = array<i32>} : memref<128x16xf32, #tpu.memory_space<vmem>>, vector<16x16xf32>,
    %26 = vector.extract_strided_slice %10 {offsets = [96, 0], sizes = [16, 16], strides = [1, 1]} : vector<256x16xf32> to vector<16x16xf32>
    %27 = vector.extract_strided_slice %10 {offsets = [112, 0], sizes = [16, 16], strides = [1, 1]} : vector<256x16xf32> to vector<16x16xf32>
    %28 = arith.maximumf %26, %27 : vector<16x16xf32>
    %c48 = arith.constant 48 : index
    %c0_13 = arith.constant 0 : index
    %29 = vector.load %arg10[%c48, %c0_13] : memref<128x16xf32, #tpu.memory_space<vmem>>, vector<16x16xf32>
    tpu.vector_store %arg10[%c48, %c0_13], %28 {strides = array<i32>} : memref<128x16xf32, #tpu.memory_space<vmem>>, vector<16x16xf32>,
    %30 = vector.extract_strided_slice %10 {offsets = [128, 0], sizes = [16, 16], strides = [1, 1]} : vector<256x16xf32> to vector<16x16xf32>
    %31 = vector.extract_strided_slice %10 {offsets = [144, 0], sizes = [16, 16], strides = [1, 1]} : vector<256x16xf32> to vector<16x16xf32>
    %32 = arith.maximumf %30, %31 : vector<16x16xf32>
    %c64 = arith.constant 64 : index
    %c0_14 = arith.constant 0 : index
    %33 = vector.load %arg10[%c64, %c0_14] : memref<128x16xf32, #tpu.memory_space<vmem>>, vector<16x16xf32>
    tpu.vector_store %arg10[%c64, %c0_14], %32 {strides = array<i32>} : memref<128x16xf32, #tpu.memory_space<vmem>>, vector<16x16xf32>,
    %34 = vector.extract_strided_slice %10 {offsets = [160, 0], sizes = [16, 16], strides = [1, 1]} : vector<256x16xf32> to vector<16x16xf32>
    %35 = vector.extract_strided_slice %10 {offsets = [176, 0], sizes = [16, 16], strides = [1, 1]} : vector<256x16xf32> to vector<16x16xf32>
    %36 = arith.maximumf %34, %35 : vector<16x16xf32>
    %c80 = arith.constant 80 : index
    %c0_15 = arith.constant 0 : index
    %37 = vector.load %arg10[%c80, %c0_15] : memref<128x16xf32, #tpu.memory_space<vmem>>, vector<16x16xf32>
    tpu.vector_store %arg10[%c80, %c0_15], %36 {strides = array<i32>} : memref<128x16xf32, #tpu.memory_space<vmem>>, vector<16x16xf32>,
    %38 = vector.extract_strided_slice %10 {offsets = [192, 0], sizes = [16, 16], strides = [1, 1]} : vector<256x16xf32> to vector<16x16xf32>
    %39 = vector.extract_strided_slice %10 {offsets = [208, 0], sizes = [16, 16], strides = [1, 1]} : vector<256x16xf32> to vector<16x16xf32>
    %40 = arith.maximumf %38, %39 : vector<16x16xf32>
    %c96 = arith.constant 96 : index
    %c0_16 = arith.constant 0 : index
    %41 = vector.load %arg10[%c96, %c0_16] : memref<128x16xf32, #tpu.memory_space<vmem>>, vector<16x16xf32>
    tpu.vector_store %arg10[%c96, %c0_16], %40 {strides = array<i32>} : memref<128x16xf32, #tpu.memory_space<vmem>>, vector<16x16xf32>,
    %42 = vector.extract_strided_slice %10 {offsets = [224, 0], sizes = [16, 16], strides = [1, 1]} : vector<256x16xf32> to vector<16x16xf32>
    %43 = vector.extract_strided_slice %10 {offsets = [240, 0], sizes = [16, 16], strides = [1, 1]} : vector<256x16xf32> to vector<16x16xf32>
    %44 = arith.maximumf %42, %43 : vector<16x16xf32>
    %c112 = arith.constant 112 : index
    %c0_17 = arith.constant 0 : index
    %45 = vector.load %arg10[%c112, %c0_17] : memref<128x16xf32, #tpu.memory_space<vmem>>, vector<16x16xf32>
    tpu.vector_store %arg10[%c112, %c0_17], %44 {strides = array<i32>} : memref<128x16xf32, #tpu.memory_space<vmem>>, vector<16x16xf32>,
    %c0_18 = arith.constant 0 : index
    %c0_19 = arith.constant 0 : index
    %46 = tpu.strided_load %arg10[%c0_18, %c0_19] {strides = array<i32: 2, 1>} : memref<128x16xf32, #tpu.memory_space<vmem>>, vector<64x16xf32>
    %c1 = arith.constant 1 : index
    %c0_20 = arith.constant 0 : index
    %47 = tpu.strided_load %arg10[%c1, %c0_20] {strides = array<i32: 2, 1>} : memref<128x16xf32, #tpu.memory_space<vmem>>, vector<64x16xf32>
    %48 = arith.maximumf %46, %47 : vector<64x16xf32>
    %cst_21 = arith.constant 0.000000e+00 : f32
    %49 = vector.broadcast %cst_21 : f32 to vector<1x16xf32>
    %c0_22 = arith.constant 0 : index
    %c0_23 = arith.constant 0 : index
    %50 = vector.load %arg11[%c0_22, %c0_23] : memref<66x16xf32, #tpu.memory_space<vmem>>, vector<1x16xf32>
    tpu.vector_store %arg11[%c0_22, %c0_23], %49 {strides = array<i32>} : memref<66x16xf32, #tpu.memory_space<vmem>>, vector<1x16xf32>,
    %cst_24 = arith.constant 0.000000e+00 : f32
    %51 = vector.broadcast %cst_24 : f32 to vector<1x16xf32>
    %c65 = arith.constant 65 : index
    %c0_25 = arith.constant 0 : index
    %52 = vector.load %arg11[%c65, %c0_25] : memref<66x16xf32, #tpu.memory_space<vmem>>, vector<1x16xf32>
    tpu.vector_store %arg11[%c65, %c0_25], %51 {strides = array<i32>} : memref<66x16xf32, #tpu.memory_space<vmem>>, vector<1x16xf32>,
    %c1_26 = arith.constant 1 : index
    %c0_27 = arith.constant 0 : index
    %53 = vector.load %arg11[%c1_26, %c0_27] : memref<66x16xf32, #tpu.memory_space<vmem>>, vector<64x16xf32>
    tpu.vector_store %arg11[%c1_26, %c0_27], %48 {strides = array<i32>} : memref<66x16xf32, #tpu.memory_space<vmem>>, vector<64x16xf32>,
    %c0_28 = arith.constant 0 : index
    %c0_29 = arith.constant 0 : index
    %54 = vector.load %arg4[%c0_28, %c0_29] : memref<64x2xf32, #tpu.memory_space<vmem>>, vector<64x1xf32>
    %c0_30 = arith.constant 0 : index
    %c1_31 = arith.constant 1 : index
    %55 = vector.load %arg4[%c0_30, %c1_31] : memref<64x2xf32, #tpu.memory_space<vmem>>, vector<64x1xf32>
    %c0_32 = arith.constant 0 : index
    %c0_33 = arith.constant 0 : index
    %56 = vector.load %arg11[%c0_32, %c0_33] : memref<66x16xf32, #tpu.memory_space<vmem>>, vector<64x16xf32>
    %57 = vector.broadcast %54 : vector<64x1xf32> to vector<64x16xf32>
    %58 = arith.mulf %56, %57 : vector<64x16xf32>
    %c2 = arith.constant 2 : index
    %c0_34 = arith.constant 0 : index
    %59 = vector.load %arg11[%c2, %c0_34] : memref<66x16xf32, #tpu.memory_space<vmem>>, vector<64x16xf32>
    %60 = vector.broadcast %55 : vector<64x1xf32> to vector<64x16xf32>
    %61 = arith.mulf %59, %60 : vector<64x16xf32>
    %62 = tpu.concatenate %58, %48, %61 in 1 : vector<64x16xf32>, vector<64x16xf32>, vector<64x16xf32> -> vector<64x48xf32>
    %63 = arith.truncf %62 : vector<64x48xf32> to vector<64x48xbf16>
    %cst_35 = arith.constant 0.000000e+00 : bf16
    %64 = vector.broadcast %cst_35 : bf16 to vector<8x48xbf16>
    %c0_36 = arith.constant 0 : index
    %c0_37 = arith.constant 0 : index
    %65 = vector.load %arg12[%c0_36, %c0_37] : memref<80x48xbf16, #tpu.memory_space<vmem>>, vector<8x48xbf16>
    tpu.vector_store %arg12[%c0_36, %c0_37], %64 {strides = array<i32>} : memref<80x48xbf16, #tpu.memory_space<vmem>>, vector<8x48xbf16>,
    %cst_38 = arith.constant 0.000000e+00 : bf16
    %66 = vector.broadcast %cst_38 : bf16 to vector<8x48xbf16>
    %c72 = arith.constant 72 : index
    %c0_39 = arith.constant 0 : index
    %67 = vector.load %arg12[%c72, %c0_39] : memref<80x48xbf16, #tpu.memory_space<vmem>>, vector<8x48xbf16>
    tpu.vector_store %arg12[%c72, %c0_39], %66 {strides = array<i32>} : memref<80x48xbf16, #tpu.memory_space<vmem>>, vector<8x48xbf16>,
    %c8 = arith.constant 8 : index
    %c0_40 = arith.constant 0 : index
    %68 = vector.load %arg12[%c8, %c0_40] : memref<80x48xbf16, #tpu.memory_space<vmem>>, vector<64x48xbf16>
    tpu.vector_store %arg12[%c8, %c0_40], %63 {strides = array<i32>} : memref<80x48xbf16, #tpu.memory_space<vmem>>, vector<64x48xbf16>,
    %cst_41 = arith.constant 0.000000e+00 : f32
    %69 = vector.broadcast %cst_41 : f32 to vector<64x32xf32>
    %c0_42 = arith.constant 0 : index
    %c0_43 = arith.constant 0 : index
    %70 = vector.load %arg12[%c0_42, %c0_43] : memref<80x48xbf16, #tpu.memory_space<vmem>>, vector<64x48xbf16>
    %c0_44 = arith.constant 0 : index
    %c0_45 = arith.constant 0 : index
    %c0_46 = arith.constant 0 : index
    %71 = vector.load %arg5[%c0_44, %c0_45, %c0_46] : memref<3x48x32xbf16, #tpu.memory_space<vmem>>, vector<1x48x32xbf16>
    %72 = vector.shape_cast %71 : vector<1x48x32xbf16> to vector<48x32xbf16>
    %cst_47 = arith.constant dense<0.000000e+00> : vector<64x32xf32>
    %73 = tpu.matmul %70, %72, %cst_47 {dimension_numbers = #tpu.dot_dimension_numbers<[1], [0], [0], [1], [0, 0, 1, 1], [], []>} : vector<64x48xbf16>, vector<48x32xbf16>, vector<64x32xf32> -> vector<64x32xf32>
    %74 = arith.addf %69, %73 : vector<64x32xf32>
    %c8_48 = arith.constant 8 : index
    %c0_49 = arith.constant 0 : index
    %75 = vector.load %arg12[%c8_48, %c0_49] : memref<80x48xbf16, #tpu.memory_space<vmem>>, vector<64x48xbf16>
    %c1_50 = arith.constant 1 : index
    %c0_51 = arith.constant 0 : index
    %c0_52 = arith.constant 0 : index
    %76 = vector.load %arg5[%c1_50, %c0_51, %c0_52] : memref<3x48x32xbf16, #tpu.memory_space<vmem>>, vector<1x48x32xbf16>
    %77 = vector.shape_cast %76 : vector<1x48x32xbf16> to vector<48x32xbf16>
    %cst_53 = arith.constant dense<0.000000e+00> : vector<64x32xf32>
    %78 = tpu.matmul %75, %77, %cst_53 {dimension_numbers = #tpu.dot_dimension_numbers<[1], [0], [0], [1], [0, 0, 1, 1], [], []>} : vector<64x48xbf16>, vector<48x32xbf16>, vector<64x32xf32> -> vector<64x32xf32>
    %79 = arith.addf %74, %78 : vector<64x32xf32>
    %c16_54 = arith.constant 16 : index
    %c0_55 = arith.constant 0 : index
    %80 = vector.load %arg12[%c16_54, %c0_55] : memref<80x48xbf16, #tpu.memory_space<vmem>>, vector<64x48xbf16>
    %c2_56 = arith.constant 2 : index
    %c0_57 = arith.constant 0 : index
    %c0_58 = arith.constant 0 : index
    %81 = vector.load %arg5[%c2_56, %c0_57, %c0_58] : memref<3x48x32xbf16, #tpu.memory_space<vmem>>, vector<1x48x32xbf16>
    %82 = vector.shape_cast %81 : vector<1x48x32xbf16> to vector<48x32xbf16>
    %cst_59 = arith.constant dense<0.000000e+00> : vector<64x32xf32>
    %83 = tpu.matmul %80, %82, %cst_59 {dimension_numbers = #tpu.dot_dimension_numbers<[1], [0], [0], [1], [0, 0, 1, 1], [], []>} : vector<64x48xbf16>, vector<48x32xbf16>, vector<64x32xf32> -> vector<64x32xf32>
    %84 = arith.addf %79, %83 : vector<64x32xf32>
    %c0_60 = arith.constant 0 : index
    %c0_61 = arith.constant 0 : index
    %85 = vector.load %arg6[%c0_60, %c0_61] : memref<1x32xf32, #tpu.memory_space<vmem>>, vector<1x32xf32>
    %86 = vector.broadcast %85 : vector<1x32xf32> to vector<64x32xf32>
    %87 = arith.addf %84, %86 : vector<64x32xf32>
    %88 = arith.truncf %87 : vector<64x32xf32> to vector<64x32xbf16>
    %c0_62 = arith.constant 0 : index
    %c0_63 = arith.constant 0 : index
    %c0_64 = arith.constant 0 : index
    %89 = vector.load %arg8[%c0_62, %c0_63, %c0_64] : memref<1x64x32xbf16, #tpu.memory_space<vmem>>, vector<1x64x32xbf16>
    %90 = vector.shape_cast %89 : vector<1x64x32xbf16> to vector<64x32xbf16>
    %91 = vector.shape_cast %88 : vector<64x32xbf16> to vector<1x64x32xbf16>
    tpu.vector_store %arg8[%c0_62, %c0_63, %c0_64], %91 {strides = array<i32>} : memref<1x64x32xbf16, #tpu.memory_space<vmem>>, vector<1x64x32xbf16>,
    %cst_65 = arith.constant dense<0.000000e+00> : vector<32xf32>
    %92 = vector.multi_reduction <add>, %87, %cst_65 [0] : vector<64x32xf32> to vector<32xf32>
    %93 = vector.shape_cast %92 : vector<32xf32> to vector<1x32xf32>
    %c0_66 = arith.constant 0 : index
    %c0_67 = arith.constant 0 : index
    %c0_68 = arith.constant 0 : index
    %94 = vector.load %arg9[%c0_66, %c0_67, %c0_68] : memref<1x2x32xf32, #tpu.memory_space<vmem>>, vector<1x1x32xf32>
    %95 = vector.shape_cast %94 : vector<1x1x32xf32> to vector<1x32xf32>
    %96 = vector.shape_cast %93 : vector<1x32xf32> to vector<1x1x32xf32>
    tpu.vector_store %arg9[%c0_66, %c0_67, %c0_68], %96 {strides = array<i32>} : memref<1x2x32xf32, #tpu.memory_space<vmem>>, vector<1x1x32xf32>,
    %97 = arith.mulf %87, %87 : vector<64x32xf32>
    %cst_69 = arith.constant dense<0.000000e+00> : vector<32xf32>
    %98 = vector.multi_reduction <add>, %97, %cst_69 [0] : vector<64x32xf32> to vector<32xf32>
    %99 = vector.shape_cast %98 : vector<32xf32> to vector<1x32xf32>
    %c0_70 = arith.constant 0 : index
    %c1_71 = arith.constant 1 : index
    %c0_72 = arith.constant 0 : index
    %100 = vector.load %arg9[%c0_70, %c1_71, %c0_72] : memref<1x2x32xf32, #tpu.memory_space<vmem>>, vector<1x1x32xf32>
    %101 = vector.shape_cast %100 : vector<1x1x32xf32> to vector<1x32xf32>
    %102 = vector.shape_cast %99 : vector<1x32xf32> to vector<1x1x32xf32>
    tpu.vector_store %arg9[%c0_70, %c1_71, %c0_72], %102 {strides = array<i32>} : memref<1x2x32xf32, #tpu.memory_space<vmem>>, vector<1x1x32xf32>,
    return
  }
  func.func @transform_0(%arg0: i32) -> (i32, i32, i32) {
    %c0_i32 = arith.constant 0 : i32
    %c0_i32_0 = arith.constant 0 : i32
    %c0_i32_1 = arith.constant 0 : i32
    return %arg0, %c0_i32, %c0_i32_0 : i32, i32, i32
  }
  func.func @transform_1(%arg0: i32) -> (i32, i32) {
    %c0_i32 = arith.constant 0 : i32
    %c0_i32_0 = arith.constant 0 : i32
    %c0_i32_1 = arith.constant 0 : i32
    return %c0_i32, %c0_i32_0 : i32, i32
  }
  func.func @transform_2(%arg0: i32) -> (i32, i32) {
    %c0_i32 = arith.constant 0 : i32
    %c0_i32_0 = arith.constant 0 : i32
    %c0_i32_1 = arith.constant 0 : i32
    return %c0_i32, %c0_i32_0 : i32, i32
  }
  func.func @transform_3(%arg0: i32) -> (i32, i32) {
    %c0_i32 = arith.constant 0 : i32
    %c0_i32_0 = arith.constant 0 : i32
    %c0_i32_1 = arith.constant 0 : i32
    return %c0_i32, %c0_i32_0 : i32, i32
  }
  func.func @transform_4(%arg0: i32) -> (i32, i32, i32) {
    %c0_i32 = arith.constant 0 : i32
    %c0_i32_0 = arith.constant 0 : i32
    %c0_i32_1 = arith.constant 0 : i32
    %c0_i32_2 = arith.constant 0 : i32
    return %c0_i32, %c0_i32_0, %c0_i32_1 : i32, i32, i32
  }
  func.func @transform_5(%arg0: i32) -> (i32, i32) {
    %c0_i32 = arith.constant 0 : i32
    %c0_i32_0 = arith.constant 0 : i32
    %c0_i32_1 = arith.constant 0 : i32
    return %c0_i32, %c0_i32_0 : i32, i32
  }
  func.func @transform_6(%arg0: i32) -> (i32, i32, i32) {
    %c0_i32 = arith.constant 0 : i32
    %c0_i32_0 = arith.constant 0 : i32
    %c0_i32_1 = arith.constant 0 : i32
    return %arg0, %c0_i32, %c0_i32_0 : i32, i32, i32
  }
  func.func @transform_7(%arg0: i32) -> (i32, i32, i32) {
    %c0_i32 = arith.constant 0 : i32
    %c0_i32_0 = arith.constant 0 : i32
    %c0_i32_1 = arith.constant 0 : i32
    return %arg0, %c0_i32, %c0_i32_0 : i32, i32, i32
  }
  func.func @transform_8(%arg0: i32) -> (i32, i32, i32) {
    %c0_i32 = arith.constant 0 : i32
    %c0_i32_0 = arith.constant 0 : i32
    %c0_i32_1 = arith.constant 0 : i32
    return %arg0, %c0_i32, %c0_i32_0 : i32, i32, i32
  }
}

module attributes {stable_mosaic.version = 11 : i64} {
  func.func @kernel(%arg0: i32, %arg1: memref<1x64x32xbf16, #tpu.memory_space<vmem>>, %arg2: memref<64x2xf32, #tpu.memory_space<vmem>>, %arg3: memref<3x96x32xbf16, #tpu.memory_space<vmem>>, %arg4: memref<1x32xf32, #tpu.memory_space<vmem>>, %arg5: memref<1x32xf32, #tpu.memory_space<vmem>>, %arg6: memref<1x32xf32, #tpu.memory_space<vmem>>, %arg7: memref<1x64x32xbf16, #tpu.memory_space<vmem>>, %arg8: memref<1x2x32xf32, #tpu.memory_space<vmem>>, %arg9: memref<66x32xf32, #tpu.memory_space<vmem>>, %arg10: memref<80x96xbf16, #tpu.memory_space<vmem>>) attributes {dimension_semantics = [#tpu.dimension_semantics<parallel>], iteration_bounds = array<i64: 2>, scalar_prefetch = 0 : i64, scratch_operands = 2 : i64, tpu.core_type = #tpu.core_type<tc>, window_params = [{transform_indices = @transform_0, window_bounds = array<i64: 1, 64, 32>}, {pipeline_mode = #tpu.pipeline_mode<synchronous>, transform_indices = @transform_1, window_bounds = array<i64: 64, 2>}, {pipeline_mode = #tpu.pipeline_mode<synchronous>, transform_indices = @transform_2, window_bounds = array<i64: 3, 96, 32>}, {pipeline_mode = #tpu.pipeline_mode<synchronous>, transform_indices = @transform_3, window_bounds = array<i64: 1, 32>}, {pipeline_mode = #tpu.pipeline_mode<synchronous>, transform_indices = @transform_4, window_bounds = array<i64: 1, 32>}, {pipeline_mode = #tpu.pipeline_mode<synchronous>, transform_indices = @transform_5, window_bounds = array<i64: 1, 32>}, {transform_indices = @transform_6, window_bounds = array<i64: 1, 64, 32>}, {transform_indices = @transform_7, window_bounds = array<i64: 1, 2, 32>}]} {
    %c0 = arith.constant 0 : index
    %c0_0 = arith.constant 0 : index
    %c0_1 = arith.constant 0 : index
    %0 = vector.load %arg1[%c0, %c0_0, %c0_1] : memref<1x64x32xbf16, #tpu.memory_space<vmem>>, vector<1x64x32xbf16>
    %1 = vector.shape_cast %0 : vector<1x64x32xbf16> to vector<64x32xbf16>
    %2 = arith.extf %1 : vector<64x32xbf16> to vector<64x32xf32>
    %c0_2 = arith.constant 0 : index
    %c0_3 = arith.constant 0 : index
    %3 = vector.load %arg5[%c0_2, %c0_3] : memref<1x32xf32, #tpu.memory_space<vmem>>, vector<1x32xf32>
    %4 = vector.broadcast %3 : vector<1x32xf32> to vector<64x32xf32>
    %5 = arith.mulf %2, %4 : vector<64x32xf32>
    %c0_4 = arith.constant 0 : index
    %c0_5 = arith.constant 0 : index
    %6 = vector.load %arg6[%c0_4, %c0_5] : memref<1x32xf32, #tpu.memory_space<vmem>>, vector<1x32xf32>
    %7 = vector.broadcast %6 : vector<1x32xf32> to vector<64x32xf32>
    %8 = arith.addf %5, %7 : vector<64x32xf32>
    %cst = arith.constant 0.000000e+00 : f32
    %9 = vector.broadcast %cst : f32 to vector<64x32xf32>
    %10 = arith.maximumf %8, %9 : vector<64x32xf32>
    %cst_6 = arith.constant 0.000000e+00 : f32
    %11 = vector.broadcast %cst_6 : f32 to vector<1x32xf32>
    %c0_7 = arith.constant 0 : index
    %c0_8 = arith.constant 0 : index
    %12 = vector.load %arg9[%c0_7, %c0_8] : memref<66x32xf32, #tpu.memory_space<vmem>>, vector<1x32xf32>
    tpu.vector_store %arg9[%c0_7, %c0_8], %11 {strides = array<i32>} : memref<66x32xf32, #tpu.memory_space<vmem>>, vector<1x32xf32>,
    %cst_9 = arith.constant 0.000000e+00 : f32
    %13 = vector.broadcast %cst_9 : f32 to vector<1x32xf32>
    %c65 = arith.constant 65 : index
    %c0_10 = arith.constant 0 : index
    %14 = vector.load %arg9[%c65, %c0_10] : memref<66x32xf32, #tpu.memory_space<vmem>>, vector<1x32xf32>
    tpu.vector_store %arg9[%c65, %c0_10], %13 {strides = array<i32>} : memref<66x32xf32, #tpu.memory_space<vmem>>, vector<1x32xf32>,
    %c1 = arith.constant 1 : index
    %c0_11 = arith.constant 0 : index
    %15 = vector.load %arg9[%c1, %c0_11] : memref<66x32xf32, #tpu.memory_space<vmem>>, vector<64x32xf32>
    tpu.vector_store %arg9[%c1, %c0_11], %10 {strides = array<i32>} : memref<66x32xf32, #tpu.memory_space<vmem>>, vector<64x32xf32>,
    %c0_12 = arith.constant 0 : index
    %c0_13 = arith.constant 0 : index
    %16 = vector.load %arg2[%c0_12, %c0_13] : memref<64x2xf32, #tpu.memory_space<vmem>>, vector<64x1xf32>
    %c0_14 = arith.constant 0 : index
    %c1_15 = arith.constant 1 : index
    %17 = vector.load %arg2[%c0_14, %c1_15] : memref<64x2xf32, #tpu.memory_space<vmem>>, vector<64x1xf32>
    %c0_16 = arith.constant 0 : index
    %c0_17 = arith.constant 0 : index
    %18 = vector.load %arg9[%c0_16, %c0_17] : memref<66x32xf32, #tpu.memory_space<vmem>>, vector<64x32xf32>
    %19 = vector.broadcast %16 : vector<64x1xf32> to vector<64x32xf32>
    %20 = arith.mulf %18, %19 : vector<64x32xf32>
    %c2 = arith.constant 2 : index
    %c0_18 = arith.constant 0 : index
    %21 = vector.load %arg9[%c2, %c0_18] : memref<66x32xf32, #tpu.memory_space<vmem>>, vector<64x32xf32>
    %22 = vector.broadcast %17 : vector<64x1xf32> to vector<64x32xf32>
    %23 = arith.mulf %21, %22 : vector<64x32xf32>
    %24 = tpu.concatenate %20, %10, %23 in 1 : vector<64x32xf32>, vector<64x32xf32>, vector<64x32xf32> -> vector<64x96xf32>
    %25 = arith.truncf %24 : vector<64x96xf32> to vector<64x96xbf16>
    %cst_19 = arith.constant 0.000000e+00 : bf16
    %26 = vector.broadcast %cst_19 : bf16 to vector<8x96xbf16>
    %c0_20 = arith.constant 0 : index
    %c0_21 = arith.constant 0 : index
    %27 = vector.load %arg10[%c0_20, %c0_21] : memref<80x96xbf16, #tpu.memory_space<vmem>>, vector<8x96xbf16>
    tpu.vector_store %arg10[%c0_20, %c0_21], %26 {strides = array<i32>} : memref<80x96xbf16, #tpu.memory_space<vmem>>, vector<8x96xbf16>,
    %cst_22 = arith.constant 0.000000e+00 : bf16
    %28 = vector.broadcast %cst_22 : bf16 to vector<8x96xbf16>
    %c72 = arith.constant 72 : index
    %c0_23 = arith.constant 0 : index
    %29 = vector.load %arg10[%c72, %c0_23] : memref<80x96xbf16, #tpu.memory_space<vmem>>, vector<8x96xbf16>
    tpu.vector_store %arg10[%c72, %c0_23], %28 {strides = array<i32>} : memref<80x96xbf16, #tpu.memory_space<vmem>>, vector<8x96xbf16>,
    %c8 = arith.constant 8 : index
    %c0_24 = arith.constant 0 : index
    %30 = vector.load %arg10[%c8, %c0_24] : memref<80x96xbf16, #tpu.memory_space<vmem>>, vector<64x96xbf16>
    tpu.vector_store %arg10[%c8, %c0_24], %25 {strides = array<i32>} : memref<80x96xbf16, #tpu.memory_space<vmem>>, vector<64x96xbf16>,
    %cst_25 = arith.constant 0.000000e+00 : f32
    %31 = vector.broadcast %cst_25 : f32 to vector<64x32xf32>
    %c0_26 = arith.constant 0 : index
    %c0_27 = arith.constant 0 : index
    %32 = vector.load %arg10[%c0_26, %c0_27] : memref<80x96xbf16, #tpu.memory_space<vmem>>, vector<64x96xbf16>
    %c0_28 = arith.constant 0 : index
    %c0_29 = arith.constant 0 : index
    %c0_30 = arith.constant 0 : index
    %33 = vector.load %arg3[%c0_28, %c0_29, %c0_30] : memref<3x96x32xbf16, #tpu.memory_space<vmem>>, vector<1x96x32xbf16>
    %34 = vector.shape_cast %33 : vector<1x96x32xbf16> to vector<96x32xbf16>
    %cst_31 = arith.constant dense<0.000000e+00> : vector<64x32xf32>
    %35 = tpu.matmul %32, %34, %cst_31 {dimension_numbers = #tpu.dot_dimension_numbers<[1], [0], [0], [1], [0, 0, 1, 1], [], []>} : vector<64x96xbf16>, vector<96x32xbf16>, vector<64x32xf32> -> vector<64x32xf32>
    %36 = arith.addf %31, %35 : vector<64x32xf32>
    %c8_32 = arith.constant 8 : index
    %c0_33 = arith.constant 0 : index
    %37 = vector.load %arg10[%c8_32, %c0_33] : memref<80x96xbf16, #tpu.memory_space<vmem>>, vector<64x96xbf16>
    %c1_34 = arith.constant 1 : index
    %c0_35 = arith.constant 0 : index
    %c0_36 = arith.constant 0 : index
    %38 = vector.load %arg3[%c1_34, %c0_35, %c0_36] : memref<3x96x32xbf16, #tpu.memory_space<vmem>>, vector<1x96x32xbf16>
    %39 = vector.shape_cast %38 : vector<1x96x32xbf16> to vector<96x32xbf16>
    %cst_37 = arith.constant dense<0.000000e+00> : vector<64x32xf32>
    %40 = tpu.matmul %37, %39, %cst_37 {dimension_numbers = #tpu.dot_dimension_numbers<[1], [0], [0], [1], [0, 0, 1, 1], [], []>} : vector<64x96xbf16>, vector<96x32xbf16>, vector<64x32xf32> -> vector<64x32xf32>
    %41 = arith.addf %36, %40 : vector<64x32xf32>
    %c16 = arith.constant 16 : index
    %c0_38 = arith.constant 0 : index
    %42 = vector.load %arg10[%c16, %c0_38] : memref<80x96xbf16, #tpu.memory_space<vmem>>, vector<64x96xbf16>
    %c2_39 = arith.constant 2 : index
    %c0_40 = arith.constant 0 : index
    %c0_41 = arith.constant 0 : index
    %43 = vector.load %arg3[%c2_39, %c0_40, %c0_41] : memref<3x96x32xbf16, #tpu.memory_space<vmem>>, vector<1x96x32xbf16>
    %44 = vector.shape_cast %43 : vector<1x96x32xbf16> to vector<96x32xbf16>
    %cst_42 = arith.constant dense<0.000000e+00> : vector<64x32xf32>
    %45 = tpu.matmul %42, %44, %cst_42 {dimension_numbers = #tpu.dot_dimension_numbers<[1], [0], [0], [1], [0, 0, 1, 1], [], []>} : vector<64x96xbf16>, vector<96x32xbf16>, vector<64x32xf32> -> vector<64x32xf32>
    %46 = arith.addf %41, %45 : vector<64x32xf32>
    %c0_43 = arith.constant 0 : index
    %c0_44 = arith.constant 0 : index
    %47 = vector.load %arg4[%c0_43, %c0_44] : memref<1x32xf32, #tpu.memory_space<vmem>>, vector<1x32xf32>
    %48 = vector.broadcast %47 : vector<1x32xf32> to vector<64x32xf32>
    %49 = arith.addf %46, %48 : vector<64x32xf32>
    %50 = arith.truncf %49 : vector<64x32xf32> to vector<64x32xbf16>
    %c0_45 = arith.constant 0 : index
    %c0_46 = arith.constant 0 : index
    %c0_47 = arith.constant 0 : index
    %51 = vector.load %arg7[%c0_45, %c0_46, %c0_47] : memref<1x64x32xbf16, #tpu.memory_space<vmem>>, vector<1x64x32xbf16>
    %52 = vector.shape_cast %51 : vector<1x64x32xbf16> to vector<64x32xbf16>
    %53 = vector.shape_cast %50 : vector<64x32xbf16> to vector<1x64x32xbf16>
    tpu.vector_store %arg7[%c0_45, %c0_46, %c0_47], %53 {strides = array<i32>} : memref<1x64x32xbf16, #tpu.memory_space<vmem>>, vector<1x64x32xbf16>,
    %cst_48 = arith.constant dense<0.000000e+00> : vector<32xf32>
    %54 = vector.multi_reduction <add>, %49, %cst_48 [0] : vector<64x32xf32> to vector<32xf32>
    %55 = vector.shape_cast %54 : vector<32xf32> to vector<1x32xf32>
    %c0_49 = arith.constant 0 : index
    %c0_50 = arith.constant 0 : index
    %c0_51 = arith.constant 0 : index
    %56 = vector.load %arg8[%c0_49, %c0_50, %c0_51] : memref<1x2x32xf32, #tpu.memory_space<vmem>>, vector<1x1x32xf32>
    %57 = vector.shape_cast %56 : vector<1x1x32xf32> to vector<1x32xf32>
    %58 = vector.shape_cast %55 : vector<1x32xf32> to vector<1x1x32xf32>
    tpu.vector_store %arg8[%c0_49, %c0_50, %c0_51], %58 {strides = array<i32>} : memref<1x2x32xf32, #tpu.memory_space<vmem>>, vector<1x1x32xf32>,
    %59 = arith.mulf %49, %49 : vector<64x32xf32>
    %cst_52 = arith.constant dense<0.000000e+00> : vector<32xf32>
    %60 = vector.multi_reduction <add>, %59, %cst_52 [0] : vector<64x32xf32> to vector<32xf32>
    %61 = vector.shape_cast %60 : vector<32xf32> to vector<1x32xf32>
    %c0_53 = arith.constant 0 : index
    %c1_54 = arith.constant 1 : index
    %c0_55 = arith.constant 0 : index
    %62 = vector.load %arg8[%c0_53, %c1_54, %c0_55] : memref<1x2x32xf32, #tpu.memory_space<vmem>>, vector<1x1x32xf32>
    %63 = vector.shape_cast %62 : vector<1x1x32xf32> to vector<1x32xf32>
    %64 = vector.shape_cast %61 : vector<1x32xf32> to vector<1x1x32xf32>
    tpu.vector_store %arg8[%c0_53, %c1_54, %c0_55], %64 {strides = array<i32>} : memref<1x2x32xf32, #tpu.memory_space<vmem>>, vector<1x1x32xf32>,
    return
  }
  func.func @transform_0(%arg0: i32) -> (i32, i32, i32) {
    %c0_i32 = arith.constant 0 : i32
    %c0_i32_0 = arith.constant 0 : i32
    %c0_i32_1 = arith.constant 0 : i32
    return %arg0, %c0_i32, %c0_i32_0 : i32, i32, i32
  }
  func.func @transform_1(%arg0: i32) -> (i32, i32) {
    %c0_i32 = arith.constant 0 : i32
    %c0_i32_0 = arith.constant 0 : i32
    %c0_i32_1 = arith.constant 0 : i32
    return %c0_i32, %c0_i32_0 : i32, i32
  }
  func.func @transform_2(%arg0: i32) -> (i32, i32, i32) {
    %c0_i32 = arith.constant 0 : i32
    %c0_i32_0 = arith.constant 0 : i32
    %c0_i32_1 = arith.constant 0 : i32
    %c0_i32_2 = arith.constant 0 : i32
    return %c0_i32, %c0_i32_0, %c0_i32_1 : i32, i32, i32
  }
  func.func @transform_3(%arg0: i32) -> (i32, i32) {
    %c0_i32 = arith.constant 0 : i32
    %c0_i32_0 = arith.constant 0 : i32
    %c0_i32_1 = arith.constant 0 : i32
    return %c0_i32, %c0_i32_0 : i32, i32
  }
  func.func @transform_4(%arg0: i32) -> (i32, i32) {
    %c0_i32 = arith.constant 0 : i32
    %c0_i32_0 = arith.constant 0 : i32
    %c0_i32_1 = arith.constant 0 : i32
    return %c0_i32, %c0_i32_0 : i32, i32
  }
  func.func @transform_5(%arg0: i32) -> (i32, i32) {
    %c0_i32 = arith.constant 0 : i32
    %c0_i32_0 = arith.constant 0 : i32
    %c0_i32_1 = arith.constant 0 : i32
    return %c0_i32, %c0_i32_0 : i32, i32
  }
  func.func @transform_6(%arg0: i32) -> (i32, i32, i32) {
    %c0_i32 = arith.constant 0 : i32
    %c0_i32_0 = arith.constant 0 : i32
    %c0_i32_1 = arith.constant 0 : i32
    return %arg0, %c0_i32, %c0_i32_0 : i32, i32, i32
  }
  func.func @transform_7(%arg0: i32) -> (i32, i32, i32) {
    %c0_i32 = arith.constant 0 : i32
    %c0_i32_0 = arith.constant 0 : i32
    %c0_i32_1 = arith.constant 0 : i32
    return %arg0, %c0_i32, %c0_i32_0 : i32, i32, i32
  }
}

module attributes {stable_mosaic.version = 11 : i64} {
  func.func @kernel(%arg0: i32, %arg1: memref<1x16x64xbf16, #tpu.memory_space<vmem>>, %arg2: memref<16x2xf32, #tpu.memory_space<vmem>>, %arg3: memref<3x192x64xbf16, #tpu.memory_space<vmem>>, %arg4: memref<1x64xf32, #tpu.memory_space<vmem>>, %arg5: memref<1x64xf32, #tpu.memory_space<vmem>>, %arg6: memref<1x64xf32, #tpu.memory_space<vmem>>, %arg7: memref<1x16x64xbf16, #tpu.memory_space<vmem>>, %arg8: memref<1x2x64xf32, #tpu.memory_space<vmem>>, %arg9: memref<18x64xf32, #tpu.memory_space<vmem>>, %arg10: memref<24x192xbf16, #tpu.memory_space<vmem>>) attributes {dimension_semantics = [#tpu.dimension_semantics<parallel>], iteration_bounds = array<i64: 2>, scalar_prefetch = 0 : i64, scratch_operands = 2 : i64, tpu.core_type = #tpu.core_type<tc>, window_params = [{transform_indices = @transform_0, window_bounds = array<i64: 1, 16, 64>}, {pipeline_mode = #tpu.pipeline_mode<synchronous>, transform_indices = @transform_1, window_bounds = array<i64: 16, 2>}, {pipeline_mode = #tpu.pipeline_mode<synchronous>, transform_indices = @transform_2, window_bounds = array<i64: 3, 192, 64>}, {pipeline_mode = #tpu.pipeline_mode<synchronous>, transform_indices = @transform_3, window_bounds = array<i64: 1, 64>}, {pipeline_mode = #tpu.pipeline_mode<synchronous>, transform_indices = @transform_4, window_bounds = array<i64: 1, 64>}, {pipeline_mode = #tpu.pipeline_mode<synchronous>, transform_indices = @transform_5, window_bounds = array<i64: 1, 64>}, {transform_indices = @transform_6, window_bounds = array<i64: 1, 16, 64>}, {transform_indices = @transform_7, window_bounds = array<i64: 1, 2, 64>}]} {
    %c0 = arith.constant 0 : index
    %c0_0 = arith.constant 0 : index
    %c0_1 = arith.constant 0 : index
    %0 = vector.load %arg1[%c0, %c0_0, %c0_1] : memref<1x16x64xbf16, #tpu.memory_space<vmem>>, vector<1x16x64xbf16>
    %1 = vector.shape_cast %0 : vector<1x16x64xbf16> to vector<16x64xbf16>
    %2 = arith.extf %1 : vector<16x64xbf16> to vector<16x64xf32>
    %c0_2 = arith.constant 0 : index
    %c0_3 = arith.constant 0 : index
    %3 = vector.load %arg5[%c0_2, %c0_3] : memref<1x64xf32, #tpu.memory_space<vmem>>, vector<1x64xf32>
    %4 = vector.broadcast %3 : vector<1x64xf32> to vector<16x64xf32>
    %5 = arith.mulf %2, %4 : vector<16x64xf32>
    %c0_4 = arith.constant 0 : index
    %c0_5 = arith.constant 0 : index
    %6 = vector.load %arg6[%c0_4, %c0_5] : memref<1x64xf32, #tpu.memory_space<vmem>>, vector<1x64xf32>
    %7 = vector.broadcast %6 : vector<1x64xf32> to vector<16x64xf32>
    %8 = arith.addf %5, %7 : vector<16x64xf32>
    %cst = arith.constant 0.000000e+00 : f32
    %9 = vector.broadcast %cst : f32 to vector<16x64xf32>
    %10 = arith.maximumf %8, %9 : vector<16x64xf32>
    %cst_6 = arith.constant 0.000000e+00 : f32
    %11 = vector.broadcast %cst_6 : f32 to vector<1x64xf32>
    %c0_7 = arith.constant 0 : index
    %c0_8 = arith.constant 0 : index
    %12 = vector.load %arg9[%c0_7, %c0_8] : memref<18x64xf32, #tpu.memory_space<vmem>>, vector<1x64xf32>
    tpu.vector_store %arg9[%c0_7, %c0_8], %11 {strides = array<i32>} : memref<18x64xf32, #tpu.memory_space<vmem>>, vector<1x64xf32>,
    %cst_9 = arith.constant 0.000000e+00 : f32
    %13 = vector.broadcast %cst_9 : f32 to vector<1x64xf32>
    %c17 = arith.constant 17 : index
    %c0_10 = arith.constant 0 : index
    %14 = vector.load %arg9[%c17, %c0_10] : memref<18x64xf32, #tpu.memory_space<vmem>>, vector<1x64xf32>
    tpu.vector_store %arg9[%c17, %c0_10], %13 {strides = array<i32>} : memref<18x64xf32, #tpu.memory_space<vmem>>, vector<1x64xf32>,
    %c1 = arith.constant 1 : index
    %c0_11 = arith.constant 0 : index
    %15 = vector.load %arg9[%c1, %c0_11] : memref<18x64xf32, #tpu.memory_space<vmem>>, vector<16x64xf32>
    tpu.vector_store %arg9[%c1, %c0_11], %10 {strides = array<i32>} : memref<18x64xf32, #tpu.memory_space<vmem>>, vector<16x64xf32>,
    %c0_12 = arith.constant 0 : index
    %c0_13 = arith.constant 0 : index
    %16 = vector.load %arg2[%c0_12, %c0_13] : memref<16x2xf32, #tpu.memory_space<vmem>>, vector<16x1xf32>
    %c0_14 = arith.constant 0 : index
    %c1_15 = arith.constant 1 : index
    %17 = vector.load %arg2[%c0_14, %c1_15] : memref<16x2xf32, #tpu.memory_space<vmem>>, vector<16x1xf32>
    %c0_16 = arith.constant 0 : index
    %c0_17 = arith.constant 0 : index
    %18 = vector.load %arg9[%c0_16, %c0_17] : memref<18x64xf32, #tpu.memory_space<vmem>>, vector<16x64xf32>
    %19 = vector.broadcast %16 : vector<16x1xf32> to vector<16x64xf32>
    %20 = arith.mulf %18, %19 : vector<16x64xf32>
    %c2 = arith.constant 2 : index
    %c0_18 = arith.constant 0 : index
    %21 = vector.load %arg9[%c2, %c0_18] : memref<18x64xf32, #tpu.memory_space<vmem>>, vector<16x64xf32>
    %22 = vector.broadcast %17 : vector<16x1xf32> to vector<16x64xf32>
    %23 = arith.mulf %21, %22 : vector<16x64xf32>
    %24 = tpu.concatenate %20, %10, %23 in 1 : vector<16x64xf32>, vector<16x64xf32>, vector<16x64xf32> -> vector<16x192xf32>
    %25 = arith.truncf %24 : vector<16x192xf32> to vector<16x192xbf16>
    %cst_19 = arith.constant 0.000000e+00 : bf16
    %26 = vector.broadcast %cst_19 : bf16 to vector<4x192xbf16>
    %c0_20 = arith.constant 0 : index
    %c0_21 = arith.constant 0 : index
    %27 = vector.load %arg10[%c0_20, %c0_21] : memref<24x192xbf16, #tpu.memory_space<vmem>>, vector<4x192xbf16>
    tpu.vector_store %arg10[%c0_20, %c0_21], %26 {strides = array<i32>} : memref<24x192xbf16, #tpu.memory_space<vmem>>, vector<4x192xbf16>,
    %cst_22 = arith.constant 0.000000e+00 : bf16
    %28 = vector.broadcast %cst_22 : bf16 to vector<4x192xbf16>
    %c20 = arith.constant 20 : index
    %c0_23 = arith.constant 0 : index
    %29 = vector.load %arg10[%c20, %c0_23] : memref<24x192xbf16, #tpu.memory_space<vmem>>, vector<4x192xbf16>
    tpu.vector_store %arg10[%c20, %c0_23], %28 {strides = array<i32>} : memref<24x192xbf16, #tpu.memory_space<vmem>>, vector<4x192xbf16>,
    %c4 = arith.constant 4 : index
    %c0_24 = arith.constant 0 : index
    %30 = vector.load %arg10[%c4, %c0_24] : memref<24x192xbf16, #tpu.memory_space<vmem>>, vector<16x192xbf16>
    tpu.vector_store %arg10[%c4, %c0_24], %25 {strides = array<i32>} : memref<24x192xbf16, #tpu.memory_space<vmem>>, vector<16x192xbf16>,
    %cst_25 = arith.constant 0.000000e+00 : f32
    %31 = vector.broadcast %cst_25 : f32 to vector<16x64xf32>
    %c0_26 = arith.constant 0 : index
    %c0_27 = arith.constant 0 : index
    %32 = vector.load %arg10[%c0_26, %c0_27] : memref<24x192xbf16, #tpu.memory_space<vmem>>, vector<16x192xbf16>
    %c0_28 = arith.constant 0 : index
    %c0_29 = arith.constant 0 : index
    %c0_30 = arith.constant 0 : index
    %33 = vector.load %arg3[%c0_28, %c0_29, %c0_30] : memref<3x192x64xbf16, #tpu.memory_space<vmem>>, vector<1x192x64xbf16>
    %34 = vector.shape_cast %33 : vector<1x192x64xbf16> to vector<192x64xbf16>
    %cst_31 = arith.constant dense<0.000000e+00> : vector<16x64xf32>
    %35 = tpu.matmul %32, %34, %cst_31 {dimension_numbers = #tpu.dot_dimension_numbers<[1], [0], [0], [1], [0, 0, 1, 1], [], []>} : vector<16x192xbf16>, vector<192x64xbf16>, vector<16x64xf32> -> vector<16x64xf32>
    %36 = arith.addf %31, %35 : vector<16x64xf32>
    %c4_32 = arith.constant 4 : index
    %c0_33 = arith.constant 0 : index
    %37 = vector.load %arg10[%c4_32, %c0_33] : memref<24x192xbf16, #tpu.memory_space<vmem>>, vector<16x192xbf16>
    %c1_34 = arith.constant 1 : index
    %c0_35 = arith.constant 0 : index
    %c0_36 = arith.constant 0 : index
    %38 = vector.load %arg3[%c1_34, %c0_35, %c0_36] : memref<3x192x64xbf16, #tpu.memory_space<vmem>>, vector<1x192x64xbf16>
    %39 = vector.shape_cast %38 : vector<1x192x64xbf16> to vector<192x64xbf16>
    %cst_37 = arith.constant dense<0.000000e+00> : vector<16x64xf32>
    %40 = tpu.matmul %37, %39, %cst_37 {dimension_numbers = #tpu.dot_dimension_numbers<[1], [0], [0], [1], [0, 0, 1, 1], [], []>} : vector<16x192xbf16>, vector<192x64xbf16>, vector<16x64xf32> -> vector<16x64xf32>
    %41 = arith.addf %36, %40 : vector<16x64xf32>
    %c8 = arith.constant 8 : index
    %c0_38 = arith.constant 0 : index
    %42 = vector.load %arg10[%c8, %c0_38] : memref<24x192xbf16, #tpu.memory_space<vmem>>, vector<16x192xbf16>
    %c2_39 = arith.constant 2 : index
    %c0_40 = arith.constant 0 : index
    %c0_41 = arith.constant 0 : index
    %43 = vector.load %arg3[%c2_39, %c0_40, %c0_41] : memref<3x192x64xbf16, #tpu.memory_space<vmem>>, vector<1x192x64xbf16>
    %44 = vector.shape_cast %43 : vector<1x192x64xbf16> to vector<192x64xbf16>
    %cst_42 = arith.constant dense<0.000000e+00> : vector<16x64xf32>
    %45 = tpu.matmul %42, %44, %cst_42 {dimension_numbers = #tpu.dot_dimension_numbers<[1], [0], [0], [1], [0, 0, 1, 1], [], []>} : vector<16x192xbf16>, vector<192x64xbf16>, vector<16x64xf32> -> vector<16x64xf32>
    %46 = arith.addf %41, %45 : vector<16x64xf32>
    %c0_43 = arith.constant 0 : index
    %c0_44 = arith.constant 0 : index
    %47 = vector.load %arg4[%c0_43, %c0_44] : memref<1x64xf32, #tpu.memory_space<vmem>>, vector<1x64xf32>
    %48 = vector.broadcast %47 : vector<1x64xf32> to vector<16x64xf32>
    %49 = arith.addf %46, %48 : vector<16x64xf32>
    %50 = arith.truncf %49 : vector<16x64xf32> to vector<16x64xbf16>
    %c0_45 = arith.constant 0 : index
    %c0_46 = arith.constant 0 : index
    %c0_47 = arith.constant 0 : index
    %51 = vector.load %arg7[%c0_45, %c0_46, %c0_47] : memref<1x16x64xbf16, #tpu.memory_space<vmem>>, vector<1x16x64xbf16>
    %52 = vector.shape_cast %51 : vector<1x16x64xbf16> to vector<16x64xbf16>
    %53 = vector.shape_cast %50 : vector<16x64xbf16> to vector<1x16x64xbf16>
    tpu.vector_store %arg7[%c0_45, %c0_46, %c0_47], %53 {strides = array<i32>} : memref<1x16x64xbf16, #tpu.memory_space<vmem>>, vector<1x16x64xbf16>,
    %cst_48 = arith.constant dense<0.000000e+00> : vector<64xf32>
    %54 = vector.multi_reduction <add>, %49, %cst_48 [0] : vector<16x64xf32> to vector<64xf32>
    %55 = vector.shape_cast %54 : vector<64xf32> to vector<1x64xf32>
    %c0_49 = arith.constant 0 : index
    %c0_50 = arith.constant 0 : index
    %c0_51 = arith.constant 0 : index
    %56 = vector.load %arg8[%c0_49, %c0_50, %c0_51] : memref<1x2x64xf32, #tpu.memory_space<vmem>>, vector<1x1x64xf32>
    %57 = vector.shape_cast %56 : vector<1x1x64xf32> to vector<1x64xf32>
    %58 = vector.shape_cast %55 : vector<1x64xf32> to vector<1x1x64xf32>
    tpu.vector_store %arg8[%c0_49, %c0_50, %c0_51], %58 {strides = array<i32>} : memref<1x2x64xf32, #tpu.memory_space<vmem>>, vector<1x1x64xf32>,
    %59 = arith.mulf %49, %49 : vector<16x64xf32>
    %cst_52 = arith.constant dense<0.000000e+00> : vector<64xf32>
    %60 = vector.multi_reduction <add>, %59, %cst_52 [0] : vector<16x64xf32> to vector<64xf32>
    %61 = vector.shape_cast %60 : vector<64xf32> to vector<1x64xf32>
    %c0_53 = arith.constant 0 : index
    %c1_54 = arith.constant 1 : index
    %c0_55 = arith.constant 0 : index
    %62 = vector.load %arg8[%c0_53, %c1_54, %c0_55] : memref<1x2x64xf32, #tpu.memory_space<vmem>>, vector<1x1x64xf32>
    %63 = vector.shape_cast %62 : vector<1x1x64xf32> to vector<1x64xf32>
    %64 = vector.shape_cast %61 : vector<1x64xf32> to vector<1x1x64xf32>
    tpu.vector_store %arg8[%c0_53, %c1_54, %c0_55], %64 {strides = array<i32>} : memref<1x2x64xf32, #tpu.memory_space<vmem>>, vector<1x1x64xf32>,
    return
  }
  func.func @transform_0(%arg0: i32) -> (i32, i32, i32) {
    %c0_i32 = arith.constant 0 : i32
    %c0_i32_0 = arith.constant 0 : i32
    %c0_i32_1 = arith.constant 0 : i32
    return %arg0, %c0_i32, %c0_i32_0 : i32, i32, i32
  }
  func.func @transform_1(%arg0: i32) -> (i32, i32) {
    %c0_i32 = arith.constant 0 : i32
    %c0_i32_0 = arith.constant 0 : i32
    %c0_i32_1 = arith.constant 0 : i32
    return %c0_i32, %c0_i32_0 : i32, i32
  }
  func.func @transform_2(%arg0: i32) -> (i32, i32, i32) {
    %c0_i32 = arith.constant 0 : i32
    %c0_i32_0 = arith.constant 0 : i32
    %c0_i32_1 = arith.constant 0 : i32
    %c0_i32_2 = arith.constant 0 : i32
    return %c0_i32, %c0_i32_0, %c0_i32_1 : i32, i32, i32
  }
  func.func @transform_3(%arg0: i32) -> (i32, i32) {
    %c0_i32 = arith.constant 0 : i32
    %c0_i32_0 = arith.constant 0 : i32
    %c0_i32_1 = arith.constant 0 : i32
    return %c0_i32, %c0_i32_0 : i32, i32
  }
  func.func @transform_4(%arg0: i32) -> (i32, i32) {
    %c0_i32 = arith.constant 0 : i32
    %c0_i32_0 = arith.constant 0 : i32
    %c0_i32_1 = arith.constant 0 : i32
    return %c0_i32, %c0_i32_0 : i32, i32
  }
  func.func @transform_5(%arg0: i32) -> (i32, i32) {
    %c0_i32 = arith.constant 0 : i32
    %c0_i32_0 = arith.constant 0 : i32
    %c0_i32_1 = arith.constant 0 : i32
    return %c0_i32, %c0_i32_0 : i32, i32
  }
  func.func @transform_6(%arg0: i32) -> (i32, i32, i32) {
    %c0_i32 = arith.constant 0 : i32
    %c0_i32_0 = arith.constant 0 : i32
    %c0_i32_1 = arith.constant 0 : i32
    return %arg0, %c0_i32, %c0_i32_0 : i32, i32, i32
  }
  func.func @transform_7(%arg0: i32) -> (i32, i32, i32) {
    %c0_i32 = arith.constant 0 : i32
    %c0_i32_0 = arith.constant 0 : i32
    %c0_i32_1 = arith.constant 0 : i32
    return %arg0, %c0_i32, %c0_i32_0 : i32, i32, i32
  }
}

module attributes {stable_mosaic.version = 11 : i64} {
  func.func @kernel(%arg0: i32, %arg1: memref<1x64x32xbf16, #tpu.memory_space<vmem>>, %arg2: memref<1x32xf32, #tpu.memory_space<vmem>>, %arg3: memref<1x32xf32, #tpu.memory_space<vmem>>, %arg4: memref<16x2xf32, #tpu.memory_space<vmem>>, %arg5: memref<3x96x64xbf16, #tpu.memory_space<vmem>>, %arg6: memref<1x64xf32, #tpu.memory_space<vmem>>, %arg7: memref<1x64x32xf32, #tpu.memory_space<vmem>>, %arg8: memref<1x16x64xbf16, #tpu.memory_space<vmem>>, %arg9: memref<1x2x64xf32, #tpu.memory_space<vmem>>, %arg10: memref<32x32xf32, #tpu.memory_space<vmem>>, %arg11: memref<18x32xf32, #tpu.memory_space<vmem>>, %arg12: memref<24x96xbf16, #tpu.memory_space<vmem>>) attributes {dimension_semantics = [#tpu.dimension_semantics<parallel>], iteration_bounds = array<i64: 2>, scalar_prefetch = 0 : i64, scratch_operands = 3 : i64, tpu.core_type = #tpu.core_type<tc>, window_params = [{transform_indices = @transform_0, window_bounds = array<i64: 1, 64, 32>}, {pipeline_mode = #tpu.pipeline_mode<synchronous>, transform_indices = @transform_1, window_bounds = array<i64: 1, 32>}, {pipeline_mode = #tpu.pipeline_mode<synchronous>, transform_indices = @transform_2, window_bounds = array<i64: 1, 32>}, {pipeline_mode = #tpu.pipeline_mode<synchronous>, transform_indices = @transform_3, window_bounds = array<i64: 16, 2>}, {pipeline_mode = #tpu.pipeline_mode<synchronous>, transform_indices = @transform_4, window_bounds = array<i64: 3, 96, 64>}, {pipeline_mode = #tpu.pipeline_mode<synchronous>, transform_indices = @transform_5, window_bounds = array<i64: 1, 64>}, {transform_indices = @transform_6, window_bounds = array<i64: 1, 64, 32>}, {transform_indices = @transform_7, window_bounds = array<i64: 1, 16, 64>}, {transform_indices = @transform_8, window_bounds = array<i64: 1, 2, 64>}]} {
    %c0 = arith.constant 0 : index
    %c0_0 = arith.constant 0 : index
    %c0_1 = arith.constant 0 : index
    %0 = vector.load %arg1[%c0, %c0_0, %c0_1] : memref<1x64x32xbf16, #tpu.memory_space<vmem>>, vector<1x64x32xbf16>
    %1 = vector.shape_cast %0 : vector<1x64x32xbf16> to vector<64x32xbf16>
    %2 = arith.extf %1 : vector<64x32xbf16> to vector<64x32xf32>
    %c0_2 = arith.constant 0 : index
    %c0_3 = arith.constant 0 : index
    %3 = vector.load %arg2[%c0_2, %c0_3] : memref<1x32xf32, #tpu.memory_space<vmem>>, vector<1x32xf32>
    %4 = vector.broadcast %3 : vector<1x32xf32> to vector<64x32xf32>
    %5 = arith.mulf %2, %4 : vector<64x32xf32>
    %c0_4 = arith.constant 0 : index
    %c0_5 = arith.constant 0 : index
    %6 = vector.load %arg3[%c0_4, %c0_5] : memref<1x32xf32, #tpu.memory_space<vmem>>, vector<1x32xf32>
    %7 = vector.broadcast %6 : vector<1x32xf32> to vector<64x32xf32>
    %8 = arith.addf %5, %7 : vector<64x32xf32>
    %cst = arith.constant 0.000000e+00 : f32
    %9 = vector.broadcast %cst : f32 to vector<64x32xf32>
    %10 = arith.maximumf %8, %9 : vector<64x32xf32>
    %c0_6 = arith.constant 0 : index
    %c0_7 = arith.constant 0 : index
    %c0_8 = arith.constant 0 : index
    %11 = vector.load %arg7[%c0_6, %c0_7, %c0_8] : memref<1x64x32xf32, #tpu.memory_space<vmem>>, vector<1x64x32xf32>
    %12 = vector.shape_cast %11 : vector<1x64x32xf32> to vector<64x32xf32>
    %13 = vector.shape_cast %10 : vector<64x32xf32> to vector<1x64x32xf32>
    tpu.vector_store %arg7[%c0_6, %c0_7, %c0_8], %13 {strides = array<i32>} : memref<1x64x32xf32, #tpu.memory_space<vmem>>, vector<1x64x32xf32>,
    %14 = vector.extract_strided_slice %10 {offsets = [0, 0], sizes = [8, 32], strides = [1, 1]} : vector<64x32xf32> to vector<8x32xf32>
    %15 = vector.extract_strided_slice %10 {offsets = [8, 0], sizes = [8, 32], strides = [1, 1]} : vector<64x32xf32> to vector<8x32xf32>
    %16 = arith.maximumf %14, %15 : vector<8x32xf32>
    %c0_9 = arith.constant 0 : index
    %c0_10 = arith.constant 0 : index
    %17 = vector.load %arg10[%c0_9, %c0_10] : memref<32x32xf32, #tpu.memory_space<vmem>>, vector<8x32xf32>
    tpu.vector_store %arg10[%c0_9, %c0_10], %16 {strides = array<i32>} : memref<32x32xf32, #tpu.memory_space<vmem>>, vector<8x32xf32>,
    %18 = vector.extract_strided_slice %10 {offsets = [16, 0], sizes = [8, 32], strides = [1, 1]} : vector<64x32xf32> to vector<8x32xf32>
    %19 = vector.extract_strided_slice %10 {offsets = [24, 0], sizes = [8, 32], strides = [1, 1]} : vector<64x32xf32> to vector<8x32xf32>
    %20 = arith.maximumf %18, %19 : vector<8x32xf32>
    %c8 = arith.constant 8 : index
    %c0_11 = arith.constant 0 : index
    %21 = vector.load %arg10[%c8, %c0_11] : memref<32x32xf32, #tpu.memory_space<vmem>>, vector<8x32xf32>
    tpu.vector_store %arg10[%c8, %c0_11], %20 {strides = array<i32>} : memref<32x32xf32, #tpu.memory_space<vmem>>, vector<8x32xf32>,
    %22 = vector.extract_strided_slice %10 {offsets = [32, 0], sizes = [8, 32], strides = [1, 1]} : vector<64x32xf32> to vector<8x32xf32>
    %23 = vector.extract_strided_slice %10 {offsets = [40, 0], sizes = [8, 32], strides = [1, 1]} : vector<64x32xf32> to vector<8x32xf32>
    %24 = arith.maximumf %22, %23 : vector<8x32xf32>
    %c16 = arith.constant 16 : index
    %c0_12 = arith.constant 0 : index
    %25 = vector.load %arg10[%c16, %c0_12] : memref<32x32xf32, #tpu.memory_space<vmem>>, vector<8x32xf32>
    tpu.vector_store %arg10[%c16, %c0_12], %24 {strides = array<i32>} : memref<32x32xf32, #tpu.memory_space<vmem>>, vector<8x32xf32>,
    %26 = vector.extract_strided_slice %10 {offsets = [48, 0], sizes = [8, 32], strides = [1, 1]} : vector<64x32xf32> to vector<8x32xf32>
    %27 = vector.extract_strided_slice %10 {offsets = [56, 0], sizes = [8, 32], strides = [1, 1]} : vector<64x32xf32> to vector<8x32xf32>
    %28 = arith.maximumf %26, %27 : vector<8x32xf32>
    %c24 = arith.constant 24 : index
    %c0_13 = arith.constant 0 : index
    %29 = vector.load %arg10[%c24, %c0_13] : memref<32x32xf32, #tpu.memory_space<vmem>>, vector<8x32xf32>
    tpu.vector_store %arg10[%c24, %c0_13], %28 {strides = array<i32>} : memref<32x32xf32, #tpu.memory_space<vmem>>, vector<8x32xf32>,
    %c0_14 = arith.constant 0 : index
    %c0_15 = arith.constant 0 : index
    %30 = tpu.strided_load %arg10[%c0_14, %c0_15] {strides = array<i32: 2, 1>} : memref<32x32xf32, #tpu.memory_space<vmem>>, vector<16x32xf32>
    %c1 = arith.constant 1 : index
    %c0_16 = arith.constant 0 : index
    %31 = tpu.strided_load %arg10[%c1, %c0_16] {strides = array<i32: 2, 1>} : memref<32x32xf32, #tpu.memory_space<vmem>>, vector<16x32xf32>
    %32 = arith.maximumf %30, %31 : vector<16x32xf32>
    %cst_17 = arith.constant 0.000000e+00 : f32
    %33 = vector.broadcast %cst_17 : f32 to vector<1x32xf32>
    %c0_18 = arith.constant 0 : index
    %c0_19 = arith.constant 0 : index
    %34 = vector.load %arg11[%c0_18, %c0_19] : memref<18x32xf32, #tpu.memory_space<vmem>>, vector<1x32xf32>
    tpu.vector_store %arg11[%c0_18, %c0_19], %33 {strides = array<i32>} : memref<18x32xf32, #tpu.memory_space<vmem>>, vector<1x32xf32>,
    %cst_20 = arith.constant 0.000000e+00 : f32
    %35 = vector.broadcast %cst_20 : f32 to vector<1x32xf32>
    %c17 = arith.constant 17 : index
    %c0_21 = arith.constant 0 : index
    %36 = vector.load %arg11[%c17, %c0_21] : memref<18x32xf32, #tpu.memory_space<vmem>>, vector<1x32xf32>
    tpu.vector_store %arg11[%c17, %c0_21], %35 {strides = array<i32>} : memref<18x32xf32, #tpu.memory_space<vmem>>, vector<1x32xf32>,
    %c1_22 = arith.constant 1 : index
    %c0_23 = arith.constant 0 : index
    %37 = vector.load %arg11[%c1_22, %c0_23] : memref<18x32xf32, #tpu.memory_space<vmem>>, vector<16x32xf32>
    tpu.vector_store %arg11[%c1_22, %c0_23], %32 {strides = array<i32>} : memref<18x32xf32, #tpu.memory_space<vmem>>, vector<16x32xf32>,
    %c0_24 = arith.constant 0 : index
    %c0_25 = arith.constant 0 : index
    %38 = vector.load %arg4[%c0_24, %c0_25] : memref<16x2xf32, #tpu.memory_space<vmem>>, vector<16x1xf32>
    %c0_26 = arith.constant 0 : index
    %c1_27 = arith.constant 1 : index
    %39 = vector.load %arg4[%c0_26, %c1_27] : memref<16x2xf32, #tpu.memory_space<vmem>>, vector<16x1xf32>
    %c0_28 = arith.constant 0 : index
    %c0_29 = arith.constant 0 : index
    %40 = vector.load %arg11[%c0_28, %c0_29] : memref<18x32xf32, #tpu.memory_space<vmem>>, vector<16x32xf32>
    %41 = vector.broadcast %38 : vector<16x1xf32> to vector<16x32xf32>
    %42 = arith.mulf %40, %41 : vector<16x32xf32>
    %c2 = arith.constant 2 : index
    %c0_30 = arith.constant 0 : index
    %43 = vector.load %arg11[%c2, %c0_30] : memref<18x32xf32, #tpu.memory_space<vmem>>, vector<16x32xf32>
    %44 = vector.broadcast %39 : vector<16x1xf32> to vector<16x32xf32>
    %45 = arith.mulf %43, %44 : vector<16x32xf32>
    %46 = tpu.concatenate %42, %32, %45 in 1 : vector<16x32xf32>, vector<16x32xf32>, vector<16x32xf32> -> vector<16x96xf32>
    %47 = arith.truncf %46 : vector<16x96xf32> to vector<16x96xbf16>
    %cst_31 = arith.constant 0.000000e+00 : bf16
    %48 = vector.broadcast %cst_31 : bf16 to vector<4x96xbf16>
    %c0_32 = arith.constant 0 : index
    %c0_33 = arith.constant 0 : index
    %49 = vector.load %arg12[%c0_32, %c0_33] : memref<24x96xbf16, #tpu.memory_space<vmem>>, vector<4x96xbf16>
    tpu.vector_store %arg12[%c0_32, %c0_33], %48 {strides = array<i32>} : memref<24x96xbf16, #tpu.memory_space<vmem>>, vector<4x96xbf16>,
    %cst_34 = arith.constant 0.000000e+00 : bf16
    %50 = vector.broadcast %cst_34 : bf16 to vector<4x96xbf16>
    %c20 = arith.constant 20 : index
    %c0_35 = arith.constant 0 : index
    %51 = vector.load %arg12[%c20, %c0_35] : memref<24x96xbf16, #tpu.memory_space<vmem>>, vector<4x96xbf16>
    tpu.vector_store %arg12[%c20, %c0_35], %50 {strides = array<i32>} : memref<24x96xbf16, #tpu.memory_space<vmem>>, vector<4x96xbf16>,
    %c4 = arith.constant 4 : index
    %c0_36 = arith.constant 0 : index
    %52 = vector.load %arg12[%c4, %c0_36] : memref<24x96xbf16, #tpu.memory_space<vmem>>, vector<16x96xbf16>
    tpu.vector_store %arg12[%c4, %c0_36], %47 {strides = array<i32>} : memref<24x96xbf16, #tpu.memory_space<vmem>>, vector<16x96xbf16>,
    %cst_37 = arith.constant 0.000000e+00 : f32
    %53 = vector.broadcast %cst_37 : f32 to vector<16x64xf32>
    %c0_38 = arith.constant 0 : index
    %c0_39 = arith.constant 0 : index
    %54 = vector.load %arg12[%c0_38, %c0_39] : memref<24x96xbf16, #tpu.memory_space<vmem>>, vector<16x96xbf16>
    %c0_40 = arith.constant 0 : index
    %c0_41 = arith.constant 0 : index
    %c0_42 = arith.constant 0 : index
    %55 = vector.load %arg5[%c0_40, %c0_41, %c0_42] : memref<3x96x64xbf16, #tpu.memory_space<vmem>>, vector<1x96x64xbf16>
    %56 = vector.shape_cast %55 : vector<1x96x64xbf16> to vector<96x64xbf16>
    %cst_43 = arith.constant dense<0.000000e+00> : vector<16x64xf32>
    %57 = tpu.matmul %54, %56, %cst_43 {dimension_numbers = #tpu.dot_dimension_numbers<[1], [0], [0], [1], [0, 0, 1, 1], [], []>} : vector<16x96xbf16>, vector<96x64xbf16>, vector<16x64xf32> -> vector<16x64xf32>
    %58 = arith.addf %53, %57 : vector<16x64xf32>
    %c4_44 = arith.constant 4 : index
    %c0_45 = arith.constant 0 : index
    %59 = vector.load %arg12[%c4_44, %c0_45] : memref<24x96xbf16, #tpu.memory_space<vmem>>, vector<16x96xbf16>
    %c1_46 = arith.constant 1 : index
    %c0_47 = arith.constant 0 : index
    %c0_48 = arith.constant 0 : index
    %60 = vector.load %arg5[%c1_46, %c0_47, %c0_48] : memref<3x96x64xbf16, #tpu.memory_space<vmem>>, vector<1x96x64xbf16>
    %61 = vector.shape_cast %60 : vector<1x96x64xbf16> to vector<96x64xbf16>
    %cst_49 = arith.constant dense<0.000000e+00> : vector<16x64xf32>
    %62 = tpu.matmul %59, %61, %cst_49 {dimension_numbers = #tpu.dot_dimension_numbers<[1], [0], [0], [1], [0, 0, 1, 1], [], []>} : vector<16x96xbf16>, vector<96x64xbf16>, vector<16x64xf32> -> vector<16x64xf32>
    %63 = arith.addf %58, %62 : vector<16x64xf32>
    %c8_50 = arith.constant 8 : index
    %c0_51 = arith.constant 0 : index
    %64 = vector.load %arg12[%c8_50, %c0_51] : memref<24x96xbf16, #tpu.memory_space<vmem>>, vector<16x96xbf16>
    %c2_52 = arith.constant 2 : index
    %c0_53 = arith.constant 0 : index
    %c0_54 = arith.constant 0 : index
    %65 = vector.load %arg5[%c2_52, %c0_53, %c0_54] : memref<3x96x64xbf16, #tpu.memory_space<vmem>>, vector<1x96x64xbf16>
    %66 = vector.shape_cast %65 : vector<1x96x64xbf16> to vector<96x64xbf16>
    %cst_55 = arith.constant dense<0.000000e+00> : vector<16x64xf32>
    %67 = tpu.matmul %64, %66, %cst_55 {dimension_numbers = #tpu.dot_dimension_numbers<[1], [0], [0], [1], [0, 0, 1, 1], [], []>} : vector<16x96xbf16>, vector<96x64xbf16>, vector<16x64xf32> -> vector<16x64xf32>
    %68 = arith.addf %63, %67 : vector<16x64xf32>
    %c0_56 = arith.constant 0 : index
    %c0_57 = arith.constant 0 : index
    %69 = vector.load %arg6[%c0_56, %c0_57] : memref<1x64xf32, #tpu.memory_space<vmem>>, vector<1x64xf32>
    %70 = vector.broadcast %69 : vector<1x64xf32> to vector<16x64xf32>
    %71 = arith.addf %68, %70 : vector<16x64xf32>
    %72 = arith.truncf %71 : vector<16x64xf32> to vector<16x64xbf16>
    %c0_58 = arith.constant 0 : index
    %c0_59 = arith.constant 0 : index
    %c0_60 = arith.constant 0 : index
    %73 = vector.load %arg8[%c0_58, %c0_59, %c0_60] : memref<1x16x64xbf16, #tpu.memory_space<vmem>>, vector<1x16x64xbf16>
    %74 = vector.shape_cast %73 : vector<1x16x64xbf16> to vector<16x64xbf16>
    %75 = vector.shape_cast %72 : vector<16x64xbf16> to vector<1x16x64xbf16>
    tpu.vector_store %arg8[%c0_58, %c0_59, %c0_60], %75 {strides = array<i32>} : memref<1x16x64xbf16, #tpu.memory_space<vmem>>, vector<1x16x64xbf16>,
    %cst_61 = arith.constant dense<0.000000e+00> : vector<64xf32>
    %76 = vector.multi_reduction <add>, %71, %cst_61 [0] : vector<16x64xf32> to vector<64xf32>
    %77 = vector.shape_cast %76 : vector<64xf32> to vector<1x64xf32>
    %c0_62 = arith.constant 0 : index
    %c0_63 = arith.constant 0 : index
    %c0_64 = arith.constant 0 : index
    %78 = vector.load %arg9[%c0_62, %c0_63, %c0_64] : memref<1x2x64xf32, #tpu.memory_space<vmem>>, vector<1x1x64xf32>
    %79 = vector.shape_cast %78 : vector<1x1x64xf32> to vector<1x64xf32>
    %80 = vector.shape_cast %77 : vector<1x64xf32> to vector<1x1x64xf32>
    tpu.vector_store %arg9[%c0_62, %c0_63, %c0_64], %80 {strides = array<i32>} : memref<1x2x64xf32, #tpu.memory_space<vmem>>, vector<1x1x64xf32>,
    %81 = arith.mulf %71, %71 : vector<16x64xf32>
    %cst_65 = arith.constant dense<0.000000e+00> : vector<64xf32>
    %82 = vector.multi_reduction <add>, %81, %cst_65 [0] : vector<16x64xf32> to vector<64xf32>
    %83 = vector.shape_cast %82 : vector<64xf32> to vector<1x64xf32>
    %c0_66 = arith.constant 0 : index
    %c1_67 = arith.constant 1 : index
    %c0_68 = arith.constant 0 : index
    %84 = vector.load %arg9[%c0_66, %c1_67, %c0_68] : memref<1x2x64xf32, #tpu.memory_space<vmem>>, vector<1x1x64xf32>
    %85 = vector.shape_cast %84 : vector<1x1x64xf32> to vector<1x64xf32>
    %86 = vector.shape_cast %83 : vector<1x64xf32> to vector<1x1x64xf32>
    tpu.vector_store %arg9[%c0_66, %c1_67, %c0_68], %86 {strides = array<i32>} : memref<1x2x64xf32, #tpu.memory_space<vmem>>, vector<1x1x64xf32>,
    return
  }
  func.func @transform_0(%arg0: i32) -> (i32, i32, i32) {
    %c0_i32 = arith.constant 0 : i32
    %c0_i32_0 = arith.constant 0 : i32
    %c0_i32_1 = arith.constant 0 : i32
    return %arg0, %c0_i32, %c0_i32_0 : i32, i32, i32
  }
  func.func @transform_1(%arg0: i32) -> (i32, i32) {
    %c0_i32 = arith.constant 0 : i32
    %c0_i32_0 = arith.constant 0 : i32
    %c0_i32_1 = arith.constant 0 : i32
    return %c0_i32, %c0_i32_0 : i32, i32
  }
  func.func @transform_2(%arg0: i32) -> (i32, i32) {
    %c0_i32 = arith.constant 0 : i32
    %c0_i32_0 = arith.constant 0 : i32
    %c0_i32_1 = arith.constant 0 : i32
    return %c0_i32, %c0_i32_0 : i32, i32
  }
  func.func @transform_3(%arg0: i32) -> (i32, i32) {
    %c0_i32 = arith.constant 0 : i32
    %c0_i32_0 = arith.constant 0 : i32
    %c0_i32_1 = arith.constant 0 : i32
    return %c0_i32, %c0_i32_0 : i32, i32
  }
  func.func @transform_4(%arg0: i32) -> (i32, i32, i32) {
    %c0_i32 = arith.constant 0 : i32
    %c0_i32_0 = arith.constant 0 : i32
    %c0_i32_1 = arith.constant 0 : i32
    %c0_i32_2 = arith.constant 0 : i32
    return %c0_i32, %c0_i32_0, %c0_i32_1 : i32, i32, i32
  }
  func.func @transform_5(%arg0: i32) -> (i32, i32) {
    %c0_i32 = arith.constant 0 : i32
    %c0_i32_0 = arith.constant 0 : i32
    %c0_i32_1 = arith.constant 0 : i32
    return %c0_i32, %c0_i32_0 : i32, i32
  }
  func.func @transform_6(%arg0: i32) -> (i32, i32, i32) {
    %c0_i32 = arith.constant 0 : i32
    %c0_i32_0 = arith.constant 0 : i32
    %c0_i32_1 = arith.constant 0 : i32
    return %arg0, %c0_i32, %c0_i32_0 : i32, i32, i32
  }
  func.func @transform_7(%arg0: i32) -> (i32, i32, i32) {
    %c0_i32 = arith.constant 0 : i32
    %c0_i32_0 = arith.constant 0 : i32
    %c0_i32_1 = arith.constant 0 : i32
    return %arg0, %c0_i32, %c0_i32_0 : i32, i32, i32
  }
  func.func @transform_8(%arg0: i32) -> (i32, i32, i32) {
    %c0_i32 = arith.constant 0 : i32
    %c0_i32_0 = arith.constant 0 : i32
    %c0_i32_1 = arith.constant 0 : i32
    return %arg0, %c0_i32, %c0_i32_0 : i32, i32, i32
  }
}

module attributes {stable_mosaic.version = 11 : i64} {
  func.func @kernel(%arg0: i32, %arg1: memref<1x16x64xbf16, #tpu.memory_space<vmem>>, %arg2: memref<1x64xf32, #tpu.memory_space<vmem>>, %arg3: memref<1x64xf32, #tpu.memory_space<vmem>>, %arg4: memref<4x2xf32, #tpu.memory_space<vmem>>, %arg5: memref<3x192x128xbf16, #tpu.memory_space<vmem>>, %arg6: memref<1x128xf32, #tpu.memory_space<vmem>>, %arg7: memref<1x16x64xf32, #tpu.memory_space<vmem>>, %arg8: memref<1x4x128xbf16, #tpu.memory_space<vmem>>, %arg9: memref<1x2x128xf32, #tpu.memory_space<vmem>>, %arg10: memref<8x64xf32, #tpu.memory_space<vmem>>, %arg11: memref<6x64xf32, #tpu.memory_space<vmem>>, %arg12: memref<8x192xbf16, #tpu.memory_space<vmem>>) attributes {dimension_semantics = [#tpu.dimension_semantics<parallel>], iteration_bounds = array<i64: 2>, scalar_prefetch = 0 : i64, scratch_operands = 3 : i64, tpu.core_type = #tpu.core_type<tc>, window_params = [{transform_indices = @transform_0, window_bounds = array<i64: 1, 16, 64>}, {pipeline_mode = #tpu.pipeline_mode<synchronous>, transform_indices = @transform_1, window_bounds = array<i64: 1, 64>}, {pipeline_mode = #tpu.pipeline_mode<synchronous>, transform_indices = @transform_2, window_bounds = array<i64: 1, 64>}, {pipeline_mode = #tpu.pipeline_mode<synchronous>, transform_indices = @transform_3, window_bounds = array<i64: 4, 2>}, {pipeline_mode = #tpu.pipeline_mode<synchronous>, transform_indices = @transform_4, window_bounds = array<i64: 3, 192, 128>}, {pipeline_mode = #tpu.pipeline_mode<synchronous>, transform_indices = @transform_5, window_bounds = array<i64: 1, 128>}, {transform_indices = @transform_6, window_bounds = array<i64: 1, 16, 64>}, {transform_indices = @transform_7, window_bounds = array<i64: 1, 4, 128>}, {transform_indices = @transform_8, window_bounds = array<i64: 1, 2, 128>}]} {
    %c0 = arith.constant 0 : index
    %c0_0 = arith.constant 0 : index
    %c0_1 = arith.constant 0 : index
    %0 = vector.load %arg1[%c0, %c0_0, %c0_1] : memref<1x16x64xbf16, #tpu.memory_space<vmem>>, vector<1x16x64xbf16>
    %1 = vector.shape_cast %0 : vector<1x16x64xbf16> to vector<16x64xbf16>
    %2 = arith.extf %1 : vector<16x64xbf16> to vector<16x64xf32>
    %c0_2 = arith.constant 0 : index
    %c0_3 = arith.constant 0 : index
    %3 = vector.load %arg2[%c0_2, %c0_3] : memref<1x64xf32, #tpu.memory_space<vmem>>, vector<1x64xf32>
    %4 = vector.broadcast %3 : vector<1x64xf32> to vector<16x64xf32>
    %5 = arith.mulf %2, %4 : vector<16x64xf32>
    %c0_4 = arith.constant 0 : index
    %c0_5 = arith.constant 0 : index
    %6 = vector.load %arg3[%c0_4, %c0_5] : memref<1x64xf32, #tpu.memory_space<vmem>>, vector<1x64xf32>
    %7 = vector.broadcast %6 : vector<1x64xf32> to vector<16x64xf32>
    %8 = arith.addf %5, %7 : vector<16x64xf32>
    %cst = arith.constant 0.000000e+00 : f32
    %9 = vector.broadcast %cst : f32 to vector<16x64xf32>
    %10 = arith.maximumf %8, %9 : vector<16x64xf32>
    %c0_6 = arith.constant 0 : index
    %c0_7 = arith.constant 0 : index
    %c0_8 = arith.constant 0 : index
    %11 = vector.load %arg7[%c0_6, %c0_7, %c0_8] : memref<1x16x64xf32, #tpu.memory_space<vmem>>, vector<1x16x64xf32>
    %12 = vector.shape_cast %11 : vector<1x16x64xf32> to vector<16x64xf32>
    %13 = vector.shape_cast %10 : vector<16x64xf32> to vector<1x16x64xf32>
    tpu.vector_store %arg7[%c0_6, %c0_7, %c0_8], %13 {strides = array<i32>} : memref<1x16x64xf32, #tpu.memory_space<vmem>>, vector<1x16x64xf32>,
    %14 = vector.extract_strided_slice %10 {offsets = [0, 0], sizes = [4, 64], strides = [1, 1]} : vector<16x64xf32> to vector<4x64xf32>
    %15 = vector.extract_strided_slice %10 {offsets = [4, 0], sizes = [4, 64], strides = [1, 1]} : vector<16x64xf32> to vector<4x64xf32>
    %16 = arith.maximumf %14, %15 : vector<4x64xf32>
    %c0_9 = arith.constant 0 : index
    %c0_10 = arith.constant 0 : index
    %17 = vector.load %arg10[%c0_9, %c0_10] : memref<8x64xf32, #tpu.memory_space<vmem>>, vector<4x64xf32>
    tpu.vector_store %arg10[%c0_9, %c0_10], %16 {strides = array<i32>} : memref<8x64xf32, #tpu.memory_space<vmem>>, vector<4x64xf32>,
    %18 = vector.extract_strided_slice %10 {offsets = [8, 0], sizes = [4, 64], strides = [1, 1]} : vector<16x64xf32> to vector<4x64xf32>
    %19 = vector.extract_strided_slice %10 {offsets = [12, 0], sizes = [4, 64], strides = [1, 1]} : vector<16x64xf32> to vector<4x64xf32>
    %20 = arith.maximumf %18, %19 : vector<4x64xf32>
    %c4 = arith.constant 4 : index
    %c0_11 = arith.constant 0 : index
    %21 = vector.load %arg10[%c4, %c0_11] : memref<8x64xf32, #tpu.memory_space<vmem>>, vector<4x64xf32>
    tpu.vector_store %arg10[%c4, %c0_11], %20 {strides = array<i32>} : memref<8x64xf32, #tpu.memory_space<vmem>>, vector<4x64xf32>,
    %c0_12 = arith.constant 0 : index
    %c0_13 = arith.constant 0 : index
    %22 = tpu.strided_load %arg10[%c0_12, %c0_13] {strides = array<i32: 2, 1>} : memref<8x64xf32, #tpu.memory_space<vmem>>, vector<4x64xf32>
    %c1 = arith.constant 1 : index
    %c0_14 = arith.constant 0 : index
    %23 = tpu.strided_load %arg10[%c1, %c0_14] {strides = array<i32: 2, 1>} : memref<8x64xf32, #tpu.memory_space<vmem>>, vector<4x64xf32>
    %24 = arith.maximumf %22, %23 : vector<4x64xf32>
    %cst_15 = arith.constant 0.000000e+00 : f32
    %25 = vector.broadcast %cst_15 : f32 to vector<1x64xf32>
    %c0_16 = arith.constant 0 : index
    %c0_17 = arith.constant 0 : index
    %26 = vector.load %arg11[%c0_16, %c0_17] : memref<6x64xf32, #tpu.memory_space<vmem>>, vector<1x64xf32>
    tpu.vector_store %arg11[%c0_16, %c0_17], %25 {strides = array<i32>} : memref<6x64xf32, #tpu.memory_space<vmem>>, vector<1x64xf32>,
    %cst_18 = arith.constant 0.000000e+00 : f32
    %27 = vector.broadcast %cst_18 : f32 to vector<1x64xf32>
    %c5 = arith.constant 5 : index
    %c0_19 = arith.constant 0 : index
    %28 = vector.load %arg11[%c5, %c0_19] : memref<6x64xf32, #tpu.memory_space<vmem>>, vector<1x64xf32>
    tpu.vector_store %arg11[%c5, %c0_19], %27 {strides = array<i32>} : memref<6x64xf32, #tpu.memory_space<vmem>>, vector<1x64xf32>,
    %c1_20 = arith.constant 1 : index
    %c0_21 = arith.constant 0 : index
    %29 = vector.load %arg11[%c1_20, %c0_21] : memref<6x64xf32, #tpu.memory_space<vmem>>, vector<4x64xf32>
    tpu.vector_store %arg11[%c1_20, %c0_21], %24 {strides = array<i32>} : memref<6x64xf32, #tpu.memory_space<vmem>>, vector<4x64xf32>,
    %c0_22 = arith.constant 0 : index
    %c0_23 = arith.constant 0 : index
    %30 = vector.load %arg4[%c0_22, %c0_23] : memref<4x2xf32, #tpu.memory_space<vmem>>, vector<4x1xf32>
    %c0_24 = arith.constant 0 : index
    %c1_25 = arith.constant 1 : index
    %31 = vector.load %arg4[%c0_24, %c1_25] : memref<4x2xf32, #tpu.memory_space<vmem>>, vector<4x1xf32>
    %c0_26 = arith.constant 0 : index
    %c0_27 = arith.constant 0 : index
    %32 = vector.load %arg11[%c0_26, %c0_27] : memref<6x64xf32, #tpu.memory_space<vmem>>, vector<4x64xf32>
    %33 = vector.broadcast %30 : vector<4x1xf32> to vector<4x64xf32>
    %34 = arith.mulf %32, %33 : vector<4x64xf32>
    %c2 = arith.constant 2 : index
    %c0_28 = arith.constant 0 : index
    %35 = vector.load %arg11[%c2, %c0_28] : memref<6x64xf32, #tpu.memory_space<vmem>>, vector<4x64xf32>
    %36 = vector.broadcast %31 : vector<4x1xf32> to vector<4x64xf32>
    %37 = arith.mulf %35, %36 : vector<4x64xf32>
    %38 = tpu.concatenate %34, %24, %37 in 1 : vector<4x64xf32>, vector<4x64xf32>, vector<4x64xf32> -> vector<4x192xf32>
    %39 = arith.truncf %38 : vector<4x192xf32> to vector<4x192xbf16>
    %cst_29 = arith.constant 0.000000e+00 : bf16
    %40 = vector.broadcast %cst_29 : bf16 to vector<2x192xbf16>
    %c0_30 = arith.constant 0 : index
    %c0_31 = arith.constant 0 : index
    %41 = vector.load %arg12[%c0_30, %c0_31] : memref<8x192xbf16, #tpu.memory_space<vmem>>, vector<2x192xbf16>
    tpu.vector_store %arg12[%c0_30, %c0_31], %40 {strides = array<i32>} : memref<8x192xbf16, #tpu.memory_space<vmem>>, vector<2x192xbf16>,
    %cst_32 = arith.constant 0.000000e+00 : bf16
    %42 = vector.broadcast %cst_32 : bf16 to vector<2x192xbf16>
    %c6 = arith.constant 6 : index
    %c0_33 = arith.constant 0 : index
    %43 = vector.load %arg12[%c6, %c0_33] : memref<8x192xbf16, #tpu.memory_space<vmem>>, vector<2x192xbf16>
    tpu.vector_store %arg12[%c6, %c0_33], %42 {strides = array<i32>} : memref<8x192xbf16, #tpu.memory_space<vmem>>, vector<2x192xbf16>,
    %c2_34 = arith.constant 2 : index
    %c0_35 = arith.constant 0 : index
    %44 = vector.load %arg12[%c2_34, %c0_35] : memref<8x192xbf16, #tpu.memory_space<vmem>>, vector<4x192xbf16>
    tpu.vector_store %arg12[%c2_34, %c0_35], %39 {strides = array<i32>} : memref<8x192xbf16, #tpu.memory_space<vmem>>, vector<4x192xbf16>,
    %cst_36 = arith.constant 0.000000e+00 : f32
    %45 = vector.broadcast %cst_36 : f32 to vector<4x128xf32>
    %c0_37 = arith.constant 0 : index
    %c0_38 = arith.constant 0 : index
    %46 = vector.load %arg12[%c0_37, %c0_38] : memref<8x192xbf16, #tpu.memory_space<vmem>>, vector<4x192xbf16>
    %c0_39 = arith.constant 0 : index
    %c0_40 = arith.constant 0 : index
    %c0_41 = arith.constant 0 : index
    %47 = vector.load %arg5[%c0_39, %c0_40, %c0_41] : memref<3x192x128xbf16, #tpu.memory_space<vmem>>, vector<1x192x128xbf16>
    %48 = vector.shape_cast %47 : vector<1x192x128xbf16> to vector<192x128xbf16>
    %cst_42 = arith.constant dense<0.000000e+00> : vector<4x128xf32>
    %49 = tpu.matmul %46, %48, %cst_42 {dimension_numbers = #tpu.dot_dimension_numbers<[1], [0], [0], [1], [0, 0, 1, 1], [], []>} : vector<4x192xbf16>, vector<192x128xbf16>, vector<4x128xf32> -> vector<4x128xf32>
    %50 = arith.addf %45, %49 : vector<4x128xf32>
    %c2_43 = arith.constant 2 : index
    %c0_44 = arith.constant 0 : index
    %51 = vector.load %arg12[%c2_43, %c0_44] : memref<8x192xbf16, #tpu.memory_space<vmem>>, vector<4x192xbf16>
    %c1_45 = arith.constant 1 : index
    %c0_46 = arith.constant 0 : index
    %c0_47 = arith.constant 0 : index
    %52 = vector.load %arg5[%c1_45, %c0_46, %c0_47] : memref<3x192x128xbf16, #tpu.memory_space<vmem>>, vector<1x192x128xbf16>
    %53 = vector.shape_cast %52 : vector<1x192x128xbf16> to vector<192x128xbf16>
    %cst_48 = arith.constant dense<0.000000e+00> : vector<4x128xf32>
    %54 = tpu.matmul %51, %53, %cst_48 {dimension_numbers = #tpu.dot_dimension_numbers<[1], [0], [0], [1], [0, 0, 1, 1], [], []>} : vector<4x192xbf16>, vector<192x128xbf16>, vector<4x128xf32> -> vector<4x128xf32>
    %55 = arith.addf %50, %54 : vector<4x128xf32>
    %c4_49 = arith.constant 4 : index
    %c0_50 = arith.constant 0 : index
    %56 = vector.load %arg12[%c4_49, %c0_50] : memref<8x192xbf16, #tpu.memory_space<vmem>>, vector<4x192xbf16>
    %c2_51 = arith.constant 2 : index
    %c0_52 = arith.constant 0 : index
    %c0_53 = arith.constant 0 : index
    %57 = vector.load %arg5[%c2_51, %c0_52, %c0_53] : memref<3x192x128xbf16, #tpu.memory_space<vmem>>, vector<1x192x128xbf16>
    %58 = vector.shape_cast %57 : vector<1x192x128xbf16> to vector<192x128xbf16>
    %cst_54 = arith.constant dense<0.000000e+00> : vector<4x128xf32>
    %59 = tpu.matmul %56, %58, %cst_54 {dimension_numbers = #tpu.dot_dimension_numbers<[1], [0], [0], [1], [0, 0, 1, 1], [], []>} : vector<4x192xbf16>, vector<192x128xbf16>, vector<4x128xf32> -> vector<4x128xf32>
    %60 = arith.addf %55, %59 : vector<4x128xf32>
    %c0_55 = arith.constant 0 : index
    %c0_56 = arith.constant 0 : index
    %61 = vector.load %arg6[%c0_55, %c0_56] : memref<1x128xf32, #tpu.memory_space<vmem>>, vector<1x128xf32>
    %62 = vector.broadcast %61 : vector<1x128xf32> to vector<4x128xf32>
    %63 = arith.addf %60, %62 : vector<4x128xf32>
    %64 = arith.truncf %63 : vector<4x128xf32> to vector<4x128xbf16>
    %c0_57 = arith.constant 0 : index
    %c0_58 = arith.constant 0 : index
    %c0_59 = arith.constant 0 : index
    %65 = vector.load %arg8[%c0_57, %c0_58, %c0_59] : memref<1x4x128xbf16, #tpu.memory_space<vmem>>, vector<1x4x128xbf16>
    %66 = vector.shape_cast %65 : vector<1x4x128xbf16> to vector<4x128xbf16>
    %67 = vector.shape_cast %64 : vector<4x128xbf16> to vector<1x4x128xbf16>
    tpu.vector_store %arg8[%c0_57, %c0_58, %c0_59], %67 {strides = array<i32>} : memref<1x4x128xbf16, #tpu.memory_space<vmem>>, vector<1x4x128xbf16>,
    %cst_60 = arith.constant dense<0.000000e+00> : vector<128xf32>
    %68 = vector.multi_reduction <add>, %63, %cst_60 [0] : vector<4x128xf32> to vector<128xf32>
    %69 = vector.shape_cast %68 : vector<128xf32> to vector<1x128xf32>
    %c0_61 = arith.constant 0 : index
    %c0_62 = arith.constant 0 : index
    %c0_63 = arith.constant 0 : index
    %70 = vector.load %arg9[%c0_61, %c0_62, %c0_63] : memref<1x2x128xf32, #tpu.memory_space<vmem>>, vector<1x1x128xf32>
    %71 = vector.shape_cast %70 : vector<1x1x128xf32> to vector<1x128xf32>
    %72 = vector.shape_cast %69 : vector<1x128xf32> to vector<1x1x128xf32>
    tpu.vector_store %arg9[%c0_61, %c0_62, %c0_63], %72 {strides = array<i32>} : memref<1x2x128xf32, #tpu.memory_space<vmem>>, vector<1x1x128xf32>,
    %73 = arith.mulf %63, %63 : vector<4x128xf32>
    %cst_64 = arith.constant dense<0.000000e+00> : vector<128xf32>
    %74 = vector.multi_reduction <add>, %73, %cst_64 [0] : vector<4x128xf32> to vector<128xf32>
    %75 = vector.shape_cast %74 : vector<128xf32> to vector<1x128xf32>
    %c0_65 = arith.constant 0 : index
    %c1_66 = arith.constant 1 : index
    %c0_67 = arith.constant 0 : index
    %76 = vector.load %arg9[%c0_65, %c1_66, %c0_67] : memref<1x2x128xf32, #tpu.memory_space<vmem>>, vector<1x1x128xf32>
    %77 = vector.shape_cast %76 : vector<1x1x128xf32> to vector<1x128xf32>
    %78 = vector.shape_cast %75 : vector<1x128xf32> to vector<1x1x128xf32>
    tpu.vector_store %arg9[%c0_65, %c1_66, %c0_67], %78 {strides = array<i32>} : memref<1x2x128xf32, #tpu.memory_space<vmem>>, vector<1x1x128xf32>,
    return
  }
  func.func @transform_0(%arg0: i32) -> (i32, i32, i32) {
    %c0_i32 = arith.constant 0 : i32
    %c0_i32_0 = arith.constant 0 : i32
    %c0_i32_1 = arith.constant 0 : i32
    return %arg0, %c0_i32, %c0_i32_0 : i32, i32, i32
  }
  func.func @transform_1(%arg0: i32) -> (i32, i32) {
    %c0_i32 = arith.constant 0 : i32
    %c0_i32_0 = arith.constant 0 : i32
    %c0_i32_1 = arith.constant 0 : i32
    return %c0_i32, %c0_i32_0 : i32, i32
  }
  func.func @transform_2(%arg0: i32) -> (i32, i32) {
    %c0_i32 = arith.constant 0 : i32
    %c0_i32_0 = arith.constant 0 : i32
    %c0_i32_1 = arith.constant 0 : i32
    return %c0_i32, %c0_i32_0 : i32, i32
  }
  func.func @transform_3(%arg0: i32) -> (i32, i32) {
    %c0_i32 = arith.constant 0 : i32
    %c0_i32_0 = arith.constant 0 : i32
    %c0_i32_1 = arith.constant 0 : i32
    return %c0_i32, %c0_i32_0 : i32, i32
  }
  func.func @transform_4(%arg0: i32) -> (i32, i32, i32) {
    %c0_i32 = arith.constant 0 : i32
    %c0_i32_0 = arith.constant 0 : i32
    %c0_i32_1 = arith.constant 0 : i32
    %c0_i32_2 = arith.constant 0 : i32
    return %c0_i32, %c0_i32_0, %c0_i32_1 : i32, i32, i32
  }
  func.func @transform_5(%arg0: i32) -> (i32, i32) {
    %c0_i32 = arith.constant 0 : i32
    %c0_i32_0 = arith.constant 0 : i32
    %c0_i32_1 = arith.constant 0 : i32
    return %c0_i32, %c0_i32_0 : i32, i32
  }
  func.func @transform_6(%arg0: i32) -> (i32, i32, i32) {
    %c0_i32 = arith.constant 0 : i32
    %c0_i32_0 = arith.constant 0 : i32
    %c0_i32_1 = arith.constant 0 : i32
    return %arg0, %c0_i32, %c0_i32_0 : i32, i32, i32
  }
  func.func @transform_7(%arg0: i32) -> (i32, i32, i32) {
    %c0_i32 = arith.constant 0 : i32
    %c0_i32_0 = arith.constant 0 : i32
    %c0_i32_1 = arith.constant 0 : i32
    return %arg0, %c0_i32, %c0_i32_0 : i32, i32, i32
  }
  func.func @transform_8(%arg0: i32) -> (i32, i32, i32) {
    %c0_i32 = arith.constant 0 : i32
    %c0_i32_0 = arith.constant 0 : i32
    %c0_i32_1 = arith.constant 0 : i32
    return %arg0, %c0_i32, %c0_i32_0 : i32, i32, i32
  }
}

module attributes {stable_mosaic.version = 11 : i64} {
  func.func @kernel(%arg0: i32, %arg1: memref<1x4x128xbf16, #tpu.memory_space<vmem>>, %arg2: memref<4x2xf32, #tpu.memory_space<vmem>>, %arg3: memref<3x384x128xbf16, #tpu.memory_space<vmem>>, %arg4: memref<1x128xf32, #tpu.memory_space<vmem>>, %arg5: memref<1x128xf32, #tpu.memory_space<vmem>>, %arg6: memref<1x128xf32, #tpu.memory_space<vmem>>, %arg7: memref<1x4x128xbf16, #tpu.memory_space<vmem>>, %arg8: memref<1x2x128xf32, #tpu.memory_space<vmem>>, %arg9: memref<6x128xf32, #tpu.memory_space<vmem>>, %arg10: memref<8x384xbf16, #tpu.memory_space<vmem>>) attributes {dimension_semantics = [#tpu.dimension_semantics<parallel>], iteration_bounds = array<i64: 2>, scalar_prefetch = 0 : i64, scratch_operands = 2 : i64, tpu.core_type = #tpu.core_type<tc>, window_params = [{transform_indices = @transform_0, window_bounds = array<i64: 1, 4, 128>}, {pipeline_mode = #tpu.pipeline_mode<synchronous>, transform_indices = @transform_1, window_bounds = array<i64: 4, 2>}, {pipeline_mode = #tpu.pipeline_mode<synchronous>, transform_indices = @transform_2, window_bounds = array<i64: 3, 384, 128>}, {pipeline_mode = #tpu.pipeline_mode<synchronous>, transform_indices = @transform_3, window_bounds = array<i64: 1, 128>}, {pipeline_mode = #tpu.pipeline_mode<synchronous>, transform_indices = @transform_4, window_bounds = array<i64: 1, 128>}, {pipeline_mode = #tpu.pipeline_mode<synchronous>, transform_indices = @transform_5, window_bounds = array<i64: 1, 128>}, {transform_indices = @transform_6, window_bounds = array<i64: 1, 4, 128>}, {transform_indices = @transform_7, window_bounds = array<i64: 1, 2, 128>}]} {
    %c0 = arith.constant 0 : index
    %c0_0 = arith.constant 0 : index
    %c0_1 = arith.constant 0 : index
    %0 = vector.load %arg1[%c0, %c0_0, %c0_1] : memref<1x4x128xbf16, #tpu.memory_space<vmem>>, vector<1x4x128xbf16>
    %1 = vector.shape_cast %0 : vector<1x4x128xbf16> to vector<4x128xbf16>
    %2 = arith.extf %1 : vector<4x128xbf16> to vector<4x128xf32>
    %c0_2 = arith.constant 0 : index
    %c0_3 = arith.constant 0 : index
    %3 = vector.load %arg5[%c0_2, %c0_3] : memref<1x128xf32, #tpu.memory_space<vmem>>, vector<1x128xf32>
    %4 = vector.broadcast %3 : vector<1x128xf32> to vector<4x128xf32>
    %5 = arith.mulf %2, %4 : vector<4x128xf32>
    %c0_4 = arith.constant 0 : index
    %c0_5 = arith.constant 0 : index
    %6 = vector.load %arg6[%c0_4, %c0_5] : memref<1x128xf32, #tpu.memory_space<vmem>>, vector<1x128xf32>
    %7 = vector.broadcast %6 : vector<1x128xf32> to vector<4x128xf32>
    %8 = arith.addf %5, %7 : vector<4x128xf32>
    %cst = arith.constant 0.000000e+00 : f32
    %9 = vector.broadcast %cst : f32 to vector<4x128xf32>
    %10 = arith.maximumf %8, %9 : vector<4x128xf32>
    %cst_6 = arith.constant 0.000000e+00 : f32
    %11 = vector.broadcast %cst_6 : f32 to vector<1x128xf32>
    %c0_7 = arith.constant 0 : index
    %c0_8 = arith.constant 0 : index
    %12 = vector.load %arg9[%c0_7, %c0_8] : memref<6x128xf32, #tpu.memory_space<vmem>>, vector<1x128xf32>
    tpu.vector_store %arg9[%c0_7, %c0_8], %11 {strides = array<i32>} : memref<6x128xf32, #tpu.memory_space<vmem>>, vector<1x128xf32>,
    %cst_9 = arith.constant 0.000000e+00 : f32
    %13 = vector.broadcast %cst_9 : f32 to vector<1x128xf32>
    %c5 = arith.constant 5 : index
    %c0_10 = arith.constant 0 : index
    %14 = vector.load %arg9[%c5, %c0_10] : memref<6x128xf32, #tpu.memory_space<vmem>>, vector<1x128xf32>
    tpu.vector_store %arg9[%c5, %c0_10], %13 {strides = array<i32>} : memref<6x128xf32, #tpu.memory_space<vmem>>, vector<1x128xf32>,
    %c1 = arith.constant 1 : index
    %c0_11 = arith.constant 0 : index
    %15 = vector.load %arg9[%c1, %c0_11] : memref<6x128xf32, #tpu.memory_space<vmem>>, vector<4x128xf32>
    tpu.vector_store %arg9[%c1, %c0_11], %10 {strides = array<i32>} : memref<6x128xf32, #tpu.memory_space<vmem>>, vector<4x128xf32>,
    %c0_12 = arith.constant 0 : index
    %c0_13 = arith.constant 0 : index
    %16 = vector.load %arg2[%c0_12, %c0_13] : memref<4x2xf32, #tpu.memory_space<vmem>>, vector<4x1xf32>
    %c0_14 = arith.constant 0 : index
    %c1_15 = arith.constant 1 : index
    %17 = vector.load %arg2[%c0_14, %c1_15] : memref<4x2xf32, #tpu.memory_space<vmem>>, vector<4x1xf32>
    %c0_16 = arith.constant 0 : index
    %c0_17 = arith.constant 0 : index
    %18 = vector.load %arg9[%c0_16, %c0_17] : memref<6x128xf32, #tpu.memory_space<vmem>>, vector<4x128xf32>
    %19 = vector.broadcast %16 : vector<4x1xf32> to vector<4x128xf32>
    %20 = arith.mulf %18, %19 : vector<4x128xf32>
    %c2 = arith.constant 2 : index
    %c0_18 = arith.constant 0 : index
    %21 = vector.load %arg9[%c2, %c0_18] : memref<6x128xf32, #tpu.memory_space<vmem>>, vector<4x128xf32>
    %22 = vector.broadcast %17 : vector<4x1xf32> to vector<4x128xf32>
    %23 = arith.mulf %21, %22 : vector<4x128xf32>
    %24 = tpu.concatenate %20, %10, %23 in 1 : vector<4x128xf32>, vector<4x128xf32>, vector<4x128xf32> -> vector<4x384xf32>
    %25 = arith.truncf %24 : vector<4x384xf32> to vector<4x384xbf16>
    %cst_19 = arith.constant 0.000000e+00 : bf16
    %26 = vector.broadcast %cst_19 : bf16 to vector<2x384xbf16>
    %c0_20 = arith.constant 0 : index
    %c0_21 = arith.constant 0 : index
    %27 = vector.load %arg10[%c0_20, %c0_21] : memref<8x384xbf16, #tpu.memory_space<vmem>>, vector<2x384xbf16>
    tpu.vector_store %arg10[%c0_20, %c0_21], %26 {strides = array<i32>} : memref<8x384xbf16, #tpu.memory_space<vmem>>, vector<2x384xbf16>,
    %cst_22 = arith.constant 0.000000e+00 : bf16
    %28 = vector.broadcast %cst_22 : bf16 to vector<2x384xbf16>
    %c6 = arith.constant 6 : index
    %c0_23 = arith.constant 0 : index
    %29 = vector.load %arg10[%c6, %c0_23] : memref<8x384xbf16, #tpu.memory_space<vmem>>, vector<2x384xbf16>
    tpu.vector_store %arg10[%c6, %c0_23], %28 {strides = array<i32>} : memref<8x384xbf16, #tpu.memory_space<vmem>>, vector<2x384xbf16>,
    %c2_24 = arith.constant 2 : index
    %c0_25 = arith.constant 0 : index
    %30 = vector.load %arg10[%c2_24, %c0_25] : memref<8x384xbf16, #tpu.memory_space<vmem>>, vector<4x384xbf16>
    tpu.vector_store %arg10[%c2_24, %c0_25], %25 {strides = array<i32>} : memref<8x384xbf16, #tpu.memory_space<vmem>>, vector<4x384xbf16>,
    %cst_26 = arith.constant 0.000000e+00 : f32
    %31 = vector.broadcast %cst_26 : f32 to vector<4x128xf32>
    %c0_27 = arith.constant 0 : index
    %c0_28 = arith.constant 0 : index
    %32 = vector.load %arg10[%c0_27, %c0_28] : memref<8x384xbf16, #tpu.memory_space<vmem>>, vector<4x384xbf16>
    %c0_29 = arith.constant 0 : index
    %c0_30 = arith.constant 0 : index
    %c0_31 = arith.constant 0 : index
    %33 = vector.load %arg3[%c0_29, %c0_30, %c0_31] : memref<3x384x128xbf16, #tpu.memory_space<vmem>>, vector<1x384x128xbf16>
    %34 = vector.shape_cast %33 : vector<1x384x128xbf16> to vector<384x128xbf16>
    %cst_32 = arith.constant dense<0.000000e+00> : vector<4x128xf32>
    %35 = tpu.matmul %32, %34, %cst_32 {dimension_numbers = #tpu.dot_dimension_numbers<[1], [0], [0], [1], [0, 0, 1, 1], [], []>} : vector<4x384xbf16>, vector<384x128xbf16>, vector<4x128xf32> -> vector<4x128xf32>
    %36 = arith.addf %31, %35 : vector<4x128xf32>
    %c2_33 = arith.constant 2 : index
    %c0_34 = arith.constant 0 : index
    %37 = vector.load %arg10[%c2_33, %c0_34] : memref<8x384xbf16, #tpu.memory_space<vmem>>, vector<4x384xbf16>
    %c1_35 = arith.constant 1 : index
    %c0_36 = arith.constant 0 : index
    %c0_37 = arith.constant 0 : index
    %38 = vector.load %arg3[%c1_35, %c0_36, %c0_37] : memref<3x384x128xbf16, #tpu.memory_space<vmem>>, vector<1x384x128xbf16>
    %39 = vector.shape_cast %38 : vector<1x384x128xbf16> to vector<384x128xbf16>
    %cst_38 = arith.constant dense<0.000000e+00> : vector<4x128xf32>
    %40 = tpu.matmul %37, %39, %cst_38 {dimension_numbers = #tpu.dot_dimension_numbers<[1], [0], [0], [1], [0, 0, 1, 1], [], []>} : vector<4x384xbf16>, vector<384x128xbf16>, vector<4x128xf32> -> vector<4x128xf32>
    %41 = arith.addf %36, %40 : vector<4x128xf32>
    %c4 = arith.constant 4 : index
    %c0_39 = arith.constant 0 : index
    %42 = vector.load %arg10[%c4, %c0_39] : memref<8x384xbf16, #tpu.memory_space<vmem>>, vector<4x384xbf16>
    %c2_40 = arith.constant 2 : index
    %c0_41 = arith.constant 0 : index
    %c0_42 = arith.constant 0 : index
    %43 = vector.load %arg3[%c2_40, %c0_41, %c0_42] : memref<3x384x128xbf16, #tpu.memory_space<vmem>>, vector<1x384x128xbf16>
    %44 = vector.shape_cast %43 : vector<1x384x128xbf16> to vector<384x128xbf16>
    %cst_43 = arith.constant dense<0.000000e+00> : vector<4x128xf32>
    %45 = tpu.matmul %42, %44, %cst_43 {dimension_numbers = #tpu.dot_dimension_numbers<[1], [0], [0], [1], [0, 0, 1, 1], [], []>} : vector<4x384xbf16>, vector<384x128xbf16>, vector<4x128xf32> -> vector<4x128xf32>
    %46 = arith.addf %41, %45 : vector<4x128xf32>
    %c0_44 = arith.constant 0 : index
    %c0_45 = arith.constant 0 : index
    %47 = vector.load %arg4[%c0_44, %c0_45] : memref<1x128xf32, #tpu.memory_space<vmem>>, vector<1x128xf32>
    %48 = vector.broadcast %47 : vector<1x128xf32> to vector<4x128xf32>
    %49 = arith.addf %46, %48 : vector<4x128xf32>
    %50 = arith.truncf %49 : vector<4x128xf32> to vector<4x128xbf16>
    %c0_46 = arith.constant 0 : index
    %c0_47 = arith.constant 0 : index
    %c0_48 = arith.constant 0 : index
    %51 = vector.load %arg7[%c0_46, %c0_47, %c0_48] : memref<1x4x128xbf16, #tpu.memory_space<vmem>>, vector<1x4x128xbf16>
    %52 = vector.shape_cast %51 : vector<1x4x128xbf16> to vector<4x128xbf16>
    %53 = vector.shape_cast %50 : vector<4x128xbf16> to vector<1x4x128xbf16>
    tpu.vector_store %arg7[%c0_46, %c0_47, %c0_48], %53 {strides = array<i32>} : memref<1x4x128xbf16, #tpu.memory_space<vmem>>, vector<1x4x128xbf16>,
    %cst_49 = arith.constant dense<0.000000e+00> : vector<128xf32>
    %54 = vector.multi_reduction <add>, %49, %cst_49 [0] : vector<4x128xf32> to vector<128xf32>
    %55 = vector.shape_cast %54 : vector<128xf32> to vector<1x128xf32>
    %c0_50 = arith.constant 0 : index
    %c0_51 = arith.constant 0 : index
    %c0_52 = arith.constant 0 : index
    %56 = vector.load %arg8[%c0_50, %c0_51, %c0_52] : memref<1x2x128xf32, #tpu.memory_space<vmem>>, vector<1x1x128xf32>
    %57 = vector.shape_cast %56 : vector<1x1x128xf32> to vector<1x128xf32>
    %58 = vector.shape_cast %55 : vector<1x128xf32> to vector<1x1x128xf32>
    tpu.vector_store %arg8[%c0_50, %c0_51, %c0_52], %58 {strides = array<i32>} : memref<1x2x128xf32, #tpu.memory_space<vmem>>, vector<1x1x128xf32>,
    %59 = arith.mulf %49, %49 : vector<4x128xf32>
    %cst_53 = arith.constant dense<0.000000e+00> : vector<128xf32>
    %60 = vector.multi_reduction <add>, %59, %cst_53 [0] : vector<4x128xf32> to vector<128xf32>
    %61 = vector.shape_cast %60 : vector<128xf32> to vector<1x128xf32>
    %c0_54 = arith.constant 0 : index
    %c1_55 = arith.constant 1 : index
    %c0_56 = arith.constant 0 : index
    %62 = vector.load %arg8[%c0_54, %c1_55, %c0_56] : memref<1x2x128xf32, #tpu.memory_space<vmem>>, vector<1x1x128xf32>
    %63 = vector.shape_cast %62 : vector<1x1x128xf32> to vector<1x128xf32>
    %64 = vector.shape_cast %61 : vector<1x128xf32> to vector<1x1x128xf32>
    tpu.vector_store %arg8[%c0_54, %c1_55, %c0_56], %64 {strides = array<i32>} : memref<1x2x128xf32, #tpu.memory_space<vmem>>, vector<1x1x128xf32>,
    return
  }
  func.func @transform_0(%arg0: i32) -> (i32, i32, i32) {
    %c0_i32 = arith.constant 0 : i32
    %c0_i32_0 = arith.constant 0 : i32
    %c0_i32_1 = arith.constant 0 : i32
    return %arg0, %c0_i32, %c0_i32_0 : i32, i32, i32
  }
  func.func @transform_1(%arg0: i32) -> (i32, i32) {
    %c0_i32 = arith.constant 0 : i32
    %c0_i32_0 = arith.constant 0 : i32
    %c0_i32_1 = arith.constant 0 : i32
    return %c0_i32, %c0_i32_0 : i32, i32
  }
  func.func @transform_2(%arg0: i32) -> (i32, i32, i32) {
    %c0_i32 = arith.constant 0 : i32
    %c0_i32_0 = arith.constant 0 : i32
    %c0_i32_1 = arith.constant 0 : i32
    %c0_i32_2 = arith.constant 0 : i32
    return %c0_i32, %c0_i32_0, %c0_i32_1 : i32, i32, i32
  }
  func.func @transform_3(%arg0: i32) -> (i32, i32) {
    %c0_i32 = arith.constant 0 : i32
    %c0_i32_0 = arith.constant 0 : i32
    %c0_i32_1 = arith.constant 0 : i32
    return %c0_i32, %c0_i32_0 : i32, i32
  }
  func.func @transform_4(%arg0: i32) -> (i32, i32) {
    %c0_i32 = arith.constant 0 : i32
    %c0_i32_0 = arith.constant 0 : i32
    %c0_i32_1 = arith.constant 0 : i32
    return %c0_i32, %c0_i32_0 : i32, i32
  }
  func.func @transform_5(%arg0: i32) -> (i32, i32) {
    %c0_i32 = arith.constant 0 : i32
    %c0_i32_0 = arith.constant 0 : i32
    %c0_i32_1 = arith.constant 0 : i32
    return %c0_i32, %c0_i32_0 : i32, i32
  }
  func.func @transform_6(%arg0: i32) -> (i32, i32, i32) {
    %c0_i32 = arith.constant 0 : i32
    %c0_i32_0 = arith.constant 0 : i32
    %c0_i32_1 = arith.constant 0 : i32
    return %arg0, %c0_i32, %c0_i32_0 : i32, i32, i32
  }
  func.func @transform_7(%arg0: i32) -> (i32, i32, i32) {
    %c0_i32 = arith.constant 0 : i32
    %c0_i32_0 = arith.constant 0 : i32
    %c0_i32_1 = arith.constant 0 : i32
    return %arg0, %c0_i32, %c0_i32_0 : i32, i32, i32
  }
}

module attributes {stable_mosaic.version = 11 : i64} {
  func.func @kernel(%arg0: i32, %arg1: memref<1x4x128xbf16, #tpu.memory_space<vmem>>, %arg2: memref<1x128xf32, #tpu.memory_space<vmem>>, %arg3: memref<1x128xf32, #tpu.memory_space<vmem>>, %arg4: memref<1x4x128xf32, #tpu.memory_space<vmem>>, %arg5: memref<1x1x128xf32, #tpu.memory_space<vmem>>, %arg6: memref<2x128xf32, #tpu.memory_space<vmem>>) attributes {dimension_semantics = [#tpu.dimension_semantics<parallel>], iteration_bounds = array<i64: 2>, scalar_prefetch = 0 : i64, scratch_operands = 1 : i64, tpu.core_type = #tpu.core_type<tc>, window_params = [{transform_indices = @transform_0, window_bounds = array<i64: 1, 4, 128>}, {pipeline_mode = #tpu.pipeline_mode<synchronous>, transform_indices = @transform_1, window_bounds = array<i64: 1, 128>}, {pipeline_mode = #tpu.pipeline_mode<synchronous>, transform_indices = @transform_2, window_bounds = array<i64: 1, 128>}, {transform_indices = @transform_3, window_bounds = array<i64: 1, 4, 128>}, {transform_indices = @transform_4, window_bounds = array<i64: 1, 1, 128>}]} {
    %c0 = arith.constant 0 : index
    %c0_0 = arith.constant 0 : index
    %c0_1 = arith.constant 0 : index
    %0 = vector.load %arg1[%c0, %c0_0, %c0_1] : memref<1x4x128xbf16, #tpu.memory_space<vmem>>, vector<1x4x128xbf16>
    %1 = vector.shape_cast %0 : vector<1x4x128xbf16> to vector<4x128xbf16>
    %2 = arith.extf %1 : vector<4x128xbf16> to vector<4x128xf32>
    %c0_2 = arith.constant 0 : index
    %c0_3 = arith.constant 0 : index
    %3 = vector.load %arg2[%c0_2, %c0_3] : memref<1x128xf32, #tpu.memory_space<vmem>>, vector<1x128xf32>
    %4 = vector.broadcast %3 : vector<1x128xf32> to vector<4x128xf32>
    %5 = arith.mulf %2, %4 : vector<4x128xf32>
    %c0_4 = arith.constant 0 : index
    %c0_5 = arith.constant 0 : index
    %6 = vector.load %arg3[%c0_4, %c0_5] : memref<1x128xf32, #tpu.memory_space<vmem>>, vector<1x128xf32>
    %7 = vector.broadcast %6 : vector<1x128xf32> to vector<4x128xf32>
    %8 = arith.addf %5, %7 : vector<4x128xf32>
    %cst = arith.constant 0.000000e+00 : f32
    %9 = vector.broadcast %cst : f32 to vector<4x128xf32>
    %10 = arith.maximumf %8, %9 : vector<4x128xf32>
    %c0_6 = arith.constant 0 : index
    %c0_7 = arith.constant 0 : index
    %c0_8 = arith.constant 0 : index
    %11 = vector.load %arg4[%c0_6, %c0_7, %c0_8] : memref<1x4x128xf32, #tpu.memory_space<vmem>>, vector<1x4x128xf32>
    %12 = vector.shape_cast %11 : vector<1x4x128xf32> to vector<4x128xf32>
    %13 = vector.shape_cast %10 : vector<4x128xf32> to vector<1x4x128xf32>
    tpu.vector_store %arg4[%c0_6, %c0_7, %c0_8], %13 {strides = array<i32>} : memref<1x4x128xf32, #tpu.memory_space<vmem>>, vector<1x4x128xf32>,
    %14 = vector.extract_strided_slice %10 {offsets = [0, 0], sizes = [2, 128], strides = [1, 1]} : vector<4x128xf32> to vector<2x128xf32>
    %15 = vector.extract_strided_slice %10 {offsets = [2, 0], sizes = [2, 128], strides = [1, 1]} : vector<4x128xf32> to vector<2x128xf32>
    %16 = arith.maximumf %14, %15 : vector<2x128xf32>
    %c0_9 = arith.constant 0 : index
    %c0_10 = arith.constant 0 : index
    %17 = vector.load %arg6[%c0_9, %c0_10] : memref<2x128xf32, #tpu.memory_space<vmem>>, vector<2x128xf32>
    tpu.vector_store %arg6[%c0_9, %c0_10], %16 {strides = array<i32>} : memref<2x128xf32, #tpu.memory_space<vmem>>, vector<2x128xf32>,
    %c0_11 = arith.constant 0 : index
    %c0_12 = arith.constant 0 : index
    %18 = tpu.strided_load %arg6[%c0_11, %c0_12] {strides = array<i32: 2, 1>} : memref<2x128xf32, #tpu.memory_space<vmem>>, vector<1x128xf32>
    %c1 = arith.constant 1 : index
    %c0_13 = arith.constant 0 : index
    %19 = tpu.strided_load %arg6[%c1, %c0_13] {strides = array<i32: 2, 1>} : memref<2x128xf32, #tpu.memory_space<vmem>>, vector<1x128xf32>
    %20 = arith.maximumf %18, %19 : vector<1x128xf32>
    %c0_14 = arith.constant 0 : index
    %c0_15 = arith.constant 0 : index
    %c0_16 = arith.constant 0 : index
    %21 = vector.load %arg5[%c0_14, %c0_15, %c0_16] : memref<1x1x128xf32, #tpu.memory_space<vmem>>, vector<1x1x128xf32>
    %22 = vector.shape_cast %21 : vector<1x1x128xf32> to vector<1x128xf32>
    %23 = vector.shape_cast %20 : vector<1x128xf32> to vector<1x1x128xf32>
    tpu.vector_store %arg5[%c0_14, %c0_15, %c0_16], %23 {strides = array<i32>} : memref<1x1x128xf32, #tpu.memory_space<vmem>>, vector<1x1x128xf32>,
    return
  }
  func.func @transform_0(%arg0: i32) -> (i32, i32, i32) {
    %c0_i32 = arith.constant 0 : i32
    %c0_i32_0 = arith.constant 0 : i32
    %c0_i32_1 = arith.constant 0 : i32
    return %arg0, %c0_i32, %c0_i32_0 : i32, i32, i32
  }
  func.func @transform_1(%arg0: i32) -> (i32, i32) {
    %c0_i32 = arith.constant 0 : i32
    %c0_i32_0 = arith.constant 0 : i32
    %c0_i32_1 = arith.constant 0 : i32
    return %c0_i32, %c0_i32_0 : i32, i32
  }
  func.func @transform_2(%arg0: i32) -> (i32, i32) {
    %c0_i32 = arith.constant 0 : i32
    %c0_i32_0 = arith.constant 0 : i32
    %c0_i32_1 = arith.constant 0 : i32
    return %c0_i32, %c0_i32_0 : i32, i32
  }
  func.func @transform_3(%arg0: i32) -> (i32, i32, i32) {
    %c0_i32 = arith.constant 0 : i32
    %c0_i32_0 = arith.constant 0 : i32
    %c0_i32_1 = arith.constant 0 : i32
    return %arg0, %c0_i32, %c0_i32_0 : i32, i32, i32
  }
  func.func @transform_4(%arg0: i32) -> (i32, i32, i32) {
    %c0_i32 = arith.constant 0 : i32
    %c0_i32_0 = arith.constant 0 : i32
    %c0_i32_1 = arith.constant 0 : i32
    return %arg0, %c0_i32, %c0_i32_0 : i32, i32, i32
  }
}

</mosaic_0001>

<bundles_post_ra>
// kernel: unet_encoder.10
= control target key start
LH: loop header
LB: loop body
LE: loop exit
PB: predicated region body
PF: predicated region fallthrough
CT: control target
= control target key end

     0   :  { %s3196_s24 = smov 0   ;;  %s4233_s0 = inlined_call_operand.vmem [shape: bf16[2,256,16], index: 0, kind: input, shape index: {}]   ;;  %s4234_s1 = inlined_call_operand.vmem [shape: f32[256,2], index: 1, kind: input, shape index: {}]   ;;  %s4235_s2 = inlined_call_operand.vmem [shape: bf16[3,48,16], index: 2, kind: input, shape index: {}]   ;;  %s4236_s3 = inlined_call_operand.vmem [shape: f32[1,16], index: 3, kind: input, shape index: {}]   ;;  %s4237_s4 = inlined_call_operand.vmem [shape: f32[1,16], index: 4, kind: input, shape index: {}]   ;;  %s4238_s5 = inlined_call_operand.vmem [shape: f32[1,16], index: 5, kind: input, shape index: {}]   ;;  %s4239_s6 = inlined_call_operand.vmem [shape: bf16[2,256,16], index: 6, kind: output, shape index: {0}]   ;;  %s4240_s7 = inlined_call_operand.vmem [shape: f32[2,2,16], index: 7, kind: output, shape index: {1}]  }
   0x1 LB: > { %s2484_s25 = sadd.s32 4294967295, %s3149_s24   ;;  %p2488_p0 = scmp.ge.s32.totalorder %s3149_s24, 1  ;;  %s3149_s24 = sphi %s3196_s24, %s18_s24  }
   0x2   : > { %p240_p1 = scmp.lt.s32.totalorder %s3149_s24, 3 }
   0x4   : > { %p241_p2 = pnand %p2488_p0, %p240_p1 }
   0x5   : > { %v3207_v0 = vld [vmem:[%s4234_s1 + $0x10] sm:$0xff] (!%p241_p2)  ;;  %v3212_v1 = vld [vmem:[%s4234_s1] sm:$0xff] (!%p241_p2)  ;;  %p276_p3 = scmp.lt.s32.totalorder (!%p241_p2), %s2484_s25, 1  ;;  %v3151_v2 = vmov (!%p241_p2), 1   ;;  %v3223_v3 = vld [vmem:[%s4234_s1 + $0x18] sm:$0xff] (!%p241_p2)  ;;  %vm468_vm0 = vcmask (!%p241_p2), 130048  }
   0x6   : > { %244 = sbr.rel (%p241_p2) target bundleno = 638 (0x27e), region = 44  ;;  %2968 = vset.pattern.permute.xlu1 (!%p241_p2), %v3151_v2  ;;  %2967 = vset.pattern.permute.xlu0 (!%p241_p2), %v3151_v2  ;;  %v3228_v4 = vld [vmem:[%s4234_s1 + $0x8] sm:$0xff] (!%p241_p2)  ;;  %v3241_v6 = vld [vmem:[%s4234_s1 + $0x20] sm:$0xff] (!%p241_p2)  ;;  %v3255_v7 = vld [vmem:[%s4234_s1 + $0x38] sm:$0xff] (!%p241_p2)  ;;  %vm465_vm1 = vcmask (!%p241_p2), 122880   ;;  %s3154_s16 = smov (!%p241_p2), 16  }
   0x7   : > { %798 = vperm.xlu1 (!%p241_p2), %2968, %v3207_v0   ;;  %790 = vperm.xlu0 (!%p241_p2), %2967, %v3212_v1   ;;  %v3236_v5 = vld [vmem:[%s4234_s1 + $0x28] sm:$0xff] (!%p241_p2)  ;;  %v3261_v9 = vld [vmem:[%s4234_s1 + $0x30] sm:$0xff] (!%p241_p2)  ;;  %v3266_v12 = vld [vmem:[%s4237_s4] ss:$0 sm:$0xff] (!%p241_p2)  ;;  %vm1286_vm2 = vcmask (!%p241_p2), 392192   ;;  %s3155_s8 = smov (!%p241_p2), 32  }
   0x8   : > { %v3272_v14 = vld [vmem:[%s4238_s5] ss:$0 sm:$0xff] (!%p241_p2)  ;;  %v3279_v19 = vld [vmem:[%s4234_s1 + $0x48] sm:$0xff] (!%p241_p2)  ;;  %v3308_v38 = vld [vmem:[%s4234_s1 + $0x58] sm:$0xff] (!%p241_p2)  ;;  %vm1237_vm3 = vcmask (!%p241_p2), 261120   ;;  %vm2193_vm4 = vcmask (!%p241_p2), 125952  }
   0x9   : > { %v3284_v20 = vld [vmem:[%s4234_s1 + $0x40] sm:$0xff] (!%p241_p2)  ;;  %v3313_v39 = vld [vmem:[%s4234_s1 + $0x50] sm:$0xff] (!%p241_p2) }
   0xb   : > { %802 = vperm.xlu1 (!%p241_p2), %2968, %v3223_v3   ;;  %794 = vperm.xlu0 (!%p241_p2), %2967, %v3228_v4  }
   0xd   : > { %s4244_s25 = smov (!%p276_p3, %s2484_s25), 1 }
   0xe   : > { %s2600_s11 = sshll.u32 %s4244_s25, 7 }
   0xf   : > { %s3248_s18 = scalar_lea.vmem %s4233_s0, %s2600_s11  ;;  %810 = vperm.xlu1 %2968, %v3236_v5   ;;  %806 = vperm.xlu0 %2967, %v3241_v6   ;;  %s4031_s20 = scalar_lea.vmem %s4239_s6, %s2600_s11 }
  0x10   : > { %v2698_v8 = vld [vmem:[%s3248_s18 + $0x8] sm:$0xff]   ;;  %v2635_v13 = vld [vmem:[%s3248_s18] sm:$0xff]   ;;  %v2700_v17 = vld [vmem:[%s3248_s18 + $0x18] sm:$0xff]   ;;  %s2493_s11 = sshll.u32 %s4244_s25, 1 }
  0x11   : > { %v2640_v10 = vunpack.c.l.bf16 %v2698_v8  ;;  %v2641_v11 = vunpack.c.h.bf16 %v2698_v8  ;;  %v2636_v15 = vunpack.c.l.bf16 %v2635_v13  ;;  %v2637_v16 = vunpack.c.h.bf16 %v2635_v13  ;;  %v2699_v18 = vld [vmem:[%s3248_s18 + $0x10] sm:$0xff]   ;;  %v2702_v29 = vld [vmem:[%s3248_s18 + $0x28] sm:$0xff]   ;;  %v2701_v44 = vld [vmem:[%s3248_s18 + $0x20] sm:$0xff]   ;;  %s289_s23 = scalar_lea.vmem %s4240_s7, %s2493_s11 }
  0x12   : > { %v2648_v23 = vunpack.c.l.bf16 %v2700_v17  ;;  %v2649_v24 = vunpack.c.h.bf16 %v2700_v17  ;;  %v2644_v27 = vunpack.c.l.bf16 %v2699_v18  ;;  %v2645_v28 = vunpack.c.h.bf16 %v2699_v18  ;;  %v2703_v45 = vld [vmem:[%s3248_s18 + $0x30] sm:$0xff]   ;;  %v2704_v50 = vld [vmem:[%s3248_s18 + $0x38] sm:$0xff]   ;;  %v3356_v13 = vld [vmem:[%s4234_s1 + $0x60] sm:$0xff] }
  0x13   : > { %v364_v21 = vmul.f32 %v2640_v10, %v3266_v12  ;;  %v365_v22 = vmul.f32 %v2641_v11, %v3266_v12  ;;  %818 = vperm.xlu1 %2968, %v3255_v7   ;;  %814 = vperm.xlu0 %2967, %v3261_v9   ;;  %v362_v25 = vmul.f32 %v2636_v15, %v3266_v12  ;;  %v2656_v53 = vunpack.c.l.bf16 %v2702_v29  ;;  %v3351_v11 = vld [vmem:[%s4234_s1 + $0x68] sm:$0xff] }
  0x14   : > { %v363_v26 = vmul.f32 %v2637_v16, %v3266_v12  ;;  %v368_v32 = vmul.f32 %v2648_v23, %v3266_v12  ;;  %v369_v33 = vmul.f32 %v2649_v24, %v3266_v12  ;;  %v366_v36 = vmul.f32 %v2644_v27, %v3266_v12 }
  0x15   : > { %v3294_v30 = vadd.f32 %v3272_v14, %v364_v21  ;;  %v3297_v31 = vadd.f32 %v3272_v14, %v365_v22  ;;  %v401_v34 = vadd.f32 %v3272_v14, %v362_v25  ;;  %v367_v37 = vmul.f32 %v2645_v28, %v3266_v12  ;;  %v2705_v21 = vld [vmem:[%s3248_s18 + $0x40] sm:$0xff]  }
  0x16   : > { %v402_v35 = vadd.f32 %v3272_v14, %v363_v26  ;;  %v407_v42 = vadd.f32 %v3272_v14, %v368_v32  ;;  %v408_v43 = vadd.f32 %v3272_v14, %v369_v33  ;;  %v405_v48 = vadd.f32 %v3272_v14, %v366_v36  ;;  %v3375_v36 = vld [vmem:[%s4234_s1 + $0x78] sm:$0xff] }
  0x17   : > { %v435_v40 = vmax.f32 %v3294_v30, 0.0  ;;  %v4241_v41 = vmax.f32 %v3297_v31, 0.0  ;;  %826 = vperm.xlu1 %2968, %v3279_v19   ;;  %822 = vperm.xlu0 %2967, %v3284_v20   ;;  %v433_v46 = vmax.f32 %v401_v34, 0.0  ;;  %v406_v49 = vadd.f32 %v3272_v14, %v367_v37  ;;  %v3380_v37 = vld [vmem:[%s4234_s1 + $0x70] sm:$0xff] }
  0x18   : > { %v434_v47 = vmax.f32 %v402_v35, 0.0  ;;  %v439_v51 = vmax.f32 %v407_v42, 0.0  ;;  %v440_v52 = vmax.f32 %v408_v43, 0.0  ;;  %v437_v55 = vmax.f32 %v405_v48, 0.0 }
  0x19   : > { %472 = vst.msk [vmem:[#allocation2 + $0x19] sm:$0xff] %vm468_vm0, %v4241_v41  ;;  %471 = vst.msk [vmem:[#allocation2 + $0x11] sm:$0xff] %vm468_vm0, %v435_v40  ;;  %v438_v56 = vmax.f32 %v406_v49, 0.0  ;;  %v2657_v57 = vunpack.c.h.bf16 %v2702_v29  ;;  %v372_v59 = vmul.f32 %v2656_v53, %v3266_v12  ;;  %v2652_v60 = vunpack.c.l.bf16 %v2701_v44 }
  0x1a   : > { %470 = vst.msk [vmem:[#allocation2 + $0x9] sm:$0xff] %vm468_vm0, %v434_v47  ;;  %v3333_v54 = vpack.i.bf16 %v434_v47, %v433_v46  ;;  %469 = vst.msk [vmem:[#allocation2 + $0x1] sm:$0xff] %vm468_vm0, %v433_v46  ;;  %v3337_v58 = vpack.i.bf16 %v440_v52, %v439_v51  ;;  %v2653_v61 = vunpack.c.h.bf16 %v2701_v44  ;;  %v2660_v8 = vunpack.c.l.bf16 %v2703_v45  ;;  %v2706_v46 = vld [vmem:[%s3248_s18 + $0x48] sm:$0xff]  }
  0x1b   : > { %476 = vst.msk [vmem:[#allocation2 + $0x39] sm:$0xff] %vm468_vm0, %v440_v52  ;;  %475 = vst.msk [vmem:[#allocation2 + $0x31] sm:$0xff] %vm468_vm0, %v439_v51  ;;  %834 = vperm.xlu1 %2968, %v3308_v38   ;;  %830 = vperm.xlu0 %2967, %v3313_v39   ;;  %v3344_v62 = vpack.i.bf16 %v438_v56, %v437_v55  ;;  %v373_v63 = vmul.f32 %v2657_v57, %v3266_v12  ;;  %v2661_v10 = vunpack.c.h.bf16 %v2703_v45  ;;  %v2707_v51 = vld [vmem:[%s3248_s18 + $0x50] sm:$0xff]   ;;  %v2708_v57 = vld [vmem:[%s3248_s18 + $0x58] sm:$0xff]  }
  0x1c   : > { %474 = vst.msk [vmem:[#allocation2 + $0x29] sm:$0xff] %vm468_vm0, %v438_v56  ;;  %473 = vst.msk [vmem:[#allocation2 + $0x21] sm:$0xff] %vm468_vm0, %v437_v55  ;;  %v411_v15 = vadd.f32 %v3272_v14, %v372_v59  ;;  %v370_v16 = vmul.f32 %v2652_v60, %v3266_v12  ;;  %v371_v17 = vmul.f32 %v2653_v61, %v3266_v12  ;;  %v2664_v18 = vunpack.c.l.bf16 %v2704_v50 }
  0x1d   : > { %v412_v22 = vadd.f32 %v3272_v14, %v373_v63  ;;  %v374_v23 = vmul.f32 %v2660_v8, %v3266_v12  ;;  %v375_v24 = vmul.f32 %v2661_v10, %v3266_v12  ;;  %v2665_v25 = vunpack.c.h.bf16 %v2704_v50  ;;  %v3407_v8 = vld [vmem:[%s4234_s1 + $0x88] sm:$0xff]  ;;  %v3412_v10 = vld [vmem:[%s4234_s1 + $0x80] sm:$0xff] }
  0x1e   : > { %v443_v26 = vmax.f32 %v411_v15, 0.0  ;;  %v409_v27 = vadd.f32 %v3272_v14, %v370_v16  ;;  %v410_v28 = vadd.f32 %v3272_v14, %v371_v17  ;;  %v376_v29 = vmul.f32 %v2664_v18, %v3266_v12 }
  0x1f   : > { %842 = vperm.xlu1 %2968, %v3351_v11   ;;  %838 = vperm.xlu0 %2967, %v3356_v13   ;;  %v444_v32 = vmax.f32 %v412_v22, 0.0  ;;  %v413_v33 = vadd.f32 %v3272_v14, %v374_v23  ;;  %v414_v34 = vadd.f32 %v3272_v14, %v375_v24  ;;  %v2668_v35 = vunpack.c.l.bf16 %v2705_v21 }
  0x20   : > { %479 = vst.msk [vmem:[#allocation2 + $0x51] sm:$0xff] %vm468_vm0, %v443_v26  ;;  %v441_v42 = vmax.f32 %v409_v27, 0.0  ;;  %v442_v43 = vmax.f32 %v410_v28, 0.0  ;;  %v415_v44 = vadd.f32 %v3272_v14, %v376_v29  ;;  %v377_v45 = vmul.f32 %v2665_v25, %v3266_v12  ;;  %v2709_v25 = vld [vmem:[%s3248_s18 + $0x60] sm:$0xff]  }
  0x21   : > { %480 = vst.msk [vmem:[#allocation2 + $0x59] sm:$0xff] %vm468_vm0, %v444_v32  ;;  %v3387_v47 = vpack.i.bf16 %v444_v32, %v443_v26  ;;  %v445_v48 = vmax.f32 %v413_v33, 0.0  ;;  %v446_v49 = vmax.f32 %v414_v34, 0.0  ;;  %v378_v50 = vmul.f32 %v2668_v35, %v3266_v12  ;;  %v758_v30 = vld [vmem:[#allocation2 + $0xa] sm:$0xff] }
  0x22   : > { %478 = vst.msk [vmem:[#allocation2 + $0x49] sm:$0xff] %vm468_vm0, %v442_v43  ;;  %v3392_v52 = vpack.i.bf16 %v442_v43, %v441_v42  ;;  %477 = vst.msk [vmem:[#allocation2 + $0x41] sm:$0xff] %vm468_vm0, %v441_v42  ;;  %v447_v53 = vmax.f32 %v415_v44, 0.0  ;;  %v416_v55 = vadd.f32 %v3272_v14, %v377_v45  ;;  %v2669_v56 = vunpack.c.h.bf16 %v2705_v21  ;;  %v3434_v42 = vld [vmem:[%s4234_s1 + $0x98] sm:$0xff]  ;;  %v3439_v43 = vld [vmem:[%s4234_s1 + $0x90] sm:$0xff] }
  0x23   : > { %850 = vperm.xlu1 %2968, %v3375_v36   ;;  %846 = vperm.xlu0 %2967, %v3380_v37   ;;  %482 = vst.msk [vmem:[#allocation2 + $0x69] sm:$0xff] %vm468_vm0, %v446_v49  ;;  %v3400_v59 = vpack.i.bf16 %v446_v49, %v445_v48  ;;  %481 = vst.msk [vmem:[#allocation2 + $0x61] sm:$0xff] %vm468_vm0, %v445_v48  ;;  %v417_v60 = vadd.f32 %v3272_v14, %v378_v50  ;;  %v2672_v61 = vunpack.c.l.bf16 %v2706_v46  ;;  %v2710_v49 = vld [vmem:[%s3248_s18 + $0x68] sm:$0xff]  }
  0x24   : > { %v2673_v63 = vunpack.c.h.bf16 %v2706_v46  ;;  %483 = vst.msk [vmem:[#allocation2 + $0x71] sm:$0xff] %vm468_vm0, %v447_v53  ;;  %v448_v15 = vmax.f32 %v416_v55, 0.0  ;;  %v379_v16 = vmul.f32 %v2669_v56, %v3266_v12  ;;  %v2676_v17 = vunpack.c.l.bf16 %v2707_v51 }
  0x25   : > { %v2677_v18 = vunpack.c.h.bf16 %v2707_v51  ;;  %v449_v21 = vmax.f32 %v417_v60, 0.0  ;;  %v380_v22 = vmul.f32 %v2672_v61, %v3266_v12  ;;  %v2680_v24 = vunpack.c.l.bf16 %v2708_v57 }
  0x26   : > { %v381_v23 = vmul.f32 %v2673_v63, %v3266_v12  ;;  %484 = vst.msk [vmem:[#allocation2 + $0x79] sm:$0xff] %vm468_vm0, %v448_v15  ;;  %v3420_v26 = vpack.i.bf16 %v448_v15, %v447_v53  ;;  %v418_v27 = vadd.f32 %v3272_v14, %v379_v16  ;;  %v382_v28 = vmul.f32 %v2676_v17, %v3266_v12  ;;  %v2711_v63 = vld [vmem:[%s3248_s18 + $0x70] sm:$0xff]  }
  0x27   : > { %v383_v29 = vmul.f32 %v2677_v18, %v3266_v12  ;;  %858 = vperm.xlu1 %2968, %v3407_v8   ;;  %854 = vperm.xlu0 %2967, %v3412_v10   ;;  %485 = vst.msk [vmem:[#allocation2 + $0x81] sm:$0xff] %vm468_vm0, %v449_v21  ;;  %v419_v32 = vadd.f32 %v3272_v14, %v380_v22  ;;  %v2681_v35 = vunpack.c.h.bf16 %v2708_v57  ;;  %v2684_v48 = vunpack.c.l.bf16 %v2709_v25  ;;  %v3468_v22 = vld [vmem:[%s4234_s1 + $0xa8] sm:$0xff] }
  0x28   : > { %v420_v33 = vadd.f32 %v3272_v14, %v381_v23  ;;  %v384_v34 = vmul.f32 %v2680_v24, %v3266_v12  ;;  %v450_v44 = vmax.f32 %v418_v27, 0.0  ;;  %v3442_v45 = vadd.f32 %v3272_v14, %v382_v28  ;;  %v3473_v23 = vld [vmem:[%s4234_s1 + $0xa0] sm:$0xff] }
  0x29   : > { %v3445_v46 = vadd.f32 %v3272_v14, %v383_v29  ;;  %v451_v50 = vmax.f32 %v419_v32, 0.0  ;;  %v385_v55 = vmul.f32 %v2681_v35, %v3266_v12  ;;  %v386_v60 = vmul.f32 %v2684_v48, %v3266_v12 }
  0x2a   : > { %v452_v51 = vmax.f32 %v420_v33, 0.0  ;;  %v3449_v53 = vadd.f32 %v3272_v14, %v384_v34  ;;  %486 = vst.msk [vmem:[#allocation2 + $0x89] sm:$0xff] %vm468_vm0, %v450_v44  ;;  %v453_v56 = vmax.f32 %v3442_v45, 0.0  ;;  %v2685_v61 = vunpack.c.h.bf16 %v2709_v25  ;;  %v3603_v45 = vld [vmem:[%s4234_s1 + $0xf0] sm:$0xff] }
  0x2b   : > { %v454_v57 = vmax.f32 %v3445_v46, 0.0  ;;  %866 = vperm.xlu1 %2968, %v3434_v42   ;;  %862 = vperm.xlu0 %2967, %v3439_v43   ;;  %487 = vst.msk [vmem:[#allocation2 + $0x91] sm:$0xff] %vm468_vm0, %v451_v50  ;;  %v3463_v16 = vadd.f32 %v3272_v14, %v385_v55  ;;  %v2688_v17 = vunpack.c.l.bf16 %v2710_v49  ;;  %v2689_v18 = vunpack.c.h.bf16 %v2710_v49  ;;  %v2712_v49 = vld [vmem:[%s3248_s18 + $0x78] sm:$0xff]  }
  0x2c   : > { %488 = vst.msk [vmem:[#allocation2 + $0x99] sm:$0xff] %vm468_vm0, %v452_v51  ;;  %v455_v15 = vmax.f32 %v3449_v53, 0.0  ;;  %489 = vst.msk [vmem:[#allocation2 + $0xa1] sm:$0xff] %vm468_vm0, %v453_v56  ;;  %v3482_v24 = vadd.f32 %v3272_v14, %v386_v60  ;;  %v387_v25 = vmul.f32 %v2685_v61, %v3266_v12  ;;  %v2692_v27 = vunpack.c.l.bf16 %v2711_v63  ;;  %v3511_v61 = vld [vmem:[%s4234_s1 + $0xb8] sm:$0xff] }
  0x2d   : > { %490 = vst.msk [vmem:[#allocation2 + $0xa9] sm:$0xff] %vm468_vm0, %v454_v57  ;;  %v3488_v28 = vpack.i.bf16 %v450_v44, %v449_v21  ;;  %v456_v29 = vmax.f32 %v3463_v16, 0.0  ;;  %v388_v32 = vmul.f32 %v2688_v17, %v3266_v12  ;;  %v389_v33 = vmul.f32 %v2689_v18, %v3266_v12  ;;  %v3516_v16 = vld [vmem:[%s4234_s1 + $0xb0] sm:$0xff] }
  0x2e   : > { %491 = vst.msk [vmem:[#allocation2 + $0xb1] sm:$0xff] %vm468_vm0, %v455_v15  ;;  %v457_v34 = vmax.f32 %v3482_v24, 0.0  ;;  %v3495_v35 = vadd.f32 %v3272_v14, %v387_v25  ;;  %v390_v48 = vmul.f32 %v2692_v27, %v3266_v12  ;;  %v2693_v55 = vunpack.c.h.bf16 %v2711_v63 }
  0x2f   : > { %874 = vperm.xlu1 %2968, %v3468_v22   ;;  %870 = vperm.xlu0 %2967, %v3473_v23   ;;  %492 = vst.msk [vmem:[#allocation2 + $0xb9] sm:$0xff] %vm468_vm0, %v456_v29  ;;  %v3503_v21 = vadd.f32 %v3272_v14, %v388_v32  ;;  %v3506_v44 = vadd.f32 %v3272_v14, %v389_v33  ;;  %v2696_v60 = vunpack.c.l.bf16 %v2712_v49 }
  0x30   : > { %493 = vst.msk [vmem:[#allocation2 + $0xc1] sm:$0xff] %vm468_vm0, %v457_v34  ;;  %v458_v17 = vmax.f32 %v3495_v35, 0.0  ;;  %v3523_v18 = vadd.f32 %v3272_v14, %v390_v48  ;;  %v3525_v63 = vpack.i.bf16 %v452_v51, %v451_v50  ;;  %v391_v32 = vmul.f32 %v2693_v55, %v3266_v12  ;;  %v3541_v35 = vld [vmem:[%s4234_s1 + $0xc8] sm:$0xff]  ;;  %v3546_v48 = vld [vmem:[%s4234_s1 + $0xc0] sm:$0xff] }
  0x31   : > { %v459_v25 = vmax.f32 %v3503_v21, 0.0  ;;  %v460_v27 = vmax.f32 %v3506_v44, 0.0  ;;  %v392_v41 = vmul.f32 %v2696_v60, %v3266_v12  ;;  %v2697_v51 = vunpack.c.h.bf16 %v2712_v49 }
  0x32   : > { %494 = vst.msk [vmem:[#allocation2 + $0xc9] sm:$0xff] %vm468_vm0, %v458_v17  ;;  %v461_v33 = vmax.f32 %v3523_v18, 0.0  ;;  %v430_v50 = vadd.f32 %v3272_v14, %v391_v32  ;;  %v3558_v18 = vld [vmem:[%s4234_s1 + $0xd8] sm:$0xff]  ;;  %v3152_v32 = vmov 0.0   ;;  %v3611_v46 = vpack.i.bf16 %v458_v17, %v457_v34 }
  0x33   : > { %882 = vperm.xlu1 %2968, %v3511_v61   ;;  %878 = vperm.xlu0 %2967, %v3516_v16   ;;  %495 = vst.msk [vmem:[#allocation2 + $0xd1] sm:$0xff] %vm468_vm0, %v459_v25  ;;  %496 = vst.msk [vmem:[#allocation2 + $0xd9] sm:$0xff] %vm468_vm0, %v460_v27  ;;  %v431_v21 = vadd.f32 %v3272_v14, %v392_v41  ;;  %v393_v55 = vmul.f32 %v2697_v51, %v3266_v12  ;;  %v3563_v41 = vld [vmem:[%s4234_s1 + $0xd0] sm:$0xff] }
  0x34   : > { %497 = vst.msk [vmem:[#allocation2 + $0xe1] sm:$0xff] %vm468_vm0, %v461_v33  ;;  %v462_v44 = vmax.f32 %v430_v50, 0.0  ;;  %v3579_v50 = vld [vmem:[%s4234_s1 + $0xe0] sm:$0xff]  ;;  %v3585_v51 = vpack.i.bf16 %v454_v57, %v453_v56  ;;  %v3619_v56 = vpack.i.bf16 %v460_v27, %v459_v25 }
  0x35   : > { %v463_v60 = vmax.f32 %v431_v21, 0.0  ;;  %v432_v49 = vadd.f32 %v3272_v14, %v393_v55  ;;  %467 = vst.msk [vmem:[#allocation2 + $0x101] sm:$0x1] %vm465_vm1, %v3152_v32  ;;  %466 = vst.msk [vmem:[#allocation2] sm:$0x1] %vm465_vm1, %v3152_v32  ;;  %v3574_v14 = vld [vmem:[%s4234_s1 + $0xe8] sm:$0xff]  ;;  %v3596_v55 = vpack.i.bf16 %v456_v29, %v455_v15 }
  0x36   : > { %498 = vst.msk [vmem:[#allocation2 + $0xe9] sm:$0xff] %vm468_vm0, %v462_v44  ;;  %v3592_v21 = vld [vmem:[%s4234_s1 + $0xf8] sm:$0xff] }
  0x37   : > { %890 = vperm.xlu1 %2968, %v3541_v35   ;;  %886 = vperm.xlu0 %2967, %v3546_v48   ;;  %499 = vst.msk [vmem:[#allocation2 + $0xf1] sm:$0xff] %vm468_vm0, %v463_v60  ;;  %v464_v12 = vmax.f32 %v432_v49, 0.0  ;;  %v3153_v49 = vmov 0   ;;  %v764_v57 = vld [vmem:[#allocation2 + $0x3a] sm:$0xff]  ;;  %v763_v15 = vld [vmem:[#allocation2 + $0x32] sm:$0xff] }
  0x38   : > { %1287 = vst.msk [vmem:[#allocation3] sm:$0xff] %vm1286_vm2, %v3153_v49  ;;  %1288 = vst.msk [vmem:[#allocation3 + $0x88] sm:$0xff] %vm1286_vm2, %v3153_v49 }
  0x39   : > { %500 = vst.msk [vmem:[#allocation2 + $0xf9] sm:$0xff] %vm468_vm0, %v464_v12 }
  0x3b   : > { %898 = vperm.xlu1 %2968, %v3558_v18   ;;  %894 = vperm.xlu0 %2967, %v3563_v41  }
  0x3f   : > { %906 = vperm.xlu1 %2968, %v3574_v14   ;;  %902 = vperm.xlu0 %2967, %v3579_v50   ;;  %v1305_v29 = vld [vmem:[#allocation3] sm:$0xff] }
  0x40   : > { %2814 = vmatprep.mubr.msk.bf16.mxu0 %vm1286_vm2, %v1305_v29 }
  0x43   : > { %2969 = vset.pattern.permute.xlu1 %v3153_v49  ;;  %914 = vperm.xlu0 %2967, %v3592_v21  }
  0x44   : > { %572 = vperm.xlu1 %2969, %v3228_v4   ;;  %v4242_v4 = vmax.f32 %v3297_v31, 0.0  ;;  %v3668_v31 = vld [vmem:[%s4235_s2 + $0x8] sm:$0xff]  }
  0x46   : > { %v2978_v53 = vpack.i.bf16 %v4242_v4, %v435_v40  ;;  %v3137_v40 = vld [vmem:[%s4235_s2 + $0x20] sm:$0xff]  }
  0x47   : > { %2971 = vset.pattern.permute.xlu0 %v3153_v49 }
  0x48   : > { %2970 = vset.pattern.permute.xlu1 %v3151_v2  ;;  %567 = vperm.xlu0 %2971, %v3212_v1   ;;  %v3623_v1 = vpack.i.bf16 %v462_v44, %v461_v33  ;;  %v766_v33 = vld [vmem:[#allocation2 + $0x4a] sm:$0xff]  ;;  %v765_v44 = vld [vmem:[#allocation2 + $0x42] sm:$0xff] }
  0x49   : > { %910 = vperm.xlu1 %2970, %v3603_v45  }
  0x4c   : > { %587 = vperm.xlu0 %2971, %v3241_v6  }
  0x4d   : > { %2972 = vset.pattern.permute.xlu1 %v3153_v49 }
  0x4e   : > { %577 = vperm.xlu1 %2972, %v3207_v0   ;;  %v3627_v0 = vpack.i.bf16 %v464_v12, %v463_v60 }
  0x50   : > { %602 = vperm.xlu0 %2971, %v3255_v7   ;;  %v3135_v7 = vld [vmem:[%s4235_s2 + $0x18] sm:$0xff]  }
  0x51   : > { %2770 = vmatprep.subr.bf16.mxu1 %v3135_v7 }
  0x52   : > { %582 = vperm.xlu1 %2972, %v3223_v3   ;;  %v3658_v3 = vld [vmem:[%s4235_s2] sm:$0xff]   ;;  %2771 = vmatpush3.bf16.msra.mxu1 %v3135_v7 }
  0x53   : > { %2808 = vmatprep.subr.bf16.mxu0 %v3658_v3  ;;  %2772 = vmatprep.subr.bf16.mxu1 %v3137_v40 }
  0x54   : > { %2979 = vrot.lane.b32.xlu0 %v2978_v53, %s3154_s16  ;;  %2809 = vmatpush3.bf16.msra.mxu0 %v3658_v3  ;;  %v768_v53 = vld [vmem:[#allocation2 + $0x5a] sm:$0xff] }
  0x55   : > { %2810 = vmatprep.subr.bf16.mxu0 %v3668_v31 }
  0x56   : > { %592 = vperm.xlu1 %2972, %v3236_v5   ;;  %2773 = vmatpush3.bf16.msra.mxu1 %v3137_v40 }
  0x58   : > { %612 = vperm.xlu0 %2971, %v3279_v19   ;;  %v757_v19 = vld [vmem:[#allocation2 + $0x2] sm:$0xff]  ;;  %2811 = vmatpush3.bf16.msra.mxu0 %v3668_v31 }
  0x5a   : > { %597 = vperm.xlu1 %2972, %v3261_v9   ;;  %v759_v9 = vld [vmem:[#allocation2 + $0x12] sm:$0xff] }
  0x5c   : > { %622 = vperm.xlu0 %2971, %v3308_v38  }
  0x5e   : > { %2974 = vrot.lane.b32.xlu1 %v3333_v54, %s3154_s16 }
  0x60   : > { %2989 = vrot.lane.b32.xlu0 %v3337_v58, %s3154_s16 }
  0x62   : > { %607 = vperm.xlu1 %2972, %v3284_v20   ;;  %v760_v20 = vld [vmem:[#allocation2 + $0x1a] sm:$0xff] }
  0x64   : > { %632 = vperm.xlu0 %2971, %v3351_v11  }
  0x66   : > { %617 = vperm.xlu1 %2972, %v3313_v39  }
  0x68   : > { %642 = vperm.xlu0 %2971, %v3375_v36   ;;  %v761_v36 = vld [vmem:[#allocation2 + $0x22] sm:$0xff] }
  0x6a   : > { %2984 = vrot.lane.b32.xlu1 %v3344_v62, %s3154_s16 }
  0x6c   : > { %2999 = vrot.lane.b32.xlu0 %v3387_v47, %s3154_s16 }
  0x6e   : > { %627 = vperm.xlu1 %2972, %v3356_v13   ;;  %v762_v13 = vld [vmem:[#allocation2 + $0x2a] sm:$0xff] }
  0x70   : > { %652 = vperm.xlu0 %2971, %v3407_v8  }
  0x72   : > { %637 = vperm.xlu1 %2972, %v3380_v37  }
  0x74   : > { %662 = vperm.xlu0 %2971, %v3434_v42  }
  0x76   : > { %2994 = vrot.lane.b32.xlu1 %v3392_v52, %s3154_s16  ;;  %v3678_v52 = vld [vmem:[%s4235_s2 + $0x10] sm:$0xff]  }
  0x77   : > { %2812 = vmatprep.subr.bf16.mxu0 %v3678_v52 }
  0x78   : > { %2813 = vmatpush3.bf16.msra.mxu0 %v3678_v52 }
  0x7a   : > { %647 = vperm.xlu1 %2972, %v3412_v10   ;;  %v3139_v10 = vld [vmem:[%s4235_s2 + $0x28] sm:$0xff]  }
  0x7b   : > { %2774 = vmatprep.subr.bf16.mxu1 %v3139_v10 }
  0x7c   : > { %2775 = vmatpush3.bf16.msra.mxu1 %v3139_v10 }
  0x7d   : > { %2884 = vmatprep.subr.bf16.mxu1 %v3658_v3 }
  0x7e   : > { %657 = vperm.xlu1 %2972, %v3439_v43  }
  0x82   : > { %3004 = vrot.lane.b32.xlu1 %v3400_v59, %s3154_s16 }
  0x86   : > { %v799_v5 = vpop.permute.xlu1 %798  ;;  %v791_v6 = vpop.permute.xlu0 %790 }
  0x87   : > { %v919_v54 = vmul.f32 %v799_v5, %v759_v9  ;;  %v917_v58 = vmul.f32 %v791_v6, %v757_v19  ;;  %v767_v5 = vld [vmem:[#allocation2 + $0x52] sm:$0xff] }
  0x8a   : > { %v803_v38 = vpop.permute.xlu1 %802  ;;  %v795_v39 = vpop.permute.xlu0 %794 }
  0x8b   : > { %v920_v62 = vmul.f32 %v803_v38, %v760_v20  ;;  %v918_v11 = vmul.f32 %v795_v39, %v758_v30  ;;  %v770_v30 = vld [vmem:[#allocation2 + $0x6a] sm:$0xff]  ;;  %v769_v38 = vld [vmem:[#allocation2 + $0x62] sm:$0xff] }
  0x8d   : > { %v3013_v37 = vpack.i.bf16 %v920_v62, %v919_v54  ;;  %v3008_v47 = vpack.i.bf16 %v918_v11, %v917_v58  ;;  %v772_v11 = vld [vmem:[#allocation2 + $0x7a] sm:$0xff] }
  0x8e   : > { %v811_v59 = vpop.permute.xlu1 %810  ;;  %v807_v8 = vpop.permute.xlu0 %806 }
  0x8f   : > { %v922_v42 = vmul.f32 %v811_v59, %v762_v13  ;;  %v921_v43 = vmul.f32 %v807_v8, %v761_v36  ;;  %3014 = vrot.lane.b32.xlu0 %v3013_v37, %s3155_s8  ;;  %3009 = vrot.lane.b32.xlu1 %v3008_v47, %s3155_s8  ;;  %v771_v13 = vld [vmem:[#allocation2 + $0x72] sm:$0xff] }
  0x91   : > { %v3018_v24 = vpack.i.bf16 %v922_v42, %v921_v43  ;;  %v3699_v42 = vld [vmem:[%s4235_s2 + $0x30] sm:$0xff]  }
  0x92   : > { %v819_v34 = vpop.permute.xlu1 %818  ;;  %v815_v17 = vpop.permute.xlu0 %814  ;;  %2846 = vmatprep.subr.bf16.mxu0 %v3699_v42 }
  0x93   : > { %v924_v25 = vmul.f32 %v819_v34, %v764_v57  ;;  %v923_v27 = vmul.f32 %v815_v17, %v763_v15  ;;  %3019 = vrot.lane.b32.xlu1 %v3018_v24, %s3155_s8  ;;  %v774_v15 = vld [vmem:[#allocation2 + $0x8a] sm:$0xff]  ;;  %v773_v24 = vld [vmem:[#allocation2 + $0x82] sm:$0xff] }
  0x95   : > { %v3023_v60 = vpack.i.bf16 %v924_v25, %v923_v27  ;;  %v776_v25 = vld [vmem:[#allocation2 + $0x9a] sm:$0xff]  ;;  %v775_v27 = vld [vmem:[#allocation2 + $0x92] sm:$0xff] }
  0x96   : > { %v827_v12 = vpop.permute.xlu1 %826  ;;  %v823_v32 = vpop.permute.xlu0 %822 }
  0x97   : > { %v926_v49 = vmul.f32 %v827_v12, %v766_v33  ;;  %v925_v4 = vmul.f32 %v823_v32, %v765_v44  ;;  %3024 = vrot.lane.b32.xlu0 %v3023_v60, %s3155_s8 }
  0x99   : > { %v3028_v6 = vpack.i.bf16 %v926_v49, %v925_v4 }
  0x9a   : > { %v835_v7 = vpop.permute.xlu1 %834  ;;  %v831_v9 = vpop.permute.xlu0 %830 }
  0x9b   : > { %v928_v19 = vmul.f32 %v835_v7, %v768_v53  ;;  %v927_v20 = vmul.f32 %v831_v9, %v767_v5  ;;  %3029 = vrot.lane.b32.xlu1 %v3028_v6, %s3155_s8  ;;  %v777_v53 = vld [vmem:[#allocation2 + $0xa2] sm:$0xff]  ;;  %v779_v9 = vld [vmem:[#allocation2 + $0xb2] sm:$0xff] }
  0x9d   : > { %v3033_v39 = vpack.i.bf16 %v928_v19, %v927_v20 }
  0x9e   : > { %v843_v40 = vpop.permute.xlu1 %842  ;;  %v839_v54 = vpop.permute.xlu0 %838 }
  0x9f   : > { %v930_v58 = vmul.f32 %v843_v40, %v770_v30  ;;  %v929_v62 = vmul.f32 %v839_v54, %v769_v38  ;;  %3034 = vrot.lane.b32.xlu0 %v3033_v39, %s3155_s8  ;;  %v781_v54 = vld [vmem:[#allocation2 + $0xc2] sm:$0xff] }
  0xa1   : > { %v3043_v36 = vpack.i.bf16 %v930_v58, %v929_v62 }
  0xa2   : > { %v851_v37 = vpop.permute.xlu1 %850  ;;  %v847_v47 = vpop.permute.xlu0 %846 }
  0xa3   : > { %v932_v59 = vmul.f32 %v851_v37, %v772_v11  ;;  %v931_v8 = vmul.f32 %v847_v47, %v771_v13  ;;  %3039 = vrot.lane.b32.xlu0 %v3420_v26, %s3154_s16  ;;  %3044 = vrot.lane.b32.xlu1 %v3043_v36, %s3155_s8  ;;  %v784_v13 = vld [vmem:[#allocation2 + $0xda] sm:$0xff]  ;;  %v783_v36 = vld [vmem:[#allocation2 + $0xd2] sm:$0xff] }
  0xa5   : > { %v3048_v10 = vpack.i.bf16 %v932_v59, %v931_v8 }
  0xa6   : > { %v859_v43 = vpop.permute.xlu1 %858  ;;  %v855_v57 = vpop.permute.xlu0 %854 }
  0xa7   : > { %3049 = vrot.lane.b32.xlu0 %v3048_v10, %s3155_s8  ;;  %667 = vperm.xlu1 %2972, %v3473_v23   ;;  %v934_v34 = vmul.f32 %v859_v43, %v774_v15  ;;  %v933_v17 = vmul.f32 %v855_v57, %v773_v24  ;;  %v786_v10 = vld [vmem:[#allocation2 + $0xea] sm:$0xff] }
  0xa9   : > { %v3063_v23 = vpack.i.bf16 %v934_v34, %v933_v17 }
  0xaa   : > { %v867_v29 = vpop.permute.xlu1 %866  ;;  %v863_v26 = vpop.permute.xlu0 %862 }
  0xab   : > { %672 = vperm.xlu0 %2971, %v3468_v22   ;;  %677 = vperm.xlu1 %2972, %v3516_v16   ;;  %v936_v60 = vmul.f32 %v867_v29, %v776_v25  ;;  %v935_v12 = vmul.f32 %v863_v26, %v775_v27  ;;  %v788_v29 = vld [vmem:[#allocation2 + $0xfa] sm:$0xff] }
  0xad   : > { %v3068_v22 = vpack.i.bf16 %v936_v60, %v935_v12 }
  0xae   : > { %v875_v33 = vpop.permute.xlu1 %874  ;;  %v871_v44 = vpop.permute.xlu0 %870 }
  0xaf   : > { %682 = vperm.xlu0 %2971, %v3511_v61   ;;  %3054 = vrot.lane.b32.xlu1 %v3488_v28, %s3154_s16  ;;  %v778_v61 = vld [vmem:[#allocation2 + $0xaa] sm:$0xff]  ;;  %v937_v7 = vmul.f32 %v871_v44, %v777_v53  ;;  %v536_v53 = vld [vmem:[#allocation2 + $0x18] sm:$0xff] }
  0xb0   : > { %v938_v6 = vmul.f32 %v875_v33, %v778_v61  ;;  %v535_v61 = vld [vmem:[#allocation2 + $0x10] sm:$0xff] }
  0xb2   : > { %v883_v32 = vpop.permute.xlu1 %882  ;;  %v879_v49 = vpop.permute.xlu0 %878 }
  0xb3   : > { %3059 = vrot.lane.b32.xlu0 %v3525_v63, %s3154_s16  ;;  %3064 = vrot.lane.b32.xlu1 %v3063_v23, %s3155_s8  ;;  %v780_v63 = vld [vmem:[#allocation2 + $0xba] sm:$0xff]  ;;  %v939_v38 = vmul.f32 %v879_v49, %v779_v9 }
  0xb4   : > { %v940_v30 = vmul.f32 %v883_v32, %v780_v63 }
  0xb6   : > { %v891_v16 = vpop.permute.xlu1 %890  ;;  %v887_v4 = vpop.permute.xlu0 %886 }
  0xb7   : > { %3069 = vrot.lane.b32.xlu0 %v3068_v22, %s3155_s8  ;;  %687 = vperm.xlu1 %2972, %v3546_v48   ;;  %v3083_v48 = vpack.i.bf16 %v938_v6, %v937_v7  ;;  %v941_v62 = vmul.f32 %v887_v4, %v781_v54  ;;  %v533_v6 = vld [vmem:[#allocation2] sm:$0xff] }
  0xba   : > { %v899_v28 = vpop.permute.xlu1 %898  ;;  %v895_v5 = vpop.permute.xlu0 %894 }
  0xbb   : > { %692 = vperm.xlu0 %2971, %v3541_v35   ;;  %697 = vperm.xlu1 %2972, %v3563_v41   ;;  %v3088_v41 = vpack.i.bf16 %v940_v30, %v939_v38  ;;  %v944_v47 = vmul.f32 %v899_v28, %v784_v13  ;;  %v943_v59 = vmul.f32 %v895_v5, %v783_v36 }
  0xbe   : > { %v903_v19 = vpop.permute.xlu0 %902  ;;  %v907_v20 = vpop.permute.xlu1 %906 }
  0xbf   : > { %702 = vperm.xlu0 %2971, %v3558_v18   ;;  %3074 = vrot.lane.b32.xlu1 %v3585_v51, %s3154_s16  ;;  %v782_v51 = vld [vmem:[#allocation2 + $0xca] sm:$0xff]  ;;  %v946_v57 = vmul.f32 %v907_v20, %v786_v10 }
  0xc0   : > { %v534_v20 = vld [vmem:[#allocation2 + $0x8] sm:$0xff] }
  0xc2   : > { %v915_v39 = vpop.permute.xlu0 %914 }
  0xc3   : > { %3079 = vrot.lane.b32.xlu0 %v3596_v55, %s3154_s16  ;;  %3084 = vrot.lane.b32.xlu1 %v3083_v48, %s3155_s8  ;;  %v3722_v35 = vpop.permute.xlu1 %572  ;;  %v942_v55 = vmul.f32 %v891_v16, %v782_v51  ;;  %v948_v17 = vmul.f32 %v915_v39, %v788_v29  ;;  %v540_v48 = vld [vmem:[#allocation2 + $0x38] sm:$0xff] }
  0xc4   : > { %v726_v13 = vmul.f32 %v3722_v35, %v534_v20 }
  0xc7   : > { %v3724_v40 = vpop.permute.xlu0 %567  ;;  %3089 = vrot.lane.b32.xlu0 %v3088_v41, %s3155_s8  ;;  %707 = vperm.xlu1 %2972, %v3579_v50   ;;  %v3103_v50 = vpack.i.bf16 %v942_v55, %v941_v62  ;;  %v539_v41 = vld [vmem:[#allocation2 + $0x30] sm:$0xff] }
  0xc8   : > { %v911_v18 = vpop.permute.xlu1 %910  ;;  %v725_v39 = vmul.f32 %v3724_v40, %v533_v6  ;;  %v542_v6 = vld [vmem:[#allocation2 + $0x48] sm:$0xff] }
  0xcb   : > { %v3728_v58 = vpop.permute.xlu0 %587  ;;  %712 = vperm.xlu0 %2971, %v3574_v14   ;;  %717 = vperm.xlu1 %2972, %v3603_v45   ;;  %v785_v14 = vld [vmem:[#allocation2 + $0xe2] sm:$0xff]  ;;  %v3108_v45 = vpack.i.bf16 %v944_v47, %v943_v59 }
  0xcc   : > { %v537_v59 = vld [vmem:[#allocation2 + $0x20] sm:$0xff] }
  0xcd   : > { %v578_v11 = vpop.permute.xlu1 %577 }
  0xce   : > { %v727_v7 = vmul.f32 %v578_v11, %v535_v61 }
  0xcf   : > { %v3732_v37 = vpop.permute.xlu0 %602  ;;  %722 = vperm.xlu0 %2971, %v3592_v21   ;;  %3094 = vrot.lane.b32.xlu1 %v3611_v46, %s3154_s16  ;;  %v945_v21 = vmul.f32 %v903_v19, %v785_v14  ;;  %v787_v46 = vld [vmem:[#allocation2 + $0xf2] sm:$0xff] }
  0xd0   : > { %v732_v36 = vmul.f32 %v3732_v37, %v540_v48 }
  0xd1   : > { %v583_v8 = vpop.permute.xlu1 %582  ;;  %v3123_v26 = vpack.i.bf16 %v946_v57, %v945_v21 }
  0xd2   : > { %v728_v63 = vmul.f32 %v583_v8, %v536_v53 }
  0xd3   : > { %v2980_v43 = vpop.permute.xlu0 %2979  ;;  %3099 = vrot.lane.b32.xlu0 %v3619_v56, %s3154_s16  ;;  %3104 = vrot.lane.b32.xlu1 %v3103_v50, %s3155_s8  ;;  %v947_v56 = vmul.f32 %v911_v18, %v787_v46 }
  0xd4   : > { %3133 = vset.pattern.permute.xlu0 %v3151_v2  ;;  %v2982_v9 = vunpack.i.h.bf16 %v2980_v43  ;;  %v2981_v19 = vunpack.i.l.bf16 %v2980_v43 }
  0xd5   : > { %v3741_v15 = vpop.permute.xlu1 %592  ;;  %v3128_v2 = vpack.i.bf16 %v948_v17, %v947_v56 }
  0xd6   : > { %v1207_v54 = vsel %vm468_vm0, %v727_v7, %v2981_v19  ;;  %v1208_v55 = vsel %vm468_vm0, %v728_v63, %v2982_v9  ;;  %v541_v7 = vld [vmem:[#allocation2 + $0x40] sm:$0xff] }
  0xd7   : > { %v3743_v24 = vpop.permute.xlu0 %612  ;;  %3109 = vrot.lane.b32.xlu0 %v3108_v45, %s3155_s8  ;;  %3114 = vrot.lane.b32.xlu1 %v3623_v1, %s3154_s16  ;;  %v538_v45 = vld [vmem:[#allocation2 + $0x28] sm:$0xff] }
  0xd8   : > { %v730_v17 = vmul.f32 %v3741_v15, %v538_v45 }
  0xd9   : > { %v598_v34 = vpop.permute.xlu1 %597 }
  0xda   : > { %v731_v8 = vmul.f32 %v598_v34, %v539_v41 }
  0xdb   : > { %v3748_v25 = vpop.permute.xlu0 %622  ;;  %3119 = vrot.lane.b32.xlu0 %v3627_v0, %s3154_s16  ;;  %3124 = vrot.lane.b32.xlu1 %v3123_v26, %s3155_s8  ;;  %v729_v26 = vmul.f32 %v3728_v58, %v537_v59 }
  0xdd   : > { %v2975_v27 = vpop.permute.xlu1 %2974 }
  0xde   : > { %v2977_v62 = vunpack.i.h.bf16 %v2975_v27  ;;  %v2976_v11 = vunpack.i.l.bf16 %v2975_v27 }
  0xdf   : > { %v2990_v33 = vpop.permute.xlu0 %2989  ;;  %3129 = vrot.lane.b32.xlu0 %v3128_v2, %s3155_s8 }
  0xe0   : > { %v2992_v40 = vunpack.i.h.bf16 %v2990_v33  ;;  %v2991_v10 = vunpack.i.l.bf16 %v2990_v33  ;;  %v1205_v46 = vsel %vm468_vm0, %v725_v39, %v2976_v11  ;;  %v1206_v29 = vsel %vm468_vm0, %v726_v13, %v2977_v62  ;;  %v544_v13 = vld [vmem:[#allocation2 + $0x58] sm:$0xff] }
  0xe1   : > { %v3754_v44 = vpop.permute.xlu1 %607 }
  0xe2   : > { %v1212_v2 = vsel %vm468_vm0, %v732_v36, %v2992_v40  ;;  %v1211_v27 = vsel %vm468_vm0, %v731_v8, %v2991_v10  ;;  %v543_v36 = vld [vmem:[#allocation2 + $0x50] sm:$0xff]  ;;  %v736_v10 = vmul.f32 %v3748_v25, %v544_v13 }
  0xe3   : > { %v3756_v1 = vpop.permute.xlu0 %632 }
  0xe5   : > { %v3758_v23 = vpop.permute.xlu1 %617 }
  0xe7   : > { %v3762_v12 = vpop.permute.xlu0 %642 }
  0xe9   : > { %v3760_v60 = vpop.permute.xlu1 %2984 }
  0xea   : > { %v2987_v35 = vunpack.i.h.bf16 %v3760_v60  ;;  %v2986_v37 = vunpack.i.l.bf16 %v3760_v60 }
  0xeb   : > { %v3766_v0 = vpop.permute.xlu0 %2999 }
  0xec   : > { %v1210_v58 = vsel %vm468_vm0, %v730_v17, %v2987_v35  ;;  %v1209_v20 = vsel %vm468_vm0, %v729_v26, %v2986_v37  ;;  %v3001_v59 = vunpack.i.l.bf16 %v3766_v0  ;;  %v3141_v35 = vld [vmem:[%s4235_s2 + $0x38] sm:$0xff]  }
  0xed   : > { %v3764_v32 = vpop.permute.xlu1 %627 }
  0xef   : > { %v3772_v16 = vpop.permute.xlu0 %652 }
  0xf1   : > { %v3768_v49 = vpop.permute.xlu1 %637 }
  0xf3   : > { %v3776_v28 = vpop.permute.xlu0 %662 }
  0xf5   : > { %v3770_v22 = vpop.permute.xlu1 %2994 }
  0xf6   : > { %v2997_v48 = vunpack.i.h.bf16 %v3770_v22  ;;  %v2996_v15 = vunpack.i.l.bf16 %v3770_v22 }
  0xf9   : > { %v3774_v4 = vpop.permute.xlu1 %647 }
  0xfd   : > { %v3778_v5 = vpop.permute.xlu1 %657 }
 0x101   : > { %v3015_v30 = vpop.permute.xlu0 %3014  ;;  %v3780_v38 = vpop.permute.xlu1 %3004 }
 0x102   : > { %v3017_v18 = vunpack.i.h.bf16 %v3015_v30  ;;  %v3016_v51 = vunpack.i.l.bf16 %v3015_v30  ;;  %v3006_v25 = vunpack.i.l.bf16 %v3780_v38 }
 0x104   : > { %v1240_v50 = vsel %vm1237_vm3, %v1207_v54, %v3016_v51  ;;  %v1241_v47 = vsel %vm1237_vm3, %v1208_v55, %v3017_v18  ;;  %v734_v51 = vmul.f32 %v3743_v24, %v542_v6  ;;  %v733_v54 = vmul.f32 %v3754_v44, %v541_v7  ;;  %v547_v6 = vld [vmem:[#allocation2 + $0x70] sm:$0xff] }
 0x105   : > { %v1271_v14 = vpack.c.bf16 %v1241_v47, %v1240_v50  ;;  %v3010_v43 = vpop.permute.xlu1 %3009  ;;  %v3002_v47 = vunpack.i.h.bf16 %v3766_v0  ;;  %v545_v0 = vld [vmem:[#allocation2 + $0x60] sm:$0xff] }
 0x106   : > { %v3012_v57 = vunpack.i.h.bf16 %v3010_v43  ;;  %v3011_v21 = vunpack.i.l.bf16 %v3010_v43  ;;  %v1214_v8 = vsel %vm468_vm0, %v734_v51, %v2997_v48  ;;  %v1213_v40 = vsel %vm468_vm0, %v733_v54, %v2996_v15 }
 0x107   : > { %1290 = vst.msk [vmem:[#allocation3 + $0x10] sm:$0xff] %vm1286_vm2, %v1271_v14  ;;  %v546_v14 = vld [vmem:[#allocation2 + $0x68] sm:$0xff]  ;;  %v735_v43 = vmul.f32 %v3758_v23, %v543_v36  ;;  %v1216_v37 = vsel %vm468_vm0, %v736_v10, %v3002_v47  ;;  %v739_v48 = vmul.f32 %v3768_v49, %v547_v6 }
 0x108   : > { %v1238_v56 = vsel %vm1237_vm3, %v1205_v46, %v3011_v21  ;;  %v1239_v34 = vsel %vm1237_vm3, %v1206_v29, %v3012_v57 }
 0x109   : > { %v1270_v33 = vpack.c.bf16 %v1239_v34, %v1238_v56  ;;  %v3025_v61 = vpop.permute.xlu0 %3024  ;;  %v3020_v53 = vpop.permute.xlu1 %3019  ;;  %v1215_v26 = vsel %vm468_vm0, %v735_v43, %v3001_v59  ;;  %v3007_v56 = vunpack.i.h.bf16 %v3780_v38  ;;  %v738_v38 = vmul.f32 %v3756_v1, %v546_v14  ;;  %v3142_v1 = vld [vmem:[%s4235_s2 + $0x40] sm:$0xff]   ;;  %v550_v59 = vld [vmem:[#allocation2 + $0x88] sm:$0xff] }
 0x10a   : > { %v3027_v60 = vunpack.i.h.bf16 %v3025_v61  ;;  %v3026_v63 = vunpack.i.l.bf16 %v3025_v61  ;;  %v3022_v9 = vunpack.i.h.bf16 %v3020_v53  ;;  %v3021_v19 = vunpack.i.l.bf16 %v3020_v53 }
 0x10b   : > { %1289 = vst.msk [vmem:[#allocation3 + $0x8] sm:$0xff] %vm1286_vm2, %v1270_v33 }
 0x10c   : > { %v1245_v30 = vsel %vm1237_vm3, %v1212_v2, %v3027_v60  ;;  %v1244_v39 = vsel %vm1237_vm3, %v1211_v27, %v3026_v63  ;;  %v1243_v41 = vsel %vm1237_vm3, %v1210_v58, %v3022_v9  ;;  %v1242_v18 = vsel %vm1237_vm3, %v1209_v20, %v3021_v19  ;;  %v548_v2 = vld [vmem:[#allocation2 + $0x78] sm:$0xff] }
 0x10d   : > { %v1273_v55 = vpack.c.bf16 %v1245_v30, %v1244_v39  ;;  %v1272_v62 = vpack.c.bf16 %v1243_v41, %v1242_v18  ;;  %v3030_v11 = vpop.permute.xlu1 %3029  ;;  %v737_v27 = vmul.f32 %v3764_v32, %v545_v0  ;;  %v1218_v32 = vsel %vm468_vm0, %v738_v38, %v3007_v56 }
 0x10e   : > { %v3032_v22 = vunpack.i.h.bf16 %v3030_v11  ;;  %v3031_v50 = vunpack.i.l.bf16 %v3030_v11  ;;  %v3831_v23 = vld [vmem:[#allocation3 + $0x10] sm:$0xff]  ;;  %v740_v20 = vmul.f32 %v3762_v12, %v548_v2 }
 0x10f   : > { %1292 = vst.msk [vmem:[#allocation3 + $0x20] sm:$0xff] %vm1286_vm2, %v1273_v55  ;;  %1291 = vst.msk [vmem:[#allocation3 + $0x18] sm:$0xff] %vm1286_vm2, %v1272_v62  ;;  %v1217_v9 = vsel %vm468_vm0, %v737_v27, %v3006_v25 }
 0x110   : > { %v1247_v24 = vsel %vm1237_vm3, %v1214_v8, %v3032_v22  ;;  %v1246_v44 = vsel %vm1237_vm3, %v1213_v40, %v3031_v50  ;;  %v549_v8 = vld [vmem:[#allocation2 + $0x80] sm:$0xff] }
 0x111   : > { %v1274_v45 = vpack.c.bf16 %v1247_v24, %v1246_v44  ;;  %v3035_v57 = vpop.permute.xlu0 %3034  ;;  %v742_v44 = vmul.f32 %v3772_v16, %v550_v59  ;;  %v741_v10 = vmul.f32 %v3774_v4, %v549_v8 }
 0x112   : > { %v3037_v21 = vunpack.i.h.bf16 %v3035_v57  ;;  %v3036_v46 = vunpack.i.l.bf16 %v3035_v57  ;;  %v1306_v29 = vld [vmem:[#allocation3 + $0x8] sm:$0xff] }
 0x113   : > { %1293 = vst.msk [vmem:[#allocation3 + $0x28] sm:$0xff] %vm1286_vm2, %v1274_v45  ;;  %2776 = vmatprep.mubr.msk.bf16.mxu1 %vm1286_vm2, %v1306_v29  ;;  %2815 = vmatmul.mubr.msk.bf16.vlgmr.msra.gmra.mrb[0].mxu0 %vm1286_vm2, %v1306_v29  ;;  %v552_v45 = vld [vmem:[#allocation2 + $0x98] sm:$0xff]  ;;  %v551_v57 = vld [vmem:[#allocation2 + $0x90] sm:$0xff] }
 0x114   : > { %v1249_v34 = vsel %vm1237_vm3, %v1216_v37, %v3037_v21  ;;  %v1248_v17 = vsel %vm1237_vm3, %v1215_v26, %v3036_v46  ;;  %2777 = vmatmul.mubr.msk.bf16.vlgmr.msra.gmra.mrb[0].mxu1 %vm1286_vm2, %v3831_v23  ;;  %2818 = vmatprep.mubr.msk.bf16.mxu0 %vm1286_vm2, %v3831_v23  ;;  %v744_v26 = vmul.f32 %v3776_v28, %v552_v45  ;;  %v558_v45 = vld [vmem:[#allocation2 + $0xc8] sm:$0xff] }
 0x115   : > { %v1275_v33 = vpack.c.bf16 %v1249_v34, %v1248_v17  ;;  %v3040_v61 = vpop.permute.xlu0 %3039  ;;  %v3045_v53 = vpop.permute.xlu1 %3044  ;;  %2847 = vmatpush3.bf16.msra.mxu0 %v3699_v42  ;;  %2887 = vmatpush3.bf16.msra.mxu1 %v3658_v3  ;;  %v743_v56 = vmul.f32 %v3778_v5, %v551_v57 }
 0x116   : > { %v3047_v7 = vunpack.i.h.bf16 %v3045_v53  ;;  %v3046_v60 = vunpack.i.l.bf16 %v3045_v53  ;;  %v3843_v63 = vld [vmem:[#allocation3 + $0x18] sm:$0xff]  ;;  %2848 = vmatprep.subr.bf16.mxu0 %v3141_v35  ;;  %2885 = vmatprep.subr.bf16.mxu1 %v3668_v31  ;;  %v3042_v42 = vunpack.i.h.bf16 %v3040_v61  ;;  %v3041_v3 = vunpack.i.l.bf16 %v3040_v61  ;;  %v1309_v12 = vld [vmem:[#allocation3 + $0x20] sm:$0xff] }
 0x117   : > { %1294 = vst.msk [vmem:[#allocation3 + $0x30] sm:$0xff] %vm1286_vm2, %v1275_v33  ;;  %2780 = vmatprep.mubr.msk.bf16.mxu1 %vm1286_vm2, %v3843_v63 }
 0x118   : > { %v1251_v19 = vsel %vm1237_vm3, %v1218_v32, %v3047_v7  ;;  %v1250_v58 = vsel %vm1237_vm3, %v1217_v9, %v3046_v60  ;;  %v1220_v18 = vsel %vm468_vm0, %v740_v20, %v3042_v42  ;;  %v1219_v51 = vsel %vm468_vm0, %v739_v48, %v3041_v3  ;;  %v553_v60 = vld [vmem:[#allocation2 + $0xa0] sm:$0xff]  ;;  %v555_v20 = vld [vmem:[#allocation2 + $0xb0] sm:$0xff]  ;;  %v556_v48 = vld [vmem:[#allocation2 + $0xb8] sm:$0xff] }
 0x119   : > { %v1276_v15 = vpack.c.bf16 %v1251_v19, %v1250_v58  ;;  %v3050_v30 = vpop.permute.xlu0 %3049  ;;  %2849 = vmatpush3.bf16.msra.mxu0 %v3141_v35  ;;  %2888 = vmatpush3.bf16.msra.mxu1 %v3668_v31 }
 0x11a   : > { %v3052_v39 = vunpack.i.h.bf16 %v3050_v30  ;;  %v3051_v41 = vunpack.i.l.bf16 %v3050_v30  ;;  %2850 = vmatprep.subr.bf16.mxu0 %v3142_v1  ;;  %2886 = vmatprep.subr.bf16.mxu1 %v3678_v52  ;;  %v1310_v31 = vld [vmem:[#allocation3 + $0x28] sm:$0xff] }
 0x11b   : > { %1295 = vst.msk [vmem:[#allocation3 + $0x38] sm:$0xff] %vm1286_vm2, %v1276_v15  ;;  %2819 = vmatmul.mubr.msk.bf16.gmra.mrb[4].mxu0 %vm1286_vm2, %v3843_v63 }
 0x11c   : > { %v1252_v49 = vsel %vm1237_vm3, %v1219_v51, %v3051_v41  ;;  %v1253_v54 = vsel %vm1237_vm3, %v1220_v18, %v3052_v39  ;;  %2781 = vmatmul.mubr.msk.bf16.gmra.mrb[4].mxu1 %vm1286_vm2, %v1309_v12  ;;  %2822 = vmatprep.mubr.msk.bf16.mxu0 %vm1286_vm2, %v1309_v12 }
 0x11d   : > { %v1277_v55 = vpack.c.bf16 %v1253_v54, %v1252_v49  ;;  %2784 = vmatprep.mubr.msk.bf16.mxu1 %vm1286_vm2, %v1310_v31  ;;  %2851 = vmatpush3.bf16.msra.mxu0 %v3142_v1 }
 0x11e   : > { %2889 = vmatpush3.bf16.msra.mxu1 %v3678_v52  ;;  %v1311_v62 = vld [vmem:[#allocation3 + $0x30] sm:$0xff] }
 0x11f   : > { %1296 = vst.msk [vmem:[#allocation3 + $0x40] sm:$0xff] %vm1286_vm2, %v1277_v55 }
 0x122   : > { %v3875_v11 = vld [vmem:[#allocation3 + $0x38] sm:$0xff] }
 0x123   : > { %2823 = vmatmul.mubr.msk.bf16.gmra.mrb[8].mxu0 %vm1286_vm2, %v1310_v31 }
 0x124   : > { %2785 = vmatmul.mubr.msk.bf16.gmra.mrb[8].mxu1 %vm1286_vm2, %v1311_v62  ;;  %2826 = vmatprep.mubr.msk.bf16.mxu0 %vm1286_vm2, %v1311_v62 }
 0x125   : > { %2788 = vmatprep.mubr.msk.bf16.mxu1 %vm1286_vm2, %v3875_v11 }
 0x126   : > { %v668_v13 = vpop.permute.xlu1 %667  ;;  %v3883_v52 = vld [vmem:[#allocation3 + $0x40] sm:$0xff] }
 0x127   : > { %v745_v42 = vmul.f32 %v668_v13, %v553_v60  ;;  %v561_v60 = vld [vmem:[#allocation2 + $0xe0] sm:$0xff] }
 0x12a   : > { %v673_v36 = vpop.permute.xlu0 %672  ;;  %v3879_v22 = vpop.permute.xlu1 %677 }
 0x12b   : > { %2827 = vmatmul.mubr.msk.bf16.gmra.mrb[12].mxu0 %vm1286_vm2, %v3875_v11 }
 0x12c   : > { %2789 = vmatmul.mubr.msk.bf16.gmra.mrb[12].mxu1 %vm1286_vm2, %v3883_v52  ;;  %2852 = vmatprep.mubr.msk.bf16.mxu0 %vm1286_vm2, %v3831_v23 }
 0x12e   : > { %v3889_v50 = vpop.permute.xlu0 %682  ;;  %v3055_v47 = vpop.permute.xlu1 %3054 }
 0x12f   : > { %v3057_v40 = vunpack.i.h.bf16 %v3055_v47  ;;  %v3056_v24 = vunpack.i.l.bf16 %v3055_v47  ;;  %v748_v55 = vmul.f32 %v3889_v50, %v556_v48 }
 0x131   : > { %v1222_v46 = vsel %vm468_vm0, %v742_v44, %v3057_v40  ;;  %v1221_v29 = vsel %vm468_vm0, %v741_v10, %v3056_v24 }
 0x132   : > { %v3060_v14 = vpop.permute.xlu0 %3059  ;;  %v3065_v43 = vpop.permute.xlu1 %3064 }
 0x133   : > { %v3067_v0 = vunpack.i.h.bf16 %v3065_v43  ;;  %v3066_v21 = vunpack.i.l.bf16 %v3065_v43  ;;  %2853 = vmatmul.mubr.msk.bf16.vlgmr.msra.gmra.mrb[0].mxu0 %vm1286_vm2, %v3843_v63  ;;  %v3062_v35 = vunpack.i.h.bf16 %v3060_v14  ;;  %v3061_v37 = vunpack.i.l.bf16 %v3060_v14  ;;  %v554_v63 = vld [vmem:[#allocation2 + $0xa8] sm:$0xff]  ;;  %v557_v43 = vld [vmem:[#allocation2 + $0xc0] sm:$0xff] }
 0x134   : > { %2856 = vmatprep.mubr.msk.bf16.mxu0 %vm1286_vm2, %v1309_v12  ;;  %v746_v3 = vmul.f32 %v673_v36, %v554_v63  ;;  %v562_v63 = vld [vmem:[#allocation2 + $0xe8] sm:$0xff] }
 0x135   : > { %v1254_v16 = vsel %vm1237_vm3, %v1221_v29, %v3066_v21  ;;  %v1255_v4 = vsel %vm1237_vm3, %v1222_v46, %v3067_v0  ;;  %v1224_v2 = vsel %vm468_vm0, %v744_v26, %v3062_v35  ;;  %v1223_v27 = vsel %vm468_vm0, %v743_v56, %v3061_v37 }
 0x136   : > { %v1278_v25 = vpack.c.bf16 %v1255_v4, %v1254_v16  ;;  %v3070_v23 = vpop.permute.xlu0 %3069  ;;  %v3902_v34 = vpop.permute.xlu1 %687  ;;  %v559_v16 = vld [vmem:[#allocation2 + $0xd0] sm:$0xff]  ;;  %v560_v4 = vld [vmem:[#allocation2 + $0xd8] sm:$0xff] }
 0x137   : > { %v3072_v17 = vunpack.i.h.bf16 %v3070_v23  ;;  %v3071_v38 = vunpack.i.l.bf16 %v3070_v23  ;;  %v749_v46 = vmul.f32 %v3902_v34, %v557_v43 }
 0x138   : > { %1297 = vst.msk [vmem:[#allocation3 + $0x48] sm:$0xff] %vm1286_vm2, %v1278_v25 }
 0x139   : > { %v1256_v33 = vsel %vm1237_vm3, %v1223_v27, %v3071_v38  ;;  %v1257_v61 = vsel %vm1237_vm3, %v1224_v2, %v3072_v17 }
 0x13a   : > { %v1279_v53 = vpack.c.bf16 %v1257_v61, %v1256_v33  ;;  %v693_v28 = vpop.permute.xlu0 %692  ;;  %v3909_v6 = vpop.permute.xlu1 %697 }
 0x13b   : > { %2857 = vmatmul.mubr.msk.bf16.gmra.mrb[4].mxu0 %vm1286_vm2, %v1310_v31  ;;  %v747_v31 = vmul.f32 %v3879_v22, %v555_v20  ;;  %v750_v29 = vmul.f32 %v693_v28, %v558_v45  ;;  %v751_v33 = vmul.f32 %v3909_v6, %v559_v16 }
 0x13c   : > { %1298 = vst.msk [vmem:[#allocation3 + $0x50] sm:$0xff] %vm1286_vm2, %v1279_v53  ;;  %2860 = vmatprep.mubr.msk.bf16.mxu0 %vm1286_vm2, %v1311_v62 }
 0x13e   : > { %v3914_v5 = vpop.permute.xlu0 %702  ;;  %v3075_v7 = vpop.permute.xlu1 %3074 }
 0x13f   : > { %v3916_v1 = vld [vmem:[#allocation3 + $0x48] sm:$0xff]  ;;  %v3077_v32 = vunpack.i.h.bf16 %v3075_v7  ;;  %v3076_v9 = vunpack.i.l.bf16 %v3075_v7  ;;  %v752_v61 = vmul.f32 %v3914_v5, %v560_v4 }
 0x140   : > { %2792 = vmatprep.mubr.msk.bf16.mxu1 %vm1286_vm2, %v3916_v1 }
 0x141   : > { %v1226_v41 = vsel %vm468_vm0, %v746_v3, %v3077_v32  ;;  %v1225_v18 = vsel %vm468_vm0, %v745_v42, %v3076_v9 }
 0x142   : > { %v3080_v19 = vpop.permute.xlu0 %3079  ;;  %v3085_v58 = vpop.permute.xlu1 %3084 }
 0x143   : > { %v3087_v15 = vunpack.i.h.bf16 %v3085_v58  ;;  %v3086_v30 = vunpack.i.l.bf16 %v3085_v58  ;;  %2861 = vmatmul.mubr.msk.bf16.gmra.mrb[8].mxu0 %vm1286_vm2, %v3875_v11  ;;  %v3922_v39 = vld [vmem:[#allocation3 + $0x50] sm:$0xff]  ;;  %v3082_v51 = vunpack.i.h.bf16 %v3080_v19  ;;  %v3081_v12 = vunpack.i.l.bf16 %v3080_v19 }
 0x144   : > { %2793 = vmatmul.mubr.msk.bf16.gmra.mrb[16].mxu1 %vm1286_vm2, %v3922_v39  ;;  %2864 = vmatprep.mubr.msk.bf16.mxu0 %vm1286_vm2, %v3883_v52 }
 0x145   : > { %v1258_v49 = vsel %vm1237_vm3, %v1225_v18, %v3086_v30  ;;  %v1259_v54 = vsel %vm1237_vm3, %v1226_v41, %v3087_v15  ;;  %v1228_v59 = vsel %vm468_vm0, %v748_v55, %v3082_v51  ;;  %v1227_v8 = vsel %vm468_vm0, %v747_v31, %v3081_v12  ;;  %v563_v18 = vld [vmem:[#allocation2 + $0xf0] sm:$0xff]  ;;  %v564_v51 = vld [vmem:[#allocation2 + $0xf8] sm:$0xff] }
 0x146   : > { %v1280_v62 = vpack.c.bf16 %v1259_v54, %v1258_v49  ;;  %v3090_v11 = vpop.permute.xlu0 %3089  ;;  %v708_v13 = vpop.permute.xlu1 %707 }
 0x147   : > { %v3092_v36 = vunpack.i.h.bf16 %v3090_v11  ;;  %v3091_v47 = vunpack.i.l.bf16 %v3090_v11  ;;  %v753_v5 = vmul.f32 %v708_v13, %v561_v60 }
 0x148   : > { %1299 = vst.msk [vmem:[#allocation3 + $0x58] sm:$0xff] %vm1286_vm2, %v1280_v62 }
 0x149   : > { %v1260_v40 = vsel %vm1237_vm3, %v1227_v8, %v3091_v47  ;;  %v1261_v24 = vsel %vm1237_vm3, %v1228_v59, %v3092_v36 }
 0x14a   : > { %v1281_v44 = vpack.c.bf16 %v1261_v24, %v1260_v40  ;;  %v713_v10 = vpop.permute.xlu0 %712  ;;  %v3939_v22 = vpop.permute.xlu1 %717 }
 0x14b   : > { %2865 = vmatmul.mubr.msk.bf16.gmra.mrb[12].mxu0 %vm1286_vm2, %v3916_v1  ;;  %v754_v48 = vmul.f32 %v713_v10, %v562_v63  ;;  %v755_v36 = vmul.f32 %v3939_v22, %v563_v18 }
 0x14c   : > { %1300 = vst.msk [vmem:[#allocation3 + $0x60] sm:$0xff] %vm1286_vm2, %v1281_v44  ;;  %2868 = vmatprep.mubr.msk.bf16.mxu0 %vm1286_vm2, %v3922_v39 }
 0x14e   : > { %v723_v50 = vpop.permute.xlu0 %722  ;;  %v3095_v14 = vpop.permute.xlu1 %3094 }
 0x14f   : > { %v3946_v57 = vld [vmem:[#allocation3 + $0x58] sm:$0xff]  ;;  %v3097_v0 = vunpack.i.h.bf16 %v3095_v14  ;;  %v3096_v21 = vunpack.i.l.bf16 %v3095_v14  ;;  %v756_v47 = vmul.f32 %v723_v50, %v564_v51 }
 0x150   : > { %2796 = vmatprep.mubr.msk.bf16.mxu1 %vm1286_vm2, %v3946_v57 }
 0x151   : > { %v1230_v23 = vsel %vm468_vm0, %v750_v29, %v3097_v0  ;;  %v1229_v17 = vsel %vm468_vm0, %v749_v46, %v3096_v21  ;;  %v1759_v46 = vld [vmem:[#allocation3 + $0x88] sm:$0xff] }
 0x152   : > { %v3100_v35 = vpop.permute.xlu0 %3099  ;;  %v3105_v37 = vpop.permute.xlu1 %3104 }
 0x153   : > { %v3107_v26 = vunpack.i.h.bf16 %v3105_v37  ;;  %v3106_v56 = vunpack.i.l.bf16 %v3105_v37  ;;  %2869 = vmatmul.mubr.msk.bf16.gmra.mrb[16].mxu0 %vm1286_vm2, %v3946_v57  ;;  %v3953_v25 = vld [vmem:[#allocation3 + $0x60] sm:$0xff]  ;;  %v3102_v38 = vunpack.i.h.bf16 %v3100_v35  ;;  %v3101_v2 = vunpack.i.l.bf16 %v3100_v35 }
 0x154   : > { %2797 = vmatmul.mubr.msk.bf16.gmra.mrb[20].mxu1 %vm1286_vm2, %v3953_v25  ;;  %2872 = vmatprep.mubr.msk.bf16.mxu0 %vm1286_vm2, %v3953_v25 }
 0x155   : > { %v1262_v34 = vsel %vm1237_vm3, %v1229_v17, %v3106_v56  ;;  %v1263_v27 = vsel %vm1237_vm3, %v1230_v23, %v3107_v26  ;;  %v1232_v42 = vsel %vm468_vm0, %v752_v61, %v3102_v38  ;;  %v1231_v3 = vsel %vm468_vm0, %v751_v33, %v3101_v2 }
 0x156   : > { %v1282_v53 = vpack.c.bf16 %v1263_v27, %v1262_v34  ;;  %v3110_v28 = vpop.permute.xlu0 %3109  ;;  %v3115_v7 = vpop.permute.xlu1 %3114  ;;  %v4023_v27 = vld [vmem:[%s4236_s3] ss:$0 sm:$0xff] }
 0x157   : > { %v3112_v32 = vunpack.i.h.bf16 %v3110_v28  ;;  %v3111_v9 = vunpack.i.l.bf16 %v3110_v28  ;;  %v3117_v19 = vunpack.i.h.bf16 %v3115_v7  ;;  %v3116_v58 = vunpack.i.l.bf16 %v3115_v7 }
 0x158   : > { %1301 = vst.msk [vmem:[#allocation3 + $0x68] sm:$0xff] %vm1286_vm2, %v1282_v53 }
 0x159   : > { %v1264_v20 = vsel %vm1237_vm3, %v1231_v3, %v3111_v9  ;;  %v1265_v6 = vsel %vm1237_vm3, %v1232_v42, %v3112_v32  ;;  %v1234_v54 = vsel %vm468_vm0, %v754_v48, %v3117_v19  ;;  %v1233_v31 = vsel %vm468_vm0, %v753_v5, %v3116_v58 }
 0x15a   : > { %v1283_v15 = vpack.c.bf16 %v1265_v6, %v1264_v20  ;;  %v3120_v30 = vpop.permute.xlu0 %3119  ;;  %v3125_v41 = vpop.permute.xlu1 %3124 }
 0x15b   : > { %v3127_v12 = vunpack.i.h.bf16 %v3125_v41  ;;  %v3126_v49 = vunpack.i.l.bf16 %v3125_v41  ;;  %v3122_v55 = vunpack.i.h.bf16 %v3120_v30  ;;  %v3121_v62 = vunpack.i.l.bf16 %v3120_v30 }
 0x15c   : > { %1302 = vst.msk [vmem:[#allocation3 + $0x70] sm:$0xff] %vm1286_vm2, %v1283_v15 }
 0x15d   : > { %v1266_v11 = vsel %vm1237_vm3, %v1233_v31, %v3126_v49  ;;  %v1267_v13 = vsel %vm1237_vm3, %v1234_v54, %v3127_v12  ;;  %v1236_v10 = vsel %vm468_vm0, %v756_v47, %v3122_v55  ;;  %v1235_v14 = vsel %vm468_vm0, %v755_v36, %v3121_v62 }
 0x15e   : > { %v1284_v59 = vpack.c.bf16 %v1267_v13, %v1266_v11  ;;  %v3130_v8 = vpop.permute.xlu0 %3129 }
 0x15f   : > { %v3132_v40 = vunpack.i.h.bf16 %v3130_v8  ;;  %v3131_v24 = vunpack.i.l.bf16 %v3130_v8  ;;  %v1318_v44 = vld [vmem:[#allocation3 + $0x68] sm:$0xff] }
 0x160   : > { %1303 = vst.msk [vmem:[#allocation3 + $0x78] sm:$0xff] %vm1286_vm2, %v1284_v59  ;;  %2800 = vmatprep.mubr.msk.bf16.mxu1 %vm1286_vm2, %v1318_v44  ;;  %2873 = vmatmul.mubr.msk.bf16.gmra.mrb[20].mxu0 %vm1286_vm2, %v1318_v44 }
 0x161   : > { %v1268_v43 = vsel %vm1237_vm3, %v1235_v14, %v3131_v24  ;;  %v1269_v22 = vsel %vm1237_vm3, %v1236_v10, %v3132_v40 }
 0x162   : > { %v1285_v50 = vpack.c.bf16 %v1269_v22, %v1268_v43 }
 0x163   : > { %v1319_v45 = vld [vmem:[#allocation3 + $0x70] sm:$0xff] }
 0x164   : > { %1304 = vst.msk [vmem:[#allocation3 + $0x80] sm:$0xff] %vm1286_vm2, %v1285_v50  ;;  %2801 = vmatmul.mubr.msk.bf16.gmra.mrb[24].mxu1 %vm1286_vm2, %v1319_v45  ;;  %2876 = vmatprep.mubr.msk.bf16.mxu0 %vm1286_vm2, %v1319_v45 }
 0x167   : > { %v1320_v0 = vld [vmem:[#allocation3 + $0x78] sm:$0xff] }
 0x168   : > { %2804 = vmatprep.mubr.msk.bf16.mxu1 %vm1286_vm2, %v1320_v0  ;;  %2877 = vmatmul.mubr.msk.bf16.gmra.mrb[24].mxu0 %vm1286_vm2, %v1320_v0 }
 0x16b   : > { %v1327_v21 = vld [vmem:[#allocation3 + $0x80] sm:$0xff] }
 0x16c   : > { %2805 = vmatmul.mubr.msk.bf16.gmra.mrb[28].mxu1 %vm1286_vm2, %v1327_v21  ;;  %2880 = vmatprep.mubr.msk.bf16.mxu0 %vm1286_vm2, %v1327_v21 }
 0x16d   : > { %2830 = vmatprep.mubr.msk.bf16.mxu1 %vm1286_vm2, %v3883_v52 }
 0x170   : > { %2881 = vmatmul.mubr.msk.bf16.gmra.mrb[28].mxu0 %vm1286_vm2, %v1759_v46 }
 0x174   : > { %2831 = vmatmul.mubr.msk.bf16.vlgmr.msra.gmra.mrb[16].mxu1 %vm1286_vm2, %v3916_v1 }
 0x175   : > { %2834 = vmatprep.mubr.msk.bf16.mxu1 %vm1286_vm2, %v3922_v39 }
 0x17c   : > { %2835 = vmatmul.mubr.msk.bf16.gmra.mrb[20].mxu1 %vm1286_vm2, %v3946_v57 }
 0x17d   : > { %2838 = vmatprep.mubr.msk.bf16.mxu1 %vm1286_vm2, %v3953_v25 }
 0x184   : > { %2839 = vmatmul.mubr.msk.bf16.gmra.mrb[24].mxu1 %vm1286_vm2, %v1318_v44 }
 0x185   : > { %2842 = vmatprep.mubr.msk.bf16.mxu1 %vm1286_vm2, %v1319_v45 }
 0x18c   : > { %2843 = vmatmul.mubr.msk.bf16.gmra.mrb[28].mxu1 %vm1286_vm2, %v1320_v0 }
 0x1e7   : > { %v2778_v52 = vpop.f32.mrb[0].mxu1 }
 0x1e8   : > { %v1435_v29 = vpop.f32.mrb[1].mxu1 }
 0x1e9   : > { %v2779_v35 = vpop.f32.mrb[2].mxu1 }
 0x1ea   : > { %v1438_v37 = vpop.f32.mrb[3].mxu1 }
 0x1ef   : > { %v2782_v1 = vpop.f32.mrb[4].mxu1 }
 0x1f0   : > { %v1451_v16 = vpop.f32.mrb[5].mxu1 }
 0x1f1   : > { %v2783_v4 = vpop.f32.mrb[6].mxu1 }
 0x1f2   : > { %v1454_v39 = vpop.f32.mrb[7].mxu1 }
 0x1f7   : > { %v4004_v26 = vpop.f32.mrb[8].mxu1 }
 0x1f8   : > { %v4006_v57 = vpop.f32.mrb[9].mxu1 }
 0x1f9   : > { %v4008_v56 = vpop.f32.mrb[10].mxu1 }
 0x1fa   : > { %v4010_v25 = vpop.f32.mrb[11].mxu1 }
 0x1ff   : > { %v4012_v23 = vpop.f32.mrb[12].mxu1 }
 0x200   : > { %v4014_v17 = vpop.f32.mrb[13].mxu1 }
 0x201   : > { %v4016_v38 = vpop.f32.mrb[14].mxu1 }
 0x202   : > { %v4018_v2 = vpop.f32.mrb[15].mxu1 }
 0x206   : > { %v2854_v34 = vpop.f32.mrb[0].mxu0 }
 0x207   : > { %v2890_v33 = vadd.f32 %v2854_v34, %v2778_v52  ;;  %v1867_v61 = vpop.f32.mrb[1].mxu0 }
 0x208   : > { %v2891_v53 = vadd.f32 %v1867_v61, %v1435_v29  ;;  %v2855_v28 = vpop.f32.mrb[2].mxu0 }
 0x209   : > { %v2035_v7 = vadd.f32 %v2890_v33, %v4023_v27  ;;  %v2892_v60 = vadd.f32 %v2855_v28, %v2779_v35  ;;  %v1870_v63 = vpop.f32.mrb[3].mxu0 }
 0x20a   : > { %v2033_v32 = vadd.f32 %v2891_v53, %v4023_v27  ;;  %v2893_v9 = vadd.f32 %v1870_v63, %v1438_v37 }
 0x20b   : > { %v2604_v42 = vpack.c.bf16 %v2035_v7, %v2035_v7  ;;  %v2036_v3 = vadd.f32 %v2892_v60, %v4023_v27  ;;  %v2298_v6 = vmul.f32 %v2035_v7, %v2035_v7  ;;  %v2229_v31 = vsel %vm468_vm0, %v2035_v7, 0.0 }
 0x20c   : > { %v2602_v19 = vpack.c.bf16 %v2033_v32, %v2033_v32  ;;  %v2296_v58 = vmul.f32 %v2033_v32, %v2033_v32  ;;  %v2034_v20 = vadd.f32 %v2893_v9, %v4023_v27  ;;  %v2226_v48 = vsel %vm468_vm0, %v2033_v32, 0.0 }
 0x20d   : > { %2196 = vst.msk [vmem:[%s4031_s20 + $0x8] sm:$0xf] %vm2193_vm4, %v2604_v42  ;;  %v2605_v5 = vpack.c.bf16 %v2036_v3, %v2036_v3  ;;  %v2299_v51 = vmul.f32 %v2036_v3, %v2036_v3  ;;  %v2331_v24 = vsel %vm468_vm0, %v2298_v6, 0.0  ;;  %v2231_v14 = vsel %vm468_vm0, %v2036_v3, 0.0 }
 0x20e   : > { %2194 = vst.msk [vmem:[%s4031_s20] sm:$0xf] %vm2193_vm4, %v2602_v19  ;;  %v2603_v15 = vpack.c.bf16 %v2034_v20, %v2034_v20  ;;  %v2227_v30 = vsel %vm468_vm0, %v2034_v20, 0.0  ;;  %v2297_v41 = vmul.f32 %v2034_v20, %v2034_v20  ;;  %v2858_v18 = vpop.f32.mrb[4].mxu0  ;;  %v2328_v55 = vsel %vm468_vm0, %v2296_v58, 0.0 }
 0x20f   : > { %2197 = vst.msk [vmem:[%s4031_s20 + $0xc] sm:$0xf] %vm2193_vm4, %v2605_v5  ;;  %v2228_v12 = vadd.f32 %v2227_v30, %v2226_v48  ;;  %v2894_v49 = vadd.f32 %v2858_v18, %v2782_v1  ;;  %v1883_v54 = vpop.f32.mrb[5].mxu0  ;;  %v2333_v43 = vsel %vm468_vm0, %v2299_v51, 0.0 }
 0x210   : > { %2195 = vst.msk [vmem:[%s4031_s20 + $0x4] sm:$0xf] %vm2193_vm4, %v2603_v15  ;;  %v2329_v62 = vsel %vm468_vm0, %v2297_v41, 0.0  ;;  %v2895_v11 = vadd.f32 %v1883_v54, %v1451_v16  ;;  %v2859_v13 = vpop.f32.mrb[6].mxu0 }
 0x211   : > { %v2230_v36 = vadd.f32 %v2229_v31, %v2228_v12  ;;  %v2330_v47 = vadd.f32 %v2329_v62, %v2328_v55  ;;  %v2039_v59 = vadd.f32 %v2894_v49, %v4023_v27  ;;  %v2896_v8 = vadd.f32 %v2859_v13, %v2783_v4  ;;  %v1886_v40 = vpop.f32.mrb[7].mxu0 }
 0x212   : > { %v2037_v44 = vadd.f32 %v2895_v11, %v4023_v27  ;;  %v2897_v10 = vadd.f32 %v1886_v40, %v1454_v39 }
 0x213   : > { %v2332_v22 = vadd.f32 %v2331_v24, %v2330_v47  ;;  %v2608_v50 = vpack.c.bf16 %v2039_v59, %v2039_v59  ;;  %v2232_v0 = vadd.f32 %v2231_v14, %v2230_v36  ;;  %v2040_v29 = vadd.f32 %v2896_v8, %v4023_v27 }
 0x214   : > { %v2606_v45 = vpack.c.bf16 %v2037_v44, %v2037_v44  ;;  %v2233_v21 = vsel %vm468_vm0, %v2037_v44, 0.0  ;;  %v2300_v46 = vmul.f32 %v2037_v44, %v2037_v44  ;;  %v2038_v35 = vadd.f32 %v2897_v10, %v4023_v27 }
 0x215   : > { %2200 = vst.msk [vmem:[%s4031_s20 + $0x18] sm:$0xf] %vm2193_vm4, %v2608_v50  ;;  %v2334_v52 = vadd.f32 %v2333_v43, %v2332_v22  ;;  %v2234_v37 = vadd.f32 %v2233_v21, %v2232_v0  ;;  %v2302_v4 = vmul.f32 %v2039_v59, %v2039_v59  ;;  %v2609_v34 = vpack.c.bf16 %v2040_v29, %v2040_v29 }
 0x216   : > { %2198 = vst.msk [vmem:[%s4031_s20 + $0x10] sm:$0xf] %vm2193_vm4, %v2606_v45  ;;  %v2335_v1 = vsel %vm468_vm0, %v2300_v46, 0.0  ;;  %v2862_v16 = vpop.f32.mrb[8].mxu0  ;;  %v2607_v61 = vpack.c.bf16 %v2038_v35, %v2038_v35  ;;  %v2235_v53 = vsel %vm468_vm0, %v2038_v35, 0.0  ;;  %v2301_v28 = vmul.f32 %v2038_v35, %v2038_v35 }
 0x217   : > { %v2336_v39 = vadd.f32 %v2335_v1, %v2334_v52  ;;  %v1899_v33 = vpop.f32.mrb[9].mxu0  ;;  %v2898_v7 = vadd.f32 %v2862_v16, %v4004_v26  ;;  %v2237_v63 = vsel %vm468_vm0, %v2039_v59, 0.0  ;;  %2201 = vst.msk [vmem:[%s4031_s20 + $0x1c] sm:$0xf] %vm2193_vm4, %v2609_v34  ;;  %v2236_v32 = vadd.f32 %v2235_v53, %v2234_v37 }
 0x218   : > { %v2863_v60 = vpop.f32.mrb[10].mxu0  ;;  %v2899_v9 = vadd.f32 %v1899_v33, %v4006_v57  ;;  %v2303_v19 = vmul.f32 %v2040_v29, %v2040_v29  ;;  %2199 = vst.msk [vmem:[%s4031_s20 + $0x14] sm:$0xf] %vm2193_vm4, %v2607_v61  ;;  %v2337_v58 = vsel %vm468_vm0, %v2301_v28, 0.0  ;;  %v2339_v57 = vsel %vm468_vm0, %v2302_v4, 0.0 }
 0x219   : > { %v2900_v42 = vadd.f32 %v2863_v60, %v4008_v56  ;;  %v1902_v3 = vpop.f32.mrb[11].mxu0  ;;  %v2043_v20 = vadd.f32 %v2898_v7, %v4023_v27  ;;  %v2238_v6 = vadd.f32 %v2237_v63, %v2236_v32  ;;  %v2338_v5 = vadd.f32 %v2337_v58, %v2336_v39 }
 0x21a   : > { %v2901_v26 = vadd.f32 %v1902_v3, %v4010_v25  ;;  %v2041_v48 = vadd.f32 %v2899_v9, %v4023_v27  ;;  %v2239_v56 = vsel %vm468_vm0, %v2040_v29, 0.0  ;;  %v2341_v49 = vsel %vm468_vm0, %v2303_v19, 0.0 }
 0x21b   : > { %v2044_v15 = vadd.f32 %v2900_v42, %v4023_v27  ;;  %v2612_v30 = vpack.c.bf16 %v2043_v20, %v2043_v20  ;;  %v2340_v18 = vadd.f32 %v2339_v57, %v2338_v5  ;;  %v2240_v12 = vadd.f32 %v2239_v56, %v2238_v6 }
 0x21c   : > { %v2042_v41 = vadd.f32 %v2901_v26, %v4023_v27  ;;  %v2610_v51 = vpack.c.bf16 %v2041_v48, %v2041_v48  ;;  %v2241_v25 = vsel %vm468_vm0, %v2041_v48, 0.0  ;;  %v2245_v54 = vsel %vm468_vm0, %v2043_v20, 0.0 }
 0x21d   : > { %2204 = vst.msk [vmem:[%s4031_s20 + $0x28] sm:$0xf] %vm2193_vm4, %v2612_v30  ;;  %v2304_v31 = vmul.f32 %v2041_v48, %v2041_v48  ;;  %v2613_v55 = vpack.c.bf16 %v2044_v15, %v2044_v15  ;;  %v2306_v11 = vmul.f32 %v2043_v20, %v2043_v20  ;;  %v2242_v13 = vadd.f32 %v2241_v25, %v2240_v12 }
 0x21e   : > { %v2866_v62 = vpop.f32.mrb[12].mxu0  ;;  %2202 = vst.msk [vmem:[%s4031_s20 + $0x20] sm:$0xf] %vm2193_vm4, %v2610_v51  ;;  %v2342_v36 = vadd.f32 %v2341_v49, %v2340_v18  ;;  %v2611_v47 = vpack.c.bf16 %v2042_v41, %v2042_v41  ;;  %v2243_v40 = vsel %vm468_vm0, %v2042_v41, 0.0  ;;  %v2305_v24 = vmul.f32 %v2042_v41, %v2042_v41 }
 0x21f   : > { %v1915_v59 = vpop.f32.mrb[13].mxu0  ;;  %v2343_v8 = vsel %vm468_vm0, %v2304_v31, 0.0  ;;  %2205 = vst.msk [vmem:[%s4031_s20 + $0x2c] sm:$0xf] %vm2193_vm4, %v2613_v55  ;;  %v2902_v44 = vadd.f32 %v2866_v62, %v4012_v23  ;;  %v2307_v43 = vmul.f32 %v2044_v15, %v2044_v15  ;;  %v2244_v22 = vadd.f32 %v2243_v40, %v2242_v13 }
 0x220   : > { %v2867_v10 = vpop.f32.mrb[14].mxu0  ;;  %v2344_v14 = vadd.f32 %v2343_v8, %v2342_v36  ;;  %2203 = vst.msk [vmem:[%s4031_s20 + $0x24] sm:$0xf] %vm2193_vm4, %v2611_v47  ;;  %v2903_v50 = vadd.f32 %v1915_v59, %v4014_v17  ;;  %v2345_v0 = vsel %vm468_vm0, %v2305_v24, 0.0  ;;  %v2347_v37 = vsel %vm468_vm0, %v2306_v11, 0.0 }
 0x221   : > { %v1918_v45 = vpop.f32.mrb[15].mxu0  ;;  %v2047_v21 = vadd.f32 %v2902_v44, %v4023_v27  ;;  %v2904_v46 = vadd.f32 %v2867_v10, %v4016_v38  ;;  %v2246_v29 = vadd.f32 %v2245_v54, %v2244_v22  ;;  %v2247_v1 = vsel %vm468_vm0, %v2044_v15, 0.0 }
 0x222   : > { %v2905_v52 = vadd.f32 %v1918_v45, %v4018_v2  ;;  %v2346_v23 = vadd.f32 %v2345_v0, %v2344_v14  ;;  %v2045_v35 = vadd.f32 %v2903_v50, %v4023_v27  ;;  %v2349_v2 = vsel %vm468_vm0, %v2307_v43, 0.0 }
 0x223   : > { %v2616_v17 = vpack.c.bf16 %v2047_v21, %v2047_v21  ;;  %v2048_v16 = vadd.f32 %v2904_v46, %v4023_v27  ;;  %v2248_v34 = vadd.f32 %v2247_v1, %v2246_v29  ;;  %v2310_v20 = vmul.f32 %v2047_v21, %v2047_v21 }
 0x224   : > { %v2348_v4 = vadd.f32 %v2347_v37, %v2346_v23  ;;  %v2614_v39 = vpack.c.bf16 %v2045_v35, %v2045_v35  ;;  %v2249_v38 = vsel %vm468_vm0, %v2045_v35, 0.0  ;;  %v2308_v33 = vmul.f32 %v2045_v35, %v2045_v35 }
 0x225   : > { %2208 = vst.msk [vmem:[%s4031_s20 + $0x38] sm:$0xf] %vm2193_vm4, %v2616_v17  ;;  %v2617_v61 = vpack.c.bf16 %v2048_v16, %v2048_v16  ;;  %v2250_v28 = vadd.f32 %v2249_v38, %v2248_v34  ;;  %v2046_v60 = vadd.f32 %v2905_v52, %v4023_v27  ;;  %v2253_v5 = vsel %vm468_vm0, %v2047_v21, 0.0 }
 0x226   : > { %v2870_v53 = vpop.f32.mrb[16].mxu0  ;;  %2206 = vst.msk [vmem:[%s4031_s20 + $0x30] sm:$0xf] %vm2193_vm4, %v2614_v39  ;;  %v2350_v7 = vadd.f32 %v2349_v2, %v2348_v4  ;;  %v2351_v32 = vsel %vm468_vm0, %v2308_v33, 0.0  ;;  %v2311_v48 = vmul.f32 %v2048_v16, %v2048_v16  ;;  %v2255_v56 = vsel %vm468_vm0, %v2048_v16, 0.0 }
 0x227   : > { %v1931_v63 = vpop.f32.mrb[17].mxu0  ;;  %2209 = vst.msk [vmem:[%s4031_s20 + $0x3c] sm:$0xf] %vm2193_vm4, %v2617_v61  ;;  %v2615_v3 = vpack.c.bf16 %v2046_v60, %v2046_v60  ;;  %v2251_v19 = vsel %vm468_vm0, %v2046_v60, 0.0  ;;  %v2309_v6 = vmul.f32 %v2046_v60, %v2046_v60  ;;  %v2355_v41 = vsel %vm468_vm0, %v2310_v20, 0.0 }
 0x228   : > { %v2871_v9 = vpop.f32.mrb[18].mxu0  ;;  %v2352_v42 = vadd.f32 %v2351_v32, %v2350_v7  ;;  %v2252_v26 = vadd.f32 %v2251_v19, %v2250_v28  ;;  %v2357_v12 = vsel %vm468_vm0, %v2311_v48, 0.0 }
 0x229   : > { %v1934_v58 = vpop.f32.mrb[19].mxu0  ;;  %2207 = vst.msk [vmem:[%s4031_s20 + $0x34] sm:$0xf] %vm2193_vm4, %v2615_v3  ;;  %v2353_v57 = vsel %vm468_vm0, %v2309_v6, 0.0 }
 0x22a   : > { %v2254_v15 = vadd.f32 %v2253_v5, %v2252_v26  ;;  %v2354_v30 = vadd.f32 %v2353_v57, %v2352_v42 }
 0x22c   : > { %v2256_v18 = vadd.f32 %v2255_v56, %v2254_v15  ;;  %v2356_v51 = vadd.f32 %v2355_v41, %v2354_v30 }
 0x22e   : > { %v2358_v25 = vadd.f32 %v2357_v12, %v2356_v51 }
 0x233   : > { %v2874_v49 = vpop.f32.mrb[20].mxu0 }
 0x234   : > { %v1947_v54 = vpop.f32.mrb[21].mxu0 }
 0x235   : > { %v2875_v31 = vpop.f32.mrb[22].mxu0 }
 0x236   : > { %v1950_v55 = vpop.f32.mrb[23].mxu0 }
 0x23b   : > { %v4120_v62 = vpop.f32.mrb[24].mxu0 }
 0x23c   : > { %v4122_v11 = vpop.f32.mrb[25].mxu0 }
 0x23d   : > { %v4124_v13 = vpop.f32.mrb[26].mxu0 }
 0x23e   : > { %v4126_v36 = vpop.f32.mrb[27].mxu0 }
 0x243   : > { %v4128_v47 = vpop.f32.mrb[28].mxu0 }
 0x244   : > { %v4130_v59 = vpop.f32.mrb[29].mxu0 }
 0x245   : > { %v4132_v8 = vpop.f32.mrb[30].mxu0 }
 0x246   : > { %v4134_v40 = vpop.f32.mrb[31].mxu0 }
 0x247   : > { %v2832_v24 = vpop.f32.mrb[16].mxu1 }
 0x248   : > { %v2906_v44 = vadd.f32 %v2870_v53, %v2832_v24  ;;  %v1681_v10 = vpop.f32.mrb[17].mxu1 }
 0x249   : > { %v2907_v14 = vadd.f32 %v1931_v63, %v1681_v10  ;;  %v2833_v43 = vpop.f32.mrb[18].mxu1 }
 0x24a   : > { %v2051_v22 = vadd.f32 %v2906_v44, %v4023_v27  ;;  %v2908_v50 = vadd.f32 %v2871_v9, %v2833_v43  ;;  %v1684_v45 = vpop.f32.mrb[19].mxu1 }
 0x24b   : > { %v2049_v0 = vadd.f32 %v2907_v14, %v4023_v27  ;;  %v2909_v21 = vadd.f32 %v1934_v58, %v1684_v45 }
 0x24c   : > { %v2620_v46 = vpack.c.bf16 %v2051_v22, %v2051_v22  ;;  %v2052_v52 = vadd.f32 %v2908_v50, %v4023_v27  ;;  %v2314_v16 = vmul.f32 %v2051_v22, %v2051_v22  ;;  %v2261_v7 = vsel %vm468_vm0, %v2051_v22, 0.0 }
 0x24d   : > { %v2618_v29 = vpack.c.bf16 %v2049_v0, %v2049_v0  ;;  %v2257_v23 = vsel %vm468_vm0, %v2049_v0, 0.0  ;;  %v2312_v35 = vmul.f32 %v2049_v0, %v2049_v0  ;;  %v2050_v37 = vadd.f32 %v2909_v21, %v4023_v27 }
 0x24e   : > { %2212 = vst.msk [vmem:[%s4031_s20 + $0x48] sm:$0xf] %vm2193_vm4, %v2620_v46  ;;  %v2258_v1 = vadd.f32 %v2257_v23, %v2256_v18  ;;  %v2621_v17 = vpack.c.bf16 %v2052_v52, %v2052_v52  ;;  %v2315_v60 = vmul.f32 %v2052_v52, %v2052_v52  ;;  %v2263_v20 = vsel %vm468_vm0, %v2052_v52, 0.0 }
 0x24f   : > { %2210 = vst.msk [vmem:[%s4031_s20 + $0x40] sm:$0xf] %vm2193_vm4, %v2618_v29  ;;  %v2359_v4 = vsel %vm468_vm0, %v2312_v35, 0.0  ;;  %v2619_v39 = vpack.c.bf16 %v2050_v37, %v2050_v37  ;;  %v2259_v34 = vsel %vm468_vm0, %v2050_v37, 0.0  ;;  %v2836_v38 = vpop.f32.mrb[20].mxu1  ;;  %v2313_v61 = vmul.f32 %v2050_v37, %v2050_v37 }
 0x250   : > { %v2360_v2 = vadd.f32 %v2359_v4, %v2358_v25  ;;  %2213 = vst.msk [vmem:[%s4031_s20 + $0x4c] sm:$0xf] %vm2193_vm4, %v2621_v17  ;;  %v2260_v33 = vadd.f32 %v2259_v34, %v2258_v1  ;;  %v2910_v53 = vadd.f32 %v2874_v49, %v2836_v38  ;;  %v1697_v28 = vpop.f32.mrb[21].mxu1  ;;  %v2363_v48 = vsel %vm468_vm0, %v2314_v16, 0.0 }
 0x251   : > { %2211 = vst.msk [vmem:[%s4031_s20 + $0x44] sm:$0xf] %vm2193_vm4, %v2619_v39  ;;  %v2911_v63 = vadd.f32 %v1947_v54, %v1697_v28  ;;  %v2837_v32 = vpop.f32.mrb[22].mxu1  ;;  %v2361_v42 = vsel %vm468_vm0, %v2313_v61, 0.0  ;;  %v2365_v51 = vsel %vm468_vm0, %v2315_v60, 0.0 }
 0x252   : > { %v2262_v9 = vadd.f32 %v2261_v7, %v2260_v33  ;;  %v2055_v3 = vadd.f32 %v2910_v53, %v4023_v27  ;;  %v2912_v19 = vadd.f32 %v2875_v31, %v2837_v32  ;;  %v1700_v58 = vpop.f32.mrb[23].mxu1  ;;  %v2362_v26 = vadd.f32 %v2361_v42, %v2360_v2 }
 0x253   : > { %v2053_v6 = vadd.f32 %v2911_v63, %v4023_v27  ;;  %v2913_v5 = vadd.f32 %v1950_v55, %v1700_v58 }
 0x254   : > { %v2624_v15 = vpack.c.bf16 %v2055_v3, %v2055_v3  ;;  %v2264_v57 = vadd.f32 %v2263_v20, %v2262_v9  ;;  %v2364_v56 = vadd.f32 %v2363_v48, %v2362_v26  ;;  %v2056_v25 = vadd.f32 %v2912_v19, %v4023_v27 }
 0x255   : > { %v2622_v30 = vpack.c.bf16 %v2053_v6, %v2053_v6  ;;  %v2265_v41 = vsel %vm468_vm0, %v2053_v6, 0.0  ;;  %v2316_v18 = vmul.f32 %v2053_v6, %v2053_v6  ;;  %v2054_v49 = vadd.f32 %v2913_v5, %v4023_v27 }
 0x256   : > { %2216 = vst.msk [vmem:[%s4031_s20 + $0x58] sm:$0xf] %vm2193_vm4, %v2624_v15  ;;  %v2266_v12 = vadd.f32 %v2265_v41, %v2264_v57  ;;  %v2366_v54 = vadd.f32 %v2365_v51, %v2364_v56  ;;  %v2318_v24 = vmul.f32 %v2055_v3, %v2055_v3  ;;  %v2625_v44 = vpack.c.bf16 %v2056_v25, %v2056_v25 }
 0x257   : > { %2214 = vst.msk [vmem:[%s4031_s20 + $0x50] sm:$0xf] %vm2193_vm4, %v2622_v30  ;;  %v2367_v31 = vsel %vm468_vm0, %v2316_v18, 0.0  ;;  %v2840_v55 = vpop.f32.mrb[24].mxu1  ;;  %v2623_v10 = vpack.c.bf16 %v2054_v49, %v2054_v49  ;;  %v2267_v22 = vsel %vm468_vm0, %v2054_v49, 0.0  ;;  %v2317_v50 = vmul.f32 %v2054_v49, %v2054_v49 }
 0x258   : > { %v1713_v14 = vpop.f32.mrb[25].mxu1  ;;  %v2368_v43 = vadd.f32 %v2367_v31, %v2366_v54  ;;  %v2914_v45 = vadd.f32 %v4120_v62, %v2840_v55  ;;  %v2269_v21 = vsel %vm468_vm0, %v2055_v3, 0.0  ;;  %2217 = vst.msk [vmem:[%s4031_s20 + $0x5c] sm:$0xf] %vm2193_vm4, %v2625_v44  ;;  %v2268_v46 = vadd.f32 %v2267_v22, %v2266_v12 }
 0x259   : > { %v2841_v0 = vpop.f32.mrb[26].mxu1  ;;  %2215 = vst.msk [vmem:[%s4031_s20 + $0x54] sm:$0xf] %vm2193_vm4, %v2623_v10  ;;  %v2915_v52 = vadd.f32 %v4122_v11, %v1713_v14  ;;  %v2319_v35 = vmul.f32 %v2056_v25, %v2056_v25  ;;  %v2369_v37 = vsel %vm468_vm0, %v2317_v50, 0.0  ;;  %v2371_v11 = vsel %vm468_vm0, %v2318_v24, 0.0 }
 0x25a   : > { %v2916_v29 = vadd.f32 %v4124_v13, %v2841_v0  ;;  %v1716_v23 = vpop.f32.mrb[27].mxu1  ;;  %v2059_v1 = vadd.f32 %v2914_v45, %v4023_v27  ;;  %v2270_v17 = vadd.f32 %v2269_v21, %v2268_v46  ;;  %v2370_v16 = vadd.f32 %v2369_v37, %v2368_v43 }
 0x25b   : > { %v2917_v62 = vadd.f32 %v4126_v36, %v1716_v23  ;;  %v2057_v4 = vadd.f32 %v2915_v52, %v4023_v27  ;;  %v2271_v13 = vsel %vm468_vm0, %v2056_v25, 0.0  ;;  %v2373_v53 = vsel %vm468_vm0, %v2319_v35, 0.0 }
 0x25c   : > { %v2060_v39 = vadd.f32 %v2916_v29, %v4023_v27  ;;  %v2628_v34 = vpack.c.bf16 %v2059_v1, %v2059_v1  ;;  %v2372_v2 = vadd.f32 %v2371_v11, %v2370_v16  ;;  %v2272_v61 = vadd.f32 %v2271_v13, %v2270_v17 }
 0x25d   : > { %v2058_v38 = vadd.f32 %v2917_v62, %v4023_v27  ;;  %v2626_v33 = vpack.c.bf16 %v2057_v4, %v2057_v4  ;;  %v2273_v36 = vsel %vm468_vm0, %v2057_v4, 0.0  ;;  %v2277_v28 = vsel %vm468_vm0, %v2059_v1, 0.0 }
 0x25e   : > { %2220 = vst.msk [vmem:[%s4031_s20 + $0x68] sm:$0xf] %vm2193_vm4, %v2628_v34  ;;  %v2320_v7 = vmul.f32 %v2057_v4, %v2057_v4  ;;  %v2629_v60 = vpack.c.bf16 %v2060_v39, %v2060_v39  ;;  %v2322_v32 = vmul.f32 %v2059_v1, %v2059_v1  ;;  %v2274_v9 = vadd.f32 %v2273_v36, %v2272_v61 }
 0x25f   : > { %v2844_v63 = vpop.f32.mrb[28].mxu1  ;;  %2218 = vst.msk [vmem:[%s4031_s20 + $0x60] sm:$0xf] %vm2193_vm4, %v2626_v33  ;;  %v2374_v42 = vadd.f32 %v2373_v53, %v2372_v2  ;;  %v2627_v3 = vpack.c.bf16 %v2058_v38, %v2058_v38  ;;  %v2275_v20 = vsel %vm468_vm0, %v2058_v38, 0.0  ;;  %v2321_v26 = vmul.f32 %v2058_v38, %v2058_v38 }
 0x260   : > { %v1729_v19 = vpop.f32.mrb[29].mxu1  ;;  %v2375_v58 = vsel %vm468_vm0, %v2320_v7, 0.0  ;;  %2221 = vst.msk [vmem:[%s4031_s20 + $0x6c] sm:$0xf] %vm2193_vm4, %v2629_v60  ;;  %v2918_v6 = vadd.f32 %v4128_v47, %v2844_v63  ;;  %v2323_v15 = vmul.f32 %v2060_v39, %v2060_v39  ;;  %v2276_v57 = vadd.f32 %v2275_v20, %v2274_v9 }
 0x261   : > { %v2845_v5 = vpop.f32.mrb[30].mxu1  ;;  %v2376_v48 = vadd.f32 %v2375_v58, %v2374_v42  ;;  %2219 = vst.msk [vmem:[%s4031_s20 + $0x64] sm:$0xf] %vm2193_vm4, %v2627_v3  ;;  %v2919_v56 = vadd.f32 %v4130_v59, %v1729_v19  ;;  %v2377_v41 = vsel %vm468_vm0, %v2321_v26, 0.0  ;;  %v2379_v54 = vsel %vm468_vm0, %v2322_v32, 0.0 }
 0x262   : > { %v1732_v30 = vpop.f32.mrb[31].mxu1  ;;  %v2063_v18 = vadd.f32 %v2918_v6, %v4023_v27  ;;  %v2920_v51 = vadd.f32 %v4132_v8, %v2845_v5  ;;  %v2278_v47 = vadd.f32 %v2277_v28, %v2276_v57  ;;  %v2279_v31 = vsel %vm468_vm0, %v2060_v39, 0.0 }
 0x263   : > { %v2921_v12 = vadd.f32 %v4134_v40, %v1732_v30  ;;  %v2378_v25 = vadd.f32 %v2377_v41, %v2376_v48  ;;  %v2061_v49 = vadd.f32 %v2919_v56, %v4023_v27  ;;  %v2381_v40 = vsel %vm468_vm0, %v2323_v15, 0.0 }
 0x264   : > { %v2632_v59 = vpack.c.bf16 %v2063_v18, %v2063_v18  ;;  %v2064_v55 = vadd.f32 %v2920_v51, %v4023_v27  ;;  %v2280_v10 = vadd.f32 %v2279_v31, %v2278_v47  ;;  %v2326_v29 = vmul.f32 %v2063_v18, %v2063_v18 }
 0x265   : > { %v2380_v24 = vadd.f32 %v2379_v54, %v2378_v25  ;;  %v2630_v44 = vpack.c.bf16 %v2061_v49, %v2061_v49  ;;  %v2281_v8 = vsel %vm468_vm0, %v2061_v49, 0.0  ;;  %v2324_v14 = vmul.f32 %v2061_v49, %v2061_v49 }
 0x266   : > { %2224 = vst.msk [vmem:[%s4031_s20 + $0x78] sm:$0xf] %vm2193_vm4, %v2632_v59  ;;  %v2633_v43 = vpack.c.bf16 %v2064_v55, %v2064_v55  ;;  %v2282_v22 = vadd.f32 %v2281_v8, %v2280_v10  ;;  %v2062_v45 = vadd.f32 %v2921_v12, %v4023_v27  ;;  %v2285_v37 = vsel %vm468_vm0, %v2063_v18, 0.0 }
 0x267   : > { %2222 = vst.msk [vmem:[%s4031_s20 + $0x70] sm:$0xf] %vm2193_vm4, %v2630_v44  ;;  %v2382_v50 = vadd.f32 %v2381_v40, %v2380_v24  ;;  %v2383_v0 = vsel %vm468_vm0, %v2324_v14, 0.0  ;;  %v2327_v1 = vmul.f32 %v2064_v55, %v2064_v55  ;;  %v2287_v17 = vsel %vm468_vm0, %v2064_v55, 0.0 }
 0x268   : > { %2225 = vst.msk [vmem:[%s4031_s20 + $0x7c] sm:$0xf] %vm2193_vm4, %v2633_v43  ;;  %v2631_v46 = vpack.c.bf16 %v2062_v45, %v2062_v45  ;;  %v2283_v52 = vsel %vm468_vm0, %v2062_v45, 0.0  ;;  %v2325_v35 = vmul.f32 %v2062_v45, %v2062_v45  ;;  %v2387_v4 = vsel %vm468_vm0, %v2326_v29, 0.0 }
 0x269   : > { %v2384_v21 = vadd.f32 %v2383_v0, %v2382_v50  ;;  %v2284_v23 = vadd.f32 %v2283_v52, %v2282_v22  ;;  %v2389_v13 = vsel %vm468_vm0, %v2327_v1, 0.0 }
 0x26a   : > { %2223 = vst.msk [vmem:[%s4031_s20 + $0x74] sm:$0xf] %vm2193_vm4, %v2631_v46  ;;  %v2385_v27 = vsel %vm468_vm0, %v2325_v35, 0.0 }
 0x26b   : > { %v2286_v62 = vadd.f32 %v2285_v37, %v2284_v23  ;;  %v2386_v16 = vadd.f32 %v2385_v27, %v2384_v21 }
 0x26d   : > { %v2288_v39 = vadd.f32 %v2287_v17, %v2286_v62  ;;  %v2388_v11 = vadd.f32 %v2387_v4, %v2386_v16 }
 0x26f   : > { %v2289_v34 = vrot.slane %v2288_v39, 4  ;;  %v2390_v38 = vadd.f32 %v2389_v13, %v2388_v11 }
 0x271   : > { %v2290_v2 = vadd.f32 %v2289_v34, %v2288_v39  ;;  %v2391_v33 = vrot.slane %v2390_v38, 4 }
 0x273   : > { %v2291_v61 = vrot.slane %v2290_v2, 2  ;;  %v2392_v36 = vadd.f32 %v2391_v33, %v2390_v38 }
 0x275   : > { %v2292_v53 = vadd.f32 %v2291_v61, %v2290_v2  ;;  %v2393_v28 = vrot.slane %v2392_v36, 2 }
 0x277   : > { %v2293_v7 = vrot.slane %v2292_v53, 1  ;;  %v2394_v60 = vadd.f32 %v2393_v28, %v2392_v36 }
 0x279   : > { %v2294_v63 = vadd.f32 %v2293_v7, %v2292_v53  ;;  %v2395_v32 = vrot.slane %v2394_v60, 1 }
 0x27b   : > { %2295 = vst.msk [vmem:[%s289_s23] sm:$0x1] %vm465_vm1, %v2294_v63  ;;  %v2396_v9 = vadd.f32 %v2395_v32, %v2394_v60 }
 0x27d   : > { %2397 = vst.msk [vmem:[%s289_s23 + $0x1] sm:$0x1] %vm465_vm1, %v2396_v9 }
 0x27e PF: > { %s18_s24 = sadd.s32 1, %s3149_s24  }
 0x27f   : > { %p15_p4 = scmp.ge.s32.totalorder %s18_s24, 4  }
 0x281   :  { %17 = sbr.rel (!%p15_p4) target bundleno = 1 (0x1), region = 88 }

// kernel: unet_encoder.11
= control target key start
LH: loop header
LB: loop body
LE: loop exit
PB: predicated region body
PF: predicated region fallthrough
CT: control target
= control target key end

     0   :  { %s1754_s27 = smov 0   ;;  %s2163_s0 = inlined_call_operand.vmem [shape: bf16[2,256,16], index: 0, kind: input, shape index: {}]   ;;  %s2164_s1 = inlined_call_operand.vmem [shape: f32[1,16], index: 1, kind: input, shape index: {}]   ;;  %s2165_s2 = inlined_call_operand.vmem [shape: f32[1,16], index: 2, kind: input, shape index: {}]   ;;  %s2166_s3 = inlined_call_operand.vmem [shape: f32[64,2], index: 3, kind: input, shape index: {}]   ;;  %s2167_s4 = inlined_call_operand.vmem [shape: bf16[3,48,32], index: 4, kind: input, shape index: {}]   ;;  %s2168_s5 = inlined_call_operand.vmem [shape: f32[1,32], index: 5, kind: input, shape index: {}]   ;;  %s2169_s6 = inlined_call_operand.vmem [shape: f32[2,256,16], index: 6, kind: output, shape index: {0}]   ;;  %s2170_s7 = inlined_call_operand.vmem [shape: bf16[2,64,32], index: 7, kind: output, shape index: {1}]   ;;  %s2171_s8 = inlined_call_operand.vmem [shape: f32[2,2,32], index: 8, kind: output, shape index: {2}]  }
   0x1 LB: > { %s1396_s28 = sadd.s32 4294967295, %s1702_s27   ;;  %p1400_p0 = scmp.ge.s32.totalorder %s1702_s27, 1  ;;  %s1702_s27 = sphi %s1754_s27, %s19_s27  }
   0x2   : > { %p267_p1 = scmp.lt.s32.totalorder %s1702_s27, 3 }
   0x4   : > { %p268_p2 = pnand %p1400_p0, %p267_p1 }
   0x5   : > { %v1765_v0 = vld [vmem:[%s2166_s3 + $0x10] sm:$0xff] (!%p268_p2)  ;;  %v1770_v1 = vld [vmem:[%s2166_s3] sm:$0xff] (!%p268_p2)  ;;  %p310_p3 = scmp.lt.s32.totalorder (!%p268_p2), %s1396_s28, 1  ;;  %v1704_v2 = vmov (!%p268_p2), 1   ;;  %v1779_v3 = vld [vmem:[%s2166_s3 + $0x18] sm:$0xff] (!%p268_p2)  ;;  %vm608_vm0 = vcmask (!%p268_p2), 122880  }
   0x6   : > { %271 = sbr.rel (%p268_p2) target bundleno = 541 (0x21d), region = 44  ;;  %1643 = vset.pattern.permute.xlu1 (!%p268_p2), %v1704_v2  ;;  %1642 = vset.pattern.permute.xlu0 (!%p268_p2), %v1704_v2  ;;  %v1786_v4 = vld [vmem:[%s2166_s3 + $0x8] sm:$0xff] (!%p268_p2)  ;;  %v1792_v5 = vld [vmem:[%s2164_s1] ss:$0 sm:$0xff] (!%p268_p2)  ;;  %vm504_vm1 = vcmask (!%p268_p2), 130048   ;;  %v1705_v10 = vmov (!%p268_p2), 0.0  }
   0x7   : > { %700 = vperm.xlu1 (!%p268_p2), %1643, %v1765_v0   ;;  %692 = vperm.xlu0 (!%p268_p2), %1642, %v1770_v1   ;;  %v1797_v6 = vld [vmem:[%s2166_s3 + $0x28] sm:$0xff] (!%p268_p2)  ;;  %610 = vst.msk [vmem:[#allocation3 + $0x41] sm:$0x1] (!%p268_p2), %vm608_vm0, %v1705_v10  ;;  %609 = vst.msk [vmem:[#allocation3] sm:$0x1] (!%p268_p2), %vm608_vm0, %v1705_v10  ;;  %v1812_v11 = vld [vmem:[%s2166_s3 + $0x20] sm:$0xff] (!%p268_p2) }
   0x8   : > { %v1821_v22 = vld [vmem:[%s2165_s2] ss:$0 sm:$0xff] (!%p268_p2)  ;;  %v1833_v27 = vld [vmem:[%s2166_s3 + $0x38] sm:$0xff] (!%p268_p2)  ;;  %v1838_v28 = vld [vmem:[%s2166_s3 + $0x30] sm:$0xff] (!%p268_p2)  ;;  %vm818_vm2 = vcmask (!%p268_p2), 392196   ;;  %vm816_vm3 = vcmask (!%p268_p2), 388096  }
   0x9   : > { %s1708_s24 = smov (!%p268_p2), 32   ;;  %vm803_vm4 = vcmask (!%p268_p2), 261120   ;;  %vm824_vm5 = vcmask (!%p268_p2), 1043456   ;;  %vm838_vm6 = vcmask (!%p268_p2), 392192   ;;  %vm1215_vm7 = vcmask (!%p268_p2), 257024  }
   0xa   : > { %vm1245_vm8 = vcmask (!%p268_p2), 253952  }
   0xb   : > { %704 = vperm.xlu1 (!%p268_p2), %1643, %v1779_v3   ;;  %696 = vperm.xlu0 (!%p268_p2), %1642, %v1786_v4  }
   0xd   : > { %s2173_s28 = smov (!%p310_p3, %s1396_s28), 1 }
   0xe   : > { %s1454_s15 = sshll.u32 %s2173_s28, 7  ;;  %s1455_s29 = sshll.u32 %s2173_s28, 8 }
   0xf   : > { %s1802_s22 = scalar_lea.vmem %s2163_s0, %s1454_s15  ;;  %712 = vperm.xlu1 %1643, %v1797_v6   ;;  %708 = vperm.xlu0 %1642, %v1812_v11   ;;  %s1853_s14 = scalar_lea.vmem %s2169_s6, %s1455_s29 }
  0x10   : > { %v1532_v7 = vld [vmem:[%s1802_s22 + $0x20] sm:$0xff]   ;;  %v1533_v8 = vld [vmem:[%s1802_s22 + $0x28] sm:$0xff]   ;;  %v1534_v9 = vld [vmem:[%s1802_s22 + $0x30] sm:$0xff]   ;;  %s1707_s15 = smov 16   ;;  %s1456_s17 = sshll.u32 %s2173_s28, 5 }
  0x11   : > { %v1483_v12 = vunpack.c.l.bf16 %v1532_v7  ;;  %v1484_v13 = vunpack.c.h.bf16 %v1532_v7  ;;  %v1487_v14 = vunpack.c.l.bf16 %v1533_v8  ;;  %v1488_v15 = vunpack.c.h.bf16 %v1533_v8  ;;  %v1535_v16 = vld [vmem:[%s1802_s22 + $0x38] sm:$0xff]   ;;  %v1816_v17 = vld [vmem:[%s1802_s22] sm:$0xff]   ;;  %v1529_v33 = vld [vmem:[%s1802_s22 + $0x8] sm:$0xff]   ;;  %s2122_s20 = scalar_lea.vmem %s2170_s7, %s1456_s17  ;;  %s1407_s21 = sshll.u32 %s2173_s28, 1 }
  0x12   : > { %v1491_v18 = vunpack.c.l.bf16 %v1534_v9  ;;  %v1492_v19 = vunpack.c.h.bf16 %v1534_v9  ;;  %v1495_v20 = vunpack.c.l.bf16 %v1535_v16  ;;  %v1496_v21 = vunpack.c.h.bf16 %v1535_v16  ;;  %v1530_v38 = vld [vmem:[%s1802_s22 + $0x10] sm:$0xff]   ;;  %v1531_v47 = vld [vmem:[%s1802_s22 + $0x18] sm:$0xff]   ;;  %v1871_v56 = vld [vmem:[%s1802_s22 + $0x40] sm:$0xff]  }
  0x13   : > { %v409_v23 = vmul.f32 %v1483_v12, %v1792_v5  ;;  %v410_v24 = vmul.f32 %v1484_v13, %v1792_v5  ;;  %v411_v25 = vmul.f32 %v1487_v14, %v1792_v5  ;;  %v412_v26 = vmul.f32 %v1488_v15, %v1792_v5  ;;  %720 = vperm.xlu1 %1643, %v1833_v27  }
  0x14   : > { %v413_v29 = vmul.f32 %v1491_v18, %v1792_v5  ;;  %v414_v30 = vmul.f32 %v1492_v19, %v1792_v5  ;;  %v415_v31 = vmul.f32 %v1495_v20, %v1792_v5  ;;  %v1467_v32 = vunpack.c.l.bf16 %v1816_v17  ;;  %716 = vperm.xlu0 %1642, %v1838_v28  }
  0x15   : > { %v416_v34 = vmul.f32 %v1496_v21, %v1792_v5  ;;  %v448_v35 = vadd.f32 %v1821_v22, %v409_v23  ;;  %v449_v36 = vadd.f32 %v1821_v22, %v410_v24  ;;  %v450_v37 = vadd.f32 %v1821_v22, %v411_v25  ;;  %v1537_v25 = vld [vmem:[%s1802_s22 + $0x48] sm:$0xff]  }
  0x16   : > { %v451_v39 = vadd.f32 %v1821_v22, %v412_v26  ;;  %v452_v40 = vadd.f32 %v1821_v22, %v413_v29  ;;  %v453_v41 = vadd.f32 %v1821_v22, %v414_v30  ;;  %v454_v42 = vadd.f32 %v1821_v22, %v415_v31 }
  0x17   : > { %v455_v43 = vadd.f32 %v1821_v22, %v416_v34  ;;  %v480_v44 = vmax.f32 %v448_v35, 0.0  ;;  %v481_v45 = vmax.f32 %v449_v36, 0.0  ;;  %v482_v46 = vmax.f32 %v450_v37, 0.0 }
  0x18   : > { %v483_v48 = vmax.f32 %v451_v39, 0.0  ;;  %v484_v49 = vmax.f32 %v452_v40, 0.0  ;;  %v485_v50 = vmax.f32 %v453_v41, 0.0  ;;  %v486_v51 = vmax.f32 %v454_v42, 0.0 }
  0x19   : > { %v487_v52 = vmax.f32 %v455_v43, 0.0  ;;  %514 = vst.msk [vmem:[%s1853_s14 + $0x48] sm:$0xff] %vm504_vm1, %v481_v45  ;;  %515 = vst.msk [vmem:[%s1853_s14 + $0x50] sm:$0xff] %vm504_vm1, %v482_v46  ;;  %v545_v53 = vmax.f32 %v480_v44, %v482_v46  ;;  %v1468_v54 = vunpack.c.h.bf16 %v1816_v17  ;;  %v1471_v55 = vunpack.c.l.bf16 %v1529_v33 }
  0x1a   : > { %513 = vst.msk [vmem:[%s1853_s14 + $0x40] sm:$0xff] %vm504_vm1, %v480_v44  ;;  %516 = vst.msk [vmem:[%s1853_s14 + $0x58] sm:$0xff] %vm504_vm1, %v483_v48  ;;  %v546_v57 = vmax.f32 %v481_v45, %v483_v48  ;;  %v549_v58 = vmax.f32 %v484_v49, %v486_v51  ;;  %v1472_v59 = vunpack.c.h.bf16 %v1529_v33  ;;  %v1475_v60 = vunpack.c.l.bf16 %v1530_v38  ;;  %v1539_v45 = vld [vmem:[%s1802_s22 + $0x58] sm:$0xff]  }
  0x1b   : > { %517 = vst.msk [vmem:[%s1853_s14 + $0x60] sm:$0xff] %vm504_vm1, %v484_v49  ;;  %518 = vst.msk [vmem:[%s1853_s14 + $0x68] sm:$0xff] %vm504_vm1, %v485_v50  ;;  %v550_v61 = vmax.f32 %v485_v50, %v487_v52  ;;  %v1476_v62 = vunpack.c.h.bf16 %v1530_v38  ;;  %v1479_v63 = vunpack.c.l.bf16 %v1531_v47  ;;  %v1480_v7 = vunpack.c.h.bf16 %v1531_v47 }
  0x1c   : > { %519 = vst.msk [vmem:[%s1853_s14 + $0x70] sm:$0xff] %vm504_vm1, %v486_v51  ;;  %520 = vst.msk [vmem:[%s1853_s14 + $0x78] sm:$0xff] %vm504_vm1, %v487_v52  ;;  %v1706_v8 = vmov 0   ;;  %v401_v9 = vmul.f32 %v1467_v32, %v1792_v5  ;;  %v402_v10 = vmul.f32 %v1468_v54, %v1792_v5  ;;  %v403_v12 = vmul.f32 %v1471_v55, %v1792_v5 }
  0x1d   : > { %547 = vst.msk [vmem:[#allocation2 + $0x20] sm:$0xff] %vm504_vm1, %v545_v53  ;;  %1645 = vset.pattern.permute.xlu1 %v1706_v8  ;;  %1644 = vset.pattern.permute.xlu0 %v1706_v8  ;;  %548 = vst.msk [vmem:[#allocation2 + $0x28] sm:$0xff] %vm504_vm1, %v546_v57  ;;  %v1499_v13 = vunpack.c.l.bf16 %v1871_v56  ;;  %v404_v14 = vmul.f32 %v1472_v59, %v1792_v5  ;;  %v405_v15 = vmul.f32 %v1475_v60, %v1792_v5  ;;  %v1541_v59 = vld [vmem:[%s1802_s22 + $0x68] sm:$0xff]  }
  0x1e   : > { %551 = vst.msk [vmem:[#allocation2 + $0x30] sm:$0xff] %vm504_vm1, %v549_v58  ;;  %642 = vperm.xlu1 %1645, %v1786_v4   ;;  %637 = vperm.xlu0 %1644, %v1770_v1   ;;  %552 = vst.msk [vmem:[#allocation2 + $0x38] sm:$0xff] %vm504_vm1, %v550_v61  ;;  %v406_v16 = vmul.f32 %v1476_v62, %v1792_v5  ;;  %v1500_v17 = vunpack.c.h.bf16 %v1871_v56  ;;  %v407_v18 = vmul.f32 %v1479_v63, %v1792_v5  ;;  %v1540_v56 = vld [vmem:[%s1802_s22 + $0x60] sm:$0xff]  }
  0x1f   : > { %v408_v19 = vmul.f32 %v1480_v7, %v1792_v5  ;;  %v440_v20 = vadd.f32 %v1821_v22, %v401_v9  ;;  %v441_v4 = vadd.f32 %v1821_v22, %v402_v10  ;;  %v442_v1 = vadd.f32 %v1821_v22, %v403_v12  ;;  %819 = vst.msk [vmem:[#allocation4 + $0x20] sm:$0xf0] %vm818_vm2, %v1706_v8 }
  0x20   : > { %v443_v21 = vadd.f32 %v1821_v22, %v404_v14  ;;  %v444_v23 = vadd.f32 %v1821_v22, %v405_v15  ;;  %v445_v24 = vadd.f32 %v1821_v22, %v406_v16  ;;  %v446_v26 = vadd.f32 %v1821_v22, %v407_v18  ;;  %817 = vst.msk [vmem:[#allocation4] sm:$0xf] %vm816_vm3, %v1706_v8  ;;  %v1689_v8 = vld [vmem:[%s2167_s4 + $0x18] sm:$0xff]  }
  0x21   : > { %v447_v29 = vadd.f32 %v1821_v22, %v408_v19  ;;  %v472_v30 = vmax.f32 %v440_v20, 0.0  ;;  %v473_v31 = vmax.f32 %v441_v4, 0.0  ;;  %v474_v32 = vmax.f32 %v442_v1, 0.0  ;;  %1565 = vmatprep.subr.bf16.mxu1 %v1689_v8 }
  0x22   : > { %647 = vperm.xlu1 %1645, %v1765_v0   ;;  %652 = vperm.xlu0 %1644, %v1779_v3   ;;  %v475_v33 = vmax.f32 %v443_v21, 0.0  ;;  %v476_v34 = vmax.f32 %v444_v23, 0.0  ;;  %v477_v35 = vmax.f32 %v445_v24, 0.0  ;;  %v478_v36 = vmax.f32 %v446_v26, 0.0  ;;  %v1538_v0 = vld [vmem:[%s1802_s22 + $0x50] sm:$0xff]  }
  0x23   : > { %v479_v37 = vmax.f32 %v447_v29, 0.0  ;;  %506 = vst.msk [vmem:[%s1853_s14 + $0x8] sm:$0xff] %vm504_vm1, %v473_v31  ;;  %505 = vst.msk [vmem:[%s1853_s14] sm:$0xff] %vm504_vm1, %v472_v30  ;;  %v1503_v38 = vunpack.c.l.bf16 %v1537_v25  ;;  %v1504_v39 = vunpack.c.h.bf16 %v1537_v25  ;;  %v537_v41 = vmax.f32 %v472_v30, %v474_v32  ;;  %1566 = vmatpush3.bf16.msra.mxu1 %v1689_v8 }
  0x24   : > { %v573_v40 = vld [vmem:[#allocation2 + $0x20] ss:$2 sm:$0xff]  ;;  %v589_v3 = vld [vmem:[#allocation2 + $0x21] ss:$2 sm:$0xff]  ;;  %507 = vst.msk [vmem:[%s1853_s14 + $0x10] sm:$0xff] %vm504_vm1, %v474_v32  ;;  %508 = vst.msk [vmem:[%s1853_s14 + $0x18] sm:$0xff] %vm504_vm1, %v475_v33  ;;  %v538_v42 = vmax.f32 %v473_v31, %v475_v33  ;;  %v417_v43 = vmul.f32 %v1499_v13, %v1792_v5  ;;  %v418_v44 = vmul.f32 %v1500_v17, %v1792_v5  ;;  %v1507_v55 = vunpack.c.l.bf16 %v1538_v0 }
  0x25   : > { %509 = vst.msk [vmem:[%s1853_s14 + $0x20] sm:$0xff] %vm504_vm1, %v476_v34  ;;  %510 = vst.msk [vmem:[%s1853_s14 + $0x28] sm:$0xff] %vm504_vm1, %v477_v35  ;;  %v575_v46 = vld [vmem:[#allocation2 + $0x30] ss:$2 sm:$0xff]  ;;  %v591_v47 = vld [vmem:[#allocation2 + $0x31] ss:$2 sm:$0xff]  ;;  %v602_v48 = vmax.f32 %v573_v40, %v589_v3  ;;  %v541_v49 = vmax.f32 %v476_v34, %v478_v36  ;;  %v542_v50 = vmax.f32 %v477_v35, %v479_v37  ;;  %v1508_v57 = vunpack.c.h.bf16 %v1538_v0 }
  0x26   : > { %511 = vst.msk [vmem:[%s1853_s14 + $0x30] sm:$0xff] %vm504_vm1, %v478_v36  ;;  %512 = vst.msk [vmem:[%s1853_s14 + $0x38] sm:$0xff] %vm504_vm1, %v479_v37  ;;  %v419_v51 = vmul.f32 %v1503_v38, %v1792_v5  ;;  %657 = vperm.xlu1 %1645, %v1812_v11   ;;  %662 = vperm.xlu0 %1644, %v1797_v6   ;;  %v603_v52 = vmax.f32 %v575_v46, %v591_v47  ;;  %v1511_v58 = vunpack.c.l.bf16 %v1539_v45  ;;  %v1542_v0 = vld [vmem:[%s1802_s22 + $0x70] sm:$0xff]  }
  0x27   : > { %539 = vst.msk [vmem:[#allocation2] sm:$0xff] %vm504_vm1, %v537_v41  ;;  %540 = vst.msk [vmem:[#allocation2 + $0x8] sm:$0xff] %vm504_vm1, %v538_v42  ;;  %v420_v53 = vmul.f32 %v1504_v39, %v1792_v5  ;;  %v456_v54 = vadd.f32 %v1821_v22, %v417_v43  ;;  %v457_v11 = vadd.f32 %v1821_v22, %v418_v44  ;;  %v1512_v63 = vunpack.c.h.bf16 %v1539_v45  ;;  %v1543_v43 = vld [vmem:[%s1802_s22 + $0x78] sm:$0xff]  }
  0x28   : > { %613 = vst.msk [vmem:[#allocation3 + $0x11] sm:$0xff] %vm504_vm1, %v602_v48  ;;  %543 = vst.msk [vmem:[#allocation2 + $0x10] sm:$0xff] %vm504_vm1, %v541_v49  ;;  %v458_v6 = vadd.f32 %v1821_v22, %v419_v51  ;;  %v1651_v60 = vpack.i.bf16 %v603_v52, %v602_v48  ;;  %v1515_v10 = vunpack.c.l.bf16 %v1540_v56  ;;  %v1516_v12 = vunpack.c.h.bf16 %v1540_v56 }
  0x29   : > { %544 = vst.msk [vmem:[#allocation2 + $0x18] sm:$0xff] %vm504_vm1, %v542_v50  ;;  %614 = vst.msk [vmem:[#allocation3 + $0x19] sm:$0xff] %vm504_vm1, %v603_v52  ;;  %v459_v61 = vadd.f32 %v1821_v22, %v420_v53  ;;  %v488_v62 = vmax.f32 %v456_v54, 0.0  ;;  %v489_v7 = vmax.f32 %v457_v11, 0.0  ;;  %v1519_v14 = vunpack.c.l.bf16 %v1541_v59 }
  0x2a   : > { %v490_v9 = vmax.f32 %v458_v6, 0.0  ;;  %667 = vperm.xlu1 %1645, %v1838_v28   ;;  %672 = vperm.xlu0 %1644, %v1833_v27   ;;  %v1520_v15 = vunpack.c.h.bf16 %v1541_v59  ;;  %v421_v16 = vmul.f32 %v1507_v55, %v1792_v5  ;;  %v422_v18 = vmul.f32 %v1508_v57, %v1792_v5 }
  0x2b   : > { %v491_v13 = vmax.f32 %v459_v61, 0.0  ;;  %521 = vst.msk [vmem:[%s1853_s14 + $0x80] sm:$0xff] %vm504_vm1, %v488_v62  ;;  %522 = vst.msk [vmem:[%s1853_s14 + $0x88] sm:$0xff] %vm504_vm1, %v489_v7  ;;  %v423_v19 = vmul.f32 %v1511_v58, %v1792_v5  ;;  %v424_v28 = vmul.f32 %v1512_v63, %v1792_v5  ;;  %v425_v20 = vmul.f32 %v1515_v10, %v1792_v5 }
  0x2c   : > { %523 = vst.msk [vmem:[%s1853_s14 + $0x90] sm:$0xff] %vm504_vm1, %v490_v9  ;;  %v553_v17 = vmax.f32 %v488_v62, %v490_v9  ;;  %v426_v4 = vmul.f32 %v1516_v12, %v1792_v5  ;;  %v427_v1 = vmul.f32 %v1519_v14, %v1792_v5  ;;  %v428_v24 = vmul.f32 %v1520_v15, %v1792_v5 }
  0x2d   : > { %524 = vst.msk [vmem:[%s1853_s14 + $0x98] sm:$0xff] %vm504_vm1, %v491_v13  ;;  %v554_v27 = vmax.f32 %v489_v7, %v491_v13  ;;  %v460_v25 = vadd.f32 %v1821_v22, %v421_v16  ;;  %v461_v26 = vadd.f32 %v1821_v22, %v422_v18  ;;  %v462_v29 = vadd.f32 %v1821_v22, %v423_v19 }
  0x2e   : > { %v569_v21 = vld [vmem:[#allocation2] ss:$2 sm:$0xff]  ;;  %v585_v23 = vld [vmem:[#allocation2 + $0x1] ss:$2 sm:$0xff]  ;;  %555 = vst.msk [vmem:[#allocation2 + $0x40] sm:$0xff] %vm504_vm1, %v553_v17  ;;  %1652 = vrot.lane.b32.xlu0 %v1651_v60, %s1707_s15  ;;  %v463_v33 = vadd.f32 %v1821_v22, %v424_v28  ;;  %v464_v34 = vadd.f32 %v1821_v22, %v425_v20  ;;  %v465_v35 = vadd.f32 %v1821_v22, %v426_v4  ;;  %v1523_v49 = vunpack.c.l.bf16 %v1542_v0 }
  0x2f   : > { %v600_v32 = vmax.f32 %v569_v21, %v585_v23  ;;  %556 = vst.msk [vmem:[#allocation2 + $0x48] sm:$0xff] %vm504_vm1, %v554_v27  ;;  %v466_v37 = vadd.f32 %v1821_v22, %v427_v1  ;;  %v467_v38 = vadd.f32 %v1821_v22, %v428_v24  ;;  %v492_v39 = vmax.f32 %v460_v25, 0.0  ;;  %1686 = vset.pattern.permute.xlu0 %v1704_v2  ;;  %v1687_v1 = vld [vmem:[%s2167_s4] sm:$0xff]  }
  0x30   : > { %v571_v30 = vld [vmem:[#allocation2 + $0x10] ss:$2 sm:$0xff]  ;;  %v587_v31 = vld [vmem:[#allocation2 + $0x11] ss:$2 sm:$0xff]  ;;  %v493_v40 = vmax.f32 %v461_v26, 0.0  ;;  %v494_v3 = vmax.f32 %v462_v29, 0.0  ;;  %v1524_v50 = vunpack.c.h.bf16 %v1542_v0  ;;  %v1527_v53 = vunpack.c.l.bf16 %v1543_v43  ;;  %1579 = vmatprep.subr.bf16.mxu0 %v1687_v1 }
  0x31   : > { %v601_v36 = vmax.f32 %v571_v30, %v587_v31  ;;  %611 = vst.msk [vmem:[#allocation3 + $0x1] sm:$0xff] %vm504_vm1, %v600_v32  ;;  %v495_v41 = vmax.f32 %v463_v33, 0.0  ;;  %v496_v42 = vmax.f32 %v464_v34, 0.0  ;;  %v497_v45 = vmax.f32 %v465_v35, 0.0  ;;  %525 = vst.msk [vmem:[%s1853_s14 + $0xa0] sm:$0xff] %vm504_vm1, %v492_v39  ;;  %v685_v24 = vld [vmem:[#allocation3 + $0x12] sm:$0xff]  ;;  %1580 = vmatpush3.bf16.msra.mxu0 %v1687_v1 }
  0x32   : > { %v498_v46 = vmax.f32 %v466_v37, 0.0  ;;  %v499_v47 = vmax.f32 %v467_v38, 0.0  ;;  %526 = vst.msk [vmem:[%s1853_s14 + $0xa8] sm:$0xff] %vm504_vm1, %v493_v40  ;;  %527 = vst.msk [vmem:[%s1853_s14 + $0xb0] sm:$0xff] %vm504_vm1, %v494_v3  ;;  %v557_v2 = vmax.f32 %v492_v39, %v494_v3  ;;  %v1528_v54 = vunpack.c.h.bf16 %v1543_v43  ;;  %v1688_v30 = vld [vmem:[%s2167_s4 + $0x8] sm:$0xff]  }
  0x33   : > { %612 = vst.msk [vmem:[#allocation3 + $0x9] sm:$0xff] %vm504_vm1, %v601_v36  ;;  %v1646_v44 = vpack.i.bf16 %v601_v36, %v600_v32  ;;  %528 = vst.msk [vmem:[%s1853_s14 + $0xb8] sm:$0xff] %vm504_vm1, %v495_v41  ;;  %v558_v48 = vmax.f32 %v493_v40, %v495_v41  ;;  %v429_v55 = vmul.f32 %v1523_v49, %v1792_v5  ;;  %1581 = vmatprep.subr.bf16.mxu0 %v1688_v30  ;;  %v1690_v40 = vld [vmem:[%s2167_s4 + $0x10] sm:$0xff]  }
  0x34   : > { %529 = vst.msk [vmem:[%s1853_s14 + $0xc0] sm:$0xff] %vm504_vm1, %v496_v42  ;;  %530 = vst.msk [vmem:[%s1853_s14 + $0xc8] sm:$0xff] %vm504_vm1, %v497_v45  ;;  %v561_v51 = vmax.f32 %v496_v42, %v498_v46  ;;  %v562_v52 = vmax.f32 %v497_v45, %v499_v47  ;;  %v430_v56 = vmul.f32 %v1524_v50, %v1792_v5 }
  0x35   : > { %1647 = vrot.lane.b32.xlu1 %v1646_v44, %s1707_s15  ;;  %531 = vst.msk [vmem:[%s1853_s14 + $0xd0] sm:$0xff] %vm504_vm1, %v498_v46  ;;  %532 = vst.msk [vmem:[%s1853_s14 + $0xd8] sm:$0xff] %vm504_vm1, %v499_v47  ;;  %v431_v57 = vmul.f32 %v1527_v53, %v1792_v5  ;;  %v432_v58 = vmul.f32 %v1528_v54, %v1792_v5  ;;  %v468_v60 = vadd.f32 %v1821_v22, %v429_v55  ;;  %v1691_v47 = vld [vmem:[%s2167_s4 + $0x20] sm:$0xff]  }
  0x36   : > { %559 = vst.msk [vmem:[#allocation2 + $0x50] sm:$0xff] %vm504_vm1, %v557_v2  ;;  %560 = vst.msk [vmem:[#allocation2 + $0x58] sm:$0xff] %vm504_vm1, %v558_v48  ;;  %v577_v11 = vld [vmem:[#allocation2 + $0x40] ss:$2 sm:$0xff]  ;;  %v593_v6 = vld [vmem:[#allocation2 + $0x41] ss:$2 sm:$0xff]  ;;  %v469_v61 = vadd.f32 %v1821_v22, %v430_v56  ;;  %1582 = vmatpush3.bf16.msra.mxu0 %v1688_v30  ;;  %1567 = vmatprep.subr.bf16.mxu1 %v1691_v47 }
  0x37   : > { %563 = vst.msk [vmem:[#allocation2 + $0x60] sm:$0xff] %vm504_vm1, %v561_v51  ;;  %564 = vst.msk [vmem:[#allocation2 + $0x68] sm:$0xff] %vm504_vm1, %v562_v52  ;;  %v2007_v59 = vmax.f32 %v577_v11, %v593_v6  ;;  %v470_v62 = vadd.f32 %v1821_v22, %v431_v57  ;;  %v471_v63 = vadd.f32 %v1821_v22, %v432_v58  ;;  %v500_v7 = vmax.f32 %v468_v60, 0.0  ;;  %v2056_v51 = vld [vmem:[%s2167_s4 + $0x30] sm:$0xff]   ;;  %v1693_v53 = vld [vmem:[%s2167_s4 + $0x28] sm:$0xff]  }
  0x38   : > { %v501_v9 = vmax.f32 %v469_v61, 0.0  ;;  %1583 = vmatprep.subr.bf16.mxu0 %v1690_v40  ;;  %1568 = vmatpush3.bf16.msra.mxu1 %v1691_v47  ;;  %v630_v60 = vld [vmem:[#allocation3 + $0x18] sm:$0xff] }
  0x39   : > { %615 = vst.msk [vmem:[#allocation3 + $0x21] sm:$0xff] %vm504_vm1, %v2007_v59  ;;  %v502_v10 = vmax.f32 %v470_v62, 0.0  ;;  %v503_v12 = vmax.f32 %v471_v63, 0.0  ;;  %533 = vst.msk [vmem:[%s1853_s14 + $0xe0] sm:$0xff] %vm504_vm1, %v500_v7  ;;  %1569 = vmatprep.subr.bf16.mxu1 %v1693_v53  ;;  %v627_v62 = vld [vmem:[#allocation3] sm:$0xff] }
  0x3a   : > { %534 = vst.msk [vmem:[%s1853_s14 + $0xe8] sm:$0xff] %vm504_vm1, %v501_v9  ;;  %v683_v25 = vld [vmem:[#allocation3 + $0x2] sm:$0xff]  ;;  %v684_v29 = vld [vmem:[#allocation3 + $0xa] sm:$0xff]  ;;  %1584 = vmatpush3.bf16.msra.mxu0 %v1690_v40 }
  0x3b   : > { %535 = vst.msk [vmem:[%s1853_s14 + $0xf0] sm:$0xff] %vm504_vm1, %v502_v10  ;;  %536 = vst.msk [vmem:[%s1853_s14 + $0xf8] sm:$0xff] %vm504_vm1, %v503_v12  ;;  %v565_v14 = vmax.f32 %v500_v7, %v502_v10  ;;  %v566_v15 = vmax.f32 %v501_v9, %v503_v12  ;;  %1593 = vmatprep.subr.bf16.mxu0 %v2056_v51  ;;  %v628_v61 = vld [vmem:[#allocation3 + $0x8] sm:$0xff]  ;;  %v629_v63 = vld [vmem:[#allocation3 + $0x10] sm:$0xff] }
  0x3c   : > { %1570 = vmatpush3.bf16.msra.mxu1 %v1693_v53 }
  0x3d   : > { %v579_v5 = vld [vmem:[#allocation2 + $0x50] ss:$2 sm:$0xff]  ;;  %v595_v13 = vld [vmem:[#allocation2 + $0x51] ss:$2 sm:$0xff]  ;;  %567 = vst.msk [vmem:[#allocation2 + $0x70] sm:$0xff] %vm504_vm1, %v565_v14  ;;  %568 = vst.msk [vmem:[#allocation2 + $0x78] sm:$0xff] %vm504_vm1, %v566_v15  ;;  %1607 = vmatprep.subr.bf16.mxu1 %v2056_v51 }
  0x3e   : > { %v581_v22 = vld [vmem:[#allocation2 + $0x60] ss:$2 sm:$0xff]  ;;  %v597_v16 = vld [vmem:[#allocation2 + $0x61] ss:$2 sm:$0xff]  ;;  %v605_v17 = vmax.f32 %v579_v5, %v595_v13 }
  0x3f   : > { %v2023_v18 = vmax.f32 %v581_v22, %v597_v16 }
  0x40   : > { %616 = vst.msk [vmem:[#allocation3 + $0x29] sm:$0xff] %vm504_vm1, %v605_v17  ;;  %v1661_v19 = vpack.i.bf16 %v605_v17, %v2007_v59  ;;  %v686_v26 = vld [vmem:[#allocation3 + $0x1a] sm:$0xff] }
  0x41   : > { %617 = vst.msk [vmem:[#allocation3 + $0x31] sm:$0xff] %vm504_vm1, %v2023_v18 }
  0x44   : > { %v583_v28 = vld [vmem:[#allocation2 + $0x70] ss:$2 sm:$0xff]  ;;  %v599_v27 = vld [vmem:[#allocation2 + $0x71] ss:$2 sm:$0xff] }
  0x45   : > { %v607_v20 = vmax.f32 %v583_v28, %v599_v27 }
  0x47   : > { %618 = vst.msk [vmem:[#allocation3 + $0x39] sm:$0xff] %vm504_vm1, %v607_v20  ;;  %v1676_v4 = vpack.i.bf16 %v607_v20, %v2023_v18  ;;  %v687_v38 = vld [vmem:[#allocation3 + $0x22] sm:$0xff] }
  0x48   : > { %v688_v37 = vld [vmem:[#allocation3 + $0x2a] sm:$0xff] }
  0x49   : > { %v632_v28 = vld [vmem:[#allocation3 + $0x28] sm:$0xff] }
  0x4e   : > { %v690_v44 = vld [vmem:[#allocation3 + $0x3a] sm:$0xff]  ;;  %v689_v45 = vld [vmem:[#allocation3 + $0x32] sm:$0xff] }
  0x86   : > { %v701_v21 = vpop.permute.xlu1 %700  ;;  %v693_v23 = vpop.permute.xlu0 %692 }
  0x87   : > { %v725_v33 = vmul.f32 %v701_v21, %v685_v24  ;;  %v723_v34 = vmul.f32 %v693_v23, %v683_v25 }
  0x8a   : > { %v705_v31 = vpop.permute.xlu1 %704  ;;  %v697_v32 = vpop.permute.xlu0 %696 }
  0x8b   : > { %v726_v35 = vmul.f32 %v705_v31, %v686_v26  ;;  %v724_v36 = vmul.f32 %v697_v32, %v684_v29 }
  0x8d   : > { %v1666_v39 = vpack.i.bf16 %v726_v35, %v725_v33  ;;  %v1656_v0 = vpack.i.bf16 %v724_v36, %v723_v34 }
  0x8e   : > { %v713_v3 = vpop.permute.xlu1 %712  ;;  %v709_v41 = vpop.permute.xlu0 %708 }
  0x8f   : > { %v728_v42 = vmul.f32 %v713_v3, %v688_v37  ;;  %v727_v43 = vmul.f32 %v709_v41, %v687_v38  ;;  %1667 = vrot.lane.b32.xlu0 %v1666_v39, %s1708_s24  ;;  %1657 = vrot.lane.b32.xlu1 %v1656_v0, %s1708_s24  ;;  %v634_v38 = vld [vmem:[#allocation3 + $0x38] sm:$0xff] }
  0x91   : > { %v1671_v46 = vpack.i.bf16 %v728_v42, %v727_v43  ;;  %v633_v42 = vld [vmem:[#allocation3 + $0x30] sm:$0xff] }
  0x92   : > { %v721_v2 = vpop.permute.xlu1 %720 }
  0x93   : > { %v717_v48 = vpop.permute.xlu0 %716  ;;  %v730_v49 = vmul.f32 %v721_v2, %v690_v44  ;;  %1672 = vrot.lane.b32.xlu0 %v1671_v46, %s1708_s24  ;;  %1662 = vrot.lane.b32.xlu1 %v1661_v19, %s1707_s15  ;;  %v631_v19 = vld [vmem:[#allocation3 + $0x20] sm:$0xff] }
  0x94   : > { %v729_v50 = vmul.f32 %v717_v48, %v689_v45 }
  0x96   : > { %v1681_v52 = vpack.i.bf16 %v730_v49, %v729_v50 }
  0x97   : > { %1677 = vrot.lane.b32.xlu1 %v1676_v4, %s1707_s15 }
  0x98   : > { %1682 = vrot.lane.b32.xlu0 %v1681_v52, %s1708_s24  ;;  %s328_s24 = scalar_lea.vmem %s2171_s8, %s1407_s21 }
  0x9d   : > { %v643_v54 = vpop.permute.xlu1 %642  ;;  %v638_v55 = vpop.permute.xlu0 %637 }
  0x9e   : > { %v676_v10 = vmul.f32 %v643_v54, %v628_v61  ;;  %v675_v12 = vmul.f32 %v638_v55, %v627_v62 }
  0xa1   : > { %v648_v56 = vpop.permute.xlu1 %647  ;;  %v653_v11 = vpop.permute.xlu0 %652 }
  0xa2   : > { %v677_v5 = vmul.f32 %v648_v56, %v629_v63  ;;  %v678_v13 = vmul.f32 %v653_v11, %v630_v60 }
  0xa5   : > { %v658_v6 = vpop.permute.xlu1 %657  ;;  %v663_v57 = vpop.permute.xlu0 %662 }
  0xa6   : > { %v679_v32 = vmul.f32 %v658_v6, %v631_v19  ;;  %v680_v33 = vmul.f32 %v663_v57, %v632_v28 }
  0xa9   : > { %v2064_v58 = vpop.permute.xlu1 %667  ;;  %v673_v59 = vpop.permute.xlu0 %672 }
  0xaa   : > { %v682_v45 = vmul.f32 %v673_v59, %v634_v38  ;;  %v681_v55 = vmul.f32 %v2064_v58, %v633_v42  ;;  %v1694_v58 = vld [vmem:[%s2167_s4 + $0x38] sm:$0xff]  }
  0xad   : > { %v1653_v7 = vpop.permute.xlu0 %1652  ;;  %v1648_v9 = vpop.permute.xlu1 %1647 }
  0xae   : > { %v1655_v14 = vunpack.i.h.bf16 %v1653_v7  ;;  %v1654_v15 = vunpack.i.l.bf16 %v1653_v7  ;;  %v1650_v22 = vunpack.i.h.bf16 %v1648_v9  ;;  %v1649_v16 = vunpack.i.l.bf16 %v1648_v9 }
  0xb0   : > { %v797_v21 = vsel %vm504_vm1, %v677_v5, %v1654_v15  ;;  %v798_v23 = vsel %vm504_vm1, %v678_v13, %v1655_v14  ;;  %v795_v24 = vsel %vm504_vm1, %v675_v12, %v1649_v16  ;;  %v796_v25 = vsel %vm504_vm1, %v676_v10, %v1650_v22  ;;  %v1695_v15 = vld [vmem:[%s2167_s4 + $0x40] sm:$0xff]  }
 0x101   : > { %v1668_v17 = vpop.permute.xlu0 %1667  ;;  %v1658_v18 = vpop.permute.xlu1 %1657 }
 0x102   : > { %v1670_v27 = vunpack.i.h.bf16 %v1668_v17  ;;  %v1669_v20 = vunpack.i.l.bf16 %v1668_v17  ;;  %v1660_v4 = vunpack.i.h.bf16 %v1658_v18  ;;  %v1659_v1 = vunpack.i.l.bf16 %v1658_v18 }
 0x104   : > { %v806_v26 = vsel %vm803_vm4, %v797_v21, %v1669_v20  ;;  %v807_v29 = vsel %vm803_vm4, %v798_v23, %v1670_v27  ;;  %v804_v30 = vsel %vm803_vm4, %v795_v24, %v1659_v1  ;;  %v805_v31 = vsel %vm803_vm4, %v796_v25, %v1660_v4 }
 0x105   : > { %v813_v34 = vpack.c.bf16 %v807_v29, %v806_v26  ;;  %v812_v35 = vpack.c.bf16 %v805_v31, %v804_v30  ;;  %v1673_v36 = vpop.permute.xlu0 %1672  ;;  %v1663_v37 = vpop.permute.xlu1 %1662 }
 0x106   : > { %v1675_v39 = vunpack.i.h.bf16 %v1673_v36  ;;  %v1674_v0 = vunpack.i.l.bf16 %v1673_v36  ;;  %v1665_v8 = vunpack.i.h.bf16 %v1663_v37  ;;  %v1664_v40 = vunpack.i.l.bf16 %v1663_v37  ;;  %v1443_v36 = vld [vmem:[%s2168_s5] ss:$0 sm:$0xff] }
 0x107   : > { %v826_v3 = vrot.slane %v813_v34, 4  ;;  %v825_v41 = vrot.slane %v812_v35, 4 }
 0x108   : > { %v800_v43 = vsel %vm504_vm1, %v680_v33, %v1665_v8  ;;  %v799_v44 = vsel %vm504_vm1, %v679_v32, %v1664_v40 }
 0x109   : > { %v827_v46 = vsel %vm824_vm5, %v825_v41, %v826_v3  ;;  %837 = vst.msk [vmem:[#allocation4] sm:$0xf0] %vm818_vm2, %v825_v41  ;;  %v809_v47 = vsel %vm803_vm4, %v800_v43, %v1675_v39  ;;  %v808_v2 = vsel %vm803_vm4, %v799_v44, %v1674_v0  ;;  %v1678_v49 = vpop.permute.xlu1 %1677 }
 0x10a   : > { %v1683_v48 = vpop.permute.xlu0 %1682  ;;  %839 = vst.msk [vmem:[#allocation4 + $0x8] sm:$0xff] %vm838_vm6, %v827_v46  ;;  %v814_v50 = vpack.c.bf16 %v809_v47, %v808_v2  ;;  %v1680_v54 = vunpack.i.h.bf16 %v1678_v49  ;;  %v1679_v56 = vunpack.i.l.bf16 %v1678_v49 }
 0x10b   : > { %v1685_v52 = vunpack.i.h.bf16 %v1683_v48  ;;  %v1684_v53 = vunpack.i.l.bf16 %v1683_v48 }
 0x10c   : > { %v828_v11 = vrot.slane %v814_v50, 4  ;;  %v802_v6 = vsel %vm504_vm1, %v682_v45, %v1680_v54  ;;  %v801_v59 = vsel %vm504_vm1, %v681_v55, %v1679_v56 }
 0x10d   : > { %v811_v57 = vsel %vm803_vm4, %v802_v6, %v1685_v52  ;;  %v810_v61 = vsel %vm803_vm4, %v801_v59, %v1684_v53 }
 0x10e   : > { %v829_v60 = vsel %vm824_vm5, %v826_v3, %v828_v11  ;;  %v815_v62 = vpack.c.bf16 %v811_v57, %v810_v61 }
 0x10f   : > { %840 = vst.msk [vmem:[#allocation4 + $0x10] sm:$0xff] %vm838_vm6, %v829_v60 }
 0x110   : > { %v843_v63 = vld [vmem:[#allocation4] sm:$0xff]  ;;  %v830_v9 = vrot.slane %v815_v62, 4 }
 0x111   : > { %v853_v7 = vld [vmem:[#allocation4] sm:$0xf0]  ;;  %1585 = vmatprep.mubr.msk.bf16.mxu0 %vm838_vm6, %v843_v63  ;;  %v844_v10 = vld [vmem:[#allocation4 + $0x8] sm:$0xff] }
 0x112   : > { %v867_v12 = vrot.slane %v853_v7, 4  ;;  %1586 = vmatmul.mubr.msk.bf16.vlgmr.msra.gmra.mrb[0].mxu0 %vm838_vm6, %v844_v10  ;;  %v868_v5 = vrot.slane %v844_v10, 4  ;;  %v831_v13 = vsel %vm824_vm5, %v828_v11, %v830_v9  ;;  %842 = vst.msk [vmem:[#allocation4 + $0x20] sm:$0xf] %vm816_vm3, %v830_v9 }
 0x113   : > { %1594 = vmatpush3.bf16.msra.mxu0 %v2056_v51  ;;  %841 = vst.msk [vmem:[#allocation4 + $0x18] sm:$0xff] %vm838_vm6, %v831_v13 }
 0x114   : > { %v869_v14 = vsel %vm824_vm5, %v867_v12, %v868_v5  ;;  %1595 = vmatprep.subr.bf16.mxu0 %v1694_v58 }
 0x115   : > { %1571 = vmatprep.mubr.msk.bf16.mxu1 %vm838_vm6, %v869_v14 }
 0x116   : > { %v845_v22 = vld [vmem:[#allocation4 + $0x10] sm:$0xff] }
 0x117   : > { %v870_v16 = vrot.slane %v845_v22, 4  ;;  %1589 = vmatprep.mubr.msk.bf16.mxu0 %vm838_vm6, %v845_v22  ;;  %1596 = vmatpush3.bf16.msra.mxu0 %v1694_v58 }
 0x118   : > { %1597 = vmatprep.subr.bf16.mxu0 %v1695_v15 }
 0x119   : > { %v871_v17 = vsel %vm824_vm5, %v868_v5, %v870_v16  ;;  %v854_v18 = vld [vmem:[#allocation4 + $0x20] sm:$0xf] }
 0x11a   : > { %1572 = vmatmul.mubr.msk.bf16.vlgmr.msra.gmra.mrb[0].mxu1 %vm838_vm6, %v871_v17  ;;  %v846_v19 = vld [vmem:[#allocation4 + $0x18] sm:$0xff]  ;;  %v874_v27 = vrot.slane %v854_v18, 4 }
 0x11b   : > { %1610 = vmatpush3.bf16.msra.mxu1 %v2056_v51  ;;  %1598 = vmatpush3.bf16.msra.mxu0 %v1695_v15  ;;  %v872_v28 = vrot.slane %v846_v19, 4  ;;  %v1066_v51 = vld [vmem:[#allocation4 + $0x20] sm:$0xff] }
 0x11c   : > { %1590 = vmatmul.mubr.msk.bf16.gmra.mrb[4].mxu0 %vm838_vm6, %v846_v19  ;;  %1608 = vmatprep.subr.bf16.mxu1 %v1694_v58 }
 0x11d   : > { %1599 = vmatprep.mubr.msk.bf16.mxu0 %vm838_vm6, %v844_v10  ;;  %v873_v20 = vsel %vm824_vm5, %v870_v16, %v872_v28  ;;  %v875_v4 = vsel %vm824_vm5, %v872_v28, %v874_v27 }
 0x11e   : > { %1575 = vmatprep.mubr.msk.bf16.mxu1 %vm838_vm6, %v873_v20 }
 0x11f   : > { %1611 = vmatpush3.bf16.msra.mxu1 %v1694_v58 }
 0x120   : > { %1609 = vmatprep.subr.bf16.mxu1 %v1695_v15 }
 0x122   : > { %1576 = vmatmul.mubr.msk.bf16.gmra.mrb[4].mxu1 %vm838_vm6, %v875_v4 }
 0x123   : > { %1603 = vmatprep.mubr.msk.bf16.mxu1 %vm838_vm6, %v846_v19  ;;  %1612 = vmatpush3.bf16.msra.mxu1 %v1695_v15 }
 0x124   : > { %1600 = vmatmul.mubr.msk.bf16.vlgmr.msra.gmra.mrb[0].mxu0 %vm838_vm6, %v845_v22 }
 0x12a   : > { %1604 = vmatmul.mubr.msk.bf16.vlgmr.msra.gmra.mrb[8].mxu1 %vm838_vm6, %v1066_v51 }
 0x1ed   : > { %v1573_v1 = vpop.f32.mrb[0].mxu1 }
 0x1ee   : > { %v940_v21 = vpop.f32.mrb[1].mxu1 }
 0x1ef   : > { %v1591_v23 = vpop.f32.mrb[4].mxu0  ;;  %v1574_v24 = vpop.f32.mrb[2].mxu1 }
 0x1f0   : > { %v1051_v25 = vpop.f32.mrb[5].mxu0  ;;  %v943_v26 = vpop.f32.mrb[3].mxu1 }
 0x1f1   : > { %v1592_v29 = vpop.f32.mrb[6].mxu0 }
 0x1f2   : > { %v1054_v30 = vpop.f32.mrb[7].mxu0 }
 0x1f5   : > { %v1577_v31 = vpop.f32.mrb[4].mxu1 }
 0x1f6   : > { %v1060_v32 = vadd.f32 %v1591_v23, %v1577_v31  ;;  %v956_v33 = vpop.f32.mrb[5].mxu1 }
 0x1f7   : > { %v1052_v34 = vadd.f32 %v1051_v25, %v956_v33  ;;  %v1601_v35 = vpop.f32.mrb[0].mxu0  ;;  %v1578_v37 = vpop.f32.mrb[6].mxu1 }
 0x1f8   : > { %v1613_v38 = vadd.f32 %v1601_v35, %v1573_v1  ;;  %v1063_v39 = vadd.f32 %v1592_v29, %v1578_v37  ;;  %v1129_v0 = vpop.f32.mrb[1].mxu0  ;;  %v959_v8 = vpop.f32.mrb[7].mxu1 }
 0x1f9   : > { %v1614_v40 = vadd.f32 %v1129_v0, %v940_v21  ;;  %v1055_v3 = vadd.f32 %v1054_v30, %v959_v8  ;;  %v1602_v41 = vpop.f32.mrb[2].mxu0 }
 0x1fa   : > { %v1177_v42 = vadd.f32 %v1613_v38, %v1443_v36  ;;  %v1615_v43 = vadd.f32 %v1602_v41, %v1574_v24  ;;  %v1132_v44 = vpop.f32.mrb[3].mxu0 }
 0x1fb   : > { %v1175_v45 = vadd.f32 %v1614_v40, %v1443_v36  ;;  %v1616_v46 = vadd.f32 %v1132_v44, %v943_v26 }
 0x1fc   : > { %v1459_v47 = vpack.c.bf16 %v1177_v42, %v1177_v42  ;;  %v1178_v2 = vadd.f32 %v1615_v43, %v1443_v36  ;;  %v1227_v53 = vsel %vm803_vm4, %v1177_v42, 0.0  ;;  %v1249_v54 = vmul.f32 %v1177_v42, %v1177_v42 }
 0x1fd   : > { %v1457_v48 = vpack.c.bf16 %v1175_v45, %v1175_v45  ;;  %v1247_v49 = vmul.f32 %v1175_v45, %v1175_v45  ;;  %v1176_v50 = vadd.f32 %v1616_v46, %v1443_v36  ;;  %v1605_v52 = vpop.f32.mrb[8].mxu1  ;;  %v1224_v11 = vsel %vm803_vm4, %v1175_v45, 0.0 }
 0x1fe   : > { %1218 = vst.msk [vmem:[%s2122_s20 + $0x8] sm:$0xf] %vm1215_vm7, %v1459_v47  ;;  %v1460_v55 = vpack.c.bf16 %v1178_v2, %v1178_v2  ;;  %v1145_v56 = vpop.f32.mrb[9].mxu1  ;;  %v1250_v61 = vmul.f32 %v1178_v2, %v1178_v2  ;;  %v1166_v63 = vadd.f32 %v1605_v52, %v1060_v32  ;;  %v1258_v16 = vsel %vm803_vm4, %v1249_v54, 0.0 }
 0x1ff   : > { %1216 = vst.msk [vmem:[%s2122_s20] sm:$0xf] %vm1215_vm7, %v1457_v48  ;;  %v1458_v6 = vpack.c.bf16 %v1176_v50, %v1176_v50  ;;  %v1225_v57 = vsel %vm803_vm4, %v1176_v50, 0.0  ;;  %v1248_v59 = vmul.f32 %v1176_v50, %v1176_v50  ;;  %v1606_v60 = vpop.f32.mrb[10].mxu1  ;;  %v1164_v7 = vadd.f32 %v1145_v56, %v1052_v34 }
 0x200   : > { %1219 = vst.msk [vmem:[%s2122_s20 + $0xc] sm:$0xf] %vm1215_vm7, %v1460_v55  ;;  %v1226_v62 = vadd.f32 %v1225_v57, %v1224_v11  ;;  %v1148_v58 = vpop.f32.mrb[11].mxu1  ;;  %v1255_v9 = vsel %vm803_vm4, %v1247_v49, 0.0  ;;  %v1167_v12 = vadd.f32 %v1606_v60, %v1063_v39  ;;  %v1181_v15 = vadd.f32 %v1443_v36, %v1166_v63 }
 0x201   : > { %1217 = vst.msk [vmem:[%s2122_s20 + $0x4] sm:$0xf] %vm1215_vm7, %v1458_v6  ;;  %v1256_v10 = vsel %vm803_vm4, %v1248_v59, 0.0  ;;  %v1165_v5 = vadd.f32 %v1148_v58, %v1055_v3  ;;  %v1179_v22 = vadd.f32 %v1443_v36, %v1164_v7  ;;  %v1229_v19 = vsel %vm803_vm4, %v1178_v2, 0.0 }
 0x202   : > { %v1228_v13 = vadd.f32 %v1227_v53, %v1226_v62  ;;  %v1257_v14 = vadd.f32 %v1256_v10, %v1255_v9  ;;  %v1182_v17 = vadd.f32 %v1443_v36, %v1167_v12  ;;  %v1260_v28 = vsel %vm803_vm4, %v1250_v61, 0.0 }
 0x203   : > { %v1180_v18 = vadd.f32 %v1443_v36, %v1165_v5  ;;  %v1463_v20 = vpack.c.bf16 %v1181_v15, %v1181_v15  ;;  %v1461_v4 = vpack.c.bf16 %v1179_v22, %v1179_v22  ;;  %v1231_v1 = vsel %vm803_vm4, %v1179_v22, 0.0 }
 0x204   : > { %v1259_v27 = vadd.f32 %v1258_v16, %v1257_v14  ;;  %v1230_v51 = vadd.f32 %v1229_v19, %v1228_v13  ;;  %v1251_v21 = vmul.f32 %v1179_v22, %v1179_v22  ;;  %v1464_v24 = vpack.c.bf16 %v1182_v17, %v1182_v17 }
 0x205   : > { %1222 = vst.msk [vmem:[%s2122_s20 + $0x18] sm:$0xf] %vm1215_vm7, %v1463_v20  ;;  %1220 = vst.msk [vmem:[%s2122_s20 + $0x10] sm:$0xf] %vm1215_vm7, %v1461_v4  ;;  %v1462_v29 = vpack.c.bf16 %v1180_v18, %v1180_v18  ;;  %v1253_v30 = vmul.f32 %v1181_v15, %v1181_v15  ;;  %v1233_v32 = vsel %vm803_vm4, %v1180_v18, 0.0  ;;  %v1252_v33 = vmul.f32 %v1180_v18, %v1180_v18 }
 0x206   : > { %v1261_v23 = vadd.f32 %v1260_v28, %v1259_v27  ;;  %v1232_v25 = vadd.f32 %v1231_v1, %v1230_v51  ;;  %v1262_v26 = vsel %vm803_vm4, %v1251_v21, 0.0  ;;  %1223 = vst.msk [vmem:[%s2122_s20 + $0x1c] sm:$0xf] %vm1215_vm7, %v1464_v24  ;;  %v1235_v35 = vsel %vm803_vm4, %v1181_v15, 0.0 }
 0x207   : > { %1221 = vst.msk [vmem:[%s2122_s20 + $0x14] sm:$0xf] %vm1215_vm7, %v1462_v29  ;;  %v1254_v36 = vmul.f32 %v1182_v17, %v1182_v17  ;;  %v1264_v37 = vsel %vm803_vm4, %v1252_v33, 0.0  ;;  %v1266_v0 = vsel %vm803_vm4, %v1253_v30, 0.0  ;;  %v1237_v8 = vsel %vm803_vm4, %v1182_v17, 0.0 }
 0x208   : > { %v1263_v31 = vadd.f32 %v1262_v26, %v1261_v23  ;;  %v1234_v34 = vadd.f32 %v1233_v32, %v1232_v25 }
 0x209   : > { %v1268_v41 = vsel %vm803_vm4, %v1254_v36, 0.0 }
 0x20a   : > { %v1236_v38 = vadd.f32 %v1235_v35, %v1234_v34  ;;  %v1265_v39 = vadd.f32 %v1264_v37, %v1263_v31 }
 0x20c   : > { %v1238_v40 = vadd.f32 %v1237_v8, %v1236_v38  ;;  %v1267_v3 = vadd.f32 %v1266_v0, %v1265_v39 }
 0x20e   : > { %v1239_v42 = vrot.slane %v1238_v40, 4  ;;  %v1269_v43 = vadd.f32 %v1268_v41, %v1267_v3 }
 0x210   : > { %v1240_v44 = vadd.f32 %v1239_v42, %v1238_v40  ;;  %v1270_v45 = vrot.slane %v1269_v43, 4 }
 0x212   : > { %v1241_v46 = vrot.slane %v1240_v44, 2  ;;  %v1271_v47 = vadd.f32 %v1270_v45, %v1269_v43 }
 0x214   : > { %v1242_v2 = vadd.f32 %v1241_v46, %v1240_v44  ;;  %v1272_v48 = vrot.slane %v1271_v47, 2 }
 0x216   : > { %v1243_v49 = vrot.slane %v1242_v2, 1  ;;  %v1273_v50 = vadd.f32 %v1272_v48, %v1271_v47 }
 0x218   : > { %v1244_v52 = vadd.f32 %v1243_v49, %v1242_v2  ;;  %v1274_v53 = vrot.slane %v1273_v50, 1 }
 0x21a   : > { %1246 = vst.msk [vmem:[%s328_s24] sm:$0x1] %vm1245_vm8, %v1244_v52  ;;  %v1275_v54 = vadd.f32 %v1274_v53, %v1273_v50 }
 0x21c   : > { %1276 = vst.msk [vmem:[%s328_s24 + $0x1] sm:$0x1] %vm1245_vm8, %v1275_v54 }
 0x21d PF: > { %s19_s27 = sadd.s32 1, %s1702_s27  }
 0x21e   : > { %p16_p4 = scmp.ge.s32.totalorder %s19_s27, 4  }
 0x220   :  { %18 = sbr.rel (!%p16_p4) target bundleno = 1 (0x1), region = 115 }

// kernel: unet_encoder.9
= control target key start
LH: loop header
LB: loop body
LE: loop exit
PB: predicated region body
PF: predicated region fallthrough
CT: control target
= control target key end

     0   :  { %s2832_s18 = smov 0   ;;  %s3842_s0 = inlined_call_operand.vmem [shape: f32[2,256,4], index: 0, kind: input, shape index: {}]   ;;  %s3843_s1 = inlined_call_operand.vmem [shape: f32[256,2], index: 1, kind: input, shape index: {}]   ;;  %s3844_s2 = inlined_call_operand.vmem [shape: bf16[3,12,16], index: 2, kind: input, shape index: {}]   ;;  %s3845_s3 = inlined_call_operand.vmem [shape: f32[1,16], index: 3, kind: input, shape index: {}]   ;;  %s3846_s4 = inlined_call_operand.vmem [shape: bf16[2,256,16], index: 4, kind: output, shape index: {0}]   ;;  %s3847_s5 = inlined_call_operand.vmem [shape: f32[2,2,16], index: 5, kind: output, shape index: {1}]  }
   0x1 LB: > { %s2249_s19 = sadd.s32 4294967295, %s2795_s18   ;;  %p2253_p0 = scmp.ge.s32.totalorder %s2795_s18, 1  ;;  %s2795_s18 = sphi %s2832_s18, %s16_s18  }
   0x2   : > { %p190_p1 = scmp.lt.s32.totalorder %s2795_s18, 3 }
   0x4   : > { %p191_p2 = pnand %p2253_p0, %p190_p1 }
   0x6   : > { %194 = sbr.rel (%p191_p2) target bundleno = 646 (0x286), region = 36 }
   0xd   : > { %v2843_v0 = vld [vmem:[%s3843_s1 + $0x10] sm:$0xff]  ;;  %v2848_v1 = vld [vmem:[%s3843_s1] sm:$0xff]  ;;  %p222_p3 = scmp.lt.s32.totalorder %s2249_s19, 1  ;;  %v3848_v2 = vmov 1   ;;  %v2859_v3 = vld [vmem:[%s3843_s1 + $0x18] sm:$0xff]  ;;  %vm272_vm0 = vcmask 31744  }
   0xe   : > { %2620 = vset.pattern.permute.xlu1 %v3848_v2  ;;  %2619 = vset.pattern.permute.xlu0 %v3848_v2  ;;  %v2864_v4 = vld [vmem:[%s3843_s1 + $0x8] sm:$0xff]  ;;  %v2877_v6 = vld [vmem:[%s3843_s1 + $0x20] sm:$0xff]  ;;  %v2889_v7 = vld [vmem:[%s3843_s1 + $0x38] sm:$0xff]  ;;  %vm269_vm1 = vcmask 24576   ;;  %v2798_v20 = vmov 0.0   ;;  %s2800_s20 = smov 4  }
   0xf   : > { %602 = vperm.xlu1 %2620, %v2843_v0   ;;  %594 = vperm.xlu0 %2619, %v2848_v1   ;;  %s3873_s19 = smov (!%p222_p3, %s2249_s19), 1  ;;  %v2872_v5 = vld [vmem:[%s3843_s1 + $0x28] sm:$0xff]  ;;  %v2894_v8 = vld [vmem:[%s3843_s1 + $0x30] sm:$0xff]  ;;  %v2937_v19 = vld [vmem:[%s3843_s1 + $0x40] sm:$0xff]  ;;  %271 = vst.msk [vmem:[#allocation2 + $0x101] sm:$0x1] %vm269_vm1, %v2798_v20 }
  0x10   : > { %s2349_s28 = sshll.u32 %s3873_s19, 8  ;;  %v2932_v18 = vld [vmem:[%s3843_s1 + $0x48] sm:$0xff]  ;;  %v3002_v33 = vld [vmem:[%s3843_s1 + $0x58] sm:$0xff]  ;;  %v3007_v34 = vld [vmem:[%s3843_s1 + $0x50] sm:$0xff]  ;;  %270 = vst.msk [vmem:[#allocation2] sm:$0x1] %vm269_vm1, %v2798_v20 }
  0x11   : > { %s2882_s10 = scalar_lea.vmem %s3842_s0, %s2349_s28  ;;  %v3014_v35 = vld [vmem:[%s3843_s1 + $0x68] sm:$0xff]  ;;  %v3019_v36 = vld [vmem:[%s3843_s1 + $0x60] sm:$0xff]  ;;  %v3044_v41 = vld [vmem:[%s3843_s1 + $0x78] sm:$0xff]  ;;  %vm1090_vm2 = vcmask 97280   ;;  %vm1184_vm3 = vcmask 1045504   ;;  %s2801_s25 = smov 8  }
  0x12   : > { %v2897_v9 = vld [vmem:[%s2882_s10 + $0x10] sm:$0xff]  ;;  %v2900_v10 = vld [vmem:[%s2882_s10 + $0x18] sm:$0xff]  ;;  %v2905_v11 = vld [vmem:[%s2882_s10] sm:$0xff]  ;;  %vm1041_vm4 = vcmask 64512   ;;  %s2350_s30 = sshll.u32 %s3873_s19, 7  ;;  %vm1956_vm5 = vcmask 125952  }
  0x13   : > { %606 = vperm.xlu1 %2620, %v2859_v3   ;;  %598 = vperm.xlu0 %2619, %v2864_v4   ;;  %275 = vst.msk [vmem:[#allocation2 + $0x11] sm:$0xff] %vm272_vm0, %v2897_v9  ;;  %v2908_v12 = vld [vmem:[%s2882_s10 + $0x8] sm:$0xff]  ;;  %276 = vst.msk [vmem:[#allocation2 + $0x19] sm:$0xff] %vm272_vm0, %v2900_v10  ;;  %v2921_v15 = vld [vmem:[%s2882_s10 + $0x30] sm:$0xff]  ;;  %s3642_s8 = scalar_lea.vmem %s3846_s4, %s2350_s30  ;;  %vm1989_vm6 = vcmask 130048   ;;  %s2258_s9 = sshll.u32 %s3873_s19, 1 }
  0x14   : > { %274 = vst.msk [vmem:[#allocation2 + $0x9] sm:$0xff] %vm272_vm0, %v2908_v12  ;;  %273 = vst.msk [vmem:[#allocation2 + $0x1] sm:$0xff] %vm272_vm0, %v2905_v11  ;;  %v2924_v16 = vld [vmem:[%s2882_s10 + $0x38] sm:$0xff]  ;;  %v2927_v17 = vld [vmem:[%s2882_s10 + $0x20] sm:$0xff]  ;;  %s235_s13 = scalar_lea.vmem %s3847_s5, %s2258_s9  ;;  %vm2059_vm7 = vcmask 122880  }
  0x15   : > { %280 = vst.msk [vmem:[#allocation2 + $0x39] sm:$0xff] %vm272_vm0, %v2924_v16  ;;  %279 = vst.msk [vmem:[#allocation2 + $0x31] sm:$0xff] %vm272_vm0, %v2921_v15  ;;  %v2946_v21 = vld [vmem:[%s2882_s10 + $0x28] sm:$0xff]  ;;  %v2951_v22 = vld [vmem:[%s2882_s10 + $0x50] sm:$0xff] }
  0x16   : > { %277 = vst.msk [vmem:[#allocation2 + $0x21] sm:$0xff] %vm272_vm0, %v2927_v17  ;;  %v2954_v23 = vld [vmem:[%s2882_s10 + $0x58] sm:$0xff]  ;;  %278 = vst.msk [vmem:[#allocation2 + $0x29] sm:$0xff] %vm272_vm0, %v2946_v21  ;;  %v2969_v26 = vld [vmem:[%s2882_s10 + $0x40] sm:$0xff] }
  0x17   : > { %614 = vperm.xlu1 %2620, %v2872_v5   ;;  %610 = vperm.xlu0 %2619, %v2877_v6   ;;  %284 = vst.msk [vmem:[#allocation2 + $0x59] sm:$0xff] %vm272_vm0, %v2954_v23  ;;  %283 = vst.msk [vmem:[#allocation2 + $0x51] sm:$0xff] %vm272_vm0, %v2951_v22  ;;  %v2972_v27 = vld [vmem:[%s2882_s10 + $0x48] sm:$0xff]  ;;  %v2975_v28 = vld [vmem:[%s2882_s10 + $0x60] sm:$0xff] }
  0x18   : > { %282 = vst.msk [vmem:[#allocation2 + $0x49] sm:$0xff] %vm272_vm0, %v2972_v27  ;;  %281 = vst.msk [vmem:[#allocation2 + $0x41] sm:$0xff] %vm272_vm0, %v2969_v26  ;;  %v2984_v30 = vld [vmem:[%s2882_s10 + $0x68] sm:$0xff]  ;;  %v2993_v32 = vld [vmem:[%s2882_s10 + $0x70] sm:$0xff] }
  0x19   : > { %285 = vst.msk [vmem:[#allocation2 + $0x61] sm:$0xff] %vm272_vm0, %v2975_v28  ;;  %286 = vst.msk [vmem:[#allocation2 + $0x69] sm:$0xff] %vm272_vm0, %v2984_v30  ;;  %v3022_v37 = vld [vmem:[%s2882_s10 + $0x78] sm:$0xff]  ;;  %v3025_v38 = vld [vmem:[%s2882_s10 + $0x80] sm:$0xff] }
  0x1a   : > { %287 = vst.msk [vmem:[#allocation2 + $0x71] sm:$0xff] %vm272_vm0, %v2993_v32  ;;  %288 = vst.msk [vmem:[#allocation2 + $0x79] sm:$0xff] %vm272_vm0, %v3022_v37  ;;  %v3032_v39 = vld [vmem:[%s2882_s10 + $0x88] sm:$0xff]  ;;  %v3037_v40 = vld [vmem:[%s2882_s10 + $0x90] sm:$0xff] }
  0x1b   : > { %622 = vperm.xlu1 %2620, %v2889_v7   ;;  %618 = vperm.xlu0 %2619, %v2894_v8   ;;  %289 = vst.msk [vmem:[#allocation2 + $0x81] sm:$0xff] %vm272_vm0, %v3025_v38  ;;  %290 = vst.msk [vmem:[#allocation2 + $0x89] sm:$0xff] %vm272_vm0, %v3032_v39  ;;  %v3049_v42 = vld [vmem:[%s3843_s1 + $0x70] sm:$0xff]  ;;  %v3056_v44 = vld [vmem:[%s2882_s10 + $0x98] sm:$0xff] }
  0x1c   : > { %291 = vst.msk [vmem:[#allocation2 + $0x91] sm:$0xff] %vm272_vm0, %v3037_v40  ;;  %v3059_v45 = vld [vmem:[%s2882_s10 + $0xa0] sm:$0xff]  ;;  %292 = vst.msk [vmem:[#allocation2 + $0x99] sm:$0xff] %vm272_vm0, %v3056_v44  ;;  %v3070_v46 = vld [vmem:[%s3843_s1 + $0x88] sm:$0xff] }
  0x1d   : > { %293 = vst.msk [vmem:[#allocation2 + $0xa1] sm:$0xff] %vm272_vm0, %v3059_v45  ;;  %v3075_v47 = vld [vmem:[%s3843_s1 + $0x80] sm:$0xff]  ;;  %v3078_v48 = vld [vmem:[%s2882_s10 + $0xa8] sm:$0xff]  ;;  %v3081_v49 = vld [vmem:[%s2882_s10 + $0xb0] sm:$0xff] }
  0x1e   : > { %294 = vst.msk [vmem:[#allocation2 + $0xa9] sm:$0xff] %vm272_vm0, %v3078_v48  ;;  %295 = vst.msk [vmem:[#allocation2 + $0xb1] sm:$0xff] %vm272_vm0, %v3081_v49  ;;  %v3092_v50 = vld [vmem:[%s3843_s1 + $0x98] sm:$0xff]  ;;  %v3097_v51 = vld [vmem:[%s3843_s1 + $0x90] sm:$0xff] }
  0x1f   : > { %630 = vperm.xlu1 %2620, %v2932_v18   ;;  %626 = vperm.xlu0 %2619, %v2937_v19   ;;  %v3100_v52 = vld [vmem:[%s2882_s10 + $0xb8] sm:$0xff]  ;;  %v3105_v53 = vld [vmem:[%s2882_s10 + $0xc0] sm:$0xff]  ;;  %v3112_v54 = vld [vmem:[%s3843_s1 + $0xa8] sm:$0xff] }
  0x20   : > { %296 = vst.msk [vmem:[#allocation2 + $0xb9] sm:$0xff] %vm272_vm0, %v3100_v52  ;;  %v3117_v55 = vld [vmem:[%s3843_s1 + $0xa0] sm:$0xff]  ;;  %297 = vst.msk [vmem:[#allocation2 + $0xc1] sm:$0xff] %vm272_vm0, %v3105_v53  ;;  %v3124_v57 = vld [vmem:[%s2882_s10 + $0xc8] sm:$0xff] }
  0x21   : > { %v3129_v58 = vld [vmem:[%s2882_s10 + $0xd0] sm:$0xff]  ;;  %298 = vst.msk [vmem:[#allocation2 + $0xc9] sm:$0xff] %vm272_vm0, %v3124_v57  ;;  %v3136_v59 = vld [vmem:[%s3843_s1 + $0xb8] sm:$0xff]  ;;  %v3151_v63 = vld [vmem:[%s2882_s10 + $0xe0] sm:$0xff] }
  0x22   : > { %v3141_v60 = vld [vmem:[%s3843_s1 + $0xb0] sm:$0xff]  ;;  %299 = vst.msk [vmem:[#allocation2 + $0xd1] sm:$0xff] %vm272_vm0, %v3129_v58  ;;  %v3148_v62 = vld [vmem:[%s2882_s10 + $0xd8] sm:$0xff]  ;;  %301 = vst.msk [vmem:[#allocation2 + $0xe1] sm:$0xff] %vm272_vm0, %v3151_v63 }
  0x23   : > { %638 = vperm.xlu1 %2620, %v3002_v33   ;;  %634 = vperm.xlu0 %2619, %v3007_v34   ;;  %300 = vst.msk [vmem:[#allocation2 + $0xd9] sm:$0xff] %vm272_vm0, %v3148_v62  ;;  %v3162_v56 = vld [vmem:[%s3843_s1 + $0xc8] sm:$0xff]  ;;  %v3167_v61 = vld [vmem:[%s3843_s1 + $0xc0] sm:$0xff]  ;;  %v3173_v31 = vld [vmem:[%s2882_s10 + $0xf0] sm:$0xff] }
  0x24   : > { %v3170_v43 = vld [vmem:[%s2882_s10 + $0xe8] sm:$0xff]  ;;  %303 = vst.msk [vmem:[#allocation2 + $0xf1] sm:$0xff] %vm272_vm0, %v3173_v31  ;;  %v3184_v29 = vld [vmem:[%s3843_s1 + $0xd8] sm:$0xff]  ;;  %v3189_v25 = vld [vmem:[%s3843_s1 + $0xd0] sm:$0xff] }
  0x25   : > { %302 = vst.msk [vmem:[#allocation2 + $0xe9] sm:$0xff] %vm272_vm0, %v3170_v43  ;;  %3853 = vst [vmem:[#allocation4_spill] sm:$0xff] %v3184_v29  ;;  %v3192_v24 = vld [vmem:[%s2882_s10 + $0xf8] sm:$0xff]  ;;  %v3201_v14 = vld [vmem:[%s3843_s1 + $0xe8] sm:$0xff] }
  0x26   : > { %3854 = vst [vmem:[#allocation5_spill] sm:$0xff] %v3189_v25  ;;  %304 = vst.msk [vmem:[#allocation2 + $0xf9] sm:$0xff] %vm272_vm0, %v3192_v24  ;;  %v3206_v13 = vld [vmem:[%s3843_s1 + $0xe0] sm:$0xff]  ;;  %v3215_v20 = vld [vmem:[%s3843_s1 + $0xf8] sm:$0xff] }
  0x27   : > { %646 = vperm.xlu1 %2620, %v3014_v35   ;;  %642 = vperm.xlu0 %2619, %v3019_v36   ;;  %3855 = vst [vmem:[#allocation6_spill] sm:$0xff] %v3201_v14  ;;  %v3224_v2 = vld [vmem:[%s3843_s1 + $0xf0] sm:$0xff] }
  0x2b   : > { %654 = vperm.xlu1 %2620, %v3044_v41   ;;  %650 = vperm.xlu0 %2619, %v3049_v42  }
  0x2f   : > { %662 = vperm.xlu1 %2620, %v3070_v46   ;;  %658 = vperm.xlu0 %2619, %v3075_v47  }
  0x33   : > { %670 = vperm.xlu1 %2620, %v3092_v50   ;;  %666 = vperm.xlu0 %2619, %v3097_v51  }
  0x37   : > { %678 = vperm.xlu1 %2620, %v3112_v54   ;;  %674 = vperm.xlu0 %2619, %v3117_v55  }
  0x3b   : > { %686 = vperm.xlu1 %2620, %v3136_v59   ;;  %682 = vperm.xlu0 %2619, %v3141_v60  }
  0x3f   : > { %694 = vperm.xlu1 %2620, %v3162_v56   ;;  %690 = vperm.xlu0 %2619, %v3167_v61  }
  0x43   : > { %702 = vperm.xlu1 %2620, %v3184_v29   ;;  %698 = vperm.xlu0 %2619, %v3189_v25   ;;  %v2799_v25 = vmov 0   ;;  %v2745_v29 = vpack.i.bf16 %v3124_v57, %v3105_v53  ;;  %v591_v57 = vld [vmem:[#allocation2 + $0xf2] sm:$0xff] }
  0x44   : > { %1091 = vst.msk [vmem:[#allocation3] sm:$0xff] %vm1090_vm2, %v2799_v25  ;;  %1092 = vst.msk [vmem:[#allocation3 + $0x88] sm:$0xff] %vm1090_vm2, %v2799_v25 }
  0x47   : > { %710 = vperm.xlu1 %2620, %v3201_v14   ;;  %706 = vperm.xlu0 %2619, %v3206_v13   ;;  %v3856_v14 = vmov 1  }
  0x4b   : > { %2621 = vset.pattern.permute.xlu1 %v2799_v25  ;;  %718 = vperm.xlu0 %2619, %v3215_v20  }
  0x4c   : > { %376 = vperm.xlu1 %2621, %v2864_v4   ;;  %v2750_v4 = vpack.i.bf16 %v3148_v62, %v3129_v58  ;;  %v592_v58 = vld [vmem:[#allocation2 + $0xfa] sm:$0xff] }
  0x4f   : > { %2623 = vset.pattern.permute.xlu0 %v2799_v25 }
  0x50   : > { %2622 = vset.pattern.permute.xlu1 %v3856_v14  ;;  %371 = vperm.xlu0 %2623, %v2848_v1   ;;  %v3857_v1 = vpack.i.bf16 %v2900_v10, %v2897_v9  ;;  %v3862_v9 = vpack.i.bf16 %v2972_v27, %v2969_v26  ;;  %v3863_v10 = vpack.i.bf16 %v2984_v30, %v2975_v28  ;;  %v2786_v28 = vld [vmem:[%s3844_s2] sm:$0x3f]  }
  0x51   : > { %714 = vperm.xlu1 %2622, %v3224_v2   ;;  %2603 = vmatprep.subr.msk.bf16.mxu0 %vm1184_vm3, %v2786_v28 }
  0x54   : > { %391 = vperm.xlu0 %2623, %v2877_v6   ;;  %v2765_v6 = vpack.i.bf16 %v3170_v43, %v3151_v63 }
  0x55   : > { %2624 = vset.pattern.permute.xlu1 %v2799_v25 }
  0x56   : > { %381 = vperm.xlu1 %2624, %v2843_v0   ;;  %v2770_v0 = vpack.i.bf16 %v3192_v24, %v3173_v31 }
  0x58   : > { %406 = vperm.xlu0 %2623, %v2889_v7   ;;  %v3859_v7 = vpack.i.bf16 %v2924_v16, %v2921_v15  ;;  %v563_v15 = vld [vmem:[#allocation2 + $0x12] sm:$0xff]  ;;  %v561_v16 = vld [vmem:[#allocation2 + $0x2] sm:$0xff] }
  0x5a   : > { %386 = vperm.xlu1 %2624, %v2859_v3   ;;  %v3858_v3 = vpack.i.bf16 %v2908_v12, %v2905_v11 }
  0x5c   : > { %2631 = vrot.lane.b32.xlu0 %v3857_v1, %s2800_s20 }
  0x5e   : > { %396 = vperm.xlu1 %2624, %v2872_v5   ;;  %v3860_v5 = vpack.i.bf16 %v2946_v21, %v2927_v17  ;;  %v564_v17 = vld [vmem:[#allocation2 + $0x1a] sm:$0xff] }
  0x60   : > { %416 = vperm.xlu0 %2623, %v2932_v18   ;;  %v562_v18 = vld [vmem:[#allocation2 + $0xa] sm:$0xff] }
  0x62   : > { %401 = vperm.xlu1 %2624, %v2894_v8   ;;  %v3861_v8 = vpack.i.bf16 %v2954_v23, %v2951_v22 }
  0x64   : > { %426 = vperm.xlu0 %2623, %v3002_v33   ;;  %v566_v33 = vld [vmem:[#allocation2 + $0x2a] sm:$0xff] }
  0x66   : > { %2626 = vrot.lane.b32.xlu1 %v3858_v3, %s2800_s20 }
  0x68   : > { %2641 = vrot.lane.b32.xlu0 %v3859_v7, %s2800_s20  ;;  %v1109_v7 = vld [vmem:[#allocation3] sm:$0xff] }
  0x69   : > { %2470 = vmatprep.mubr.msk.bf16.mxu0 %vm1090_vm2, %v1109_v7 }
  0x6a   : > { %411 = vperm.xlu1 %2624, %v2937_v19  }
  0x6c   : > { %436 = vperm.xlu0 %2623, %v3014_v35  }
  0x6e   : > { %421 = vperm.xlu1 %2624, %v3007_v34   ;;  %v565_v34 = vld [vmem:[#allocation2 + $0x22] sm:$0xff] }
  0x70   : > { %446 = vperm.xlu0 %2623, %v3044_v41   ;;  %v2787_v41 = vld [vmem:[%s3844_s2 + $0x8] sm:$0x3f]  }
  0x71   : > { %2602 = vmatprep.subr.msk.bf16.mxu1 %vm1184_vm3, %v2787_v41  ;;  %v1186_v1 = vsel %vm1184_vm3, %v2787_v41, 0 }
  0x72   : > { %2636 = vrot.lane.b32.xlu1 %v3860_v5, %s2800_s20  ;;  %2435 = vmatpush3.bf16.msra.mxu1 %v1186_v1 }
  0x73   : > { %2604 = vmatprep.subr.msk.bf16.mxu1 %vm1184_vm3, %v2786_v28 }
  0x74   : > { %2651 = vrot.lane.b32.xlu0 %v3861_v8, %s2800_s20 }
  0x76   : > { %431 = vperm.xlu1 %2624, %v3019_v36  }
  0x78   : > { %456 = vperm.xlu0 %2623, %v3070_v46  }
  0x7a   : > { %441 = vperm.xlu1 %2624, %v3049_v42  }
  0x7c   : > { %466 = vperm.xlu0 %2623, %v3092_v50   ;;  %v568_v50 = vld [vmem:[#allocation2 + $0x3a] sm:$0xff] }
  0x7e   : > { %2646 = vrot.lane.b32.xlu1 %v3862_v9, %s2800_s20 }
  0x82   : > { %451 = vperm.xlu1 %2624, %v3075_v47   ;;  %v3294_v47 = vsel %vm1184_vm3, %v2786_v28, 0 }
  0x83   : > { %2469 = vmatpush3.bf16.msra.mxu0 %v3294_v47 }
  0x86   : > { %461 = vperm.xlu1 %2624, %v3097_v51   ;;  %v567_v51 = vld [vmem:[#allocation2 + $0x32] sm:$0xff] }
  0x8a   : > { %2656 = vrot.lane.b32.xlu1 %v3863_v10, %s2800_s20 }
  0x8e   : > { %v603_v11 = vpop.permute.xlu1 %602  ;;  %v595_v12 = vpop.permute.xlu0 %594 }
  0x8f   : > { %v723_v22 = vmul.f32 %v603_v11, %v563_v15  ;;  %v721_v23 = vmul.f32 %v595_v12, %v561_v16  ;;  %v570_v11 = vld [vmem:[#allocation2 + $0x4a] sm:$0xff]  ;;  %v569_v12 = vld [vmem:[#allocation2 + $0x42] sm:$0xff] }
  0x92   : > { %v607_v19 = vpop.permute.xlu1 %606  ;;  %v599_v21 = vpop.permute.xlu0 %598 }
  0x93   : > { %v724_v26 = vmul.f32 %v607_v19, %v564_v17  ;;  %v722_v27 = vmul.f32 %v599_v21, %v562_v18  ;;  %v572_v21 = vld [vmem:[#allocation2 + $0x5a] sm:$0xff] }
  0x95   : > { %v2665_v25 = vpack.i.bf16 %v724_v26, %v723_v22  ;;  %v2660_v35 = vpack.i.bf16 %v722_v27, %v721_v23  ;;  %v571_v22 = vld [vmem:[#allocation2 + $0x52] sm:$0xff] }
  0x96   : > { %v615_v30 = vpop.permute.xlu1 %614  ;;  %v611_v36 = vpop.permute.xlu0 %610 }
  0x97   : > { %v726_v42 = vmul.f32 %v615_v30, %v566_v33  ;;  %v725_v46 = vmul.f32 %v611_v36, %v565_v34  ;;  %2666 = vrot.lane.b32.xlu0 %v2665_v25, %s2801_s25  ;;  %2661 = vrot.lane.b32.xlu1 %v2660_v35, %s2801_s25  ;;  %v574_v25 = vld [vmem:[#allocation2 + $0x6a] sm:$0xff]  ;;  %v573_v35 = vld [vmem:[#allocation2 + $0x62] sm:$0xff] }
  0x99   : > { %v2670_v3 = vpack.i.bf16 %v726_v42, %v725_v46  ;;  %v576_v46 = vld [vmem:[#allocation2 + $0x7a] sm:$0xff] }
  0x9a   : > { %v623_v5 = vpop.permute.xlu1 %622  ;;  %v619_v8 = vpop.permute.xlu0 %618 }
  0x9b   : > { %v728_v9 = vmul.f32 %v623_v5, %v568_v50  ;;  %v727_v10 = vmul.f32 %v619_v8, %v567_v51  ;;  %2671 = vrot.lane.b32.xlu1 %v2670_v3, %s2801_s25  ;;  %v575_v50 = vld [vmem:[#allocation2 + $0x72] sm:$0xff]  ;;  %v3864_v8 = vpack.i.bf16 %v3022_v37, %v2993_v32 }
  0x9c   : > { %v2788_v37 = vld [vmem:[%s3844_s2 + $0x10] sm:$0x3f]  }
  0x9d   : > { %v2675_v15 = vpack.i.bf16 %v728_v9, %v727_v10  ;;  %2605 = vmatprep.subr.msk.bf16.mxu0 %vm1184_vm3, %v2788_v37 }
  0x9e   : > { %v631_v16 = vpop.permute.xlu1 %630  ;;  %v627_v17 = vpop.permute.xlu0 %626 }
  0x9f   : > { %v730_v18 = vmul.f32 %v631_v16, %v570_v11  ;;  %v729_v19 = vmul.f32 %v627_v17, %v569_v12  ;;  %2676 = vrot.lane.b32.xlu0 %v2675_v15, %s2801_s25  ;;  %v578_v12 = vld [vmem:[#allocation2 + $0x8a] sm:$0xff]  ;;  %v577_v15 = vld [vmem:[#allocation2 + $0x82] sm:$0xff] }
  0xa1   : > { %v2680_v23 = vpack.i.bf16 %v730_v18, %v729_v19  ;;  %v580_v19 = vld [vmem:[#allocation2 + $0x9a] sm:$0xff] }
  0xa2   : > { %v639_v26 = vpop.permute.xlu1 %638  ;;  %v635_v27 = vpop.permute.xlu0 %634 }
  0xa3   : > { %v732_v33 = vmul.f32 %v639_v26, %v572_v21  ;;  %v731_v34 = vmul.f32 %v635_v27, %v571_v22  ;;  %2681 = vrot.lane.b32.xlu1 %v2680_v23, %s2801_s25  ;;  %v579_v21 = vld [vmem:[#allocation2 + $0x92] sm:$0xff] }
  0xa5   : > { %v2685_v28 = vpack.i.bf16 %v732_v33, %v731_v34 }
  0xa6   : > { %v647_v30 = vpop.permute.xlu1 %646  ;;  %v643_v36 = vpop.permute.xlu0 %642 }
  0xa7   : > { %v734_v41 = vmul.f32 %v647_v30, %v574_v25  ;;  %v733_v42 = vmul.f32 %v643_v36, %v573_v35  ;;  %2686 = vrot.lane.b32.xlu0 %v2685_v28, %s2801_s25  ;;  %v3866_v25 = vpack.i.bf16 %v3056_v44, %v3037_v40  ;;  %v582_v35 = vld [vmem:[#allocation2 + $0xaa] sm:$0xff]  ;;  %v581_v28 = vld [vmem:[#allocation2 + $0xa2] sm:$0xff]  ;;  %v584_v44 = vld [vmem:[#allocation2 + $0xba] sm:$0xff] }
  0xa9   : > { %v2695_v51 = vpack.i.bf16 %v734_v41, %v733_v42  ;;  %v3867_v41 = vld [vmem:[#allocation5_spill] sm:$0xff] }
  0xaa   : > { %v655_v1 = vpop.permute.xlu1 %654  ;;  %v651_v3 = vpop.permute.xlu0 %650 }
  0xab   : > { %v736_v7 = vmul.f32 %v655_v1, %v576_v46  ;;  %v735_v5 = vmul.f32 %v651_v3, %v575_v50  ;;  %2691 = vrot.lane.b32.xlu0 %v3864_v8, %s2800_s20  ;;  %2696 = vrot.lane.b32.xlu1 %v2695_v51, %s2801_s25  ;;  %v583_v46 = vld [vmem:[#allocation2 + $0xb2] sm:$0xff] }
  0xac   : > { %v3868_v1 = vld [vmem:[#allocation4_spill] sm:$0xff] }
  0xad   : > { %v2700_v9 = vpack.i.bf16 %v736_v7, %v735_v5 }
  0xae   : > { %v663_v10 = vpop.permute.xlu1 %662  ;;  %v659_v11 = vpop.permute.xlu0 %658 }
  0xaf   : > { %2701 = vrot.lane.b32.xlu0 %v2700_v9, %s2801_s25  ;;  %471 = vperm.xlu1 %2624, %v3117_v55   ;;  %v738_v18 = vmul.f32 %v663_v10, %v578_v12  ;;  %v737_v32 = vmul.f32 %v659_v11, %v577_v15  ;;  %v3865_v55 = vpack.i.bf16 %v3032_v39, %v3025_v38  ;;  %v585_v12 = vld [vmem:[#allocation2 + $0xc2] sm:$0xff] }
  0xb2   : > { %v671_v16 = vpop.permute.xlu1 %670  ;;  %v667_v17 = vpop.permute.xlu0 %666 }
  0xb3   : > { %476 = vperm.xlu0 %2623, %v3112_v54   ;;  %481 = vperm.xlu1 %2624, %v3141_v60   ;;  %v3324_v54 = vsel %vm1184_vm3, %v2788_v37, 0  ;;  %v2715_v60 = vpack.i.bf16 %v738_v18, %v737_v32  ;;  %v740_v26 = vmul.f32 %v671_v16, %v580_v19  ;;  %v739_v27 = vmul.f32 %v667_v17, %v579_v21  ;;  %v3871_v16 = vld [vmem:[#allocation6_spill] sm:$0xff]  ;;  %v588_v18 = vld [vmem:[#allocation2 + $0xda] sm:$0xff]  ;;  %v587_v32 = vld [vmem:[#allocation2 + $0xd2] sm:$0xff] }
  0xb6   : > { %v679_v22 = vpop.permute.xlu1 %678  ;;  %v675_v23 = vpop.permute.xlu0 %674 }
  0xb7   : > { %486 = vperm.xlu0 %2623, %v3136_v59   ;;  %2706 = vrot.lane.b32.xlu1 %v3865_v55, %s2800_s20  ;;  %v2720_v59 = vpack.i.bf16 %v740_v26, %v739_v27  ;;  %v742_v42 = vmul.f32 %v679_v22, %v582_v35  ;;  %v741_v40 = vmul.f32 %v675_v23, %v581_v28  ;;  %v590_v23 = vld [vmem:[#allocation2 + $0xea] sm:$0xff] }
  0xb9   : > { %v2735_v3 = vpack.i.bf16 %v742_v42, %v741_v40 }
  0xba   : > { %v687_v33 = vpop.permute.xlu1 %686  ;;  %v683_v34 = vpop.permute.xlu0 %682 }
  0xbb   : > { %2711 = vrot.lane.b32.xlu0 %v3866_v25, %s2800_s20  ;;  %2716 = vrot.lane.b32.xlu1 %v2715_v60, %s2801_s25  ;;  %v744_v7 = vmul.f32 %v687_v33, %v584_v44  ;;  %v743_v5 = vmul.f32 %v683_v34, %v583_v46  ;;  %v337_v44 = vld [vmem:[#allocation2] sm:$0xff] }
  0xbd   : > { %v2740_v10 = vpack.i.bf16 %v744_v7, %v743_v5 }
  0xbe   : > { %v695_v38 = vpop.permute.xlu1 %694  ;;  %v691_v39 = vpop.permute.xlu0 %690 }
  0xbf   : > { %2721 = vrot.lane.b32.xlu0 %v2720_v59, %s2801_s25  ;;  %491 = vperm.xlu1 %2624, %v3167_v61   ;;  %v3869_v61 = vpack.i.bf16 %v3078_v48, %v3059_v45  ;;  %v586_v48 = vld [vmem:[#allocation2 + $0xca] sm:$0xff] }
  0xc2   : > { %v703_v30 = vpop.permute.xlu1 %702  ;;  %v699_v36 = vpop.permute.xlu0 %698 }
  0xc3   : > { %496 = vperm.xlu0 %2623, %v3162_v56   ;;  %501 = vperm.xlu1 %2624, %v3867_v41   ;;  %v3870_v56 = vpack.i.bf16 %v3100_v52, %v3081_v49  ;;  %v746_v49 = vmul.f32 %v695_v38, %v586_v48  ;;  %v745_v52 = vmul.f32 %v691_v39, %v585_v12  ;;  %v340_v41 = vld [vmem:[#allocation2 + $0x18] sm:$0xff] }
  0xc4   : > { %v748_v19 = vmul.f32 %v703_v30, %v588_v18  ;;  %v747_v21 = vmul.f32 %v699_v36, %v587_v32  ;;  %v339_v36 = vld [vmem:[#allocation2 + $0x10] sm:$0xff] }
  0xc6   : > { %v707_v50 = vpop.permute.xlu0 %706  ;;  %v711_v51 = vpop.permute.xlu1 %710 }
  0xc7   : > { %506 = vperm.xlu0 %2623, %v3868_v1   ;;  %2726 = vrot.lane.b32.xlu1 %v3869_v61, %s2800_s20  ;;  %v750_v60 = vmul.f32 %v711_v51, %v590_v23  ;;  %v338_v61 = vld [vmem:[#allocation2 + $0x8] sm:$0xff] }
  0xca   : > { %v719_v8 = vpop.permute.xlu0 %718 }
  0xcb   : > { %2731 = vrot.lane.b32.xlu0 %v3870_v56, %s2800_s20  ;;  %2736 = vrot.lane.b32.xlu1 %v2735_v3, %s2801_s25  ;;  %v3346_v9 = vpop.permute.xlu1 %376  ;;  %v344_v3 = vld [vmem:[#allocation2 + $0x38] sm:$0xff]  ;;  %v343_v56 = vld [vmem:[#allocation2 + $0x30] sm:$0xff] }
  0xcf   : > { %v3348_v11 = vpop.permute.xlu0 %371  ;;  %2741 = vrot.lane.b32.xlu0 %v2740_v10, %s2801_s25  ;;  %511 = vperm.xlu1 %2624, %v3206_v13   ;;  %v2755_v13 = vpack.i.bf16 %v746_v49, %v745_v52  ;;  %v530_v52 = vmul.f32 %v3346_v9, %v338_v61 }
  0xd0   : > { %v715_v45 = vpop.permute.xlu1 %714 }
  0xd3   : > { %v3352_v15 = vpop.permute.xlu0 %391  ;;  %516 = vperm.xlu0 %2623, %v3871_v16   ;;  %521 = vperm.xlu1 %2624, %v3224_v2   ;;  %v589_v2 = vld [vmem:[#allocation2 + $0xe2] sm:$0xff] }
  0xd4   : > { %v749_v53 = vmul.f32 %v707_v50, %v589_v2  ;;  %v342_v2 = vld [vmem:[#allocation2 + $0x28] sm:$0xff] }
  0xd5   : > { %v382_v17 = vpop.permute.xlu1 %381 }
  0xd6   : > { %v2775_v62 = vpack.i.bf16 %v750_v60, %v749_v53  ;;  %v531_v46 = vmul.f32 %v382_v17, %v339_v36  ;;  %v346_v36 = vld [vmem:[#allocation2 + $0x48] sm:$0xff] }
  0xd7   : > { %v3356_v37 = vpop.permute.xlu0 %406  ;;  %526 = vperm.xlu0 %2623, %v3215_v20   ;;  %2746 = vrot.lane.b32.xlu1 %v2745_v29, %s2800_s20  ;;  %v2760_v20 = vpack.i.bf16 %v748_v19, %v747_v21 }
  0xd8   : > { %v536_v17 = vmul.f32 %v3356_v37, %v344_v3 }
  0xd9   : > { %v387_v22 = vpop.permute.xlu1 %386 }
  0xda   : > { %v532_v50 = vmul.f32 %v387_v22, %v340_v41  ;;  %v345_v41 = vld [vmem:[#allocation2 + $0x40] sm:$0xff] }
  0xdb   : > { %v2632_v55 = vpop.permute.xlu0 %2631  ;;  %2751 = vrot.lane.b32.xlu0 %v2750_v4, %s2800_s20  ;;  %2756 = vrot.lane.b32.xlu1 %v2755_v13, %s2801_s25  ;;  %v751_v4 = vmul.f32 %v715_v45, %v591_v57  ;;  %v341_v13 = vld [vmem:[#allocation2 + $0x20] sm:$0xff] }
  0xdc   : > { %2785 = vset.pattern.permute.xlu0 %v3856_v14  ;;  %v752_v14 = vmul.f32 %v719_v8, %v592_v58  ;;  %v2634_v51 = vunpack.i.h.bf16 %v2632_v55  ;;  %v2633_v1 = vunpack.i.l.bf16 %v2632_v55  ;;  %v529_v8 = vmul.f32 %v3348_v11, %v337_v44 }
  0xdd   : > { %v3369_v29 = vpop.permute.xlu1 %396  ;;  %v533_v57 = vmul.f32 %v3352_v15, %v341_v13 }
  0xde   : > { %v2780_v34 = vpack.i.bf16 %v752_v14, %v751_v4  ;;  %v1011_v48 = vsel %vm272_vm0, %v531_v46, %v2633_v1  ;;  %v1012_v12 = vsel %vm272_vm0, %v532_v50, %v2634_v51  ;;  %v534_v4 = vmul.f32 %v3369_v29, %v342_v2 }
  0xdf   : > { %v3371_v26 = vpop.permute.xlu0 %416  ;;  %2761 = vrot.lane.b32.xlu0 %v2760_v20, %s2801_s25  ;;  %2766 = vrot.lane.b32.xlu1 %v2765_v6, %s2800_s20 }
  0xe1   : > { %v402_v27 = vpop.permute.xlu1 %401 }
  0xe2   : > { %v535_v19 = vmul.f32 %v402_v27, %v343_v56  ;;  %v538_v56 = vmul.f32 %v3371_v26, %v346_v36 }
  0xe3   : > { %v3378_v33 = vpop.permute.xlu0 %426  ;;  %2771 = vrot.lane.b32.xlu0 %v2770_v0, %s2800_s20  ;;  %2776 = vrot.lane.b32.xlu1 %v2775_v62, %s2801_s25 }
  0xe5   : > { %v2627_v25 = vpop.permute.xlu1 %2626 }
  0xe6   : > { %v2629_v16 = vunpack.i.h.bf16 %v2627_v25  ;;  %v2628_v49 = vunpack.i.l.bf16 %v2627_v25 }
  0xe7   : > { %v2642_v59 = vpop.permute.xlu0 %2641  ;;  %2781 = vrot.lane.b32.xlu0 %v2780_v34, %s2801_s25 }
  0xe8   : > { %v2644_v11 = vunpack.i.h.bf16 %v2642_v59  ;;  %v2643_v21 = vunpack.i.l.bf16 %v2642_v59  ;;  %v1009_v60 = vsel %vm272_vm0, %v529_v8, %v2628_v49  ;;  %v1010_v53 = vsel %vm272_vm0, %v530_v52, %v2629_v16  ;;  %v348_v16 = vld [vmem:[#allocation2 + $0x58] sm:$0xff]  ;;  %v347_v49 = vld [vmem:[#allocation2 + $0x50] sm:$0xff] }
  0xe9   : > { %v3386_v43 = vpop.permute.xlu1 %411 }
  0xea   : > { %v1016_v27 = vsel %vm272_vm0, %v536_v17, %v2644_v11  ;;  %v1015_v14 = vsel %vm272_vm0, %v535_v19, %v2643_v21  ;;  %v540_v19 = vmul.f32 %v3378_v33, %v348_v16 }
  0xeb   : > { %v3388_v63 = vpop.permute.xlu0 %436 }
  0xed   : > { %v3390_v6 = vpop.permute.xlu1 %421 }
  0xee   : > { %v539_v11 = vmul.f32 %v3390_v6, %v347_v49 }
  0xef   : > { %v3394_v39 = vpop.permute.xlu0 %446 }
  0xf1   : > { %v3392_v38 = vpop.permute.xlu1 %2636 }
  0xf2   : > { %v2639_v9 = vunpack.i.h.bf16 %v3392_v38  ;;  %v2638_v37 = vunpack.i.l.bf16 %v3392_v38 }
  0xf3   : > { %v3398_v24 = vpop.permute.xlu0 %2651 }
  0xf4   : > { %v1014_v15 = vsel %vm272_vm0, %v534_v4, %v2639_v9  ;;  %v1013_v51 = vsel %vm272_vm0, %v533_v57, %v2638_v37  ;;  %v2654_v17 = vunpack.i.h.bf16 %v3398_v24 }
  0xf5   : > { %v3396_v35 = vpop.permute.xlu1 %431 }
  0xf7   : > { %v3404_v28 = vpop.permute.xlu0 %456 }
  0xf9   : > { %v3400_v31 = vpop.permute.xlu1 %441 }
  0xfb   : > { %v3408_v42 = vpop.permute.xlu0 %466 }
  0xfd   : > { %v3402_v0 = vpop.permute.xlu1 %2646 }
  0xfe   : > { %v2649_v1 = vunpack.i.h.bf16 %v3402_v0  ;;  %v2648_v29 = vunpack.i.l.bf16 %v3402_v0 }
 0x101   : > { %v3406_v30 = vpop.permute.xlu1 %451 }
 0x105   : > { %v3410_v40 = vpop.permute.xlu1 %461 }
 0x109   : > { %v2667_v7 = vpop.permute.xlu0 %2666  ;;  %v3412_v5 = vpop.permute.xlu1 %2656 }
 0x10a   : > { %v2669_v10 = vunpack.i.h.bf16 %v2667_v7  ;;  %v2668_v45 = vunpack.i.l.bf16 %v2667_v7  ;;  %v2659_v9 = vunpack.i.h.bf16 %v3412_v5  ;;  %v2658_v37 = vunpack.i.l.bf16 %v3412_v5 }
 0x10c   : > { %v1044_v18 = vsel %vm1041_vm4, %v1011_v48, %v2668_v45  ;;  %v1045_v32 = vsel %vm1041_vm4, %v1012_v12, %v2669_v10  ;;  %v537_v10 = vmul.f32 %v3386_v43, %v345_v41 }
 0x10d   : > { %v1075_v22 = vpack.c.bf16 %v1045_v32, %v1044_v18  ;;  %v2662_v23 = vpop.permute.xlu1 %2661  ;;  %v2653_v18 = vunpack.i.l.bf16 %v3398_v24  ;;  %v1018_v32 = vsel %vm272_vm0, %v538_v56, %v2649_v1  ;;  %v349_v24 = vld [vmem:[#allocation2 + $0x60] sm:$0xff] }
 0x10e   : > { %v2664_v55 = vunpack.i.h.bf16 %v2662_v23  ;;  %v2663_v20 = vunpack.i.l.bf16 %v2662_v23  ;;  %v1017_v13 = vsel %vm272_vm0, %v537_v10, %v2648_v29  ;;  %v350_v23 = vld [vmem:[#allocation2 + $0x68] sm:$0xff] }
 0x10f   : > { %1094 = vst.msk [vmem:[#allocation3 + $0x10] sm:$0xff] %vm1090_vm2, %v1075_v22 }
 0x110   : > { %v1042_v58 = vsel %vm1041_vm4, %v1009_v60, %v2663_v20  ;;  %v1043_v62 = vsel %vm1041_vm4, %v1010_v53, %v2664_v55  ;;  %v1020_v60 = vsel %vm272_vm0, %v540_v19, %v2654_v17  ;;  %v1019_v53 = vsel %vm272_vm0, %v539_v11, %v2653_v18  ;;  %v353_v17 = vld [vmem:[#allocation2 + $0x80] sm:$0xff]  ;;  %v356_v11 = vld [vmem:[#allocation2 + $0x98] sm:$0xff] }
 0x111   : > { %v1074_v34 = vpack.c.bf16 %v1043_v62, %v1042_v58  ;;  %v2677_v25 = vpop.permute.xlu0 %2676  ;;  %v2672_v59 = vpop.permute.xlu1 %2671  ;;  %v542_v58 = vmul.f32 %v3388_v63, %v350_v23  ;;  %v541_v62 = vmul.f32 %v3396_v35, %v349_v24 }
 0x112   : > { %v2679_v38 = vunpack.i.h.bf16 %v2677_v25  ;;  %v2678_v44 = vunpack.i.l.bf16 %v2677_v25  ;;  %v2674_v46 = vunpack.i.h.bf16 %v2672_v59  ;;  %v2673_v50 = vunpack.i.l.bf16 %v2672_v59 }
 0x113   : > { %1093 = vst.msk [vmem:[#allocation3 + $0x8] sm:$0xff] %vm1090_vm2, %v1074_v34  ;;  %v351_v34 = vld [vmem:[#allocation2 + $0x70] sm:$0xff]  ;;  %v1022_v41 = vsel %vm272_vm0, %v542_v58, %v2659_v9 }
 0x114   : > { %v1049_v61 = vsel %vm1041_vm4, %v1016_v27, %v2679_v38  ;;  %v1048_v3 = vsel %vm1041_vm4, %v1015_v14, %v2678_v44  ;;  %v1047_v7 = vsel %vm1041_vm4, %v1014_v15, %v2674_v46  ;;  %v1046_v8 = vsel %vm1041_vm4, %v1013_v51, %v2673_v50  ;;  %v352_v14 = vld [vmem:[#allocation2 + $0x78] sm:$0xff] }
 0x115   : > { %v1077_v45 = vpack.c.bf16 %v1049_v61, %v1048_v3  ;;  %v1076_v48 = vpack.c.bf16 %v1047_v7, %v1046_v8  ;;  %v2682_v12 = vpop.permute.xlu1 %2681  ;;  %v1021_v38 = vsel %vm272_vm0, %v541_v62, %v2658_v37  ;;  %v543_v46 = vmul.f32 %v3400_v31, %v351_v34 }
 0x116   : > { %v2684_v0 = vunpack.i.h.bf16 %v2682_v12  ;;  %v2683_v52 = vunpack.i.l.bf16 %v2682_v12  ;;  %v1111_v33 = vld [vmem:[#allocation3 + $0x10] sm:$0xff] }
 0x117   : > { %1096 = vst.msk [vmem:[#allocation3 + $0x20] sm:$0xff] %vm1090_vm2, %v1077_v45  ;;  %1095 = vst.msk [vmem:[#allocation3 + $0x18] sm:$0xff] %vm1090_vm2, %v1076_v48 }
 0x118   : > { %v1051_v26 = vsel %vm1041_vm4, %v1018_v32, %v2684_v0  ;;  %v1050_v43 = vsel %vm1041_vm4, %v1017_v13, %v2683_v52  ;;  %v354_v52 = vld [vmem:[#allocation2 + $0x88] sm:$0xff] }
 0x119   : > { %v1078_v21 = vpack.c.bf16 %v1051_v26, %v1050_v43  ;;  %v2687_v22 = vpop.permute.xlu0 %2686  ;;  %v546_v13 = vmul.f32 %v3404_v28, %v354_v52  ;;  %v545_v26 = vmul.f32 %v3406_v30, %v353_v17 }
 0x11a   : > { %v2689_v2 = vunpack.i.h.bf16 %v2687_v22  ;;  %v2688_v55 = vunpack.i.l.bf16 %v2687_v22  ;;  %v1110_v20 = vld [vmem:[#allocation3 + $0x8] sm:$0xff] }
 0x11b   : > { %1097 = vst.msk [vmem:[#allocation3 + $0x28] sm:$0xff] %vm1090_vm2, %v1078_v21  ;;  %2436 = vmatprep.mubr.msk.bf16.mxu1 %vm1090_vm2, %v1110_v20  ;;  %2471 = vmatmul.mubr.msk.bf16.vlgmr.msra.gmra.mrb[0].mxu0 %vm1090_vm2, %v1110_v20  ;;  %v355_v21 = vld [vmem:[#allocation2 + $0x90] sm:$0xff] }
 0x11c   : > { %v1053_v6 = vsel %vm1041_vm4, %v1020_v60, %v2689_v2  ;;  %v1052_v57 = vsel %vm1041_vm4, %v1019_v53, %v2688_v55  ;;  %2437 = vmatmul.mubr.msk.bf16.vlgmr.msra.gmra.mrb[0].mxu1 %vm1090_vm2, %v1111_v33  ;;  %2474 = vmatprep.mubr.msk.bf16.mxu0 %vm1090_vm2, %v1111_v33  ;;  %v548_v60 = vmul.f32 %v3408_v42, %v356_v11  ;;  %v362_v11 = vld [vmem:[#allocation2 + $0xc8] sm:$0xff] }
 0x11d   : > { %v1079_v5 = vpack.c.bf16 %v1053_v6, %v1052_v57  ;;  %v2692_v4 = vpop.permute.xlu0 %2691  ;;  %v2697_v27 = vpop.permute.xlu1 %2696  ;;  %2503 = vmatpush3.bf16.msra.mxu0 %v3324_v54  ;;  %2537 = vmatpush3.bf16.msra.mxu1 %v3294_v47  ;;  %v544_v47 = vmul.f32 %v3394_v39, %v352_v14  ;;  %v547_v53 = vmul.f32 %v3410_v40, %v355_v21 }
 0x11e   : > { %v2699_v25 = vunpack.i.h.bf16 %v2697_v27  ;;  %v2698_v59 = vunpack.i.l.bf16 %v2697_v27  ;;  %v1112_v36 = vld [vmem:[#allocation3 + $0x18] sm:$0xff]  ;;  %v2694_v63 = vunpack.i.h.bf16 %v2692_v4  ;;  %v2693_v35 = vunpack.i.l.bf16 %v2692_v4  ;;  %v1113_v3 = vld [vmem:[#allocation3 + $0x20] sm:$0xff] }
 0x11f   : > { %1098 = vst.msk [vmem:[#allocation3 + $0x30] sm:$0xff] %vm1090_vm2, %v1079_v5  ;;  %2440 = vmatprep.mubr.msk.bf16.mxu1 %vm1090_vm2, %v1112_v36 }
 0x120   : > { %v1055_v44 = vsel %vm1041_vm4, %v1022_v41, %v2699_v25  ;;  %v1054_v54 = vsel %vm1041_vm4, %v1021_v38, %v2698_v59  ;;  %v1024_v29 = vsel %vm272_vm0, %v544_v47, %v2694_v63  ;;  %v1023_v61 = vsel %vm272_vm0, %v543_v46, %v2693_v35  ;;  %v357_v25 = vld [vmem:[#allocation2 + $0xa0] sm:$0xff]  ;;  %v358_v59 = vld [vmem:[#allocation2 + $0xa8] sm:$0xff]  ;;  %v359_v47 = vld [vmem:[#allocation2 + $0xb0] sm:$0xff] }
 0x121   : > { %v1080_v50 = vpack.c.bf16 %v1055_v44, %v1054_v54  ;;  %v2702_v15 = vpop.permute.xlu0 %2701  ;;  %v360_v46 = vld [vmem:[#allocation2 + $0xb8] sm:$0xff] }
 0x122   : > { %v2704_v51 = vunpack.i.h.bf16 %v2702_v15  ;;  %v2703_v1 = vunpack.i.l.bf16 %v2702_v15  ;;  %v1114_v39 = vld [vmem:[#allocation3 + $0x28] sm:$0xff] }
 0x123   : > { %1099 = vst.msk [vmem:[#allocation3 + $0x38] sm:$0xff] %vm1090_vm2, %v1080_v50  ;;  %2475 = vmatmul.mubr.msk.bf16.gmra.mrb[4].mxu0 %vm1090_vm2, %v1112_v36 }
 0x124   : > { %v1056_v7 = vsel %vm1041_vm4, %v1023_v61, %v2703_v1  ;;  %v1057_v8 = vsel %vm1041_vm4, %v1024_v29, %v2704_v51  ;;  %2441 = vmatmul.mubr.msk.bf16.gmra.mrb[4].mxu1 %vm1090_vm2, %v1113_v3  ;;  %2478 = vmatprep.mubr.msk.bf16.mxu0 %vm1090_vm2, %v1113_v3 }
 0x125   : > { %v1081_v31 = vpack.c.bf16 %v1057_v8, %v1056_v7  ;;  %2444 = vmatprep.mubr.msk.bf16.mxu1 %vm1090_vm2, %v1114_v39 }
 0x126   : > { %v1115_v56 = vld [vmem:[#allocation3 + $0x30] sm:$0xff] }
 0x127   : > { %1100 = vst.msk [vmem:[#allocation3 + $0x40] sm:$0xff] %vm1090_vm2, %v1081_v31 }
 0x12a   : > { %v3489_v10 = vld [vmem:[#allocation3 + $0x38] sm:$0xff] }
 0x12b   : > { %2479 = vmatmul.mubr.msk.bf16.gmra.mrb[8].mxu0 %vm1090_vm2, %v1114_v39 }
 0x12c   : > { %2445 = vmatmul.mubr.msk.bf16.gmra.mrb[8].mxu1 %vm1090_vm2, %v1115_v56  ;;  %2482 = vmatprep.mubr.msk.bf16.mxu0 %vm1090_vm2, %v1115_v56 }
 0x12d   : > { %2448 = vmatprep.mubr.msk.bf16.mxu1 %vm1090_vm2, %v3489_v10 }
 0x12e   : > { %v472_v45 = vpop.permute.xlu1 %471  ;;  %v3497_v16 = vld [vmem:[#allocation3 + $0x40] sm:$0xff] }
 0x12f   : > { %v549_v63 = vmul.f32 %v472_v45, %v357_v25  ;;  %v365_v25 = vld [vmem:[#allocation2 + $0xe0] sm:$0xff] }
 0x132   : > { %v477_v48 = vpop.permute.xlu0 %476  ;;  %v3493_v12 = vpop.permute.xlu1 %481 }
 0x133   : > { %2483 = vmatmul.mubr.msk.bf16.gmra.mrb[12].mxu0 %vm1090_vm2, %v3489_v10  ;;  %v550_v35 = vmul.f32 %v477_v48, %v358_v59  ;;  %v366_v59 = vld [vmem:[#allocation2 + $0xe8] sm:$0xff] }
 0x134   : > { %2449 = vmatmul.mubr.msk.bf16.gmra.mrb[12].mxu1 %vm1090_vm2, %v3497_v16  ;;  %2504 = vmatprep.mubr.msk.bf16.mxu0 %vm1090_vm2, %v1111_v33 }
 0x136   : > { %v3502_v49 = vpop.permute.xlu0 %486  ;;  %v2707_v0 = vpop.permute.xlu1 %2706 }
 0x137   : > { %v2709_v18 = vunpack.i.h.bf16 %v2707_v0  ;;  %v2708_v32 = vunpack.i.l.bf16 %v2707_v0  ;;  %v552_v31 = vmul.f32 %v3502_v49, %v360_v46 }
 0x139   : > { %v1026_v24 = vsel %vm272_vm0, %v546_v13, %v2709_v18  ;;  %v1025_v2 = vsel %vm272_vm0, %v545_v26, %v2708_v32 }
 0x13a   : > { %v2712_v43 = vpop.permute.xlu0 %2711  ;;  %v2717_v19 = vpop.permute.xlu1 %2716 }
 0x13b   : > { %v2719_v22 = vunpack.i.h.bf16 %v2717_v19  ;;  %v2718_v23 = vunpack.i.l.bf16 %v2717_v19  ;;  %2505 = vmatmul.mubr.msk.bf16.vlgmr.msra.gmra.mrb[0].mxu0 %vm1090_vm2, %v1112_v36  ;;  %v2714_v55 = vunpack.i.h.bf16 %v2712_v43  ;;  %v2713_v20 = vunpack.i.l.bf16 %v2712_v43  ;;  %v361_v19 = vld [vmem:[#allocation2 + $0xc0] sm:$0xff] }
 0x13c   : > { %2508 = vmatprep.mubr.msk.bf16.mxu0 %vm1090_vm2, %v1113_v3 }
 0x13d   : > { %v1058_v28 = vsel %vm1041_vm4, %v1025_v2, %v2718_v23  ;;  %v1059_v30 = vsel %vm1041_vm4, %v1026_v24, %v2719_v22  ;;  %v1028_v58 = vsel %vm272_vm0, %v548_v60, %v2714_v55  ;;  %v1027_v62 = vsel %vm272_vm0, %v547_v53, %v2713_v20 }
 0x13e   : > { %v1082_v9 = vpack.c.bf16 %v1059_v30, %v1058_v28  ;;  %v2722_v37 = vpop.permute.xlu0 %2721  ;;  %v3514_v33 = vpop.permute.xlu1 %491  ;;  %v363_v28 = vld [vmem:[#allocation2 + $0xd0] sm:$0xff]  ;;  %v364_v30 = vld [vmem:[#allocation2 + $0xd8] sm:$0xff] }
 0x13f   : > { %v2724_v6 = vunpack.i.h.bf16 %v2722_v37  ;;  %v2723_v57 = vunpack.i.l.bf16 %v2722_v37  ;;  %v553_v24 = vmul.f32 %v3514_v33, %v361_v19 }
 0x140   : > { %1101 = vst.msk [vmem:[#allocation3 + $0x48] sm:$0xff] %vm1090_vm2, %v1082_v9 }
 0x141   : > { %v1060_v5 = vsel %vm1041_vm4, %v1027_v62, %v2723_v57  ;;  %v1061_v4 = vsel %vm1041_vm4, %v1028_v58, %v2724_v6 }
 0x142   : > { %v1083_v27 = vpack.c.bf16 %v1061_v4, %v1060_v5  ;;  %v497_v42 = vpop.permute.xlu0 %496  ;;  %v3521_v14 = vpop.permute.xlu1 %501 }
 0x143   : > { %2509 = vmatmul.mubr.msk.bf16.gmra.mrb[4].mxu0 %vm1090_vm2, %v1114_v39  ;;  %v551_v39 = vmul.f32 %v3493_v12, %v359_v47  ;;  %v554_v2 = vmul.f32 %v497_v42, %v362_v11  ;;  %v555_v5 = vmul.f32 %v3521_v14, %v363_v28 }
 0x144   : > { %1102 = vst.msk [vmem:[#allocation3 + $0x50] sm:$0xff] %vm1090_vm2, %v1083_v27  ;;  %2512 = vmatprep.mubr.msk.bf16.mxu0 %vm1090_vm2, %v1115_v56 }
 0x146   : > { %v3526_v40 = vpop.permute.xlu0 %506  ;;  %v2727_v34 = vpop.permute.xlu1 %2726 }
 0x147   : > { %v3528_v36 = vld [vmem:[#allocation3 + $0x48] sm:$0xff]  ;;  %v2729_v41 = vunpack.i.h.bf16 %v2727_v34  ;;  %v2728_v38 = vunpack.i.l.bf16 %v2727_v34  ;;  %v556_v4 = vmul.f32 %v3526_v40, %v364_v30 }
 0x148   : > { %2452 = vmatprep.mubr.msk.bf16.mxu1 %vm1090_vm2, %v3528_v36 }
 0x149   : > { %v1030_v1 = vsel %vm272_vm0, %v550_v35, %v2729_v41  ;;  %v1029_v29 = vsel %vm272_vm0, %v549_v63, %v2728_v38 }
 0x14a   : > { %v2732_v44 = vpop.permute.xlu0 %2731  ;;  %v2737_v54 = vpop.permute.xlu1 %2736 }
 0x14b   : > { %v2739_v50 = vunpack.i.h.bf16 %v2737_v54  ;;  %v2738_v15 = vunpack.i.l.bf16 %v2737_v54  ;;  %2513 = vmatmul.mubr.msk.bf16.gmra.mrb[8].mxu0 %vm1090_vm2, %v3489_v10  ;;  %v3534_v51 = vld [vmem:[#allocation3 + $0x50] sm:$0xff]  ;;  %v2734_v61 = vunpack.i.h.bf16 %v2732_v44  ;;  %v2733_v3 = vunpack.i.l.bf16 %v2732_v44 }
 0x14c   : > { %2453 = vmatmul.mubr.msk.bf16.gmra.mrb[16].mxu1 %vm1090_vm2, %v3534_v51  ;;  %2516 = vmatprep.mubr.msk.bf16.mxu0 %vm1090_vm2, %v3497_v16 }
 0x14d   : > { %v1062_v7 = vsel %vm1041_vm4, %v1029_v29, %v2738_v15  ;;  %v1063_v8 = vsel %vm1041_vm4, %v1030_v1, %v2739_v50  ;;  %v1032_v52 = vsel %vm272_vm0, %v552_v31, %v2734_v61  ;;  %v1031_v17 = vsel %vm272_vm0, %v551_v39, %v2733_v3  ;;  %v367_v29 = vld [vmem:[#allocation2 + $0xf0] sm:$0xff]  ;;  %v368_v61 = vld [vmem:[#allocation2 + $0xf8] sm:$0xff] }
 0x14e   : > { %v1084_v56 = vpack.c.bf16 %v1063_v8, %v1062_v7  ;;  %v2742_v10 = vpop.permute.xlu0 %2741  ;;  %v512_v45 = vpop.permute.xlu1 %511 }
 0x14f   : > { %v2744_v48 = vunpack.i.h.bf16 %v2742_v10  ;;  %v2743_v0 = vunpack.i.l.bf16 %v2742_v10  ;;  %v557_v40 = vmul.f32 %v512_v45, %v365_v25 }
 0x150   : > { %1103 = vst.msk [vmem:[#allocation3 + $0x58] sm:$0xff] %vm1090_vm2, %v1084_v56 }
 0x151   : > { %v1064_v18 = vsel %vm1041_vm4, %v1031_v17, %v2743_v0  ;;  %v1065_v32 = vsel %vm1041_vm4, %v1032_v52, %v2744_v48 }
 0x152   : > { %v1085_v13 = vpack.c.bf16 %v1065_v32, %v1064_v18  ;;  %v517_v26 = vpop.permute.xlu0 %516  ;;  %v3551_v12 = vpop.permute.xlu1 %521 }
 0x153   : > { %2517 = vmatmul.mubr.msk.bf16.gmra.mrb[12].mxu0 %vm1090_vm2, %v3528_v36  ;;  %v558_v46 = vmul.f32 %v517_v26, %v366_v59  ;;  %v559_v48 = vmul.f32 %v3551_v12, %v367_v29 }
 0x154   : > { %1104 = vst.msk [vmem:[#allocation3 + $0x60] sm:$0xff] %vm1090_vm2, %v1085_v13  ;;  %2520 = vmatprep.mubr.msk.bf16.mxu0 %vm1090_vm2, %v3534_v51 }
 0x156   : > { %v527_v49 = vpop.permute.xlu0 %526  ;;  %v2747_v43 = vpop.permute.xlu1 %2746 }
 0x157   : > { %v3558_v21 = vld [vmem:[#allocation3 + $0x58] sm:$0xff]  ;;  %v2749_v22 = vunpack.i.h.bf16 %v2747_v43  ;;  %v2748_v23 = vunpack.i.l.bf16 %v2747_v43  ;;  %v560_v0 = vmul.f32 %v527_v49, %v368_v61 }
 0x158   : > { %2456 = vmatprep.mubr.msk.bf16.mxu1 %vm1090_vm2, %v3558_v21 }
 0x159   : > { %v1034_v37 = vsel %vm272_vm0, %v554_v2, %v2749_v22  ;;  %v1033_v6 = vsel %vm272_vm0, %v553_v24, %v2748_v23  ;;  %v1536_v24 = vld [vmem:[#allocation3 + $0x88] sm:$0xff] }
 0x15a   : > { %v2752_v55 = vpop.permute.xlu0 %2751  ;;  %v2757_v20 = vpop.permute.xlu1 %2756 }
 0x15b   : > { %v2759_v60 = vunpack.i.h.bf16 %v2757_v20  ;;  %v2758_v53 = vunpack.i.l.bf16 %v2757_v20  ;;  %2521 = vmatmul.mubr.msk.bf16.gmra.mrb[16].mxu0 %vm1090_vm2, %v3558_v21  ;;  %v3565_v9 = vld [vmem:[#allocation3 + $0x60] sm:$0xff]  ;;  %v2754_v57 = vunpack.i.h.bf16 %v2752_v55  ;;  %v2753_v58 = vunpack.i.l.bf16 %v2752_v55 }
 0x15c   : > { %2457 = vmatmul.mubr.msk.bf16.gmra.mrb[20].mxu1 %vm1090_vm2, %v3565_v9  ;;  %2524 = vmatprep.mubr.msk.bf16.mxu0 %vm1090_vm2, %v3565_v9 }
 0x15d   : > { %v1066_v33 = vsel %vm1041_vm4, %v1033_v6, %v2758_v53  ;;  %v1067_v62 = vsel %vm1041_vm4, %v1034_v37, %v2759_v60  ;;  %v1036_v63 = vsel %vm272_vm0, %v556_v4, %v2754_v57  ;;  %v1035_v35 = vsel %vm272_vm0, %v555_v5, %v2753_v58 }
 0x15e   : > { %v1086_v27 = vpack.c.bf16 %v1067_v62, %v1066_v33  ;;  %v2762_v42 = vpop.permute.xlu0 %2761  ;;  %v2767_v34 = vpop.permute.xlu1 %2766  ;;  %v3635_v62 = vld [vmem:[%s3845_s3] ss:$0 sm:$0xff] }
 0x15f   : > { %v2764_v41 = vunpack.i.h.bf16 %v2762_v42  ;;  %v2763_v38 = vunpack.i.l.bf16 %v2762_v42  ;;  %v2769_v44 = vunpack.i.h.bf16 %v2767_v34  ;;  %v2768_v54 = vunpack.i.l.bf16 %v2767_v34 }
 0x160   : > { %1105 = vst.msk [vmem:[#allocation3 + $0x68] sm:$0xff] %vm1090_vm2, %v1086_v27 }
 0x161   : > { %v1068_v47 = vsel %vm1041_vm4, %v1035_v35, %v2763_v38  ;;  %v1069_v14 = vsel %vm1041_vm4, %v1036_v63, %v2764_v41  ;;  %v1038_v8 = vsel %vm272_vm0, %v558_v46, %v2769_v44  ;;  %v1037_v39 = vsel %vm272_vm0, %v557_v40, %v2768_v54 }
 0x162   : > { %v1087_v50 = vpack.c.bf16 %v1069_v14, %v1068_v47  ;;  %v2772_v15 = vpop.permute.xlu0 %2771  ;;  %v2777_v1 = vpop.permute.xlu1 %2776 }
 0x163   : > { %v2779_v3 = vunpack.i.h.bf16 %v2777_v1  ;;  %v2778_v7 = vunpack.i.l.bf16 %v2777_v1  ;;  %v2774_v31 = vunpack.i.h.bf16 %v2772_v15  ;;  %v2773_v56 = vunpack.i.l.bf16 %v2772_v15 }
 0x164   : > { %1106 = vst.msk [vmem:[#allocation3 + $0x70] sm:$0xff] %vm1090_vm2, %v1087_v50 }
 0x165   : > { %v1070_v10 = vsel %vm1041_vm4, %v1037_v39, %v2778_v7  ;;  %v1071_v45 = vsel %vm1041_vm4, %v1038_v8, %v2779_v3  ;;  %v1040_v26 = vsel %vm272_vm0, %v560_v0, %v2774_v31  ;;  %v1039_v43 = vsel %vm272_vm0, %v559_v48, %v2773_v56 }
 0x166   : > { %v1088_v52 = vpack.c.bf16 %v1071_v45, %v1070_v10  ;;  %v2782_v17 = vpop.permute.xlu0 %2781 }
 0x167   : > { %v2784_v18 = vunpack.i.h.bf16 %v2782_v17  ;;  %v2783_v32 = vunpack.i.l.bf16 %v2782_v17  ;;  %v1122_v13 = vld [vmem:[#allocation3 + $0x68] sm:$0xff] }
 0x168   : > { %1107 = vst.msk [vmem:[#allocation3 + $0x78] sm:$0xff] %vm1090_vm2, %v1088_v52  ;;  %2460 = vmatprep.mubr.msk.bf16.mxu1 %vm1090_vm2, %v1122_v13  ;;  %2525 = vmatmul.mubr.msk.bf16.gmra.mrb[20].mxu0 %vm1090_vm2, %v1122_v13 }
 0x169   : > { %v1072_v19 = vsel %vm1041_vm4, %v1039_v43, %v2783_v32  ;;  %v1073_v12 = vsel %vm1041_vm4, %v1040_v26, %v2784_v18 }
 0x16a   : > { %v1089_v49 = vpack.c.bf16 %v1073_v12, %v1072_v19 }
 0x16b   : > { %v1123_v11 = vld [vmem:[#allocation3 + $0x70] sm:$0xff] }
 0x16c   : > { %1108 = vst.msk [vmem:[#allocation3 + $0x80] sm:$0xff] %vm1090_vm2, %v1089_v49  ;;  %2461 = vmatmul.mubr.msk.bf16.gmra.mrb[24].mxu1 %vm1090_vm2, %v1123_v11  ;;  %2528 = vmatprep.mubr.msk.bf16.mxu0 %vm1090_vm2, %v1123_v11 }
 0x16f   : > { %v1124_v22 = vld [vmem:[#allocation3 + $0x78] sm:$0xff] }
 0x170   : > { %2464 = vmatprep.mubr.msk.bf16.mxu1 %vm1090_vm2, %v1124_v22  ;;  %2529 = vmatmul.mubr.msk.bf16.gmra.mrb[24].mxu0 %vm1090_vm2, %v1124_v22 }
 0x173   : > { %v1127_v23 = vld [vmem:[#allocation3 + $0x80] sm:$0xff] }
 0x174   : > { %2465 = vmatmul.mubr.msk.bf16.gmra.mrb[28].mxu1 %vm1090_vm2, %v1127_v23  ;;  %2532 = vmatprep.mubr.msk.bf16.mxu0 %vm1090_vm2, %v1127_v23 }
 0x175   : > { %2486 = vmatprep.mubr.msk.bf16.mxu1 %vm1090_vm2, %v3497_v16 }
 0x178   : > { %2533 = vmatmul.mubr.msk.bf16.gmra.mrb[28].mxu0 %vm1090_vm2, %v1536_v24 }
 0x17c   : > { %2487 = vmatmul.mubr.msk.bf16.vlgmr.msra.gmra.mrb[16].mxu1 %vm1090_vm2, %v3528_v36 }
 0x17d   : > { %2490 = vmatprep.mubr.msk.bf16.mxu1 %vm1090_vm2, %v3534_v51 }
 0x184   : > { %2491 = vmatmul.mubr.msk.bf16.gmra.mrb[20].mxu1 %vm1090_vm2, %v3558_v21 }
 0x185   : > { %2494 = vmatprep.mubr.msk.bf16.mxu1 %vm1090_vm2, %v3565_v9 }
 0x18c   : > { %2495 = vmatmul.mubr.msk.bf16.gmra.mrb[24].mxu1 %vm1090_vm2, %v1122_v13 }
 0x18d   : > { %2498 = vmatprep.mubr.msk.bf16.mxu1 %vm1090_vm2, %v1123_v11 }
 0x194   : > { %2499 = vmatmul.mubr.msk.bf16.gmra.mrb[28].mxu1 %vm1090_vm2, %v1124_v22 }
 0x1ef   : > { %v2438_v16 = vpop.f32.mrb[0].mxu1 }
 0x1f0   : > { %v1222_v2 = vpop.f32.mrb[1].mxu1 }
 0x1f1   : > { %v2439_v55 = vpop.f32.mrb[2].mxu1 }
 0x1f2   : > { %v1225_v36 = vpop.f32.mrb[3].mxu1 }
 0x1f7   : > { %v2442_v20 = vpop.f32.mrb[4].mxu1 }
 0x1f8   : > { %v1238_v28 = vpop.f32.mrb[5].mxu1 }
 0x1f9   : > { %v2443_v51 = vpop.f32.mrb[6].mxu1 }
 0x1fa   : > { %v1241_v30 = vpop.f32.mrb[7].mxu1 }
 0x1ff   : > { %v3616_v60 = vpop.f32.mrb[8].mxu1 }
 0x200   : > { %v3618_v21 = vpop.f32.mrb[9].mxu1 }
 0x201   : > { %v3620_v53 = vpop.f32.mrb[10].mxu1 }
 0x202   : > { %v3622_v9 = vpop.f32.mrb[11].mxu1 }
 0x207   : > { %v3624_v37 = vpop.f32.mrb[12].mxu1 }
 0x208   : > { %v3626_v6 = vpop.f32.mrb[13].mxu1 }
 0x209   : > { %v3628_v57 = vpop.f32.mrb[14].mxu1 }
 0x20a   : > { %v3630_v58 = vpop.f32.mrb[15].mxu1 }
 0x20e   : > { %v2506_v33 = vpop.f32.mrb[0].mxu0 }
 0x20f   : > { %v2538_v5 = vadd.f32 %v2506_v33, %v2438_v16  ;;  %v1630_v4 = vpop.f32.mrb[1].mxu0 }
 0x210   : > { %v2539_v27 = vadd.f32 %v1630_v4, %v1222_v2  ;;  %v2507_v42 = vpop.f32.mrb[2].mxu0 }
 0x211   : > { %v1798_v34 = vadd.f32 %v2538_v5, %v3635_v62  ;;  %v2540_v25 = vadd.f32 %v2507_v42, %v2439_v55  ;;  %v1633_v59 = vpop.f32.mrb[3].mxu0 }
 0x212   : > { %v1796_v41 = vadd.f32 %v2539_v27, %v3635_v62  ;;  %v2541_v38 = vadd.f32 %v1633_v59, %v1225_v36 }
 0x213   : > { %v2353_v63 = vpack.c.bf16 %v1798_v34, %v1798_v34  ;;  %v1799_v35 = vadd.f32 %v2540_v25, %v3635_v62  ;;  %v2063_v14 = vmul.f32 %v1798_v34, %v1798_v34  ;;  %v1993_v39 = vsel %vm1989_vm6, %v1798_v34, 0.0 }
 0x214   : > { %v2351_v44 = vpack.c.bf16 %v1796_v41, %v1796_v41  ;;  %v2061_v54 = vmul.f32 %v1796_v41, %v1796_v41  ;;  %v1797_v47 = vadd.f32 %v2541_v38, %v3635_v62  ;;  %v1990_v46 = vsel %vm1989_vm6, %v1796_v41, 0.0 }
 0x215   : > { %1959 = vst.msk [vmem:[%s3642_s8 + $0x8] sm:$0xf] %vm1956_vm5, %v2353_v63  ;;  %v2354_v40 = vpack.c.bf16 %v1799_v35, %v1799_v35  ;;  %v2064_v61 = vmul.f32 %v1799_v35, %v1799_v35  ;;  %v2096_v32 = vsel %vm1989_vm6, %v2063_v14, 0.0  ;;  %v1995_v43 = vsel %vm1989_vm6, %v1799_v35, 0.0 }
 0x216   : > { %1957 = vst.msk [vmem:[%s3642_s8] sm:$0xf] %vm1956_vm5, %v2351_v44  ;;  %v2352_v50 = vpack.c.bf16 %v1797_v47, %v1797_v47  ;;  %v1991_v15 = vsel %vm1989_vm6, %v1797_v47, 0.0  ;;  %v2062_v1 = vmul.f32 %v1797_v47, %v1797_v47  ;;  %v2510_v29 = vpop.f32.mrb[4].mxu0  ;;  %v2093_v31 = vsel %vm1989_vm6, %v2061_v54, 0.0 }
 0x217   : > { %1960 = vst.msk [vmem:[%s3642_s8 + $0xc] sm:$0xf] %vm1956_vm5, %v2354_v40  ;;  %v1992_v3 = vadd.f32 %v1991_v15, %v1990_v46  ;;  %v2542_v7 = vadd.f32 %v2510_v29, %v2442_v20  ;;  %v1646_v8 = vpop.f32.mrb[5].mxu0  ;;  %v2098_v19 = vsel %vm1989_vm6, %v2064_v61, 0.0 }
 0x218   : > { %1958 = vst.msk [vmem:[%s3642_s8 + $0x4] sm:$0xf] %vm1956_vm5, %v2352_v50  ;;  %v2094_v56 = vsel %vm1989_vm6, %v2062_v1, 0.0  ;;  %v2543_v10 = vadd.f32 %v1646_v8, %v1238_v28  ;;  %v2511_v45 = vpop.f32.mrb[6].mxu0 }
 0x219   : > { %v1994_v48 = vadd.f32 %v1993_v39, %v1992_v3  ;;  %v2095_v0 = vadd.f32 %v2094_v56, %v2093_v31  ;;  %v1802_v52 = vadd.f32 %v2542_v7, %v3635_v62  ;;  %v2544_v17 = vadd.f32 %v2511_v45, %v2443_v51  ;;  %v1649_v18 = vpop.f32.mrb[7].mxu0 }
 0x21a   : > { %v1800_v13 = vadd.f32 %v2543_v10, %v3635_v62  ;;  %v2545_v26 = vadd.f32 %v1649_v18, %v1241_v30 }
 0x21b   : > { %v2097_v12 = vadd.f32 %v2096_v32, %v2095_v0  ;;  %v2357_v49 = vpack.c.bf16 %v1802_v52, %v1802_v52  ;;  %v1996_v22 = vadd.f32 %v1995_v43, %v1994_v48  ;;  %v1803_v2 = vadd.f32 %v2544_v17, %v3635_v62 }
 0x21c   : > { %v2355_v11 = vpack.c.bf16 %v1800_v13, %v1800_v13  ;;  %v1997_v23 = vsel %vm1989_vm6, %v1800_v13, 0.0  ;;  %v2065_v24 = vmul.f32 %v1800_v13, %v1800_v13  ;;  %v1801_v55 = vadd.f32 %v2545_v26, %v3635_v62 }
 0x21d   : > { %1963 = vst.msk [vmem:[%s3642_s8 + $0x18] sm:$0xf] %vm1956_vm5, %v2357_v49  ;;  %v2099_v16 = vadd.f32 %v2098_v19, %v2097_v12  ;;  %v1998_v36 = vadd.f32 %v1997_v23, %v1996_v22  ;;  %v2067_v51 = vmul.f32 %v1802_v52, %v1802_v52  ;;  %v2358_v33 = vpack.c.bf16 %v1803_v2, %v1803_v2 }
 0x21e   : > { %1961 = vst.msk [vmem:[%s3642_s8 + $0x10] sm:$0xf] %vm1956_vm5, %v2355_v11  ;;  %v2100_v20 = vsel %vm1989_vm6, %v2065_v24, 0.0  ;;  %v2514_v28 = vpop.f32.mrb[8].mxu0  ;;  %v2356_v4 = vpack.c.bf16 %v1801_v55, %v1801_v55  ;;  %v1999_v27 = vsel %vm1989_vm6, %v1801_v55, 0.0  ;;  %v2066_v42 = vmul.f32 %v1801_v55, %v1801_v55 }
 0x21f   : > { %v2101_v30 = vadd.f32 %v2100_v20, %v2099_v16  ;;  %v1662_v5 = vpop.f32.mrb[9].mxu0  ;;  %v2546_v34 = vadd.f32 %v2514_v28, %v3616_v60  ;;  %v2001_v59 = vsel %vm1989_vm6, %v1802_v52, 0.0  ;;  %1964 = vst.msk [vmem:[%s3642_s8 + $0x1c] sm:$0xf] %vm1956_vm5, %v2358_v33  ;;  %v2000_v41 = vadd.f32 %v1999_v27, %v1998_v36 }
 0x220   : > { %v2515_v25 = vpop.f32.mrb[10].mxu0  ;;  %v2547_v38 = vadd.f32 %v1662_v5, %v3618_v21  ;;  %v2068_v44 = vmul.f32 %v1803_v2, %v1803_v2  ;;  %1962 = vst.msk [vmem:[%s3642_s8 + $0x14] sm:$0xf] %vm1956_vm5, %v2356_v4  ;;  %v2102_v54 = vsel %vm1989_vm6, %v2066_v42, 0.0  ;;  %v2104_v21 = vsel %vm1989_vm6, %v2067_v51, 0.0 }
 0x221   : > { %v2548_v63 = vadd.f32 %v2515_v25, %v3620_v53  ;;  %v1665_v35 = vpop.f32.mrb[11].mxu0  ;;  %v1806_v47 = vadd.f32 %v2546_v34, %v3635_v62  ;;  %v2002_v14 = vadd.f32 %v2001_v59, %v2000_v41  ;;  %v2103_v40 = vadd.f32 %v2102_v54, %v2101_v30 }
 0x222   : > { %v2549_v60 = vadd.f32 %v1665_v35, %v3622_v9  ;;  %v1804_v46 = vadd.f32 %v2547_v38, %v3635_v62  ;;  %v2003_v53 = vsel %vm1989_vm6, %v1803_v2, 0.0  ;;  %v2106_v7 = vsel %vm1989_vm6, %v2068_v44, 0.0 }
 0x223   : > { %v1807_v50 = vadd.f32 %v2548_v63, %v3635_v62  ;;  %v2361_v15 = vpack.c.bf16 %v1806_v47, %v1806_v47  ;;  %v2105_v29 = vadd.f32 %v2104_v21, %v2103_v40  ;;  %v2004_v3 = vadd.f32 %v2003_v53, %v2002_v14 }
 0x224   : > { %v1805_v1 = vadd.f32 %v2549_v60, %v3635_v62  ;;  %v2359_v61 = vpack.c.bf16 %v1804_v46, %v1804_v46  ;;  %v2005_v9 = vsel %vm1989_vm6, %v1804_v46, 0.0  ;;  %v2009_v8 = vsel %vm1989_vm6, %v1806_v47, 0.0 }
 0x225   : > { %1967 = vst.msk [vmem:[%s3642_s8 + $0x28] sm:$0xf] %vm1956_vm5, %v2361_v15  ;;  %v2069_v39 = vmul.f32 %v1804_v46, %v1804_v46  ;;  %v2362_v31 = vpack.c.bf16 %v1807_v50, %v1807_v50  ;;  %v2071_v10 = vmul.f32 %v1806_v47, %v1806_v47  ;;  %v2006_v45 = vadd.f32 %v2005_v9, %v2004_v3 }
 0x226   : > { %v2518_v56 = vpop.f32.mrb[12].mxu0  ;;  %1965 = vst.msk [vmem:[%s3642_s8 + $0x20] sm:$0xf] %vm1956_vm5, %v2359_v61  ;;  %v2107_v48 = vadd.f32 %v2106_v7, %v2105_v29  ;;  %v2360_v0 = vpack.c.bf16 %v1805_v1, %v1805_v1  ;;  %v2007_v18 = vsel %vm1989_vm6, %v1805_v1, 0.0  ;;  %v2070_v32 = vmul.f32 %v1805_v1, %v1805_v1 }
 0x227   : > { %v1678_v52 = vpop.f32.mrb[13].mxu0  ;;  %v2108_v17 = vsel %vm1989_vm6, %v2069_v39, 0.0  ;;  %1968 = vst.msk [vmem:[%s3642_s8 + $0x2c] sm:$0xf] %vm1956_vm5, %v2362_v31  ;;  %v2550_v13 = vadd.f32 %v2518_v56, %v3624_v37  ;;  %v2072_v19 = vmul.f32 %v1807_v50, %v1807_v50  ;;  %v2008_v12 = vadd.f32 %v2007_v18, %v2006_v45 }
 0x228   : > { %v2519_v26 = vpop.f32.mrb[14].mxu0  ;;  %v2109_v43 = vadd.f32 %v2108_v17, %v2107_v48  ;;  %1966 = vst.msk [vmem:[%s3642_s8 + $0x24] sm:$0xf] %vm1956_vm5, %v2360_v0  ;;  %v2551_v49 = vadd.f32 %v1678_v52, %v3626_v6  ;;  %v2110_v22 = vsel %vm1989_vm6, %v2070_v32, 0.0  ;;  %v2112_v36 = vsel %vm1989_vm6, %v2071_v10, 0.0 }
 0x229   : > { %v1681_v11 = vpop.f32.mrb[15].mxu0  ;;  %v1810_v23 = vadd.f32 %v2550_v13, %v3635_v62  ;;  %v2552_v24 = vadd.f32 %v2519_v26, %v3628_v57  ;;  %v2010_v2 = vadd.f32 %v2009_v8, %v2008_v12  ;;  %v2011_v20 = vsel %vm1989_vm6, %v1807_v50, 0.0 }
 0x22a   : > { %v2553_v16 = vadd.f32 %v1681_v11, %v3630_v58  ;;  %v2111_v37 = vadd.f32 %v2110_v22, %v2109_v43  ;;  %v1808_v55 = vadd.f32 %v2551_v49, %v3635_v62  ;;  %v2114_v58 = vsel %vm1989_vm6, %v2072_v19, 0.0 }
 0x22b   : > { %v2365_v6 = vpack.c.bf16 %v1810_v23, %v1810_v23  ;;  %v1811_v28 = vadd.f32 %v2552_v24, %v3635_v62  ;;  %v2012_v33 = vadd.f32 %v2011_v20, %v2010_v2  ;;  %v2075_v47 = vmul.f32 %v1810_v23, %v1810_v23 }
 0x22c   : > { %v2113_v51 = vadd.f32 %v2112_v36, %v2111_v37  ;;  %v2363_v30 = vpack.c.bf16 %v1808_v55, %v1808_v55  ;;  %v2013_v57 = vsel %vm1989_vm6, %v1808_v55, 0.0  ;;  %v2073_v5 = vmul.f32 %v1808_v55, %v1808_v55 }
 0x22d   : > { %1971 = vst.msk [vmem:[%s3642_s8 + $0x38] sm:$0xf] %vm1956_vm5, %v2365_v6  ;;  %v2366_v4 = vpack.c.bf16 %v1811_v28, %v1811_v28  ;;  %v2014_v42 = vadd.f32 %v2013_v57, %v2012_v33  ;;  %v1809_v25 = vadd.f32 %v2553_v16, %v3635_v62  ;;  %v2017_v40 = vsel %vm1989_vm6, %v1810_v23, 0.0 }
 0x22e   : > { %v2522_v27 = vpop.f32.mrb[16].mxu0  ;;  %1969 = vst.msk [vmem:[%s3642_s8 + $0x30] sm:$0xf] %vm1956_vm5, %v2363_v30  ;;  %v2115_v34 = vadd.f32 %v2114_v58, %v2113_v51  ;;  %v2116_v41 = vsel %vm1989_vm6, %v2073_v5, 0.0  ;;  %v2076_v46 = vmul.f32 %v1811_v28, %v1811_v28  ;;  %v2019_v53 = vsel %vm1989_vm6, %v1811_v28, 0.0 }
 0x22f   : > { %v1694_v59 = vpop.f32.mrb[17].mxu0  ;;  %1972 = vst.msk [vmem:[%s3642_s8 + $0x3c] sm:$0xf] %vm1956_vm5, %v2366_v4  ;;  %v2364_v35 = vpack.c.bf16 %v1809_v25, %v1809_v25  ;;  %v2015_v44 = vsel %vm1989_vm6, %v1809_v25, 0.0  ;;  %v2074_v14 = vmul.f32 %v1809_v25, %v1809_v25  ;;  %v2120_v1 = vsel %vm1989_vm6, %v2075_v47, 0.0 }
 0x230   : > { %v2523_v38 = vpop.f32.mrb[18].mxu0  ;;  %v2117_v63 = vadd.f32 %v2116_v41, %v2115_v34  ;;  %v2016_v60 = vadd.f32 %v2015_v44, %v2014_v42  ;;  %v2122_v3 = vsel %vm1989_vm6, %v2076_v46, 0.0 }
 0x231   : > { %v1697_v54 = vpop.f32.mrb[19].mxu0  ;;  %1970 = vst.msk [vmem:[%s3642_s8 + $0x34] sm:$0xf] %vm1956_vm5, %v2364_v35  ;;  %v2118_v21 = vsel %vm1989_vm6, %v2074_v14, 0.0 }
 0x232   : > { %v2018_v50 = vadd.f32 %v2017_v40, %v2016_v60  ;;  %v2119_v15 = vadd.f32 %v2118_v21, %v2117_v63 }
 0x234   : > { %v2020_v29 = vadd.f32 %v2019_v53, %v2018_v50  ;;  %v2121_v61 = vadd.f32 %v2120_v1, %v2119_v15 }
 0x236   : > { %v2123_v9 = vadd.f32 %v2122_v3, %v2121_v61 }
 0x23b   : > { %v2526_v7 = vpop.f32.mrb[20].mxu0 }
 0x23c   : > { %v1710_v8 = vpop.f32.mrb[21].mxu0 }
 0x23d   : > { %v2527_v39 = vpop.f32.mrb[22].mxu0 }
 0x23e   : > { %v1713_v31 = vpop.f32.mrb[23].mxu0 }
 0x243   : > { %v3731_v56 = vpop.f32.mrb[24].mxu0 }
 0x244   : > { %v3733_v10 = vpop.f32.mrb[25].mxu0 }
 0x245   : > { %v3735_v45 = vpop.f32.mrb[26].mxu0 }
 0x246   : > { %v3737_v48 = vpop.f32.mrb[27].mxu0 }
 0x24b   : > { %v3739_v0 = vpop.f32.mrb[28].mxu0 }
 0x24c   : > { %v3741_v52 = vpop.f32.mrb[29].mxu0 }
 0x24d   : > { %v3743_v17 = vpop.f32.mrb[30].mxu0 }
 0x24e   : > { %v3745_v18 = vpop.f32.mrb[31].mxu0 }
 0x24f   : > { %v2488_v32 = vpop.f32.mrb[16].mxu1 }
 0x250   : > { %v2554_v13 = vadd.f32 %v2522_v27, %v2488_v32  ;;  %v1458_v26 = vpop.f32.mrb[17].mxu1 }
 0x251   : > { %v2555_v43 = vadd.f32 %v1694_v59, %v1458_v26  ;;  %v2489_v19 = vpop.f32.mrb[18].mxu1 }
 0x252   : > { %v1814_v12 = vadd.f32 %v2554_v13, %v3635_v62  ;;  %v2556_v49 = vadd.f32 %v2523_v38, %v2489_v19  ;;  %v1461_v11 = vpop.f32.mrb[19].mxu1 }
 0x253   : > { %v1812_v22 = vadd.f32 %v2555_v43, %v3635_v62  ;;  %v2557_v23 = vadd.f32 %v1697_v54, %v1461_v11 }
 0x254   : > { %v2369_v24 = vpack.c.bf16 %v1814_v12, %v1814_v12  ;;  %v1815_v16 = vadd.f32 %v2556_v49, %v3635_v62  ;;  %v2079_v28 = vmul.f32 %v1814_v12, %v1814_v12  ;;  %v2025_v34 = vsel %vm1989_vm6, %v1814_v12, 0.0 }
 0x255   : > { %v2367_v2 = vpack.c.bf16 %v1812_v22, %v1812_v22  ;;  %v2021_v37 = vsel %vm1989_vm6, %v1812_v22, 0.0  ;;  %v2077_v55 = vmul.f32 %v1812_v22, %v1812_v22  ;;  %v1813_v36 = vadd.f32 %v2557_v23, %v3635_v62 }
 0x256   : > { %1975 = vst.msk [vmem:[%s3642_s8 + $0x48] sm:$0xf] %vm1956_vm5, %v2369_v24  ;;  %v2022_v20 = vadd.f32 %v2021_v37, %v2020_v29  ;;  %v2370_v6 = vpack.c.bf16 %v1815_v16, %v1815_v16  ;;  %v2080_v25 = vmul.f32 %v1815_v16, %v1815_v16  ;;  %v2027_v47 = vsel %vm1989_vm6, %v1815_v16, 0.0 }
 0x257   : > { %1973 = vst.msk [vmem:[%s3642_s8 + $0x40] sm:$0xf] %vm1956_vm5, %v2367_v2  ;;  %v2124_v51 = vsel %vm1989_vm6, %v2077_v55, 0.0  ;;  %v2368_v30 = vpack.c.bf16 %v1813_v36, %v1813_v36  ;;  %v2023_v33 = vsel %vm1989_vm6, %v1813_v36, 0.0  ;;  %v2492_v57 = vpop.f32.mrb[20].mxu1  ;;  %v2078_v4 = vmul.f32 %v1813_v36, %v1813_v36 }
 0x258   : > { %v2125_v58 = vadd.f32 %v2124_v51, %v2123_v9  ;;  %1976 = vst.msk [vmem:[%s3642_s8 + $0x4c] sm:$0xf] %vm1956_vm5, %v2370_v6  ;;  %v2024_v5 = vadd.f32 %v2023_v33, %v2022_v20  ;;  %v2558_v27 = vadd.f32 %v2526_v7, %v2492_v57  ;;  %v1474_v42 = vpop.f32.mrb[21].mxu1  ;;  %v2128_v46 = vsel %vm1989_vm6, %v2079_v28, 0.0 }
 0x259   : > { %1974 = vst.msk [vmem:[%s3642_s8 + $0x44] sm:$0xf] %vm1956_vm5, %v2368_v30  ;;  %v2559_v59 = vadd.f32 %v1710_v8, %v1474_v42  ;;  %v2493_v41 = vpop.f32.mrb[22].mxu1  ;;  %v2126_v63 = vsel %vm1989_vm6, %v2078_v4, 0.0  ;;  %v2130_v61 = vsel %vm1989_vm6, %v2080_v25, 0.0 }
 0x25a   : > { %v2026_v38 = vadd.f32 %v2025_v34, %v2024_v5  ;;  %v1818_v35 = vadd.f32 %v2558_v27, %v3635_v62  ;;  %v2560_v44 = vadd.f32 %v2527_v39, %v2493_v41  ;;  %v1477_v54 = vpop.f32.mrb[23].mxu1  ;;  %v2127_v60 = vadd.f32 %v2126_v63, %v2125_v58 }
 0x25b   : > { %v1816_v14 = vadd.f32 %v2559_v59, %v3635_v62  ;;  %v2561_v40 = vadd.f32 %v1713_v31, %v1477_v54 }
 0x25c   : > { %v2373_v50 = vpack.c.bf16 %v1818_v35, %v1818_v35  ;;  %v2028_v21 = vadd.f32 %v2027_v47, %v2026_v38  ;;  %v2129_v53 = vadd.f32 %v2128_v46, %v2127_v60  ;;  %v1819_v9 = vadd.f32 %v2560_v44, %v3635_v62 }
 0x25d   : > { %v2371_v15 = vpack.c.bf16 %v1816_v14, %v1816_v14  ;;  %v2029_v1 = vsel %vm1989_vm6, %v1816_v14, 0.0  ;;  %v2081_v29 = vmul.f32 %v1816_v14, %v1816_v14  ;;  %v1817_v7 = vadd.f32 %v2561_v40, %v3635_v62 }
 0x25e   : > { %1979 = vst.msk [vmem:[%s3642_s8 + $0x58] sm:$0xf] %vm1956_vm5, %v2373_v50  ;;  %v2030_v3 = vadd.f32 %v2029_v1, %v2028_v21  ;;  %v2131_v8 = vadd.f32 %v2130_v61, %v2129_v53  ;;  %v2083_v32 = vmul.f32 %v1818_v35, %v1818_v35  ;;  %v2374_v13 = vpack.c.bf16 %v1819_v9, %v1819_v9 }
 0x25f   : > { %1977 = vst.msk [vmem:[%s3642_s8 + $0x50] sm:$0xf] %vm1956_vm5, %v2371_v15  ;;  %v2132_v39 = vsel %vm1989_vm6, %v2081_v29, 0.0  ;;  %v2496_v31 = vpop.f32.mrb[24].mxu1  ;;  %v2372_v26 = vpack.c.bf16 %v1817_v7, %v1817_v7  ;;  %v2031_v12 = vsel %vm1989_vm6, %v1817_v7, 0.0  ;;  %v2082_v49 = vmul.f32 %v1817_v7, %v1817_v7 }
 0x260   : > { %v1490_v43 = vpop.f32.mrb[25].mxu1  ;;  %v2133_v19 = vadd.f32 %v2132_v39, %v2131_v8  ;;  %v2562_v11 = vadd.f32 %v3731_v56, %v2496_v31  ;;  %v2033_v23 = vsel %vm1989_vm6, %v1818_v35, 0.0  ;;  %1980 = vst.msk [vmem:[%s3642_s8 + $0x5c] sm:$0xf] %vm1956_vm5, %v2374_v13  ;;  %v2032_v24 = vadd.f32 %v2031_v12, %v2030_v3 }
 0x261   : > { %v2497_v22 = vpop.f32.mrb[26].mxu1  ;;  %1978 = vst.msk [vmem:[%s3642_s8 + $0x54] sm:$0xf] %vm1956_vm5, %v2372_v26  ;;  %v2563_v16 = vadd.f32 %v3733_v10, %v1490_v43  ;;  %v2084_v55 = vmul.f32 %v1819_v9, %v1819_v9  ;;  %v2134_v36 = vsel %vm1989_vm6, %v2082_v49, 0.0  ;;  %v2136_v10 = vsel %vm1989_vm6, %v2083_v32, 0.0 }
 0x262   : > { %v2564_v2 = vadd.f32 %v3735_v45, %v2497_v22  ;;  %v1493_v37 = vpop.f32.mrb[27].mxu1  ;;  %v1822_v20 = vadd.f32 %v2562_v11, %v3635_v62  ;;  %v2034_v6 = vadd.f32 %v2033_v23, %v2032_v24  ;;  %v2135_v28 = vadd.f32 %v2134_v36, %v2133_v19 }
 0x263   : > { %v2565_v56 = vadd.f32 %v3737_v48, %v1493_v37  ;;  %v1820_v51 = vadd.f32 %v2563_v16, %v3635_v62  ;;  %v2035_v45 = vsel %vm1989_vm6, %v1819_v9, 0.0  ;;  %v2138_v27 = vsel %vm1989_vm6, %v2084_v55, 0.0 }
 0x264   : > { %v1823_v30 = vadd.f32 %v2564_v2, %v3635_v62  ;;  %v2377_v33 = vpack.c.bf16 %v1822_v20, %v1822_v20  ;;  %v2137_v58 = vadd.f32 %v2136_v10, %v2135_v28  ;;  %v2036_v4 = vadd.f32 %v2035_v45, %v2034_v6 }
 0x265   : > { %v1821_v57 = vadd.f32 %v2565_v56, %v3635_v62  ;;  %v2375_v5 = vpack.c.bf16 %v1820_v51, %v1820_v51  ;;  %v2037_v48 = vsel %vm1989_vm6, %v1820_v51, 0.0  ;;  %v2041_v42 = vsel %vm1989_vm6, %v1822_v20, 0.0 }
 0x266   : > { %1983 = vst.msk [vmem:[%s3642_s8 + $0x68] sm:$0xf] %vm1956_vm5, %v2377_v33  ;;  %v2085_v34 = vmul.f32 %v1820_v51, %v1820_v51  ;;  %v2378_v25 = vpack.c.bf16 %v1823_v30, %v1823_v30  ;;  %v2087_v41 = vmul.f32 %v1822_v20, %v1822_v20  ;;  %v2038_v38 = vadd.f32 %v2037_v48, %v2036_v4 }
 0x267   : > { %v2500_v59 = vpop.f32.mrb[28].mxu1  ;;  %1981 = vst.msk [vmem:[%s3642_s8 + $0x60] sm:$0xf] %vm1956_vm5, %v2375_v5  ;;  %v2139_v63 = vadd.f32 %v2138_v27, %v2137_v58  ;;  %v2376_v35 = vpack.c.bf16 %v1821_v57, %v1821_v57  ;;  %v2039_v47 = vsel %vm1989_vm6, %v1821_v57, 0.0  ;;  %v2086_v60 = vmul.f32 %v1821_v57, %v1821_v57 }
 0x268   : > { %v1506_v44 = vpop.f32.mrb[29].mxu1  ;;  %v2140_v54 = vsel %vm1989_vm6, %v2085_v34, 0.0  ;;  %1984 = vst.msk [vmem:[%s3642_s8 + $0x6c] sm:$0xf] %vm1956_vm5, %v2378_v25  ;;  %v2566_v14 = vadd.f32 %v3739_v0, %v2500_v59  ;;  %v2088_v50 = vmul.f32 %v1823_v30, %v1823_v30  ;;  %v2040_v21 = vadd.f32 %v2039_v47, %v2038_v38 }
 0x269   : > { %v2501_v40 = vpop.f32.mrb[30].mxu1  ;;  %v2141_v46 = vadd.f32 %v2140_v54, %v2139_v63  ;;  %1982 = vst.msk [vmem:[%s3642_s8 + $0x64] sm:$0xf] %vm1956_vm5, %v2376_v35  ;;  %v2567_v53 = vadd.f32 %v3741_v52, %v1506_v44  ;;  %v2142_v1 = vsel %vm1989_vm6, %v2086_v60, 0.0  ;;  %v2144_v8 = vsel %vm1989_vm6, %v2087_v41, 0.0 }
 0x26a   : > { %v1509_v15 = vpop.f32.mrb[31].mxu1  ;;  %v1826_v29 = vadd.f32 %v2566_v14, %v3635_v62  ;;  %v2568_v61 = vadd.f32 %v3743_v17, %v2501_v40  ;;  %v2042_v0 = vadd.f32 %v2041_v42, %v2040_v21  ;;  %v2043_v39 = vsel %vm1989_vm6, %v1823_v30, 0.0 }
 0x26b   : > { %v2569_v3 = vadd.f32 %v3745_v18, %v1509_v15  ;;  %v2143_v9 = vadd.f32 %v2142_v1, %v2141_v46  ;;  %v1824_v7 = vadd.f32 %v2567_v53, %v3635_v62  ;;  %v2146_v18 = vsel %vm1989_vm6, %v2088_v50, 0.0 }
 0x26c   : > { %v2381_v52 = vpack.c.bf16 %v1826_v29, %v1826_v29  ;;  %v1827_v31 = vadd.f32 %v2568_v61, %v3635_v62  ;;  %v2044_v26 = vadd.f32 %v2043_v39, %v2042_v0  ;;  %v2091_v2 = vmul.f32 %v1826_v29, %v1826_v29 }
 0x26d   : > { %v2145_v32 = vadd.f32 %v2144_v8, %v2143_v9  ;;  %v2379_v13 = vpack.c.bf16 %v1824_v7, %v1824_v7  ;;  %v2045_v17 = vsel %vm1989_vm6, %v1824_v7, 0.0  ;;  %v2089_v43 = vmul.f32 %v1824_v7, %v1824_v7 }
 0x26e   : > { %1987 = vst.msk [vmem:[%s3642_s8 + $0x78] sm:$0xf] %vm1956_vm5, %v2381_v52  ;;  %v2382_v19 = vpack.c.bf16 %v1827_v31, %v1827_v31  ;;  %v2046_v12 = vadd.f32 %v2045_v17, %v2044_v26  ;;  %v1825_v11 = vadd.f32 %v2569_v3, %v3635_v62  ;;  %v2049_v36 = vsel %vm1989_vm6, %v1826_v29, 0.0 }
 0x26f   : > { %1985 = vst.msk [vmem:[%s3642_s8 + $0x70] sm:$0xf] %vm1956_vm5, %v2379_v13  ;;  %v2147_v49 = vadd.f32 %v2146_v18, %v2145_v32  ;;  %v2148_v22 = vsel %vm1989_vm6, %v2089_v43, 0.0  ;;  %v2092_v20 = vmul.f32 %v1827_v31, %v1827_v31  ;;  %v2051_v6 = vsel %vm1989_vm6, %v1827_v31, 0.0 }
 0x270   : > { %1988 = vst.msk [vmem:[%s3642_s8 + $0x7c] sm:$0xf] %vm1956_vm5, %v2382_v19  ;;  %v2380_v24 = vpack.c.bf16 %v1825_v11, %v1825_v11  ;;  %v2047_v16 = vsel %vm1989_vm6, %v1825_v11, 0.0  ;;  %v2090_v55 = vmul.f32 %v1825_v11, %v1825_v11  ;;  %v2152_v51 = vsel %vm1989_vm6, %v2091_v2, 0.0 }
 0x271   : > { %v2149_v23 = vadd.f32 %v2148_v22, %v2147_v49  ;;  %v2048_v37 = vadd.f32 %v2047_v16, %v2046_v12  ;;  %v2154_v45 = vsel %vm1989_vm6, %v2092_v20, 0.0 }
 0x272   : > { %1986 = vst.msk [vmem:[%s3642_s8 + $0x74] sm:$0xf] %vm1956_vm5, %v2380_v24  ;;  %v2150_v62 = vsel %vm1989_vm6, %v2090_v55, 0.0 }
 0x273   : > { %v2050_v56 = vadd.f32 %v2049_v36, %v2048_v37  ;;  %v2151_v28 = vadd.f32 %v2150_v62, %v2149_v23 }
 0x275   : > { %v2052_v30 = vadd.f32 %v2051_v6, %v2050_v56  ;;  %v2153_v10 = vadd.f32 %v2152_v51, %v2151_v28 }
 0x277   : > { %v2053_v33 = vrot.slane %v2052_v30, 4  ;;  %v2155_v57 = vadd.f32 %v2154_v45, %v2153_v10 }
 0x279   : > { %v2054_v58 = vadd.f32 %v2053_v33, %v2052_v30  ;;  %v2156_v5 = vrot.slane %v2155_v57, 4 }
 0x27b   : > { %v2055_v4 = vrot.slane %v2054_v58, 2  ;;  %v2157_v48 = vadd.f32 %v2156_v5, %v2155_v57 }
 0x27d   : > { %v2056_v27 = vadd.f32 %v2055_v4, %v2054_v58  ;;  %v2158_v42 = vrot.slane %v2157_v48, 2 }
 0x27f   : > { %v2057_v34 = vrot.slane %v2056_v27, 1  ;;  %v2159_v25 = vadd.f32 %v2158_v42, %v2157_v48 }
 0x281   : > { %v2058_v59 = vadd.f32 %v2057_v34, %v2056_v27  ;;  %v2160_v41 = vrot.slane %v2159_v25, 1 }
 0x283   : > { %2060 = vst.msk [vmem:[%s235_s13] sm:$0x1] %vm2059_vm7, %v2058_v59  ;;  %v2161_v38 = vadd.f32 %v2160_v41, %v2159_v25 }
 0x285   : > { %2162 = vst.msk [vmem:[%s235_s13 + $0x1] sm:$0x1] %vm2059_vm7, %v2161_v38 }
 0x286 PF: > { %s16_s18 = sadd.s32 1, %s2795_s18  }
 0x287   : > { %p13_p4 = scmp.ge.s32.totalorder %s16_s18, 4  }
 0x289   :  { %15 = sbr.rel (!%p13_p4) target bundleno = 1 (0x1), region = 80 }

// kernel: unet_encoder.12
= control target key start
LH: loop header
LB: loop body
LE: loop exit
PB: predicated region body
PF: predicated region fallthrough
CT: control target
= control target key end

     0   :  { %s1525_s24 = smov 0   ;;  %s1800_s0 = inlined_call_operand.vmem [shape: bf16[2,64,32], index: 0, kind: input, shape index: {}]   ;;  %s1801_s1 = inlined_call_operand.vmem [shape: f32[64,2], index: 1, kind: input, shape index: {}]   ;;  %s1802_s2 = inlined_call_operand.vmem [shape: bf16[3,96,32], index: 2, kind: input, shape index: {}]   ;;  %s1803_s3 = inlined_call_operand.vmem [shape: f32[1,32], index: 3, kind: input, shape index: {}]   ;;  %s1804_s4 = inlined_call_operand.vmem [shape: f32[1,32], index: 4, kind: input, shape index: {}]   ;;  %s1805_s5 = inlined_call_operand.vmem [shape: f32[1,32], index: 5, kind: input, shape index: {}]   ;;  %s1806_s6 = inlined_call_operand.vmem [shape: bf16[2,64,32], index: 6, kind: output, shape index: {0}]   ;;  %s1807_s7 = inlined_call_operand.vmem [shape: f32[2,2,32], index: 7, kind: output, shape index: {1}]  }
   0x1 LB: > { %s1172_s25 = sadd.s32 4294967295, %s1478_s24   ;;  %p1176_p0 = scmp.ge.s32.totalorder %s1478_s24, 1  ;;  %s1478_s24 = sphi %s1525_s24, %s18_s24  }
   0x2   : > { %p240_p1 = scmp.lt.s32.totalorder %s1478_s24, 3 }
   0x4   : > { %p241_p2 = pnand %p1176_p0, %p240_p1 }
   0x5   : > { %v1536_v0 = vld [vmem:[%s1801_s1 + $0x10] sm:$0xff] (!%p241_p2)  ;;  %v1541_v1 = vld [vmem:[%s1801_s1] sm:$0xff] (!%p241_p2)  ;;  %vm554_vm0 = vcmask (!%p241_p2), 781312   ;;  %v1480_v2 = vmov (!%p241_p2), 1   ;;  %v1481_v3 = vmov (!%p241_p2), 0   ;;  %p276_p3 = scmp.lt.s32.totalorder (!%p241_p2), %s1172_s25, 1 }
   0x6   : > { %244 = sbr.rel (%p241_p2) target bundleno = 563 (0x233), region = 44  ;;  %1410 = vset.pattern.permute.xlu1 (!%p241_p2), %v1480_v2  ;;  %1409 = vset.pattern.permute.xlu0 (!%p241_p2), %v1480_v2  ;;  %555 = vst.msk [vmem:[#allocation3] sm:$0xf] (!%p241_p2), %vm554_vm0, %v1481_v3  ;;  %v1552_v4 = vld [vmem:[%s1801_s1 + $0x18] sm:$0xff] (!%p241_p2)  ;;  %v1557_v5 = vld [vmem:[%s1801_s1 + $0x8] sm:$0xff] (!%p241_p2)  ;;  %v1569_v7 = vld [vmem:[%s1801_s1 + $0x20] sm:$0xff] (!%p241_p2) }
   0x7   : > { %438 = vperm.xlu1 (!%p241_p2), %1410, %v1536_v0   ;;  %430 = vperm.xlu0 (!%p241_p2), %1409, %v1541_v1   ;;  %v1564_v6 = vld [vmem:[%s1801_s1 + $0x28] sm:$0xff] (!%p241_p2)  ;;  %v1182_v8 = vld [vmem:[%s1804_s4] ss:$0 sm:$0xff] (!%p241_p2)  ;;  %vm345_vm1 = vcmask (!%p241_p2), 253952   ;;  %v1482_v9 = vmov (!%p241_p2), 0.0   ;;  %vm348_vm2 = vcmask (!%p241_p2), 261120  }
   0x8   : > { %347 = vst.msk [vmem:[#allocation2 + $0x41] sm:$0x1] (!%p241_p2), %vm345_vm1, %v1482_v9  ;;  %346 = vst.msk [vmem:[#allocation2] sm:$0x1] (!%p241_p2), %vm345_vm1, %v1482_v9  ;;  %v1587_v18 = vld [vmem:[%s1801_s1 + $0x38] sm:$0xff] (!%p241_p2)  ;;  %v1592_v19 = vld [vmem:[%s1801_s1 + $0x30] sm:$0xff] (!%p241_p2) }
   0x9   : > { %v1183_v20 = vld [vmem:[%s1805_s5] ss:$0 sm:$0xff] (!%p241_p2)  ;;  %s1483_s8 = smov (!%p241_p2), 32   ;;  %v1455_v54 = vld [vmem:[%s1802_s2 + $0x8] sm:$0xff] (!%p241_p2)   ;;  %v1456_v55 = vld [vmem:[%s1802_s2 + $0x10] sm:$0xff] (!%p241_p2)   ;;  %vm556_vm3 = vcmask (!%p241_p2), 785412  }
   0xa   : > { %v1454_v53 = vld [vmem:[%s1802_s2] sm:$0xff] (!%p241_p2)   ;;  %v1457_v56 = vld [vmem:[%s1802_s2 + $0x18] sm:$0xff] (!%p241_p2)   ;;  %557 = vst.msk [vmem:[#allocation3 + $0x20] sm:$0xf0] (!%p241_p2), %vm556_vm3, %v1481_v3  ;;  %s1484_s22 = smov (!%p241_p2), 64   ;;  %vm541_vm4 = vcmask (!%p241_p2), 523264  }
   0xb   : > { %442 = vperm.xlu1 (!%p241_p2), %1410, %v1552_v4   ;;  %434 = vperm.xlu0 (!%p241_p2), %1409, %v1557_v5   ;;  %v1458_v63 = vld [vmem:[%s1802_s2 + $0x20] sm:$0xff] (!%p241_p2)   ;;  %vm562_vm5 = vcmask (!%p241_p2), 1043456   ;;  %vm576_vm6 = vcmask (!%p241_p2), 785408   ;;  %vm1025_vm7 = vcmask (!%p241_p2), 257024  }
   0xc   : > { %1328 = vmatprep.subr.bf16.mxu0 (!%p241_p2), %v1454_v53 }
   0xd   : > { %s1809_s25 = smov (!%p276_p3, %s1172_s25), 1  ;;  %1329 = vmatpush3.bf16.msra.mxu0 %v1454_v53 }
   0xe   : > { %s1249_s15 = sshll.u32 %s1809_s25, 5  ;;  %1330 = vmatprep.subr.bf16.mxu0 %v1455_v54 }
   0xf   : > { %s280_s20 = scalar_lea.vmem %s1800_s0, %s1249_s15  ;;  %450 = vperm.xlu1 %1410, %v1564_v6   ;;  %446 = vperm.xlu0 %1409, %v1569_v7   ;;  %s1757_s9 = scalar_lea.vmem %s1806_s6, %s1249_s15 }
  0x10   : > { %v1275_v10 = vld [vmem:[%s280_s20 + $0x8] sm:$0xff]   ;;  %v1260_v11 = vld [vmem:[%s280_s20] sm:$0xff]   ;;  %v1276_v12 = vld [vmem:[%s280_s20 + $0x10] sm:$0xff]   ;;  %s1181_s15 = sshll.u32 %s1809_s25, 1 }
  0x11   : > { %v1265_v13 = vunpack.c.l.bf16 %v1275_v10  ;;  %v1266_v14 = vunpack.c.h.bf16 %v1275_v10  ;;  %v1261_v15 = vunpack.c.l.bf16 %v1260_v11  ;;  %v1262_v16 = vunpack.c.h.bf16 %v1260_v11  ;;  %v1277_v17 = vld [vmem:[%s280_s20 + $0x18] sm:$0xff]   ;;  %1331 = vmatpush3.bf16.msra.mxu0 %v1455_v54  ;;  %s289_s12 = scalar_lea.vmem %s1807_s7, %s1181_s15 }
  0x12   : > { %v1269_v21 = vunpack.c.l.bf16 %v1276_v12  ;;  %v1270_v22 = vunpack.c.h.bf16 %v1276_v12  ;;  %v1273_v23 = vunpack.c.l.bf16 %v1277_v17  ;;  %v1274_v24 = vunpack.c.h.bf16 %v1277_v17  ;;  %1332 = vmatprep.subr.bf16.mxu0 %v1456_v55 }
  0x13   : > { %v316_v25 = vmul.f32 %v1265_v13, %v1182_v8  ;;  %v317_v26 = vmul.f32 %v1266_v14, %v1182_v8  ;;  %v314_v27 = vmul.f32 %v1261_v15, %v1182_v8  ;;  %v315_v28 = vmul.f32 %v1262_v16, %v1182_v8  ;;  %458 = vperm.xlu1 %1410, %v1587_v18  }
  0x14   : > { %v318_v29 = vmul.f32 %v1269_v21, %v1182_v8  ;;  %v319_v30 = vmul.f32 %v1270_v22, %v1182_v8  ;;  %v320_v31 = vmul.f32 %v1273_v23, %v1182_v8  ;;  %v321_v35 = vmul.f32 %v1274_v24, %v1182_v8  ;;  %454 = vperm.xlu0 %1409, %v1592_v19   ;;  %v1461_v23 = vld [vmem:[%s1802_s2 + $0x38] sm:$0xff]  }
  0x15   : > { %v331_v32 = vadd.f32 %v1183_v20, %v316_v25  ;;  %v332_v33 = vadd.f32 %v1183_v20, %v317_v26  ;;  %v329_v34 = vadd.f32 %v1183_v20, %v314_v27  ;;  %v330_v36 = vadd.f32 %v1183_v20, %v315_v28  ;;  %1333 = vmatpush3.bf16.msra.mxu0 %v1456_v55  ;;  %v1462_v27 = vld [vmem:[%s1802_s2 + $0x40] sm:$0xff]  }
  0x16   : > { %v333_v37 = vadd.f32 %v1183_v20, %v318_v29  ;;  %v334_v38 = vadd.f32 %v1183_v20, %v319_v30  ;;  %v335_v39 = vadd.f32 %v1183_v20, %v320_v31  ;;  %v336_v43 = vadd.f32 %v1183_v20, %v321_v35  ;;  %1334 = vmatprep.subr.bf16.mxu0 %v1457_v56  ;;  %v1660_v28 = vld [vmem:[%s1802_s2 + $0x60] sm:$0xff]   ;;  %v1468_v29 = vld [vmem:[%s1802_s2 + $0x58] sm:$0xff]  }
  0x17   : > { %v339_v40 = vmax.f32 %v331_v32, 0.0  ;;  %v340_v41 = vmax.f32 %v332_v33, 0.0  ;;  %v337_v42 = vmax.f32 %v329_v34, 0.0  ;;  %v338_v44 = vmax.f32 %v330_v36, 0.0  ;;  %1412 = vset.pattern.permute.xlu1 %v1481_v3 }
  0x18   : > { %v341_v45 = vmax.f32 %v333_v37, 0.0  ;;  %v342_v46 = vmax.f32 %v334_v38, 0.0  ;;  %v343_v47 = vmax.f32 %v335_v39, 0.0  ;;  %v344_v48 = vmax.f32 %v336_v43, 0.0  ;;  %1411 = vset.pattern.permute.xlu0 %v1481_v3  ;;  %380 = vperm.xlu1 %1412, %v1557_v5   ;;  %v1459_v5 = vld [vmem:[%s1802_s2 + $0x28] sm:$0xff]  }
  0x19   : > { %351 = vst.msk [vmem:[#allocation2 + $0x11] sm:$0xff] %vm348_vm2, %v339_v40  ;;  %352 = vst.msk [vmem:[#allocation2 + $0x19] sm:$0xff] %vm348_vm2, %v340_v41  ;;  %375 = vperm.xlu0 %1411, %v1541_v1   ;;  %v1418_v51 = vpack.i.bf16 %v340_v41, %v339_v40  ;;  %v1413_v52 = vpack.i.bf16 %v338_v44, %v337_v42  ;;  %1335 = vmatpush3.bf16.msra.mxu0 %v1457_v56 }
  0x1a   : > { %349 = vst.msk [vmem:[#allocation2 + $0x1] sm:$0xff] %vm348_vm2, %v337_v42  ;;  %350 = vst.msk [vmem:[#allocation2 + $0x9] sm:$0xff] %vm348_vm2, %v338_v44  ;;  %v1608_v49 = vpack.i.bf16 %v342_v46, %v341_v45  ;;  %v1615_v50 = vpack.i.bf16 %v344_v48, %v343_v47  ;;  %1336 = vmatprep.subr.bf16.mxu0 %v1458_v63 }
  0x1b   : > { %353 = vst.msk [vmem:[#allocation2 + $0x21] sm:$0xff] %vm348_vm2, %v341_v45  ;;  %354 = vst.msk [vmem:[#allocation2 + $0x29] sm:$0xff] %vm348_vm2, %v342_v46 }
  0x1c   : > { %355 = vst.msk [vmem:[#allocation2 + $0x31] sm:$0xff] %vm348_vm2, %v343_v47  ;;  %356 = vst.msk [vmem:[#allocation2 + $0x39] sm:$0xff] %vm348_vm2, %v344_v48  ;;  %385 = vperm.xlu1 %1412, %v1536_v0  }
  0x1d   : > { %390 = vperm.xlu0 %1411, %v1552_v4   ;;  %1337 = vmatpush3.bf16.msra.mxu0 %v1458_v63 }
  0x1e   : > { %1338 = vmatprep.subr.bf16.mxu0 %v1459_v5 }
  0x20   : > { %395 = vperm.xlu1 %1412, %v1569_v7   ;;  %v423_v60 = vld [vmem:[#allocation2 + $0x12] sm:$0xff] }
  0x21   : > { %400 = vperm.xlu0 %1411, %v1564_v6   ;;  %v421_v59 = vld [vmem:[#allocation2 + $0x2] sm:$0xff]  ;;  %v422_v62 = vld [vmem:[#allocation2 + $0xa] sm:$0xff]  ;;  %1339 = vmatpush3.bf16.msra.mxu0 %v1459_v5  ;;  %v368_v41 = vld [vmem:[#allocation2 + $0x18] sm:$0xff] }
  0x22   : > { %v424_v61 = vld [vmem:[#allocation2 + $0x1a] sm:$0xff]  ;;  %v1460_v6 = vld [vmem:[%s1802_s2 + $0x30] sm:$0xff]   ;;  %v425_v14 = vld [vmem:[#allocation2 + $0x22] sm:$0xff]  ;;  %1348 = vmatprep.subr.bf16.mxu0 %v1660_v28 }
  0x23   : > { %1308 = vmatprep.subr.bf16.mxu1 %v1460_v6  ;;  %v426_v12 = vld [vmem:[#allocation2 + $0x2a] sm:$0xff]  ;;  %v428_v20 = vld [vmem:[#allocation2 + $0x3a] sm:$0xff]  ;;  %v427_v22 = vld [vmem:[#allocation2 + $0x32] sm:$0xff] }
  0x24   : > { %1414 = vrot.lane.b32.xlu1 %v1413_v52, %s1483_s8  ;;  %1309 = vmatpush3.bf16.msra.mxu1 %v1460_v6  ;;  %v366_v36 = vld [vmem:[#allocation2 + $0x8] sm:$0xff]  ;;  %v365_v37 = vld [vmem:[#allocation2] sm:$0xff]  ;;  %v367_v38 = vld [vmem:[#allocation2 + $0x10] sm:$0xff] }
  0x25   : > { %1419 = vrot.lane.b32.xlu0 %v1418_v51, %s1483_s8  ;;  %1310 = vmatprep.subr.bf16.mxu1 %v1461_v23 }
  0x28   : > { %1311 = vmatpush3.bf16.msra.mxu1 %v1461_v23 }
  0x29   : > { %1312 = vmatprep.subr.bf16.mxu1 %v1462_v27 }
  0x2c   : > { %1313 = vmatpush3.bf16.msra.mxu1 %v1462_v27 }
  0x86   : > { %v439_v57 = vpop.permute.xlu1 %438  ;;  %v431_v58 = vpop.permute.xlu0 %430 }
  0x87   : > { %v461_v0 = vmul.f32 %v431_v58, %v421_v59  ;;  %v463_v7 = vmul.f32 %v439_v57, %v423_v60 }
  0x8a   : > { %v443_v1 = vpop.permute.xlu1 %442  ;;  %v435_v4 = vpop.permute.xlu0 %434 }
  0x8b   : > { %v464_v8 = vmul.f32 %v443_v1, %v424_v61  ;;  %v462_v9 = vmul.f32 %v435_v4, %v422_v62 }
  0x8d   : > { %v1433_v3 = vpack.i.bf16 %v464_v8, %v463_v7  ;;  %v1423_v10 = vpack.i.bf16 %v462_v9, %v461_v0  ;;  %v1689_v9 = vld [vmem:[%s1802_s2 + $0x68] sm:$0xff]  }
  0x8e   : > { %v451_v11 = vpop.permute.xlu1 %450  ;;  %v447_v13 = vpop.permute.xlu0 %446 }
  0x8f   : > { %1434 = vrot.lane.b32.xlu0 %v1433_v3, %s1484_s22  ;;  %1424 = vrot.lane.b32.xlu1 %v1423_v10, %s1484_s22  ;;  %v466_v15 = vmul.f32 %v451_v11, %v426_v12  ;;  %v465_v16 = vmul.f32 %v447_v13, %v425_v14  ;;  %v369_v14 = vld [vmem:[#allocation2 + $0x20] sm:$0xff] }
  0x91   : > { %v1438_v24 = vpack.i.bf16 %v466_v15, %v465_v16  ;;  %v370_v15 = vld [vmem:[#allocation2 + $0x28] sm:$0xff] }
  0x92   : > { %v459_v17 = vpop.permute.xlu1 %458 }
  0x93   : > { %v455_v21 = vpop.permute.xlu0 %454  ;;  %405 = vperm.xlu0 %1411, %v1592_v19   ;;  %1429 = vrot.lane.b32.xlu1 %v1608_v49, %s1483_s8  ;;  %v468_v25 = vmul.f32 %v459_v17, %v428_v20 }
  0x94   : > { %v467_v26 = vmul.f32 %v455_v21, %v427_v22  ;;  %v1703_v21 = vld [vmem:[%s1802_s2 + $0x70] sm:$0xff]  }
  0x96   : > { %v1448_v19 = vpack.i.bf16 %v468_v25, %v467_v26  ;;  %v371_v26 = vld [vmem:[#allocation2 + $0x30] sm:$0xff] }
  0x97   : > { %1439 = vrot.lane.b32.xlu0 %v1438_v24, %s1484_s22  ;;  %410 = vperm.xlu1 %1412, %v1587_v18   ;;  %v1464_v18 = vld [vmem:[%s1802_s2 + $0x48] sm:$0xff]   ;;  %v381_v30 = vpop.permute.xlu1 %380 }
  0x98   : > { %1453 = vset.pattern.permute.xlu0 %v1480_v2  ;;  %1314 = vmatprep.subr.bf16.mxu1 %v1464_v18  ;;  %v1466_v2 = vld [vmem:[%s1802_s2 + $0x50] sm:$0xff]   ;;  %v376_v31 = vpop.permute.xlu0 %375  ;;  %v414_v42 = vmul.f32 %v381_v30, %v366_v36  ;;  %v1469_v30 = vld [vmem:[%s1802_s2 + $0x78] sm:$0xff]  }
  0x99   : > { %1315 = vmatpush3.bf16.msra.mxu1 %v1464_v18  ;;  %v413_v44 = vmul.f32 %v376_v31, %v365_v37  ;;  %v372_v18 = vld [vmem:[#allocation2 + $0x38] sm:$0xff] }
  0x9a   : > { %1316 = vmatprep.subr.bf16.mxu1 %v1466_v2 }
  0x9b   : > { %1449 = vrot.lane.b32.xlu0 %v1448_v19, %s1484_s22  ;;  %1444 = vrot.lane.b32.xlu1 %v1615_v50, %s1483_s8  ;;  %v386_v32 = vpop.permute.xlu1 %385 }
  0x9c   : > { %v391_v33 = vpop.permute.xlu0 %390  ;;  %v415_v45 = vmul.f32 %v386_v32, %v367_v38 }
  0x9d   : > { %1317 = vmatpush3.bf16.msra.mxu1 %v1466_v2  ;;  %v416_v46 = vmul.f32 %v391_v33, %v368_v41 }
  0x9e   : > { %1318 = vmatprep.subr.bf16.mxu1 %v1468_v29 }
  0x9f   : > { %v396_v34 = vpop.permute.xlu1 %395 }
  0xa0   : > { %v401_v35 = vpop.permute.xlu0 %400  ;;  %v417_v22 = vmul.f32 %v396_v34, %v369_v14 }
  0xa1   : > { %1319 = vmatpush3.bf16.msra.mxu1 %v1468_v29  ;;  %v418_v23 = vmul.f32 %v401_v35, %v370_v15 }
  0xa2   : > { %1368 = vmatprep.subr.bf16.mxu1 %v1660_v28 }
  0xa3   : > { %v1415_v40 = vpop.permute.xlu1 %1414 }
  0xa4   : > { %v1420_v39 = vpop.permute.xlu0 %1419  ;;  %v1417_v43 = vunpack.i.h.bf16 %v1415_v40  ;;  %v1416_v49 = vunpack.i.l.bf16 %v1415_v40 }
  0xa5   : > { %v1422_v47 = vunpack.i.h.bf16 %v1420_v39  ;;  %v1421_v48 = vunpack.i.l.bf16 %v1420_v39 }
  0xa6   : > { %v534_v50 = vsel %vm348_vm2, %v414_v42, %v1417_v43  ;;  %v533_v59 = vsel %vm348_vm2, %v413_v44, %v1416_v49  ;;  %v1470_v43 = vld [vmem:[%s1802_s2 + $0x80] sm:$0xff]  }
  0xa7   : > { %v535_v57 = vsel %vm348_vm2, %v415_v45, %v1421_v48  ;;  %v536_v58 = vsel %vm348_vm2, %v416_v46, %v1422_v47 }
 0x101   : > { %v1435_v51 = vpop.permute.xlu0 %1434  ;;  %v1425_v52 = vpop.permute.xlu1 %1424 }
 0x102   : > { %v1437_v53 = vunpack.i.h.bf16 %v1435_v51  ;;  %v1436_v54 = vunpack.i.l.bf16 %v1435_v51  ;;  %v1427_v55 = vunpack.i.h.bf16 %v1425_v52  ;;  %v1426_v56 = vunpack.i.l.bf16 %v1425_v52 }
 0x104   : > { %v544_v60 = vsel %vm541_vm4, %v535_v57, %v1436_v54  ;;  %v545_v61 = vsel %vm541_vm4, %v536_v58, %v1437_v53  ;;  %v542_v62 = vsel %vm541_vm4, %v533_v59, %v1426_v56  ;;  %v543_v63 = vsel %vm541_vm4, %v534_v50, %v1427_v55  ;;  %v1471_v50 = vld [vmem:[%s1802_s2 + $0x88] sm:$0xff]  }
 0x105   : > { %v551_v0 = vpack.c.bf16 %v545_v61, %v544_v60  ;;  %v550_v1 = vpack.c.bf16 %v543_v63, %v542_v62  ;;  %v1430_v3 = vpop.permute.xlu1 %1429 }
 0x106   : > { %v1432_v16 = vunpack.i.h.bf16 %v1430_v3  ;;  %v1431_v17 = vunpack.i.l.bf16 %v1430_v3 }
 0x107   : > { %v564_v4 = vrot.slane %v551_v0, 4  ;;  %v563_v5 = vrot.slane %v550_v1, 4 }
 0x108   : > { %v538_v2 = vsel %vm348_vm2, %v418_v23, %v1432_v16  ;;  %v537_v29 = vsel %vm348_vm2, %v417_v22, %v1431_v17 }
 0x109   : > { %v565_v6 = vsel %vm562_vm5, %v563_v5, %v564_v4  ;;  %575 = vst.msk [vmem:[#allocation3] sm:$0xf0] %vm556_vm3, %v563_v5 }
 0x10a   : > { %577 = vst.msk [vmem:[#allocation3 + $0x8] sm:$0xff] %vm576_vm6, %v565_v6 }
 0x110   : > { %v581_v7 = vld [vmem:[#allocation3] sm:$0xff] }
 0x111   : > { %v597_v8 = vld [vmem:[#allocation3] sm:$0xf0]  ;;  %1340 = vmatprep.mubr.msk.bf16.mxu0 %vm576_vm6, %v581_v7  ;;  %v1692_v10 = vld [vmem:[#allocation3 + $0x8] sm:$0xff] }
 0x112   : > { %v617_v11 = vrot.slane %v597_v8, 4  ;;  %v406_v12 = vpop.permute.xlu0 %405  ;;  %1341 = vmatmul.mubr.msk.bf16.vlgmr.msra.gmra.mrb[0].mxu0 %vm576_vm6, %v1692_v10  ;;  %v618_v13 = vrot.slane %v1692_v10, 4 }
 0x113   : > { %1349 = vmatpush3.bf16.msra.mxu0 %v1660_v28  ;;  %v419_v33 = vmul.f32 %v406_v12, %v371_v26 }
 0x114   : > { %v619_v20 = vsel %vm562_vm5, %v617_v11, %v618_v13  ;;  %1350 = vmatprep.subr.bf16.mxu0 %v1689_v9 }
 0x115   : > { %1320 = vmatprep.mubr.msk.bf16.mxu1 %vm576_vm6, %v619_v20 }
 0x116   : > { %v1440_v24 = vpop.permute.xlu0 %1439  ;;  %v411_v25 = vpop.permute.xlu1 %410 }
 0x117   : > { %v1442_v27 = vunpack.i.h.bf16 %v1440_v24  ;;  %v1441_v19 = vunpack.i.l.bf16 %v1440_v24  ;;  %1351 = vmatpush3.bf16.msra.mxu0 %v1689_v9  ;;  %v420_v35 = vmul.f32 %v411_v25, %v372_v18 }
 0x118   : > { %1352 = vmatprep.subr.bf16.mxu0 %v1703_v21 }
 0x119   : > { %v546_v31 = vsel %vm541_vm4, %v537_v29, %v1441_v19  ;;  %v547_v32 = vsel %vm541_vm4, %v538_v2, %v1442_v27 }
 0x11a   : > { %v552_v34 = vpack.c.bf16 %v547_v32, %v546_v31  ;;  %v1450_v36 = vpop.permute.xlu0 %1449  ;;  %v1445_v37 = vpop.permute.xlu1 %1444 }
 0x11b   : > { %v1452_v38 = vunpack.i.h.bf16 %v1450_v36  ;;  %v1451_v39 = vunpack.i.l.bf16 %v1450_v36  ;;  %v1447_v40 = vunpack.i.h.bf16 %v1445_v37  ;;  %v1446_v41 = vunpack.i.l.bf16 %v1445_v37  ;;  %1353 = vmatpush3.bf16.msra.mxu0 %v1703_v21 }
 0x11c   : > { %v566_v42 = vrot.slane %v552_v34, 4  ;;  %1354 = vmatprep.subr.bf16.mxu0 %v1469_v30 }
 0x11d   : > { %v540_v44 = vsel %vm348_vm2, %v420_v35, %v1447_v40  ;;  %v539_v45 = vsel %vm348_vm2, %v419_v33, %v1446_v41 }
 0x11e   : > { %v567_v46 = vsel %vm562_vm5, %v564_v4, %v566_v42  ;;  %v549_v47 = vsel %vm541_vm4, %v540_v44, %v1452_v38  ;;  %v548_v48 = vsel %vm541_vm4, %v539_v45, %v1451_v39 }
 0x11f   : > { %578 = vst.msk [vmem:[#allocation3 + $0x10] sm:$0xff] %vm576_vm6, %v567_v46  ;;  %v553_v49 = vpack.c.bf16 %v549_v47, %v548_v48  ;;  %1355 = vmatpush3.bf16.msra.mxu0 %v1469_v30 }
 0x120   : > { %1356 = vmatprep.subr.bf16.mxu0 %v1470_v43 }
 0x121   : > { %v568_v51 = vrot.slane %v553_v49, 4 }
 0x123   : > { %v569_v52 = vsel %vm562_vm5, %v566_v42, %v568_v51  ;;  %580 = vst.msk [vmem:[#allocation3 + $0x20] sm:$0xf] %vm554_vm0, %v568_v51  ;;  %1357 = vmatpush3.bf16.msra.mxu0 %v1470_v43 }
 0x124   : > { %579 = vst.msk [vmem:[#allocation3 + $0x18] sm:$0xff] %vm576_vm6, %v569_v52  ;;  %1358 = vmatprep.subr.bf16.mxu0 %v1471_v50 }
 0x126   : > { %v583_v53 = vld [vmem:[#allocation3 + $0x10] sm:$0xff] }
 0x127   : > { %v620_v54 = vrot.slane %v583_v53, 4  ;;  %1344 = vmatprep.mubr.msk.bf16.mxu0 %vm576_vm6, %v583_v53  ;;  %1359 = vmatpush3.bf16.msra.mxu0 %v1471_v50 }
 0x129   : > { %v621_v55 = vsel %vm562_vm5, %v618_v13, %v620_v54  ;;  %v1238_v13 = vld [vmem:[%s1803_s3] ss:$0 sm:$0xff] }
 0x12a   : > { %1321 = vmatmul.mubr.msk.bf16.vlgmr.msra.gmra.mrb[0].mxu1 %vm576_vm6, %v621_v55  ;;  %v598_v56 = vld [vmem:[#allocation3 + $0x20] sm:$0xf] }
 0x12b   : > { %1374 = vmatpush3.bf16.msra.mxu1 %v1660_v28  ;;  %v584_v57 = vld [vmem:[#allocation3 + $0x18] sm:$0xff]  ;;  %v624_v59 = vrot.slane %v598_v56, 4  ;;  %v852_v61 = vld [vmem:[#allocation3 + $0x20] sm:$0xff] }
 0x12c   : > { %v622_v58 = vrot.slane %v584_v57, 4  ;;  %1345 = vmatmul.mubr.msk.bf16.gmra.mrb[4].mxu0 %vm576_vm6, %v584_v57  ;;  %1369 = vmatprep.subr.bf16.mxu1 %v1689_v9 }
 0x12d   : > { %1360 = vmatprep.mubr.msk.bf16.mxu0 %vm576_vm6, %v1692_v10 }
 0x12e   : > { %v623_v60 = vsel %vm562_vm5, %v620_v54, %v622_v58  ;;  %v625_v28 = vsel %vm562_vm5, %v622_v58, %v624_v59 }
 0x12f   : > { %1375 = vmatpush3.bf16.msra.mxu1 %v1689_v9  ;;  %1324 = vmatprep.mubr.msk.bf16.mxu1 %vm576_vm6, %v623_v60 }
 0x130   : > { %1370 = vmatprep.subr.bf16.mxu1 %v1703_v21 }
 0x132   : > { %1325 = vmatmul.mubr.msk.bf16.gmra.mrb[4].mxu1 %vm576_vm6, %v625_v28 }
 0x133   : > { %1376 = vmatpush3.bf16.msra.mxu1 %v1703_v21  ;;  %1364 = vmatprep.mubr.msk.bf16.mxu1 %vm576_vm6, %v584_v57 }
 0x134   : > { %1361 = vmatmul.mubr.msk.bf16.vlgmr.msra.gmra.mrb[0].mxu0 %vm576_vm6, %v583_v53  ;;  %1371 = vmatprep.subr.bf16.mxu1 %v1469_v30 }
 0x137   : > { %1377 = vmatpush3.bf16.msra.mxu1 %v1469_v30 }
 0x138   : > { %1372 = vmatprep.subr.bf16.mxu1 %v1470_v43 }
 0x13b   : > { %1378 = vmatpush3.bf16.msra.mxu1 %v1470_v43 }
 0x13c   : > { %1373 = vmatprep.subr.bf16.mxu1 %v1471_v50 }
 0x13f   : > { %1379 = vmatpush3.bf16.msra.mxu1 %v1471_v50 }
 0x142   : > { %1365 = vmatmul.mubr.msk.bf16.vlgmr.msra.gmra.mrb[8].mxu1 %vm576_vm6, %v852_v61 }
 0x1fd   : > { %v1322_v62 = vpop.f32.mrb[0].mxu1 }
 0x1fe   : > { %v708_v63 = vpop.f32.mrb[1].mxu1 }
 0x1ff   : > { %v1323_v0 = vpop.f32.mrb[2].mxu1  ;;  %v1346_v1 = vpop.f32.mrb[4].mxu0 }
 0x200   : > { %v711_v4 = vpop.f32.mrb[3].mxu1  ;;  %v837_v5 = vpop.f32.mrb[5].mxu0 }
 0x201   : > { %v1347_v6 = vpop.f32.mrb[6].mxu0 }
 0x202   : > { %v840_v7 = vpop.f32.mrb[7].mxu0 }
 0x205   : > { %v1326_v8 = vpop.f32.mrb[4].mxu1 }
 0x206   : > { %v846_v9 = vadd.f32 %v1346_v1, %v1326_v8  ;;  %v724_v3 = vpop.f32.mrb[5].mxu1 }
 0x207   : > { %v838_v10 = vadd.f32 %v837_v5, %v724_v3  ;;  %v1327_v11 = vpop.f32.mrb[6].mxu1  ;;  %v1362_v12 = vpop.f32.mrb[0].mxu0 }
 0x208   : > { %v849_v14 = vadd.f32 %v1347_v6, %v1327_v11  ;;  %v1380_v15 = vadd.f32 %v1362_v12, %v1322_v62  ;;  %v727_v16 = vpop.f32.mrb[7].mxu1  ;;  %v939_v17 = vpop.f32.mrb[1].mxu0 }
 0x209   : > { %v841_v20 = vadd.f32 %v840_v7, %v727_v16  ;;  %v1381_v21 = vadd.f32 %v939_v17, %v708_v63  ;;  %v1363_v22 = vpop.f32.mrb[2].mxu0 }
 0x20a   : > { %v987_v23 = vadd.f32 %v1380_v15, %v1238_v13  ;;  %v1382_v24 = vadd.f32 %v1363_v22, %v1323_v0  ;;  %v942_v25 = vpop.f32.mrb[3].mxu0 }
 0x20b   : > { %v985_v26 = vadd.f32 %v1381_v21, %v1238_v13  ;;  %v1383_v27 = vadd.f32 %v942_v25, %v711_v4 }
 0x20c   : > { %v1253_v19 = vpack.c.bf16 %v987_v23, %v987_v23  ;;  %v988_v18 = vadd.f32 %v1382_v24, %v1238_v13  ;;  %v1058_v31 = vmul.f32 %v987_v23, %v987_v23  ;;  %v1037_v38 = vsel %vm348_vm2, %v987_v23, 0.0 }
 0x20d   : > { %v1251_v2 = vpack.c.bf16 %v985_v26, %v985_v26  ;;  %v1056_v29 = vmul.f32 %v985_v26, %v985_v26  ;;  %v986_v30 = vadd.f32 %v1383_v27, %v1238_v13  ;;  %v1034_v33 = vsel %vm348_vm2, %v985_v26, 0.0 }
 0x20e   : > { %1028 = vst.msk [vmem:[%s1757_s9 + $0x8] sm:$0xf] %vm1025_vm7, %v1253_v19  ;;  %v1254_v32 = vpack.c.bf16 %v988_v18, %v988_v18  ;;  %v1059_v40 = vmul.f32 %v988_v18, %v988_v18  ;;  %v1067_v44 = vsel %vm348_vm2, %v1058_v31, 0.0  ;;  %v1039_v45 = vsel %vm348_vm2, %v988_v18, 0.0 }
 0x20f   : > { %1026 = vst.msk [vmem:[%s1757_s9] sm:$0xf] %vm1025_vm7, %v1251_v2  ;;  %v1252_v34 = vpack.c.bf16 %v986_v30, %v986_v30  ;;  %v1035_v35 = vsel %vm348_vm2, %v986_v30, 0.0  ;;  %v1057_v36 = vmul.f32 %v986_v30, %v986_v30  ;;  %v1064_v39 = vsel %vm348_vm2, %v1056_v29, 0.0 }
 0x210   : > { %1029 = vst.msk [vmem:[%s1757_s9 + $0xc] sm:$0xf] %vm1025_vm7, %v1254_v32  ;;  %v1036_v37 = vadd.f32 %v1035_v35, %v1034_v33  ;;  %v1069_v48 = vsel %vm348_vm2, %v1059_v40, 0.0 }
 0x211   : > { %1027 = vst.msk [vmem:[%s1757_s9 + $0x4] sm:$0xf] %vm1025_vm7, %v1252_v34  ;;  %v1065_v41 = vsel %vm348_vm2, %v1057_v36, 0.0 }
 0x212   : > { %v1038_v42 = vadd.f32 %v1037_v38, %v1036_v37  ;;  %v1066_v43 = vadd.f32 %v1065_v41, %v1064_v39 }
 0x214   : > { %v1068_v46 = vadd.f32 %v1067_v44, %v1066_v43  ;;  %v1040_v47 = vadd.f32 %v1039_v45, %v1038_v42 }
 0x215   : > { %v1366_v49 = vpop.f32.mrb[8].mxu1 }
 0x216   : > { %v976_v50 = vadd.f32 %v1366_v49, %v846_v9  ;;  %v955_v51 = vpop.f32.mrb[9].mxu1  ;;  %v1070_v52 = vadd.f32 %v1069_v48, %v1068_v46 }
 0x217   : > { %v974_v53 = vadd.f32 %v955_v51, %v838_v10  ;;  %v1367_v54 = vpop.f32.mrb[10].mxu1 }
 0x218   : > { %v991_v55 = vadd.f32 %v1238_v13, %v976_v50  ;;  %v977_v56 = vadd.f32 %v1367_v54, %v849_v14  ;;  %v958_v57 = vpop.f32.mrb[11].mxu1 }
 0x219   : > { %v989_v58 = vadd.f32 %v1238_v13, %v974_v53  ;;  %v975_v59 = vadd.f32 %v958_v57, %v841_v20 }
 0x21a   : > { %v1257_v60 = vpack.c.bf16 %v991_v55, %v991_v55  ;;  %v992_v28 = vadd.f32 %v1238_v13, %v977_v56  ;;  %v1062_v8 = vmul.f32 %v991_v55, %v991_v55  ;;  %v1045_v11 = vsel %vm348_vm2, %v991_v55, 0.0 }
 0x21b   : > { %v1255_v61 = vpack.c.bf16 %v989_v58, %v989_v58  ;;  %v1041_v62 = vsel %vm348_vm2, %v989_v58, 0.0  ;;  %v1060_v63 = vmul.f32 %v989_v58, %v989_v58  ;;  %v990_v0 = vadd.f32 %v1238_v13, %v975_v59 }
 0x21c   : > { %1032 = vst.msk [vmem:[%s1757_s9 + $0x18] sm:$0xf] %vm1025_vm7, %v1257_v60  ;;  %v1042_v1 = vadd.f32 %v1041_v62, %v1040_v47  ;;  %v1258_v4 = vpack.c.bf16 %v992_v28, %v992_v28  ;;  %v1063_v12 = vmul.f32 %v992_v28, %v992_v28  ;;  %v1047_v15 = vsel %vm348_vm2, %v992_v28, 0.0 }
 0x21d   : > { %1030 = vst.msk [vmem:[%s1757_s9 + $0x10] sm:$0xf] %vm1025_vm7, %v1255_v61  ;;  %v1071_v5 = vsel %vm348_vm2, %v1060_v63, 0.0  ;;  %v1256_v6 = vpack.c.bf16 %v990_v0, %v990_v0  ;;  %v1043_v7 = vsel %vm348_vm2, %v990_v0, 0.0  ;;  %v1061_v10 = vmul.f32 %v990_v0, %v990_v0 }
 0x21e   : > { %v1072_v9 = vadd.f32 %v1071_v5, %v1070_v52  ;;  %1033 = vst.msk [vmem:[%s1757_s9 + $0x1c] sm:$0xf] %vm1025_vm7, %v1258_v4  ;;  %v1044_v3 = vadd.f32 %v1043_v7, %v1042_v1  ;;  %v1075_v17 = vsel %vm348_vm2, %v1062_v8, 0.0  ;;  %v1077_v22 = vsel %vm348_vm2, %v1063_v12, 0.0 }
 0x21f   : > { %1031 = vst.msk [vmem:[%s1757_s9 + $0x14] sm:$0xf] %vm1025_vm7, %v1256_v6  ;;  %v1073_v14 = vsel %vm348_vm2, %v1061_v10, 0.0 }
 0x220   : > { %v1046_v13 = vadd.f32 %v1045_v11, %v1044_v3  ;;  %v1074_v16 = vadd.f32 %v1073_v14, %v1072_v9 }
 0x222   : > { %v1048_v20 = vadd.f32 %v1047_v15, %v1046_v13  ;;  %v1076_v21 = vadd.f32 %v1075_v17, %v1074_v16 }
 0x224   : > { %v1049_v23 = vrot.slane %v1048_v20, 4  ;;  %v1078_v24 = vadd.f32 %v1077_v22, %v1076_v21 }
 0x226   : > { %v1050_v25 = vadd.f32 %v1049_v23, %v1048_v20  ;;  %v1079_v26 = vrot.slane %v1078_v24, 4 }
 0x228   : > { %v1051_v27 = vrot.slane %v1050_v25, 2  ;;  %v1080_v19 = vadd.f32 %v1079_v26, %v1078_v24 }
 0x22a   : > { %v1052_v18 = vadd.f32 %v1051_v27, %v1050_v25  ;;  %v1081_v2 = vrot.slane %v1080_v19, 2 }
 0x22c   : > { %v1053_v29 = vrot.slane %v1052_v18, 1  ;;  %v1082_v30 = vadd.f32 %v1081_v2, %v1080_v19 }
 0x22e   : > { %v1054_v31 = vadd.f32 %v1053_v29, %v1052_v18  ;;  %v1083_v32 = vrot.slane %v1082_v30, 1 }
 0x230   : > { %1055 = vst.msk [vmem:[%s289_s12] sm:$0x1] %vm345_vm1, %v1054_v31  ;;  %v1084_v33 = vadd.f32 %v1083_v32, %v1082_v30 }
 0x232   : > { %1085 = vst.msk [vmem:[%s289_s12 + $0x1] sm:$0x1] %vm345_vm1, %v1084_v33 }
 0x233 PF: > { %s18_s24 = sadd.s32 1, %s1478_s24  }
 0x234   : > { %p15_p4 = scmp.ge.s32.totalorder %s18_s24, 4  }
 0x236   :  { %17 = sbr.rel (!%p15_p4) target bundleno = 1 (0x1), region = 88 }

// kernel: unet_encoder.14
= control target key start
LH: loop header
LB: loop body
LE: loop exit
PB: predicated region body
PF: predicated region fallthrough
CT: control target
= control target key end

     0   :  { %s1224_s24 = smov 0   ;;  %s1447_s0 = inlined_call_operand.vmem [shape: bf16[2,16,64], index: 0, kind: input, shape index: {}]   ;;  %s1448_s1 = inlined_call_operand.vmem [shape: f32[16,2], index: 1, kind: input, shape index: {}]   ;;  %s1449_s2 = inlined_call_operand.vmem [shape: bf16[3,192,64], index: 2, kind: input, shape index: {}]   ;;  %s1450_s3 = inlined_call_operand.vmem [shape: f32[1,64], index: 3, kind: input, shape index: {}]   ;;  %s1451_s4 = inlined_call_operand.vmem [shape: f32[1,64], index: 4, kind: input, shape index: {}]   ;;  %s1452_s5 = inlined_call_operand.vmem [shape: f32[1,64], index: 5, kind: input, shape index: {}]   ;;  %s1453_s6 = inlined_call_operand.vmem [shape: bf16[2,16,64], index: 6, kind: output, shape index: {0}]   ;;  %s1454_s7 = inlined_call_operand.vmem [shape: f32[2,2,64], index: 7, kind: output, shape index: {1}]  }
   0x1 LB: > { %s984_s25 = sadd.s32 4294967295, %s1178_s24   ;;  %p988_p0 = scmp.ge.s32.totalorder %s1178_s24, 1  ;;  %s1178_s24 = sphi %s1224_s24, %s18_s24  }
   0x2   : > { %p240_p1 = scmp.lt.s32.totalorder %s1178_s24, 3 }
   0x4   : > { %p241_p2 = pnand %p988_p0, %p240_p1 }
   0x5   : > { %v321_v0 = vld [vmem:[%s1448_s1] sm:$0xff] (!%p241_p2)  ;;  %p276_p3 = scmp.lt.s32.totalorder (!%p241_p2), %s984_s25, 1  ;;  %v1180_v1 = vmov (!%p241_p2), 0   ;;  %v1181_v2 = vmov (!%p241_p2), 1   ;;  %v322_v3 = vld [vmem:[%s1448_s1 + $0x8] sm:$0xff] (!%p241_p2)  ;;  %vm315_vm0 = vcmask (!%p241_p2), 516096  }
   0x6   : > { %244 = sbr.rel (%p241_p2) target bundleno = 451 (0x1c3), region = 44  ;;  %1120 = vset.pattern.permute.xlu0 (!%p241_p2), %v1180_v1  ;;  %1121 = vset.pattern.permute.xlu1 (!%p241_p2), %v1181_v2  ;;  %v1128_v4 = vld [vmem:[%s1449_s2] sm:$0xff] (!%p241_p2)   ;;  %v1130_v7 = vld [vmem:[%s1449_s2 + $0x8] sm:$0xff] (!%p241_p2)   ;;  %v1132_v13 = vld [vmem:[%s1449_s2 + $0x10] sm:$0xff] (!%p241_p2)   ;;  %v1182_v14 = vmov (!%p241_p2), 0.0   ;;  %vm361_vm1 = vcmask (!%p241_p2), 1041408  }
   0x7   : > { %327 = vperm.xlu0 (!%p241_p2), %1120, %v321_v0   ;;  %340 = vperm.xlu1 (!%p241_p2), %1121, %v321_v0   ;;  %v1129_v5 = vld [vmem:[%s1449_s2 + $0x60] sm:$0xff] (!%p241_p2)   ;;  %v1131_v8 = vld [vmem:[%s1449_s2 + $0x68] sm:$0xff] (!%p241_p2)   ;;  %316 = vst.msk [vmem:[#allocation2] sm:$0x1] (!%p241_p2), %vm315_vm0, %v1182_v14  ;;  %317 = vst.msk [vmem:[#allocation2 + $0x11] sm:$0x1] (!%p241_p2), %vm315_vm0, %v1182_v14 }
   0x8   : > { %665 = vmatprep.subr.bf16.mxu1 (!%p241_p2), %v1180_v1  ;;  %543 = vmatprep.subr.bf16.mxu0 (!%p241_p2), %v1180_v1  ;;  %v994_v6 = vld [vmem:[%s1451_s4] ss:$0 sm:$0xff] (!%p241_p2)  ;;  %v1133_v15 = vld [vmem:[%s1449_s2 + $0x70] sm:$0xff] (!%p241_p2)   ;;  %v1134_v18 = vld [vmem:[%s1449_s2 + $0x18] sm:$0xff] (!%p241_p2)   ;;  %vm362_vm2 = vcmask (!%p241_p2), 521220   ;;  %vm318_vm3 = vcmask (!%p241_p2), 523264  }
   0x9   : > { %666 = vmatpush1.bf16.msra.mxu1 (!%p241_p2), %v1128_v4  ;;  %544 = vmatpush1.bf16.msra.mxu0 (!%p241_p2), %v1129_v5  ;;  %v995_v10 = vld [vmem:[%s1452_s5] ss:$0 sm:$0xff] (!%p241_p2)  ;;  %v1135_v21 = vld [vmem:[%s1449_s2 + $0x78] sm:$0xff] (!%p241_p2)   ;;  %vm365_vm4 = vcmask (!%p241_p2), 1043458   ;;  %vm366_vm5 = vcmask (!%p241_p2), 523270   ;;  %vm1288_vm6 = vmor (!%p241_p2), %vm362_vm2, %vm361_vm1  ;;  %s1183_s15 = smov (!%p241_p2), 64  }
   0xa   : > { %667 = vmatprep.subr.bf16.mxu1 (!%p241_p2), %v1180_v1  ;;  %545 = vmatprep.subr.bf16.mxu0 (!%p241_p2), %v1180_v1  ;;  %364 = vst.msk [vmem:[#allocation3] sm:$0x33] (!%p241_p2), %vm1288_vm6, %v1180_v1  ;;  %vm1297_vm7 = vmor (!%p241_p2), %vm366_vm5, %vm365_vm4  ;;  %v1136_v27 = vld [vmem:[%s1449_s2 + $0x20] sm:$0xff] (!%p241_p2)   ;;  %v1138_v29 = vld [vmem:[%s1449_s2 + $0x28] sm:$0xff] (!%p241_p2)   ;;  %vm378_vm8 = vcmask (!%p241_p2), 1045508   ;;  %vm389_vm9 = vcmask (!%p241_p2), 1043456  }
   0xb   : > { %332 = vperm.xlu0 (!%p241_p2), %1120, %v322_v3   ;;  %344 = vperm.xlu1 (!%p241_p2), %1121, %v322_v3   ;;  %v1137_v28 = vld [vmem:[%s1449_s2 + $0x80] sm:$0xff] (!%p241_p2)   ;;  %368 = vst.msk [vmem:[#allocation3 + $0x10] sm:$0xcc] (!%p241_p2), %vm1297_vm7, %v1180_v1  ;;  %v1139_v30 = vld [vmem:[%s1449_s2 + $0x88] sm:$0xff] (!%p241_p2)   ;;  %v1140_v31 = vld [vmem:[%s1449_s2 + $0x30] sm:$0xff] (!%p241_p2)   ;;  %vm390_vm10 = vcmask (!%p241_p2), 523268  }
   0xc   : > { %v1141_v32 = vld [vmem:[%s1449_s2 + $0x90] sm:$0xff] (!%p241_p2)   ;;  %v1142_v33 = vld [vmem:[%s1449_s2 + $0x38] sm:$0xff] (!%p241_p2)   ;;  %v1144_v35 = vld [vmem:[%s1449_s2 + $0x40] sm:$0xff] (!%p241_p2)   ;;  %vm460_vm13 = vcmask (!%p241_p2), 1045504   ;;  %vm873_vm14 = vcmask (!%p241_p2), 519168  }
   0xd   : > { %s1460_s25 = smov (!%p276_p3, %s984_s25), 1  ;;  %668 = vmatpush1.bf16.msra.mxu1 %v1130_v7  ;;  %546 = vmatpush1.bf16.msra.mxu0 %v1131_v8  ;;  %v1143_v34 = vld [vmem:[%s1449_s2 + $0x98] sm:$0xff]   ;;  %v1145_v36 = vld [vmem:[%s1449_s2 + $0xa0] sm:$0xff]   ;;  %v1146_v37 = vld [vmem:[%s1449_s2 + $0x48] sm:$0xff]  }
   0xe   : > { %s1098_s11 = sshll.u32 %s1460_s25, 3  ;;  %669 = vmatprep.subr.bf16.mxu1 %v1180_v1  ;;  %547 = vmatprep.subr.bf16.mxu0 %v1180_v1  ;;  %v1147_v38 = vld [vmem:[%s1449_s2 + $0xa8] sm:$0xff]   ;;  %v1148_v39 = vld [vmem:[%s1449_s2 + $0x50] sm:$0xff]   ;;  %v1150_v41 = vld [vmem:[%s1449_s2 + $0x58] sm:$0xff]  }
   0xf   : > { %s280_s20 = scalar_lea.vmem %s1447_s0, %s1098_s11  ;;  %1127 = vset.pattern.permute.xlu0 %v1181_v2  ;;  %v1149_v40 = vld [vmem:[%s1449_s2 + $0xb0] sm:$0xff]   ;;  %v1151_v42 = vld [vmem:[%s1449_s2 + $0xb8] sm:$0xff]   ;;  %vm379_vm11 = vmor %vm361_vm1, %vm378_vm8  ;;  %s285_s12 = scalar_lea.vmem %s1453_s6, %s1098_s11 }
  0x10   : > { %v1105_v9 = vld [vmem:[%s280_s20] sm:$0xff]   ;;  %vm391_vm12 = vmor %vm390_vm10, %vm389_vm9  ;;  %v1161_v24 = vld [vmem:[%s1449_s2 + $0xd0] sm:$0xff]   ;;  %s993_s11 = sshll.u32 %s1460_s25, 1 }
  0x11   : > { %v1106_v11 = vunpack.c.l.bf16 %v1105_v9  ;;  %v1107_v12 = vunpack.c.h.bf16 %v1105_v9  ;;  %670 = vmatpush1.bf16.msra.mxu1 %v1132_v13  ;;  %548 = vmatpush1.bf16.msra.mxu0 %v1133_v15  ;;  %v1163_v26 = vld [vmem:[%s1449_s2 + $0xe0] sm:$0xff]  }
  0x12   : > { %671 = vmatprep.subr.bf16.mxu1 %v1180_v1  ;;  %549 = vmatprep.subr.bf16.mxu0 %v1180_v1 }
  0x13   : > { %v302_v16 = vmul.f32 %v1106_v11, %v994_v6  ;;  %v303_v17 = vmul.f32 %v1107_v12, %v994_v6 }
  0x15   : > { %v311_v19 = vadd.f32 %v995_v10, %v302_v16  ;;  %v312_v20 = vadd.f32 %v995_v10, %v303_v17  ;;  %672 = vmatpush1.bf16.msra.mxu1 %v1134_v18  ;;  %550 = vmatpush1.bf16.msra.mxu0 %v1135_v21 }
  0x16   : > { %673 = vmatprep.subr.bf16.mxu1 %v1180_v1  ;;  %551 = vmatprep.subr.bf16.mxu0 %v1180_v1 }
  0x17   : > { %v313_v22 = vmax.f32 %v311_v19, 0.0  ;;  %v314_v23 = vmax.f32 %v312_v20, 0.0  ;;  %v1158_v19 = vld [vmem:[%s1449_s2 + $0xc0] sm:$0xff]  }
  0x19   : > { %320 = vst.msk [vmem:[#allocation2 + $0x9] sm:$0xff] %vm318_vm3, %v314_v23  ;;  %v1122_v25 = vpack.i.bf16 %v314_v23, %v313_v22  ;;  %319 = vst.msk [vmem:[#allocation2 + $0x1] sm:$0xff] %vm318_vm3, %v313_v22  ;;  %674 = vmatpush1.bf16.msra.mxu1 %v1136_v27  ;;  %552 = vmatpush1.bf16.msra.mxu0 %v1137_v28  ;;  %v1160_v23 = vld [vmem:[%s1449_s2 + $0xc8] sm:$0xff]   ;;  %v1165_v28 = vld [vmem:[%s1449_s2 + $0xf0] sm:$0xff]  }
  0x1a   : > { %675 = vmatprep.subr.bf16.mxu1 %v1180_v1  ;;  %553 = vmatprep.subr.bf16.mxu0 %v1180_v1  ;;  %v1164_v27 = vld [vmem:[%s1449_s2 + $0xe8] sm:$0xff]  }
  0x1b   : > { %1123 = vrot.lane.b32.xlu0 %v1122_v25, %s1183_s15  ;;  %v1162_v25 = vld [vmem:[%s1449_s2 + $0xd8] sm:$0xff]   ;;  %s289_s15 = scalar_lea.vmem %s1454_s7, %s993_s11 }
  0x1d   : > { %676 = vmatpush1.bf16.msra.mxu1 %v1138_v29  ;;  %554 = vmatpush1.bf16.msra.mxu0 %v1139_v30  ;;  %v1166_v29 = vld [vmem:[%s1449_s2 + $0xf8] sm:$0xff]   ;;  %v1167_v30 = vld [vmem:[%s1449_s2 + $0x100] sm:$0xff]  }
  0x1e   : > { %677 = vmatprep.subr.bf16.mxu1 %v1180_v1  ;;  %555 = vmatprep.subr.bf16.mxu0 %v1180_v1 }
  0x20   : > { %v323_v46 = vld [vmem:[#allocation2] sm:$0xff]  ;;  %v324_v47 = vld [vmem:[#allocation2 + $0x8] sm:$0xff] }
  0x21   : > { %678 = vmatpush1.bf16.msra.mxu1 %v1140_v31  ;;  %556 = vmatpush1.bf16.msra.mxu0 %v1141_v32  ;;  %v337_v48 = vld [vmem:[#allocation2 + $0x2] sm:$0xff]  ;;  %v338_v50 = vld [vmem:[#allocation2 + $0xa] sm:$0xff] }
  0x22   : > { %679 = vmatprep.subr.bf16.mxu1 %v1180_v1  ;;  %557 = vmatprep.subr.bf16.mxu0 %v1180_v1  ;;  %v1168_v31 = vld [vmem:[%s1449_s2 + $0x108] sm:$0xff]   ;;  %v1169_v32 = vld [vmem:[%s1449_s2 + $0x110] sm:$0xff]  }
  0x25   : > { %680 = vmatpush1.bf16.msra.mxu1 %v1142_v33  ;;  %558 = vmatpush1.bf16.msra.mxu0 %v1143_v34  ;;  %v1170_v33 = vld [vmem:[%s1449_s2 + $0x118] sm:$0xff]  }
  0x26   : > { %681 = vmatprep.subr.bf16.mxu1 %v1180_v1  ;;  %559 = vmatprep.subr.bf16.mxu0 %v1180_v1 }
  0x29   : > { %682 = vmatpush1.bf16.msra.mxu1 %v1144_v35  ;;  %560 = vmatpush1.bf16.msra.mxu0 %v1145_v36 }
  0x2a   : > { %683 = vmatprep.subr.bf16.mxu1 %v1180_v1  ;;  %561 = vmatprep.subr.bf16.mxu0 %v1180_v1 }
  0x2d   : > { %684 = vmatpush1.bf16.msra.mxu1 %v1146_v37  ;;  %562 = vmatpush1.bf16.msra.mxu0 %v1147_v38 }
  0x2e   : > { %685 = vmatprep.subr.bf16.mxu1 %v1180_v1  ;;  %563 = vmatprep.subr.bf16.mxu0 %v1180_v1 }
  0x31   : > { %686 = vmatpush1.bf16.msra.mxu1 %v1148_v39  ;;  %564 = vmatpush1.bf16.msra.mxu0 %v1149_v40 }
  0x32   : > { %687 = vmatprep.subr.bf16.mxu1 %v1180_v1  ;;  %565 = vmatprep.subr.bf16.mxu0 %v1180_v1 }
  0x35   : > { %688 = vmatpush1.bf16.msra.mxu1 %v1150_v41  ;;  %566 = vmatpush1.bf16.msra.mxu0 %v1151_v42 }
  0x36   : > { %813 = vmatprep.subr.bf16.mxu0 %v1180_v1 }
  0x86   : > { %v328_v43 = vpop.permute.xlu0 %327  ;;  %v341_v44 = vpop.permute.xlu1 %340 }
  0x87   : > { %v335_v52 = vmul.f32 %v328_v43, %v323_v46  ;;  %v347_v56 = vmul.f32 %v341_v44, %v337_v48  ;;  %v1093_v46 = vld [vmem:[%s1450_s3] ss:$0 sm:$0xff] }
  0x8a   : > { %v333_v45 = vpop.permute.xlu0 %332  ;;  %v345_v49 = vpop.permute.xlu1 %344 }
  0x8b   : > { %v336_v53 = vmul.f32 %v333_v45, %v324_v47  ;;  %v348_v57 = vmul.f32 %v345_v49, %v338_v50 }
  0x8e   : > { %v1124_v51 = vpop.permute.xlu0 %1123 }
  0x8f   : > { %v1126_v54 = vunpack.i.h.bf16 %v1124_v51  ;;  %v1125_v55 = vunpack.i.l.bf16 %v1124_v51 }
  0x91   : > { %v357_v58 = vsel %vm318_vm3, %v335_v52, %v1125_v55  ;;  %v358_v59 = vsel %vm318_vm3, %v336_v53, %v1126_v54 }
  0x92   : > { %v1100_v60 = vpack.c.bf16 %v347_v56, %v357_v58  ;;  %v1101_v61 = vpack.c.bf16 %v348_v57, %v358_v59 }
  0x94   : > { %v380_v62 = vrot.slane %v1100_v60, 6  ;;  %v382_v63 = vrot.slane %v1101_v61, 6 }
  0x96   : > { %v381_v0 = vrot.slane %v380_v62, 4  ;;  %v384_v2 = vrot.slane %v382_v63, 4  ;;  %388 = vst.msk [vmem:[#allocation3] sm:$0xcc] %vm1297_vm7, %v380_v62 }
  0x98   : > { %v383_v3 = vsel %vm379_vm11, %v381_v0, %v382_v63  ;;  %393 = vst.msk [vmem:[#allocation3 + $0x10] sm:$0x33] %vm1288_vm6, %v384_v2 }
  0x99   : > { %392 = vst.msk [vmem:[#allocation3 + $0x8] sm:$0xff] %vm391_vm12, %v383_v3 }
  0x9d   : > { %v394_v5 = vld [vmem:[#allocation3] sm:$0xff] }
  0x9e   : > { %v420_v7 = vld [vmem:[#allocation3] sm:$0xcc] }
  0x9f   : > { %v421_v4 = vld [vmem:[#allocation3 + $0x10] sm:$0x33] }
  0xa0   : > { %v395_v6 = vld [vmem:[#allocation3 + $0x8] sm:$0xff]  ;;  %v1025_v8 = vcombine.high %v421_v4, %v421_v4  ;;  %v1024_v9 = vcombine.low %v421_v4, %v421_v4  ;;  %v706_v18 = vld [vmem:[#allocation3 + $0x10] sm:$0xff] }
  0xa1   : > { %v1039_v10 = vcombine.low %v394_v5, %v395_v6  ;;  %v1040_v11 = vcombine.high %v394_v5, %v395_v6  ;;  %v1023_v12 = vcombine.high %v420_v7, %v395_v6  ;;  %v1022_v13 = vcombine.low %v420_v7, %v395_v6 }
  0xa2   : > { %v465_v14 = vrot.slane %v1025_v8, 2  ;;  %v462_v15 = vrot.slane %v1024_v9, 2  ;;  %v1079_v22 = vcombine.high %v395_v6, %v706_v18  ;;  %v1078_v34 = vcombine.low %v395_v6, %v706_v18 }
  0xa3   : > { %1053 = vmatprep.mubr.msk.bf16.mxu1 %vm318_vm3, %v1040_v11  ;;  %v464_v16 = vrot.slane %v1023_v12, 2  ;;  %v461_v17 = vrot.slane %v1022_v13, 2 }
  0xa4   : > { %698 = vmatmul.mubr.bf16.vlgmr.msra.gmra.mrb[0].mxu1 %v1039_v10 }
  0xa5   : > { %v466_v20 = vsel %vm460_vm13, %v464_v16, %v465_v14  ;;  %v463_v21 = vsel %vm460_vm13, %v461_v17, %v462_v15 }
  0xa6   : > { %1038 = vmatprep.mubr.msk.bf16.mxu0 %vm318_vm3, %v466_v20 }
  0xa7   : > { %576 = vmatmul.mubr.bf16.vlgmr.msra.gmra.mrb[0].mxu0 %v463_v21 }
  0xa8   : > { %814 = vmatpush1.bf16.msra.mxu0 %v1158_v19  ;;  %1092 = vmatprep.mubr.msk.bf16.mxu0 %vm318_vm3, %v1079_v22 }
  0xa9   : > { %815 = vmatprep.subr.bf16.mxu0 %v1180_v1 }
  0xac   : > { %816 = vmatpush1.bf16.msra.mxu0 %v1160_v23 }
  0xad   : > { %817 = vmatprep.subr.bf16.mxu0 %v1180_v1 }
  0xb0   : > { %818 = vmatpush1.bf16.msra.mxu0 %v1161_v24 }
  0xb1   : > { %819 = vmatprep.subr.bf16.mxu0 %v1180_v1 }
  0xb4   : > { %820 = vmatpush1.bf16.msra.mxu0 %v1162_v25 }
  0xb5   : > { %821 = vmatprep.subr.bf16.mxu0 %v1180_v1 }
  0xb8   : > { %822 = vmatpush1.bf16.msra.mxu0 %v1163_v26 }
  0xb9   : > { %823 = vmatprep.subr.bf16.mxu0 %v1180_v1 }
  0xbc   : > { %824 = vmatpush1.bf16.msra.mxu0 %v1164_v27 }
  0xbd   : > { %825 = vmatprep.subr.bf16.mxu0 %v1180_v1 }
  0xc0   : > { %826 = vmatpush1.bf16.msra.mxu0 %v1165_v28 }
  0xc1   : > { %827 = vmatprep.subr.bf16.mxu0 %v1180_v1 }
  0xc4   : > { %828 = vmatpush1.bf16.msra.mxu0 %v1166_v29 }
  0xc5   : > { %829 = vmatprep.subr.bf16.mxu0 %v1180_v1 }
  0xc8   : > { %830 = vmatpush1.bf16.msra.mxu0 %v1167_v30 }
  0xc9   : > { %831 = vmatprep.subr.bf16.mxu0 %v1180_v1 }
  0xcc   : > { %832 = vmatpush1.bf16.msra.mxu0 %v1168_v31 }
  0xcd   : > { %833 = vmatprep.subr.bf16.mxu0 %v1180_v1 }
  0xd0   : > { %834 = vmatpush1.bf16.msra.mxu0 %v1169_v32 }
  0xd1   : > { %835 = vmatprep.subr.bf16.mxu0 %v1180_v1 }
  0xd4   : > { %836 = vmatpush1.bf16.msra.mxu0 %v1170_v33 }
  0xd7   : > { %846 = vmatmul.mubr.bf16.vlgmr.msra.gmra.mrb[4].mxu0 %v1078_v34 }
 0x177   : > { %v699_v35 = vpop.f32.mrb[0].mxu1 }
 0x178   : > { %v701_v36 = vpop.f32.mrb[1].mxu1 }
 0x179   : > { %v702_v37 = vpop.f32.mrb[2].mxu1 }
 0x17a   : > { %v577_v38 = vpop.f32.mrb[0].mxu0  ;;  %v704_v39 = vpop.f32.mrb[3].mxu1 }
 0x17b   : > { %v700_v40 = vadd.f32 %v699_v35, %v577_v38  ;;  %v579_v41 = vpop.f32.mrb[1].mxu0 }
 0x17c   : > { %v580_v42 = vpop.f32.mrb[2].mxu0 }
 0x17d   : > { %v703_v43 = vadd.f32 %v702_v37, %v580_v42  ;;  %v582_v44 = vpop.f32.mrb[3].mxu0 }
 0x1aa   : > { %v847_v45 = vpop.f32.mrb[4].mxu0 }
 0x1ab   : > { %v854_v1 = vadd.f32 %v847_v45, %v700_v40  ;;  %v849_v47 = vpop.f32.mrb[5].mxu0 }
 0x1ac   : > { %v850_v48 = vpop.f32.mrb[6].mxu0 }
 0x1ad   : > { %v863_v49 = vadd.f32 %v1093_v46, %v854_v1  ;;  %v855_v50 = vadd.f32 %v850_v48, %v703_v43  ;;  %v852_v51 = vpop.f32.mrb[7].mxu0 }
 0x1af   : > { %v1102_v52 = vpack.c.bf16 %v863_v49, %v863_v49  ;;  %v886_v53 = vmul.f32 %v863_v49, %v863_v49  ;;  %v864_v54 = vadd.f32 %v1093_v46, %v855_v50  ;;  %v876_v55 = vsel %vm318_vm3, %v863_v49, 0.0 }
 0x1b1   : > { %874 = vst.msk [vmem:[%s285_s12] sm:$0xf] %vm873_vm14, %v1102_v52  ;;  %v1103_v56 = vpack.c.bf16 %v864_v54, %v864_v54  ;;  %v877_v57 = vsel %vm318_vm3, %v864_v54, 0.0  ;;  %v887_v58 = vmul.f32 %v864_v54, %v864_v54  ;;  %v888_v60 = vsel %vm318_vm3, %v886_v53, 0.0 }
 0x1b2   : > { %v878_v59 = vadd.f32 %v877_v57, %v876_v55 }
 0x1b3   : > { %875 = vst.msk [vmem:[%s285_s12 + $0x4] sm:$0xf] %vm873_vm14, %v1103_v56  ;;  %v889_v61 = vsel %vm318_vm3, %v887_v58, 0.0 }
 0x1b4   : > { %v879_v62 = vrot.slane %v878_v59, 4  ;;  %v890_v63 = vadd.f32 %v889_v61, %v888_v60 }
 0x1b6   : > { %v880_v0 = vadd.f32 %v879_v62, %v878_v59  ;;  %v891_v2 = vrot.slane %v890_v63, 4 }
 0x1b8   : > { %v881_v3 = vrot.slane %v880_v0, 2  ;;  %v892_v4 = vadd.f32 %v891_v2, %v890_v63 }
 0x1ba   : > { %v882_v5 = vadd.f32 %v881_v3, %v880_v0  ;;  %v893_v6 = vrot.slane %v892_v4, 2 }
 0x1bc   : > { %v883_v7 = vrot.slane %v882_v5, 1  ;;  %v894_v8 = vadd.f32 %v893_v6, %v892_v4 }
 0x1be   : > { %v884_v9 = vadd.f32 %v883_v7, %v882_v5  ;;  %v895_v10 = vrot.slane %v894_v8, 1 }
 0x1c0   : > { %885 = vst.msk [vmem:[%s289_s15] sm:$0x1] %vm315_vm0, %v884_v9  ;;  %v896_v11 = vadd.f32 %v895_v10, %v894_v8 }
 0x1c2   : > { %897 = vst.msk [vmem:[%s289_s15 + $0x1] sm:$0x1] %vm315_vm0, %v896_v11 }
 0x1c3 PF: > { %s18_s24 = sadd.s32 1, %s1178_s24  }
 0x1c4   : > { %p15_p4 = scmp.ge.s32.totalorder %s18_s24, 4  }
 0x1c6   :  { %17 = sbr.rel (!%p15_p4) target bundleno = 1 (0x1), region = 88 }

// kernel: unet_encoder.13
= control target key start
LH: loop header
LB: loop body
LE: loop exit
PB: predicated region body
PF: predicated region fallthrough
CT: control target
= control target key end

     0   :  { %14 = vsyncpa [#allocation6], 0  ;;  %s1633_s0 = inlined_call_operand.vmem [shape: bf16[2,64,32], index: 0, kind: input, shape index: {}]   ;;  %s1634_s1 = inlined_call_operand.vmem [shape: f32[1,32], index: 1, kind: input, shape index: {}]   ;;  %s1635_s2 = inlined_call_operand.vmem [shape: f32[1,32], index: 2, kind: input, shape index: {}]   ;;  %s1636_s3 = inlined_call_operand.vmem [shape: f32[16,2], index: 3, kind: input, shape index: {}]   ;;  %s1637_s4 = inlined_call_operand.vmem [shape: bf16[3,96,64], index: 4, kind: input, shape index: {}]   ;;  %s1638_s5 = inlined_call_operand.vmem [shape: f32[1,64], index: 5, kind: input, shape index: {}]   ;;  %s1639_s6 = inlined_call_operand.hbm [shape: f32[2,64,32], index: 6, kind: output, shape index: {0}]   ;;  %s1640_s7 = inlined_call_operand.vmem [shape: bf16[2,16,64], index: 7, kind: output, shape index: {1}]   ;;  %s1641_s8 = inlined_call_operand.vmem [shape: f32[2,2,64], index: 8, kind: output, shape index: {2}]  }
   0x1   :  { %16 = vsyncpa [#allocation6 + $0x1], 0  ;;  %s1339_s27 = smov 0   ;;  %s1341_s28 = smov 0  }
   0x2   :  { %s1343_s29 = smov 0   ;;  %s1345_s30 = smov 0  }
   0x3 LB: > { %s1360_s9 = sadd.s32 4294967295, %s1283_s30   ;;  %s974_s10 = sadd.s32 4294967294, %s1283_s30   ;;  %s1283_s30 = sphi %s1345_s30, %s1647_s30   ;;  %s1279_s29 = sphi %s1343_s29, %s1646_s29   ;;  %s1275_s28 = sphi %s1341_s28, %s1645_s28   ;;  %s1271_s27 = sphi %s1339_s27, %s1644_s27  }
   0x4   : > { %s1364_s11 = sadd.s32 1, %s1283_s30   ;;  %s160_s12 = sadd.s32 1, %s1279_s29 }
   0x5   : > { %s157_s13 = ssub.s32 %s1283_s30, %s1364_s11  ;;  %p170_p0 = scmp.ne.s32.totalorder %s1279_s29, %s1275_s28 }
   0x6   : > { %p158_p1 = scmp.eq.s32.totalorder %s157_s13, 0  ;;  %p171_p2 = scmp.eq.s32.totalorder %s1360_s9, 1 }
   0x7   : > { %p176_p3 = scmp.ne.s32.totalorder %s1275_s28, %s1271_s27  ;;  %p177_p4 = scmp.eq.s32.totalorder %s974_s10, 1 }
   0x8   : > { %s1375_s14 = scalar_select %p158_p1, %s1279_s29, %s160_s12  }
   0x9   : > { %p1377_p5 = por %p171_p2, %p170_p0  ;;  %p1381_p6 = por %p177_p4, %p176_p3 }
   0xa   : > { %p977_p7 = scmp.ge.s32.totalorder %s1283_s30, 1  ;;  %p270_p8 = scmp.lt.s32.totalorder %s1283_s30, 3 }
   0xc   : > { %p271_p9 = pnand %p977_p7, %p270_p8 }
   0xd   : > { %v413_v0 = vld [vmem:[%s1636_s3] sm:$0xff] (!%p271_p9)  ;;  %vm463_vm0 = vcmask (!%p271_p9), 779264   ;;  %vm465_vm1 = vcmask (!%p271_p9), 781314   ;;  %v1285_v1 = vmov (!%p271_p9), 1   ;;  %v1286_v2 = vmov (!%p271_p9), 0   ;;  %p313_p10 = scmp.lt.s32.totalorder (!%p271_p9), %s1360_s9, 1 }
   0xe   : > { %274 = sbr.rel (%p271_p9) target bundleno = 549 (0x225), region = 44  ;;  %1187 = vset.pattern.permute.xlu0 (!%p271_p9), %v1285_v1  ;;  %1188 = vset.pattern.permute.xlu1 (!%p271_p9), %v1286_v2  ;;  %464 = vst.msk [vmem:[#allocation4] sm:$0x3] (!%p271_p9), %vm463_vm0, %v1286_v2  ;;  %vm408_vm2 = vcmask (!%p271_p9), 253952   ;;  %v414_v3 = vld [vmem:[%s1636_s3 + $0x8] sm:$0xff] (!%p271_p9)  ;;  %v1287_v4 = vmov (!%p271_p9), 0.0  }
   0xf   : > { %466 = vst.msk [vmem:[#allocation4 + $0x8] sm:$0xc] (!%p271_p9), %vm465_vm1, %v1286_v2  ;;  %432 = vperm.xlu0 (!%p271_p9), %1187, %v413_v0   ;;  %419 = vperm.xlu1 (!%p271_p9), %1188, %v413_v0   ;;  %v984_v5 = vld [vmem:[%s1634_s1] ss:$0 sm:$0xff] (!%p271_p9)  ;;  %vm382_vm3 = vcmask (!%p271_p9), 261120   ;;  %v1200_v48 = vld [vmem:[%s1637_s4 + $0x30] sm:$0xff] (!%p271_p9)  }
  0x10   : > { %410 = vst.msk [vmem:[#allocation3 + $0x11] sm:$0x1] (!%p271_p9), %vm408_vm2, %v1287_v4  ;;  %409 = vst.msk [vmem:[#allocation3] sm:$0x1] (!%p271_p9), %vm408_vm2, %v1287_v4  ;;  %1108 = vmatprep.subr.bf16.mxu1 (!%p271_p9), %v1287_v4  ;;  %1092 = vmatprep.subr.bf16.mxu0 (!%p271_p9), %v1287_v4  ;;  %v985_v9 = vld [vmem:[%s1635_s2] ss:$0 sm:$0xff] (!%p271_p9) }
  0x11   : > { %v1199_v47 = vld [vmem:[%s1637_s4] sm:$0xff] (!%p271_p9)   ;;  %1093 = vmatpush3.bf16.msra.mxu0 (!%p271_p9), %v1200_v48  ;;  %v1201_v56 = vld [vmem:[%s1637_s4 + $0x8] sm:$0xff] (!%p271_p9)   ;;  %v1202_v57 = vld [vmem:[%s1637_s4 + $0x38] sm:$0xff] (!%p271_p9)   ;;  %vm1289_vm4 = vmmov (!%p271_p9), 0   ;;  %vm459_vm5 = vcmask (!%p271_p9), 523264   ;;  %vm472_vm6 = vcmask (!%p271_p9), 1041408  }
  0x12   : > { %1109 = vmatpush3.bf16.msra.mxu1 (!%p271_p9), %v1199_v47  ;;  %1094 = vmatprep.subr.bf16.mxu0 (!%p271_p9), %v1287_v4  ;;  %v1203_v58 = vld [vmem:[%s1637_s4 + $0x10] sm:$0xff] (!%p271_p9)   ;;  %v1204_v60 = vld [vmem:[%s1637_s4 + $0x40] sm:$0xff] (!%p271_p9)   ;;  %v1205_v63 = vld [vmem:[%s1637_s4 + $0x18] sm:$0xff] (!%p271_p9)   ;;  %vm473_vm7 = vcmask (!%p271_p9), 1045508   ;;  %vm484_vm9 = vcmask (!%p271_p9), 781312   ;;  %vm564_vm10 = vcmask (!%p271_p9), 785408  }
  0x13   : > { %436 = vperm.xlu0 (!%p271_p9), %1187, %v414_v3   ;;  %424 = vperm.xlu1 (!%p271_p9), %1188, %v414_v3   ;;  %v1206_v3 = vld [vmem:[%s1637_s4 + $0x48] sm:$0xff] (!%p271_p9)   ;;  %vm474_vm8 = vmor (!%p271_p9), %vm472_vm6, %vm473_vm7  ;;  %vm524_vm11 = vcmask (!%p271_p9), 1045504   ;;  %s297_s19 = sand.u32 (!%p271_p9), 1, %s1275_s28   ;;  %s1051_s23 = sshll.u32 (!%p271_p9), %s1360_s9, 10 }
  0x14   : > { %1110 = vmatprep.subr.bf16.mxu1 (!%p271_p9), %v1287_v4  ;;  %1120 = vmatprep.mubr.msk.bf16.mxu1 (!%p271_p9), %vm1289_vm4, %v1287_v4  ;;  %s978_s20 = sshll.u32 (!%p271_p9), %s297_s19, 6  ;;  %s1577_s12 = scalar_lea.sflag (!%p271_p9), [#allocation6], %s297_s19 }
  0x15   : > { %s1397_s21 = scalar_select %p313_p10, %s1360_s9, 1  ;;  %1095 = vmatpush3.bf16.msra.mxu0 %v1202_v57  ;;  %1104 = vmatprep.mubr.msk.bf16.mxu0 %vm1289_vm4, %v1287_v4  ;;  %v1214_v57 = vld [vmem:[%s1637_s4 + $0x60] sm:$0xff]  }
  0x16   : > { %1111 = vmatpush3.bf16.msra.mxu1 %v1201_v56  ;;  %1096 = vmatprep.subr.bf16.mxu0 %v1287_v4  ;;  %s1291_s17 = smov [#allocation5]  }
  0x17   : > { %s1045_s22 = sshll.u32 %s1397_s21, 5  ;;  %1112 = vmatprep.subr.bf16.mxu1 %v1287_v4  ;;  %s1225_s9 = sshll.u32 %s1291_s17, 4  ;;  %s1226_s9 = int_to_ptr.vmem [resolvable:$false] %s1225_s9 }
  0x18   : > { %s317_s10 = scalar_lea.vmem %s1633_s0, %s1045_s22  ;;  %s1288_s22 = smov 32  }
  0x19   : > { %v1053_v6 = vld [vmem:[%s317_s10] sm:$0xff]   ;;  %v1068_v7 = vld [vmem:[%s317_s10 + $0x8] sm:$0xff]   ;;  %v1069_v8 = vld [vmem:[%s317_s10 + $0x10] sm:$0xff]   ;;  %1097 = vmatpush3.bf16.msra.mxu0 %v1204_v60  ;;  %s1227_s18 = scalar_lea.vmem %s1226_s9, 2048 }
  0x1a   : > { %v1054_v10 = vunpack.c.l.bf16 %v1053_v6  ;;  %v1055_v11 = vunpack.c.h.bf16 %v1053_v6  ;;  %v1058_v12 = vunpack.c.l.bf16 %v1068_v7  ;;  %v1059_v13 = vunpack.c.h.bf16 %v1068_v7  ;;  %v1070_v14 = vld [vmem:[%s317_s10 + $0x18] sm:$0xff]   ;;  %1113 = vmatpush3.bf16.msra.mxu1 %v1203_v58  ;;  %1098 = vmatprep.subr.bf16.mxu0 %v1287_v4  ;;  %v1208_v7 = vld [vmem:[%s1637_s4 + $0x50] sm:$0xff]   ;;  %s1290_s10 = smov 64  }
  0x1b   : > { %v1062_v15 = vunpack.c.l.bf16 %v1069_v8  ;;  %v1063_v16 = vunpack.c.h.bf16 %v1069_v8  ;;  %v1066_v17 = vunpack.c.l.bf16 %v1070_v14  ;;  %v1067_v18 = vunpack.c.h.bf16 %v1070_v14  ;;  %1114 = vmatprep.subr.bf16.mxu1 %v1287_v4  ;;  %v1209_v8 = vld [vmem:[%s1637_s4 + $0x28] sm:$0xff]   ;;  %v1216_v60 = vld [vmem:[%s1637_s4 + $0x70] sm:$0xff]  }
  0x1c   : > { %v351_v19 = vmul.f32 %v1054_v10, %v984_v5  ;;  %v352_v20 = vmul.f32 %v1055_v11, %v984_v5  ;;  %v353_v21 = vmul.f32 %v1058_v12, %v984_v5  ;;  %v354_v22 = vmul.f32 %v1059_v13, %v984_v5 }
  0x1d   : > { %v355_v23 = vmul.f32 %v1062_v15, %v984_v5  ;;  %v356_v24 = vmul.f32 %v1063_v16, %v984_v5  ;;  %v357_v25 = vmul.f32 %v1066_v17, %v984_v5  ;;  %v358_v26 = vmul.f32 %v1067_v18, %v984_v5  ;;  %v1207_v5 = vld [vmem:[%s1637_s4 + $0x20] sm:$0xff]   ;;  %1099 = vmatpush3.bf16.msra.mxu0 %v1206_v3 }
  0x1e   : > { %v1413_v27 = vadd.f32 %v985_v9, %v351_v19  ;;  %v1415_v28 = vadd.f32 %v985_v9, %v352_v20  ;;  %v1417_v29 = vadd.f32 %v985_v9, %v353_v21  ;;  %v1419_v30 = vadd.f32 %v985_v9, %v354_v22  ;;  %1115 = vmatpush3.bf16.msra.mxu1 %v1205_v63  ;;  %v1219_v63 = vld [vmem:[%s1637_s4 + $0x88] sm:$0xff]  }
  0x1f   : > { %v1421_v31 = vadd.f32 %v985_v9, %v355_v23  ;;  %v1423_v32 = vadd.f32 %v985_v9, %v356_v24  ;;  %v1425_v33 = vadd.f32 %v985_v9, %v357_v25  ;;  %v1427_v34 = vadd.f32 %v985_v9, %v358_v26  ;;  %1116 = vmatprep.subr.bf16.mxu1 %v1287_v4  ;;  %v1210_v9 = vld [vmem:[%s1637_s4 + $0x58] sm:$0xff]  }
  0x20   : > { %v374_v35 = vmax.f32 %v1413_v27, 0.0  ;;  %v375_v36 = vmax.f32 %v1415_v28, 0.0  ;;  %v376_v37 = vmax.f32 %v1417_v29, 0.0  ;;  %v377_v38 = vmax.f32 %v1419_v30, 0.0  ;;  %1100 = vmatprep.subr.bf16.mxu0 %v1287_v4 }
  0x21   : > { %v378_v39 = vmax.f32 %v1421_v31, 0.0  ;;  %v379_v40 = vmax.f32 %v1423_v32, 0.0  ;;  %v380_v41 = vmax.f32 %v1425_v33, 0.0  ;;  %v381_v42 = vmax.f32 %v1427_v34, 0.0  ;;  %1101 = vmatpush3.bf16.msra.mxu0 %v1208_v7 }
  0x22   : > { %v391_v43 = vmax.f32 %v374_v35, %v375_v36  ;;  %v393_v44 = vmax.f32 %v376_v37, %v377_v38  ;;  %1117 = vmatpush3.bf16.msra.mxu1 %v1207_v5  ;;  %1102 = vmatprep.subr.bf16.mxu0 %v1287_v4 }
  0x23   : > { %v395_v45 = vmax.f32 %v378_v39, %v379_v40  ;;  %v397_v46 = vmax.f32 %v380_v41, %v381_v42  ;;  %1118 = vmatprep.subr.bf16.mxu1 %v1287_v4 }
  0x24   : > { %392 = vst.msk [vmem:[#allocation2] sm:$0xff] %vm382_vm3, %v391_v43  ;;  %394 = vst.msk [vmem:[#allocation2 + $0x8] sm:$0xff] %vm382_vm3, %v393_v44 }
  0x25   : > { %396 = vst.msk [vmem:[#allocation2 + $0x10] sm:$0xff] %vm382_vm3, %v395_v45  ;;  %398 = vst.msk [vmem:[#allocation2 + $0x18] sm:$0xff] %vm382_vm3, %v397_v46  ;;  %1103 = vmatpush3.bf16.msra.mxu0 %v1210_v9 }
  0x26   : > { %1119 = vmatpush3.bf16.msra.mxu1 %v1209_v8  ;;  %1124 = vmatprep.subr.bf16.mxu0 %v1287_v4 }
  0x2b   : > { %v399_v49 = vld [vmem:[#allocation2] ss:$2 sm:$0xff]  ;;  %v403_v50 = vld [vmem:[#allocation2 + $0x1] ss:$2 sm:$0xff] }
  0x2c   : > { %v401_v51 = vld [vmem:[#allocation2 + $0x10] ss:$2 sm:$0xff]  ;;  %v405_v52 = vld [vmem:[#allocation2 + $0x11] ss:$2 sm:$0xff]  ;;  %v406_v53 = vmax.f32 %v399_v49, %v403_v50 }
  0x2d   : > { %v407_v54 = vmax.f32 %v401_v51, %v405_v52 }
  0x2e   : > { %411 = vst.msk [vmem:[#allocation3 + $0x1] sm:$0xff] %vm382_vm3, %v406_v53 }
  0x2f   : > { %412 = vst.msk [vmem:[#allocation3 + $0x9] sm:$0xff] %vm382_vm3, %v407_v54  ;;  %v1189_v55 = vpack.i.bf16 %v407_v54, %v406_v53 }
  0x31   : > { %1190 = vrot.lane.b32.xlu0 %v1189_v55, %s1288_s22  ;;  %s299_s22 = scalar_lea.vmem [#allocation5], %s978_s20 }
  0x32   : > { %383 = vst.msk [vmem:[%s299_s22] sm:$0xff] %vm382_vm3, %v374_v35  ;;  %384 = vst.msk [vmem:[%s299_s22 + $0x8] sm:$0xff] %vm382_vm3, %v375_v36  ;;  %s857_s24 = sshll.u32 %s299_s22, 4  ;;  %s1575_s24 = int_to_ptr.vmem [resolvable:$true] %s857_s24 }
  0x33   : > { %385 = vst.msk [vmem:[%s299_s22 + $0x10] sm:$0xff] %vm382_vm3, %v376_v37  ;;  %386 = vst.msk [vmem:[%s299_s22 + $0x18] sm:$0xff] %vm382_vm3, %v377_v38  ;;  %s1221_s13 = scalar_lea.vmem %s1575_s24, 1024  ;;  %p1228_p0 = scmp.lt.s32.totalorder %s1575_s24, %s1226_s9 }
  0x34   : > { %387 = vst.msk [vmem:[%s299_s22 + $0x20] sm:$0xff] %vm382_vm3, %v378_v39  ;;  %388 = vst.msk [vmem:[%s299_s22 + $0x28] sm:$0xff] %vm382_vm3, %v379_v40  ;;  %p1222_p11 = scmp.ne.s32.totalorder %s1575_s24, %s1221_s13  ;;  %p1229_p1 = scmp.lt.s32.totalorder %s1227_s18, %s1221_s13 }
  0x35   : > { %v415_v11 = vld [vmem:[#allocation3] sm:$0xff]  ;;  %389 = vst.msk [vmem:[%s299_s22 + $0x30] sm:$0xff] %vm382_vm3, %v380_v41  ;;  %390 = vst.msk [vmem:[%s299_s22 + $0x38] sm:$0xff] %vm382_vm3, %v381_v42 }
  0x36   : > { %v429_v61 = vld [vmem:[#allocation3 + $0x2] sm:$0xff]  ;;  %v430_v62 = vld [vmem:[#allocation3 + $0xa] sm:$0xff]  ;;  %p1223_p12 = pnand %p1222_p11, %p1377_p5  ;;  %p1230_p2 = por %p1229_p1, %p1228_p0 }
  0x37   : > { %v416_v13 = vld [vmem:[#allocation3 + $0x8] sm:$0xff] }
  0x38   : > { %p1224_p13 = pneg %p1223_p12 }
  0x3a   : > { %p1231_p3 = pnand %p1230_p2, %p1224_p13 }
  0x8e   : > { %v433_v59 = vpop.permute.xlu0 %432  ;;  %v420_v10 = vpop.permute.xlu1 %419 }
  0x8f   : > { %v439_v1 = vmul.f32 %v433_v59, %v429_v61  ;;  %v427_v15 = vmul.f32 %v420_v10, %v415_v11  ;;  %v1215_v59 = vld [vmem:[%s1637_s4 + $0x68] sm:$0xff]   ;;  %v1217_v61 = vld [vmem:[%s1637_s4 + $0x78] sm:$0xff]  }
  0x92   : > { %v437_v0 = vpop.permute.xlu0 %436  ;;  %v425_v12 = vpop.permute.xlu1 %424 }
  0x93   : > { %v440_v2 = vmul.f32 %v437_v0, %v430_v62  ;;  %v428_v16 = vmul.f32 %v425_v12, %v416_v13  ;;  %v1218_v62 = vld [vmem:[%s1637_s4 + $0x80] sm:$0xff]  }
  0x95   : > { %v1194_v6 = vpack.i.bf16 %v440_v2, %v439_v1 }
  0x97   : > { %1195 = vrot.lane.b32.xlu1 %v1194_v6, %s1290_s10  ;;  %s1573_s10 = scalar_lea.hbm %s1639_s6, %s1051_s23 }
  0xa3   : > { %v1191_v14 = vpop.permute.xlu0 %1190 }
  0xa4   : > { %v1193_v17 = vunpack.i.h.bf16 %v1191_v14  ;;  %v1192_v18 = vunpack.i.l.bf16 %v1191_v14 }
  0xa6   : > { %v457_v22 = vsel %vm382_vm3, %v427_v15, %v1192_v18  ;;  %v458_v23 = vsel %vm382_vm3, %v428_v16, %v1193_v17 }
 0x109   : > { %v1196_v19 = vpop.permute.xlu1 %1195 }
 0x10a   : > { %v1198_v20 = vunpack.i.h.bf16 %v1196_v19  ;;  %v1197_v21 = vunpack.i.l.bf16 %v1196_v19 }
 0x10c   : > { %v460_v24 = vsel %vm459_vm5, %v457_v22, %v1197_v21  ;;  %v461_v25 = vsel %vm459_vm5, %v458_v23, %v1198_v20 }
 0x10d   : > { %v1047_v26 = vpack.c.bf16 %v460_v24, %v460_v24  ;;  %v1048_v43 = vpack.c.bf16 %v461_v25, %v461_v25 }
 0x10f   : > { %v475_v44 = vrot.slane %v1047_v26, 6  ;;  %v477_v45 = vrot.slane %v1048_v43, 6 }
 0x111   : > { %v476_v46 = vrot.slane %v475_v44, 4  ;;  %v479_v47 = vrot.slane %v477_v45, 4  ;;  %483 = vst.msk [vmem:[#allocation4] sm:$0xc] %vm465_vm1, %v475_v44 }
 0x113   : > { %v478_v48 = vsel %vm474_vm8, %v476_v46, %v477_v45  ;;  %486 = vst.msk [vmem:[#allocation4 + $0x8] sm:$0x3] %vm463_vm0, %v479_v47 }
 0x114   : > { %485 = vst.msk [vmem:[#allocation4 + $0x4] sm:$0xf] %vm484_vm9, %v478_v48 }
 0x118   : > { %v487_v50 = vld [vmem:[#allocation4] sm:$0xf] }
 0x119   : > { %v501_v52 = vld [vmem:[#allocation4] sm:$0xc] }
 0x11a   : > { %v1213_v49 = vld [vmem:[#allocation4 + $0x8] ss:$0 sps:$4 sm:$0x33]  }
 0x11b   : > { %v488_v51 = vld [vmem:[#allocation4 + $0x4] sm:$0xf]  ;;  %v526_v56 = vrot.slane %v1213_v49, 2  ;;  %v692_v0 = vld [vmem:[#allocation4 + $0x8] sm:$0xf] }
 0x11c   : > { %v1009_v53 = vcombine.low %v487_v50, %v488_v51  ;;  %v1000_v54 = vcombine.low %v501_v52, %v488_v51  ;;  %v1029_v1 = vcombine.low %v488_v51, %v692_v0 }
 0x11e   : > { %1121 = vmatmul.mubr.msk.bf16.vlgmr.msra.gmra.mrb[0].mxu1 %vm564_vm10, %v1009_v53  ;;  %v525_v55 = vrot.slane %v1000_v54, 2 }
 0x120   : > { %v527_v58 = vsel %vm524_vm11, %v525_v55, %v526_v56 }
 0x121   : > { %1105 = vmatmul.mubr.msk.bf16.vlgmr.msra.gmra.mrb[0].mxu0 %vm564_vm10, %v527_v58 }
 0x122   : > { %1125 = vmatpush3.bf16.msra.mxu0 %v1214_v57  ;;  %1136 = vmatprep.mubr.msk.bf16.mxu0 %vm1289_vm4, %v1287_v4 }
 0x123   : > { %1126 = vmatprep.subr.bf16.mxu0 %v1287_v4 }
 0x126   : > { %1127 = vmatpush3.bf16.msra.mxu0 %v1215_v59 }
 0x127   : > { %1128 = vmatprep.subr.bf16.mxu0 %v1287_v4 }
 0x12a   : > { %1129 = vmatpush3.bf16.msra.mxu0 %v1216_v60 }
 0x12b   : > { %1130 = vmatprep.subr.bf16.mxu0 %v1287_v4 }
 0x12e   : > { %1131 = vmatpush3.bf16.msra.mxu0 %v1217_v61 }
 0x12f   : > { %1132 = vmatprep.subr.bf16.mxu0 %v1287_v4 }
 0x132   : > { %1133 = vmatpush3.bf16.msra.mxu0 %v1218_v62 }
 0x133   : > { %1134 = vmatprep.subr.bf16.mxu0 %v1287_v4 }
 0x136   : > { %1135 = vmatpush3.bf16.msra.mxu0 %v1219_v63 }
 0x139   : > { %1137 = vmatmul.mubr.msk.bf16.vlgmr.msra.gmra.mrb[4].mxu0 %vm564_vm10, %v1029_v1 }
 0x13a   : > { %1234 = shalt.err (!%p1231_p3)
}
 0x13b   : > { %s1235_s19 = scalar_lea.hbm %s1573_s10, 1024  ;;  %s1239_s23 = scalar_lea.hbm %s1639_s6, 2048 }
 0x13c   : > { %p1236_p4 = scmp.ne.s32.totalorder %s1573_s10, %s1235_s19  ;;  %p1240_p9 = scmp.lt.u32.totalorder %s1573_s10, %s1639_s6 }
 0x13d   : > { %p1241_p10 = scmp.lt.u32.totalorder %s1239_s23, %s1235_s19  ;;  %p1243_p12 = scmp.lt.u32.totalorder %s1235_s19, %s1573_s10 }
 0x13e   : > { %p1237_p7 = pnand %p1236_p4, %p1377_p5 }
 0x13f   : > { %p1242_p11 = por %p1241_p10, %p1240_p9 }
 0x140   : > { %p1238_p8 = pneg %p1237_p7 }
 0x141   : > { %p1244_p13 = por %p1243_p12, %p1242_p11 }
 0x143   : > { %p1245_p0 = pnand %p1244_p13, %p1238_p8 }
 0x145   : > { %1248 = shalt.err (!%p1245_p0)
}
 0x146   : > { %s1292_s13 = smov 128   ;;  %s1293_s17 = smov 8   ;;  %v1037_v37 = vld [vmem:[%s1638_s5] ss:$0 sm:$0xff]  ;;  %vm808_vm12 = vcmask 519168   ;;  %vm820_vm13 = vcmask 516096  }
 0x147   : > { %1140 = dma.vmem_to_hbm [thread:$0]  (%p1377_p5), %s1575_s24, 1024, %s1573_s10, %s1577_s12, %s1292_s13, %s1292_s13, %s1293_s17  }
 0x148   : > { %s1046_s19 = sshll.u32 %s1397_s21, 3  ;;  %s983_s12 = sshll.u32 %s1397_s21, 1 }
 0x149   : > { %s322_s10 = scalar_lea.vmem %s1640_s7, %s1046_s19  ;;  %s326_s23 = scalar_lea.vmem %s1641_s8, %s983_s12 }
 0x1f1   : > { %v685_v4 = vpop.f32.mrb[0].mxu1 }
 0x1f2   : > { %v1122_v27 = vpop.f32.mrb[1].mxu1 }
 0x1f3   : > { %v688_v28 = vpop.f32.mrb[2].mxu1 }
 0x1f4   : > { %v602_v29 = vpop.f32.mrb[0].mxu0  ;;  %v1123_v30 = vpop.f32.mrb[3].mxu1 }
 0x1f5   : > { %v686_v31 = vadd.f32 %v685_v4, %v602_v29  ;;  %v1106_v32 = vpop.f32.mrb[1].mxu0 }
 0x1f6   : > { %v605_v33 = vpop.f32.mrb[2].mxu0 }
 0x1f7   : > { %v689_v34 = vadd.f32 %v688_v28, %v605_v33  ;;  %v1107_v35 = vpop.f32.mrb[3].mxu0 }
 0x20c   : > { %v782_v36 = vpop.f32.mrb[4].mxu0 }
 0x20d   : > { %v789_v38 = vadd.f32 %v782_v36, %v686_v31  ;;  %v1138_v39 = vpop.f32.mrb[5].mxu0 }
 0x20e   : > { %v785_v40 = vpop.f32.mrb[6].mxu0 }
 0x20f   : > { %v798_v41 = vadd.f32 %v1037_v37, %v789_v38  ;;  %v790_v42 = vadd.f32 %v785_v40, %v689_v34  ;;  %v1139_v2 = vpop.f32.mrb[7].mxu0 }
 0x211   : > { %v1049_v3 = vpack.c.bf16 %v798_v41, %v798_v41  ;;  %v822_v5 = vmul.f32 %v798_v41, %v798_v41  ;;  %v799_v6 = vadd.f32 %v1037_v37, %v790_v42  ;;  %v811_v7 = vsel %vm459_vm5, %v798_v41, 0.0 }
 0x213   : > { %809 = vst.msk [vmem:[%s322_s10] sm:$0xf] %vm808_vm12, %v1049_v3  ;;  %v1050_v8 = vpack.c.bf16 %v799_v6, %v799_v6  ;;  %v812_v9 = vsel %vm459_vm5, %v799_v6, 0.0  ;;  %v823_v10 = vmul.f32 %v799_v6, %v799_v6  ;;  %v824_v12 = vsel %vm459_vm5, %v822_v5, 0.0 }
 0x214   : > { %v813_v11 = vadd.f32 %v812_v9, %v811_v7 }
 0x215   : > { %810 = vst.msk [vmem:[%s322_s10 + $0x4] sm:$0xf] %vm808_vm12, %v1050_v8  ;;  %v825_v13 = vsel %vm459_vm5, %v823_v10, 0.0 }
 0x216   : > { %v814_v14 = vrot.slane %v813_v11, 4  ;;  %v826_v15 = vadd.f32 %v825_v13, %v824_v12 }
 0x218   : > { %v815_v16 = vadd.f32 %v814_v14, %v813_v11  ;;  %v827_v17 = vrot.slane %v826_v15, 4 }
 0x21a   : > { %v816_v18 = vrot.slane %v815_v16, 2  ;;  %v828_v19 = vadd.f32 %v827_v17, %v826_v15 }
 0x21c   : > { %v817_v20 = vadd.f32 %v816_v18, %v815_v16  ;;  %v829_v21 = vrot.slane %v828_v19, 2 }
 0x21e   : > { %v818_v22 = vrot.slane %v817_v20, 1  ;;  %v830_v23 = vadd.f32 %v829_v21, %v828_v19 }
 0x220   : > { %v819_v24 = vadd.f32 %v818_v22, %v817_v20  ;;  %v831_v25 = vrot.slane %v830_v23, 1 }
 0x222   : > { %821 = vst.msk [vmem:[%s326_s23] sm:$0x1] %vm820_vm13, %v819_v24  ;;  %v832_v26 = vadd.f32 %v831_v25, %v830_v23 }
 0x224   : > { %833 = vst.msk [vmem:[%s326_s23 + $0x1] sm:$0x1] %vm820_vm13, %v832_v26 }
 0x225 PF: > { %p1146_p5 = scmp.ge.s32.totalorder %s1283_s30, 2  ;;  %s878_s21 = sand.u32 1, %s1271_s27  }
 0x226   : > { %s879_s25 = scalar_lea.sflag [#allocation6], %s878_s21 }
 0x227   : > { %p1143_p1 = pnand %p1146_p5, %p1381_p6 }
 0x229   : > { %1266 = dma.done.wait (!%p1143_p1), %s879_s25, 1024  }
 0x22a   : > { %1268 = vsyncadd (!%p1143_p1), %s879_s25, 4294966272  ;;  %p19_p2 = scmp.ge.s32.totalorder %s1364_s11, 4   ;;  %s1644_s27 = smov %s1275_s28 }
 0x22b   : > { %s1645_s28 = smov %s1279_s29  ;;  %s1646_s29 = smov %s1375_s14 }
 0x22c   : > { %s1647_s30 = smov %s1364_s11  ;;  %21 = sbr.rel (!%p19_p2) target bundleno = 3 (0x3), region = 108 }
 0x233   :  { %899 = vsyncpa [#allocation6], 1 }
 0x234   :  { %901 = vsyncpa [#allocation6 + $0x1], 1 }

// kernel: unet_encoder.15
= control target key start
LH: loop header
LB: loop body
LE: loop exit
PB: predicated region body
PF: predicated region fallthrough
CT: control target
= control target key end

     0   :  { %14 = vsyncpa [#allocation6], 0  ;;  %s1637_s0 = inlined_call_operand.vmem [shape: bf16[2,16,64], index: 0, kind: input, shape index: {}]   ;;  %s1638_s1 = inlined_call_operand.vmem [shape: f32[1,64], index: 1, kind: input, shape index: {}]   ;;  %s1639_s2 = inlined_call_operand.vmem [shape: f32[1,64], index: 2, kind: input, shape index: {}]   ;;  %s1640_s3 = inlined_call_operand.vmem [shape: f32[4,2], index: 3, kind: input, shape index: {}]   ;;  %s1641_s4 = inlined_call_operand.vmem [shape: bf16[3,192,128], index: 4, kind: input, shape index: {}]   ;;  %s1642_s5 = inlined_call_operand.vmem [shape: f32[1,128], index: 5, kind: input, shape index: {}]   ;;  %s1643_s6 = inlined_call_operand.hbm [shape: f32[2,16,64], index: 6, kind: output, shape index: {0}]   ;;  %s1644_s7 = inlined_call_operand.vmem [shape: bf16[2,4,128], index: 7, kind: output, shape index: {1}]   ;;  %s1645_s8 = inlined_call_operand.vmem [shape: f32[2,2,128], index: 8, kind: output, shape index: {2}]  }
   0x1   :  { %16 = vsyncpa [#allocation6 + $0x1], 0  ;;  %s1346_s27 = smov 0   ;;  %s1348_s28 = smov 0  }
   0x2   :  { %s1350_s29 = smov 0   ;;  %s1352_s30 = smov 0  }
   0x3 LB: > { %s1367_s9 = sadd.s32 4294967295, %s1292_s30   ;;  %s1023_s10 = sadd.s32 4294967294, %s1292_s30   ;;  %s1292_s30 = sphi %s1352_s30, %s1651_s30   ;;  %s1288_s29 = sphi %s1350_s29, %s1650_s29   ;;  %s1284_s28 = sphi %s1348_s28, %s1649_s28   ;;  %s1280_s27 = sphi %s1346_s27, %s1648_s27  }
   0x4   : > { %s1371_s11 = sadd.s32 1, %s1292_s30   ;;  %s160_s12 = sadd.s32 1, %s1288_s29 }
   0x5   : > { %s157_s13 = ssub.s32 %s1292_s30, %s1371_s11  ;;  %p170_p0 = scmp.ne.s32.totalorder %s1288_s29, %s1284_s28 }
   0x6   : > { %p158_p1 = scmp.eq.s32.totalorder %s157_s13, 0  ;;  %p171_p2 = scmp.eq.s32.totalorder %s1367_s9, 1 }
   0x7   : > { %p176_p3 = scmp.ne.s32.totalorder %s1284_s28, %s1280_s27  ;;  %p177_p4 = scmp.eq.s32.totalorder %s1023_s10, 1 }
   0x8   : > { %s1382_s14 = scalar_select %p158_p1, %s1288_s29, %s160_s12  }
   0x9   : > { %p1384_p5 = por %p171_p2, %p170_p0  ;;  %p1388_p6 = por %p177_p4, %p176_p3 }
   0xa   : > { %p1026_p7 = scmp.ge.s32.totalorder %s1292_s30, 1  ;;  %p270_p8 = scmp.lt.s32.totalorder %s1292_s30, 3 }
   0xc   : > { %p271_p9 = pnand %p1026_p7, %p270_p8 }
   0xd   : > { %v372_v0 = vld [vmem:[%s1640_s3] sm:$0xf] (!%p271_p9)  ;;  %p312_p10 = scmp.lt.s32.totalorder (!%p271_p9), %s1367_s9, 1  ;;  %v1294_v1 = vmov (!%p271_p9), 0   ;;  %v1190_v5 = vld [vmem:[%s1641_s4 + $0x8] sm:$0xff] (!%p271_p9)   ;;  %vm368_vm0 = vcmask (!%p271_p9), 516096  }
   0xe   : > { %274 = sbr.rel (%p271_p9) target bundleno = 462 (0x1ce), region = 44  ;;  %1186 = vset.pattern.permute.xlu0 (!%p271_p9), %v1294_v1  ;;  %667 = vmatprep.subr.bf16.mxu1 (!%p271_p9), %v1294_v1  ;;  %v1188_v2 = vld [vmem:[%s1641_s4] sm:$0xff] (!%p271_p9)   ;;  %v1191_v6 = vld [vmem:[%s1641_s4 + $0x68] sm:$0xff] (!%p271_p9)   ;;  %v1295_v7 = vmov (!%p271_p9), 1   ;;  %v1192_v12 = vld [vmem:[%s1641_s4 + $0x10] sm:$0xff] (!%p271_p9)   ;;  %v1296_v13 = vmov (!%p271_p9), 0.0  }
   0xf   : > { %376 = vperm.xlu0 (!%p271_p9), %1186, %v372_v0   ;;  %546 = vmatprep.subr.bf16.mxu0 (!%p271_p9), %v1294_v1  ;;  %v1189_v3 = vld [vmem:[%s1641_s4 + $0x60] sm:$0xff] (!%p271_p9)   ;;  %369 = vst.msk [vmem:[#allocation3] sm:$0x1] (!%p271_p9), %vm368_vm0, %v1296_v13  ;;  %370 = vst.msk [vmem:[#allocation3 + $0x5] sm:$0x1] (!%p271_p9), %vm368_vm0, %v1296_v13  ;;  %v1193_v14 = vld [vmem:[%s1641_s4 + $0x70] sm:$0xff] (!%p271_p9)  }
  0x10   : > { %668 = vmatpush1.bf16.msra.mxu1 (!%p271_p9), %v1188_v2  ;;  %v1032_v4 = vld [vmem:[%s1638_s1] ss:$0 sm:$0xff] (!%p271_p9)  ;;  %547 = vmatpush1.bf16.msra.mxu0 (!%p271_p9), %v1189_v3  ;;  %v1194_v19 = vld [vmem:[%s1641_s4 + $0x18] sm:$0xff] (!%p271_p9)   ;;  %vm357_vm1 = vcmask (!%p271_p9), 519168   ;;  %v1198_v29 = vld [vmem:[%s1641_s4 + $0x28] sm:$0xff] (!%p271_p9)   ;;  %vm393_vm2 = vcmask (!%p271_p9), 1040384  }
  0x11   : > { %669 = vmatprep.subr.bf16.mxu1 (!%p271_p9), %v1294_v1  ;;  %548 = vmatprep.subr.bf16.mxu0 (!%p271_p9), %v1294_v1  ;;  %v1033_v9 = vld [vmem:[%s1639_s2] ss:$0 sm:$0xff] (!%p271_p9)  ;;  %v1195_v20 = vld [vmem:[%s1641_s4 + $0x78] sm:$0xff] (!%p271_p9)   ;;  %v1199_v30 = vld [vmem:[%s1641_s4 + $0x88] sm:$0xff] (!%p271_p9)   ;;  %vm394_vm3 = vcmask (!%p271_p9), 520196   ;;  %vm397_vm4 = vcmask (!%p271_p9), 1043459  }
  0x12   : > { %v1196_v25 = vld [vmem:[%s1641_s4 + $0x20] sm:$0xff] (!%p271_p9)   ;;  %v1200_v31 = vld [vmem:[%s1641_s4 + $0x30] sm:$0xff] (!%p271_p9)   ;;  %v1202_v33 = vld [vmem:[%s1641_s4 + $0x38] sm:$0xff] (!%p271_p9)   ;;  %vm398_vm5 = vcmask (!%p271_p9), 523271   ;;  %s1297_s25 = smov (!%p271_p9), 64   ;;  %vm350_vm8 = vcmask (!%p271_p9), 523264  }
  0x13   : > { %1187 = vset.pattern.permute.xlu0 (!%p271_p9), %v1295_v7  ;;  %v1197_v26 = vld [vmem:[%s1641_s4 + $0x80] sm:$0xff] (!%p271_p9)   ;;  %v1201_v32 = vld [vmem:[%s1641_s4 + $0x90] sm:$0xff] (!%p271_p9)   ;;  %vm395_vm6 = vmor (!%p271_p9), %vm394_vm3, %vm393_vm2  ;;  %vm408_vm9 = vcmask (!%p271_p9), 1042433   ;;  %vm409_vm10 = vcmask (!%p271_p9), 522245   ;;  %s297_s13 = sand.u32 (!%p271_p9), 1, %s1284_s28   ;;  %s1136_s19 = sshll.u32 (!%p271_p9), %s1367_s9, 8 }
  0x14   : > { %382 = vperm.xlu0 (!%p271_p9), %1187, %v372_v0   ;;  %670 = vmatpush1.bf16.msra.mxu1 (!%p271_p9), %v1190_v5  ;;  %v1203_v37 = vld [vmem:[%s1641_s4 + $0x98] sm:$0xff] (!%p271_p9)   ;;  %396 = vst.msk [vmem:[#allocation4] sm:$0x11] (!%p271_p9), %vm395_vm6, %v1294_v1  ;;  %vm399_vm7 = vmor (!%p271_p9), %vm398_vm5, %vm397_vm4  ;;  %v1204_v38 = vld [vmem:[%s1641_s4 + $0x40] sm:$0xff] (!%p271_p9)   ;;  %s1027_s17 = sshll.u32 (!%p271_p9), %s297_s13, 4  ;;  %s1298_s10 = smov (!%p271_p9), [#allocation5]  }
  0x15   : > { %s1404_s21 = scalar_select %p312_p10, %s1367_s9, 1  ;;  %549 = vmatpush1.bf16.msra.mxu0 %v1191_v6  ;;  %671 = vmatprep.subr.bf16.mxu1 %v1294_v1  ;;  %400 = vst.msk [vmem:[#allocation4] sm:$0x88] %vm399_vm7, %v1294_v1  ;;  %v1205_v39 = vld [vmem:[%s1641_s4 + $0xa0] sm:$0xff]   ;;  %v1206_v40 = vld [vmem:[%s1641_s4 + $0x48] sm:$0xff]   ;;  %v1208_v42 = vld [vmem:[%s1641_s4 + $0x50] sm:$0xff]  }
  0x16   : > { %550 = vmatprep.subr.bf16.mxu0 %v1294_v1  ;;  %v1207_v41 = vld [vmem:[%s1641_s4 + $0xa8] sm:$0xff]   ;;  %v1209_v43 = vld [vmem:[%s1641_s4 + $0xb0] sm:$0xff]   ;;  %v1210_v44 = vld [vmem:[%s1641_s4 + $0x58] sm:$0xff]   ;;  %s1234_s9 = sshll.u32 %s1298_s10, 4  ;;  %s1235_s9 = int_to_ptr.vmem [resolvable:$false] %s1234_s9 }
  0x17   : > { %s1134_s24 = sshll.u32 %s1404_s21, 3  ;;  %v1211_v45 = vld [vmem:[%s1641_s4 + $0xb8] sm:$0xff]   ;;  %vm410_vm11 = vmor %vm409_vm10, %vm408_vm9  ;;  %v1216_v3 = vld [vmem:[%s1641_s4 + $0xc0] sm:$0xff]   ;;  %s1236_s12 = scalar_lea.vmem %s1235_s9, 512 }
  0x18   : > { %s316_s18 = scalar_lea.vmem %s1637_s0, %s1134_s24  ;;  %672 = vmatpush1.bf16.msra.mxu1 %v1192_v12  ;;  %v1218_v5 = vld [vmem:[%s1641_s4 + $0xc8] sm:$0xff]   ;;  %v1219_v6 = vld [vmem:[%s1641_s4 + $0xd0] sm:$0xff]   ;;  %v1220_v7 = vld [vmem:[%s1641_s4 + $0xd8] sm:$0xff]   ;;  %s1586_s24 = scalar_lea.sflag [#allocation6], %s297_s13 }
  0x19   : > { %v1138_v8 = vld [vmem:[%s316_s18] sm:$0xff]   ;;  %551 = vmatpush1.bf16.msra.mxu0 %v1193_v14  ;;  %673 = vmatprep.subr.bf16.mxu1 %v1294_v1  ;;  %v1226_v13 = vld [vmem:[%s1641_s4 + $0x108] sm:$0xff]   ;;  %v1227_v14 = vld [vmem:[%s1641_s4 + $0x110] sm:$0xff]   ;;  %s299_s18 = scalar_lea.vmem [#allocation5], %s1027_s17 }
  0x1a   : > { %v1139_v10 = vunpack.c.l.bf16 %v1138_v8  ;;  %v1140_v11 = vunpack.c.h.bf16 %v1138_v8  ;;  %552 = vmatprep.subr.bf16.mxu0 %v1294_v1  ;;  %v1221_v8 = vld [vmem:[%s1641_s4 + $0xe0] sm:$0xff]   ;;  %s907_s20 = sshll.u32 %s299_s18, 4  ;;  %s1584_s20 = int_to_ptr.vmem [resolvable:$true] %s907_s20 }
  0x1b   : > { %v1225_v12 = vld [vmem:[%s1641_s4 + $0x100] sm:$0xff]   ;;  %s1230_s26 = scalar_lea.vmem %s1584_s20, 256  ;;  %p1237_p0 = scmp.lt.s32.totalorder %s1584_s20, %s1235_s9 }
  0x1c   : > { %v337_v15 = vmul.f32 %v1139_v10, %v1032_v4  ;;  %v338_v16 = vmul.f32 %v1140_v11, %v1032_v4  ;;  %674 = vmatpush1.bf16.msra.mxu1 %v1194_v19  ;;  %v1223_v10 = vld [vmem:[%s1641_s4 + $0xf0] sm:$0xff]   ;;  %v1224_v11 = vld [vmem:[%s1641_s4 + $0xf8] sm:$0xff]   ;;  %p1231_p11 = scmp.ne.s32.totalorder %s1584_s20, %s1230_s26  ;;  %p1238_p1 = scmp.lt.s32.totalorder %s1236_s12, %s1230_s26 }
  0x1d   : > { %553 = vmatpush1.bf16.msra.mxu0 %v1195_v20  ;;  %675 = vmatprep.subr.bf16.mxu1 %v1294_v1 }
  0x1e   : > { %v346_v17 = vadd.f32 %v1033_v9, %v337_v15  ;;  %v347_v18 = vadd.f32 %v1033_v9, %v338_v16  ;;  %554 = vmatprep.subr.bf16.mxu0 %v1294_v1  ;;  %v1222_v9 = vld [vmem:[%s1641_s4 + $0xe8] sm:$0xff]   ;;  %v1228_v15 = vld [vmem:[%s1641_s4 + $0x118] sm:$0xff]   ;;  %p1232_p12 = pnand %p1231_p11, %p1384_p5  ;;  %p1239_p2 = por %p1238_p1, %p1237_p0 }
  0x20   : > { %v1443_v21 = vmax.f32 %v346_v17, 0.0  ;;  %v1445_v22 = vmax.f32 %v347_v18, 0.0  ;;  %676 = vmatpush1.bf16.msra.mxu1 %v1196_v25  ;;  %p1233_p13 = pneg %p1232_p12 }
  0x21   : > { %555 = vmatpush1.bf16.msra.mxu0 %v1197_v26  ;;  %677 = vmatprep.subr.bf16.mxu1 %v1294_v1 }
  0x22   : > { %v354_v23 = vrot.slane %v1443_v21, 4  ;;  %v360_v24 = vrot.slane %v1445_v22, 4  ;;  %556 = vmatprep.subr.bf16.mxu0 %v1294_v1  ;;  %351 = vst.msk [vmem:[%s299_s18] sm:$0xff] %vm350_vm8, %v1443_v21  ;;  %352 = vst.msk [vmem:[%s299_s18 + $0x8] sm:$0xff] %vm350_vm8, %v1445_v22  ;;  %p1240_p3 = pnand %p1239_p2, %p1233_p13 }
  0x24   : > { %v356_v27 = vmax.f32 %v1443_v21, %v354_v23  ;;  %v362_v28 = vmax.f32 %v1445_v22, %v360_v24  ;;  %678 = vmatpush1.bf16.msra.mxu1 %v1198_v29 }
  0x25   : > { %557 = vmatpush1.bf16.msra.mxu0 %v1199_v30  ;;  %679 = vmatprep.subr.bf16.mxu1 %v1294_v1 }
  0x26   : > { %358 = vst.msk [vmem:[#allocation2] sm:$0xf] %vm357_vm1, %v356_v27  ;;  %363 = vst.msk [vmem:[#allocation2 + $0x4] sm:$0xf] %vm357_vm1, %v362_v28  ;;  %558 = vmatprep.subr.bf16.mxu0 %v1294_v1 }
  0x28   : > { %680 = vmatpush1.bf16.msra.mxu1 %v1200_v31 }
  0x29   : > { %559 = vmatpush1.bf16.msra.mxu0 %v1201_v32  ;;  %681 = vmatprep.subr.bf16.mxu1 %v1294_v1 }
  0x2a   : > { %560 = vmatprep.subr.bf16.mxu0 %v1294_v1 }
  0x2c   : > { %682 = vmatpush1.bf16.msra.mxu1 %v1202_v33 }
  0x2d   : > { %v364_v34 = vld [vmem:[#allocation2] ss:$2 sm:$0xf]  ;;  %v366_v35 = vld [vmem:[#allocation2 + $0x1] ss:$2 sm:$0xf]  ;;  %561 = vmatpush1.bf16.msra.mxu0 %v1203_v37  ;;  %683 = vmatprep.subr.bf16.mxu1 %v1294_v1 }
  0x2e   : > { %v367_v36 = vmax.f32 %v364_v34, %v366_v35  ;;  %562 = vmatprep.subr.bf16.mxu0 %v1294_v1 }
  0x30   : > { %387 = vrot.lane.b32.xlu1 %v367_v36, %s1297_s25  ;;  %371 = vst.msk [vmem:[#allocation3 + $0x1] sm:$0xf] %vm357_vm1, %v367_v36  ;;  %684 = vmatpush1.bf16.msra.mxu1 %v1204_v38  ;;  %s1582_s25 = scalar_lea.hbm %s1643_s6, %s1136_s19 }
  0x31   : > { %563 = vmatpush1.bf16.msra.mxu0 %v1205_v39  ;;  %685 = vmatprep.subr.bf16.mxu1 %v1294_v1 }
  0x32   : > { %564 = vmatprep.subr.bf16.mxu0 %v1294_v1 }
  0x34   : > { %686 = vmatpush1.bf16.msra.mxu1 %v1206_v40 }
  0x35   : > { %565 = vmatpush1.bf16.msra.mxu0 %v1207_v41  ;;  %687 = vmatprep.subr.bf16.mxu1 %v1294_v1 }
  0x36   : > { %566 = vmatprep.subr.bf16.mxu0 %v1294_v1 }
  0x37   : > { %v380_v48 = vld [vmem:[#allocation3 + $0x2] sm:$0xf] }
  0x38   : > { %688 = vmatpush1.bf16.msra.mxu1 %v1208_v42  ;;  %v373_v49 = vld [vmem:[#allocation3] sm:$0xf] }
  0x39   : > { %567 = vmatpush1.bf16.msra.mxu0 %v1209_v43  ;;  %689 = vmatprep.subr.bf16.mxu1 %v1294_v1 }
  0x3a   : > { %568 = vmatprep.subr.bf16.mxu0 %v1294_v1 }
  0x3c   : > { %690 = vmatpush1.bf16.msra.mxu1 %v1210_v44 }
  0x3d   : > { %569 = vmatpush1.bf16.msra.mxu0 %v1211_v45 }
  0x3e   : > { %816 = vmatprep.subr.bf16.mxu0 %v1294_v1 }
  0x8e   : > { %v377_v46 = vpop.permute.xlu0 %376 }
  0x8f   : > { %v379_v51 = vmul.f32 %v377_v46, %v373_v49 }
  0x93   : > { %v383_v47 = vpop.permute.xlu0 %382 }
  0x94   : > { %v385_v50 = vmul.f32 %v383_v47, %v380_v48 }
  0xa2   : > { %v388_v52 = vpop.permute.xlu1 %387 }
  0xa3   : > { %v390_v53 = vsel %vm350_vm8, %v379_v51, %v388_v52 }
  0xa4   : > { %v1135_v54 = vpack.c.bf16 %v385_v50, %v390_v53 }
  0xa6   : > { %v406_v55 = vrot.slane %v1135_v54, 7 }
  0xa8   : > { %411 = vst.msk [vmem:[#allocation4] sm:$0x66] %vm410_vm11, %v406_v55 }
  0xaf   : > { %v412_v56 = vld [vmem:[#allocation4] sm:$0x33]  ;;  %v707_v58 = vld [vmem:[#allocation4] sm:$0xcc] }
  0xb0   : > { %v437_v57 = vld [vmem:[#allocation4] sm:$0x66]  ;;  %v1074_v59 = vcombine.low %v412_v56, %v412_v56  ;;  %v1075_v60 = vcombine.high %v412_v56, %v412_v56  ;;  %v1114_v63 = vcombine.high %v707_v58, %v707_v58  ;;  %v1113_v16 = vcombine.low %v707_v58, %v707_v58 }
  0xb1   : > { %v1059_v61 = vcombine.low %v437_v57, %v437_v57  ;;  %v1060_v62 = vcombine.high %v437_v57, %v437_v57 }
  0xb2   : > { %1088 = vmatprep.mubr.msk.bf16.mxu1 %vm350_vm8, %v1075_v60  ;;  %v739_v4 = vrot.slane %v1114_v63, 2  ;;  %v738_v17 = vrot.slane %v1113_v16, 2 }
  0xb3   : > { %v469_v0 = vrot.slane %v1060_v62, 1  ;;  %v468_v2 = vrot.slane %v1059_v61, 1  ;;  %700 = vmatmul.mubr.bf16.vlgmr.msra.gmra.mrb[0].mxu1 %v1074_v59 }
  0xb5   : > { %1073 = vmatprep.mubr.msk.bf16.mxu0 %vm350_vm8, %v469_v0 }
  0xb6   : > { %579 = vmatmul.mubr.bf16.vlgmr.msra.gmra.mrb[0].mxu0 %v468_v2 }
  0xb7   : > { %817 = vmatpush1.bf16.msra.mxu0 %v1216_v3  ;;  %1127 = vmatprep.mubr.msk.bf16.mxu0 %vm350_vm8, %v739_v4 }
  0xb8   : > { %818 = vmatprep.subr.bf16.mxu0 %v1294_v1 }
  0xbb   : > { %819 = vmatpush1.bf16.msra.mxu0 %v1218_v5 }
  0xbc   : > { %820 = vmatprep.subr.bf16.mxu0 %v1294_v1 }
  0xbf   : > { %821 = vmatpush1.bf16.msra.mxu0 %v1219_v6 }
  0xc0   : > { %822 = vmatprep.subr.bf16.mxu0 %v1294_v1 }
  0xc3   : > { %823 = vmatpush1.bf16.msra.mxu0 %v1220_v7 }
  0xc4   : > { %824 = vmatprep.subr.bf16.mxu0 %v1294_v1 }
  0xc7   : > { %825 = vmatpush1.bf16.msra.mxu0 %v1221_v8 }
  0xc8   : > { %826 = vmatprep.subr.bf16.mxu0 %v1294_v1 }
  0xcb   : > { %827 = vmatpush1.bf16.msra.mxu0 %v1222_v9 }
  0xcc   : > { %828 = vmatprep.subr.bf16.mxu0 %v1294_v1 }
  0xcf   : > { %829 = vmatpush1.bf16.msra.mxu0 %v1223_v10 }
  0xd0   : > { %830 = vmatprep.subr.bf16.mxu0 %v1294_v1 }
  0xd3   : > { %831 = vmatpush1.bf16.msra.mxu0 %v1224_v11 }
  0xd4   : > { %832 = vmatprep.subr.bf16.mxu0 %v1294_v1 }
  0xd7   : > { %833 = vmatpush1.bf16.msra.mxu0 %v1225_v12 }
  0xd8   : > { %834 = vmatprep.subr.bf16.mxu0 %v1294_v1 }
  0xdb   : > { %835 = vmatpush1.bf16.msra.mxu0 %v1226_v13 }
  0xdc   : > { %836 = vmatprep.subr.bf16.mxu0 %v1294_v1 }
  0xdf   : > { %837 = vmatpush1.bf16.msra.mxu0 %v1227_v14 }
  0xe0   : > { %838 = vmatprep.subr.bf16.mxu0 %v1294_v1 }
  0xe3   : > { %839 = vmatpush1.bf16.msra.mxu0 %v1228_v15 }
  0xe6   : > { %849 = vmatmul.mubr.bf16.vlgmr.msra.gmra.mrb[4].mxu0 %v738_v17 }
  0xe7   : > { %1243 = shalt.err (!%p1240_p3)
}
  0xe8   : > { %s1244_s13 = scalar_lea.hbm %s1582_s25, 256  ;;  %s1248_s19 = scalar_lea.hbm %s1643_s6, 512 }
  0xe9   : > { %p1245_p4 = scmp.ne.s32.totalorder %s1582_s25, %s1244_s13  ;;  %p1249_p9 = scmp.lt.u32.totalorder %s1582_s25, %s1643_s6 }
  0xea   : > { %p1250_p10 = scmp.lt.u32.totalorder %s1248_s19, %s1244_s13  ;;  %p1252_p12 = scmp.lt.u32.totalorder %s1244_s13, %s1582_s25 }
  0xeb   : > { %p1246_p7 = pnand %p1245_p4, %p1384_p5 }
  0xec   : > { %p1251_p11 = por %p1250_p10, %p1249_p9 }
  0xed   : > { %p1247_p8 = pneg %p1246_p7 }
  0xee   : > { %p1253_p13 = por %p1252_p12, %p1251_p11 }
  0xf0   : > { %p1254_p0 = pnand %p1253_p13, %p1247_p8 }
  0xf2   : > { %1257 = shalt.err (!%p1254_p0)
}
  0xf3   : > { %s1299_s26 = smov 128   ;;  %s1300_s10 = smov 8   ;;  %v1128_v27 = vld [vmem:[%s1642_s5] ss:$0 sm:$0xff]  ;;  %vm867_vm12 = vcmask 1043456  }
  0xf4   : > { %1141 = dma.vmem_to_hbm [thread:$0]  (%p1384_p5), %s1584_s20, 256, %s1582_s25, %s1586_s24, %s1299_s26, %s1299_s26, %s1300_s10  }
  0xf5   : > { %s1030_s13 = sshll.u32 %s1404_s21, 1 }
  0xf6   : > { %s320_s25 = scalar_lea.vmem %s1644_s7, %s1030_s13  ;;  %s324_s17 = scalar_lea.vmem %s1645_s8, %s1030_s13 }
 0x186   : > { %v701_v1 = vpop.f32.mrb[0].mxu1 }
 0x187   : > { %v703_v18 = vpop.f32.mrb[1].mxu1 }
 0x188   : > { %v704_v20 = vpop.f32.mrb[2].mxu1 }
 0x189   : > { %v580_v19 = vpop.f32.mrb[0].mxu0  ;;  %v705_v23 = vpop.f32.mrb[3].mxu1 }
 0x18a   : > { %v702_v21 = vadd.f32 %v701_v1, %v580_v19  ;;  %v582_v22 = vpop.f32.mrb[1].mxu0 }
 0x18b   : > { %v583_v24 = vpop.f32.mrb[2].mxu0 }
 0x18c   : > { %v584_v25 = vpop.f32.mrb[3].mxu0 }
 0x1b9   : > { %v850_v26 = vpop.f32.mrb[4].mxu0 }
 0x1ba   : > { %v856_v28 = vadd.f32 %v850_v26, %v702_v21  ;;  %v852_v29 = vpop.f32.mrb[5].mxu0 }
 0x1bb   : > { %v853_v30 = vpop.f32.mrb[6].mxu0 }
 0x1bc   : > { %v864_v31 = vadd.f32 %v1128_v27, %v856_v28  ;;  %v854_v32 = vpop.f32.mrb[7].mxu0 }
 0x1be   : > { %v865_v33 = vpack.c.bf16 %v864_v31, %v864_v31  ;;  %v868_v34 = vsel %vm867_vm12, %v864_v31, 0.0  ;;  %v876_v35 = vmul.f32 %v864_v31, %v864_v31 }
 0x1bf   : > { %v869_v36 = vrot.slane %v868_v34, 4 }
 0x1c0   : > { %866 = vst [vmem:[%s320_s25] sm:$0x3] %v865_v33  ;;  %v877_v37 = vsel %vm867_vm12, %v876_v35, 0.0 }
 0x1c1   : > { %v870_v38 = vadd.f32 %v869_v36, %v868_v34  ;;  %v878_v39 = vrot.slane %v877_v37, 4 }
 0x1c3   : > { %v871_v40 = vrot.slane %v870_v38, 2  ;;  %v879_v41 = vadd.f32 %v878_v39, %v877_v37 }
 0x1c5   : > { %v872_v42 = vadd.f32 %v871_v40, %v870_v38  ;;  %v880_v43 = vrot.slane %v879_v41, 2 }
 0x1c7   : > { %v873_v44 = vrot.slane %v872_v42, 1  ;;  %v881_v45 = vadd.f32 %v880_v43, %v879_v41 }
 0x1c9   : > { %v874_v46 = vadd.f32 %v873_v44, %v872_v42  ;;  %v882_v47 = vrot.slane %v881_v45, 1 }
 0x1cb   : > { %875 = vst [vmem:[%s324_s17] sm:$0x1] %v874_v46  ;;  %v883_v48 = vadd.f32 %v882_v47, %v881_v45 }
 0x1cd   : > { %884 = vst [vmem:[%s324_s17 + $0x1] sm:$0x1] %v883_v48 }
 0x1ce PF: > { %p1147_p5 = scmp.ge.s32.totalorder %s1292_s30, 2  ;;  %s928_s18 = sand.u32 1, %s1280_s27  }
 0x1cf   : > { %s929_s19 = scalar_lea.sflag [#allocation6], %s928_s18 }
 0x1d0   : > { %p1144_p1 = pnand %p1147_p5, %p1388_p6 }
 0x1d2   : > { %1275 = dma.done.wait (!%p1144_p1), %s929_s19, 256  }
 0x1d3   : > { %1277 = vsyncadd (!%p1144_p1), %s929_s19, 4294967040  ;;  %p19_p2 = scmp.ge.s32.totalorder %s1371_s11, 4   ;;  %s1648_s27 = smov %s1284_s28 }
 0x1d4   : > { %s1649_s28 = smov %s1288_s29  ;;  %s1650_s29 = smov %s1382_s14 }
 0x1d5   : > { %s1651_s30 = smov %s1371_s11  ;;  %21 = sbr.rel (!%p19_p2) target bundleno = 3 (0x3), region = 106 }
 0x1dc   :  { %948 = vsyncpa [#allocation6], 1 }
 0x1dd   :  { %950 = vsyncpa [#allocation6 + $0x1], 1 }

// kernel: unet_encoder.16
= control target key start
LH: loop header
LB: loop body
LE: loop exit
PB: predicated region body
PF: predicated region fallthrough
CT: control target
= control target key end

     0   :  { %s1813_s24 = smov 0   ;;  %s2110_s0 = inlined_call_operand.vmem [shape: bf16[2,4,128], index: 0, kind: input, shape index: {}]   ;;  %s2111_s1 = inlined_call_operand.vmem [shape: f32[4,2], index: 1, kind: input, shape index: {}]   ;;  %s2112_s2 = inlined_call_operand.vmem [shape: bf16[3,384,128], index: 2, kind: input, shape index: {}]   ;;  %s2113_s3 = inlined_call_operand.vmem [shape: f32[1,128], index: 3, kind: input, shape index: {}]   ;;  %s2114_s4 = inlined_call_operand.vmem [shape: f32[1,128], index: 4, kind: input, shape index: {}]   ;;  %s2115_s5 = inlined_call_operand.vmem [shape: f32[1,128], index: 5, kind: input, shape index: {}]   ;;  %s2116_s6 = inlined_call_operand.vmem [shape: bf16[2,4,128], index: 6, kind: output, shape index: {0}]   ;;  %s2117_s7 = inlined_call_operand.vmem [shape: f32[2,2,128], index: 7, kind: output, shape index: {1}]  }
   0x1 LB: > { %s1319_s25 = sadd.s32 4294967295, %s1767_s24   ;;  %p1323_p0 = scmp.ge.s32.totalorder %s1767_s24, 1  ;;  %s1767_s24 = sphi %s1813_s24, %s18_s24  }
   0x2   : > { %p239_p1 = scmp.lt.s32.totalorder %s1767_s24, 3 }
   0x4   : > { %p240_p2 = pnand %p1323_p0, %p239_p1 }
   0x5   : > { %v308_v0 = vld [vmem:[%s2111_s1] sm:$0xf] (!%p240_p2)  ;;  %v1769_v1 = vmov (!%p240_p2), 0   ;;  %v1770_v4 = vmov (!%p240_p2), 0.0   ;;  %p273_p3 = scmp.lt.s32.totalorder (!%p240_p2), %s1319_s25, 1  ;;  %v1682_v5 = vld [vmem:[%s2112_s2 + $0x108] sm:$0xff] (!%p240_p2)  }
   0x6   : > { %243 = sbr.rel (%p240_p2) target bundleno = 455 (0x1c7), region = 44  ;;  %1678 = vset.pattern.permute.xlu0 (!%p240_p2), %v1769_v1  ;;  %325 = vst [vmem:[#allocation3] sm:$0x11] (!%p240_p2), %v1769_v1  ;;  %326 = vst [vmem:[#allocation3 + $0x8] sm:$0x1] (!%p240_p2), %v1769_v1  ;;  %v1680_v2 = vld [vmem:[%s2112_s2 + $0x100] sm:$0xff] (!%p240_p2)   ;;  %1606 = vmatprep.subr.bf16.mxu1 (!%p240_p2), %v1770_v4 }
   0x7   : > { %327 = vst [vmem:[#allocation3] sm:$0x88] (!%p240_p2), %v1769_v1  ;;  %312 = vperm.xlu0 (!%p240_p2), %1678, %v308_v0   ;;  %v1681_v3 = vld [vmem:[%s2112_s2 + $0xc0] sm:$0xff] (!%p240_p2)   ;;  %305 = vst [vmem:[#allocation2] sm:$0x1] (!%p240_p2), %v1770_v4  ;;  %1513 = vmatprep.subr.bf16.mxu0 (!%p240_p2), %v1680_v2  ;;  %v1683_v6 = vld [vmem:[%s2112_s2 + $0xc8] sm:$0xff] (!%p240_p2)  }
   0x8   : > { %306 = vst [vmem:[#allocation2 + $0x5] sm:$0x1] (!%p240_p2), %v1770_v4  ;;  %1514 = vmatpush3.bf16.msra.mxu0 (!%p240_p2), %v1681_v3  ;;  %v1684_v7 = vld [vmem:[%s2112_s2 + $0x140] sm:$0xff] (!%p240_p2)   ;;  %v1771_v8 = vmov (!%p240_p2), 1   ;;  %v1685_v9 = vld [vmem:[%s2112_s2 + $0x110] sm:$0xff] (!%p240_p2)   ;;  %v1687_v11 = vld [vmem:[%s2112_s2 + $0x148] sm:$0xff] (!%p240_p2)  }
   0x9   : > { %1515 = vmatprep.subr.bf16.mxu0 (!%p240_p2), %v1682_v5  ;;  %1607 = vmatpush3.bf16.msra.mxu1 (!%p240_p2), %v1684_v7  ;;  %v1686_v10 = vld [vmem:[%s2112_s2 + $0xd0] sm:$0xff] (!%p240_p2)   ;;  %v1688_v12 = vld [vmem:[%s2112_s2 + $0x118] sm:$0xff] (!%p240_p2)   ;;  %v1327_v16 = vld [vmem:[%s2114_s4] ss:$0 sm:$0xff] (!%p240_p2)  ;;  %vm1772_vm0 = vmmov (!%p240_p2), 0   ;;  %vm1217_vm1 = vcmask (!%p240_p2), 1043456  }
   0xa   : > { %1608 = vmatprep.subr.bf16.mxu1 (!%p240_p2), %v1770_v4  ;;  %v1689_v13 = vld [vmem:[%s2112_s2 + $0xd8] sm:$0xff] (!%p240_p2)   ;;  %v1328_v17 = vld [vmem:[%s2115_s5] ss:$0 sm:$0xff] (!%p240_p2)  ;;  %v1690_v18 = vld [vmem:[%s2112_s2 + $0x150] sm:$0xff] (!%p240_p2)   ;;  %1622 = vmatprep.mubr.msk.bf16.mxu1 (!%p240_p2), %vm1772_vm0, %v1770_v4 }
   0xb   : > { %1679 = vset.pattern.permute.xlu0 (!%p240_p2), %v1771_v8  ;;  %v1691_v20 = vld [vmem:[%s2112_s2 + $0x120] sm:$0xff] (!%p240_p2)   ;;  %v1693_v22 = vld [vmem:[%s2112_s2 + $0x158] sm:$0xff] (!%p240_p2)   ;;  %v1694_v25 = vld [vmem:[%s2112_s2 + $0x128] sm:$0xff] (!%p240_p2)  }
   0xc   : > { %318 = vperm.xlu0 (!%p240_p2), %1679, %v308_v0   ;;  %1516 = vmatpush3.bf16.msra.mxu0 (!%p240_p2), %v1683_v6  ;;  %v1692_v23 = vld [vmem:[%s2112_s2 + $0xe0] sm:$0xff] (!%p240_p2)   ;;  %v1695_v27 = vld [vmem:[%s2112_s2 + $0xe8] sm:$0xff] (!%p240_p2)   ;;  %v1697_v28 = vld [vmem:[%s2112_s2 + $0x130] sm:$0xff] (!%p240_p2)  }
   0xd   : > { %s2119_s25 = smov (!%p273_p3, %s1319_s25), 1  ;;  %1517 = vmatprep.subr.bf16.mxu0 %v1685_v9  ;;  %1609 = vmatpush3.bf16.msra.mxu1 %v1687_v11  ;;  %v1696_v26 = vld [vmem:[%s2112_s2 + $0x160] sm:$0xff]   ;;  %v1699_v29 = vld [vmem:[%s2112_s2 + $0x168] sm:$0xff]   ;;  %v1698_v30 = vld [vmem:[%s2112_s2 + $0xf0] sm:$0xff]  }
   0xe   : > { %s1845_s17 = sshll.u32 %s2119_s25, 1  ;;  %1610 = vmatprep.subr.bf16.mxu1 %v1770_v4  ;;  %v1700_v31 = vld [vmem:[%s2112_s2 + $0x138] sm:$0xff]   ;;  %v1702_v32 = vld [vmem:[%s2112_s2 + $0x170] sm:$0xff]   ;;  %v1705_v34 = vld [vmem:[%s2112_s2 + $0x40] sm:$0xff]  }
   0xf   : > { %s276_s22 = scalar_lea.vmem %s2110_s0, %s1845_s17  ;;  %v1701_v33 = vld [vmem:[%s2112_s2 + $0xf8] sm:$0xff]   ;;  %v1707_v48 = vld [vmem:[%s2112_s2] sm:$0xff]   ;;  %v1710_v49 = vld [vmem:[%s2112_s2 + $0x48] sm:$0xff]   ;;  %s280_s13 = scalar_lea.vmem %s2116_s6, %s1845_s17 }
  0x10   : > { %v286_v14 = vld [vmem:[%s276_s22] sm:$0x3]  ;;  %1518 = vmatpush3.bf16.msra.mxu0 %v1686_v10  ;;  %v1706_v35 = vld [vmem:[%s2112_s2 + $0x178] sm:$0xff]   ;;  %v1711_v51 = vld [vmem:[#allocation3 + $0x8] ss:$0 sps:$4 sm:$0x66]   ;;  %s284_s16 = scalar_lea.vmem %s2117_s7, %s1845_s17 }
  0x11   : > { %v287_v15 = vunpack.c.l.bf16 %v286_v14  ;;  %1519 = vmatprep.subr.bf16.mxu0 %v1688_v12  ;;  %1611 = vmatpush3.bf16.msra.mxu1 %v1690_v18  ;;  %v1713_v52 = vld [vmem:[%s2112_s2 + $0x80] sm:$0xff]   ;;  %v454_v53 = vrot.slane %v1711_v51, 1  ;;  %v1712_v54 = vld [vmem:[%s2112_s2 + $0x8] sm:$0xff]   ;;  %v1714_v55 = vld [vmem:[%s2112_s2 + $0x50] sm:$0xff]  }
  0x12   : > { %1612 = vmatprep.subr.bf16.mxu1 %v1770_v4  ;;  %v1716_v56 = vld [vmem:[%s2112_s2 + $0x88] sm:$0xff]   ;;  %v1715_v57 = vld [vmem:[%s2112_s2 + $0x10] sm:$0xff]   ;;  %v1717_v58 = vld [vmem:[%s2112_s2 + $0x58] sm:$0xff]  }
  0x13   : > { %v295_v19 = vmul.f32 %v1327_v16, %v287_v15  ;;  %v1719_v59 = vld [vmem:[%s2112_s2 + $0x90] sm:$0xff]   ;;  %v1718_v60 = vld [vmem:[%s2112_s2 + $0x18] sm:$0xff]   ;;  %v1720_v61 = vld [vmem:[%s2112_s2 + $0x60] sm:$0xff]  }
  0x14   : > { %1520 = vmatpush3.bf16.msra.mxu0 %v1689_v13  ;;  %v1722_v62 = vld [vmem:[%s2112_s2 + $0x98] sm:$0xff]   ;;  %v1721_v63 = vld [vmem:[%s2112_s2 + $0x20] sm:$0xff]   ;;  %v1723_v0 = vld [vmem:[%s2112_s2 + $0x68] sm:$0xff]  }
  0x15   : > { %v303_v21 = vadd.f32 %v1328_v17, %v295_v19  ;;  %1521 = vmatprep.subr.bf16.mxu0 %v1691_v20  ;;  %1613 = vmatpush3.bf16.msra.mxu1 %v1693_v22  ;;  %v1725_v1 = vld [vmem:[%s2112_s2 + $0xa0] sm:$0xff]   ;;  %v1724_v2 = vld [vmem:[%s2112_s2 + $0x28] sm:$0xff]   ;;  %v1726_v3 = vld [vmem:[%s2112_s2 + $0x70] sm:$0xff]  }
  0x16   : > { %1614 = vmatprep.subr.bf16.mxu1 %v1770_v4  ;;  %v1728_v5 = vld [vmem:[%s2112_s2 + $0xa8] sm:$0xff]   ;;  %v1727_v6 = vld [vmem:[%s2112_s2 + $0x30] sm:$0xff]   ;;  %v1729_v7 = vld [vmem:[%s2112_s2 + $0x78] sm:$0xff]  }
  0x17   : > { %v304_v24 = vmax.f32 %v303_v21, 0.0  ;;  %v1731_v8 = vld [vmem:[%s2112_s2 + $0xb0] sm:$0xff]   ;;  %v1730_v10 = vld [vmem:[%s2112_s2 + $0x38] sm:$0xff]   ;;  %v1732_v11 = vld [vmem:[%s2112_s2 + $0x1c0] sm:$0xff]  }
  0x18   : > { %1522 = vmatpush3.bf16.msra.mxu0 %v1692_v23  ;;  %v1733_v13 = vld [vmem:[%s2112_s2 + $0xb8] sm:$0xff]   ;;  %v1734_v14 = vld [vmem:[%s2112_s2 + $0x180] sm:$0xff]   ;;  %v1738_v16 = vld [vmem:[%s2112_s2 + $0x1c8] sm:$0xff]  }
  0x19   : > { %307 = vst [vmem:[#allocation2 + $0x1] sm:$0xf] %v304_v24  ;;  %1523 = vmatprep.subr.bf16.mxu0 %v1694_v25  ;;  %1615 = vmatpush3.bf16.msra.mxu1 %v1696_v26  ;;  %v1740_v18 = vld [vmem:[%s2112_s2 + $0x200] sm:$0xff]   ;;  %v1737_v19 = vld [vmem:[#allocation3 + $0x8] ss:$0 sps:$4 sm:$0x33]  }
  0x1a   : > { %1616 = vmatprep.subr.bf16.mxu1 %v1770_v4  ;;  %v1739_v20 = vld [vmem:[%s2112_s2 + $0x188] sm:$0xff]   ;;  %v1741_v21 = vld [vmem:[%s2112_s2 + $0x1d0] sm:$0xff]   ;;  %v1745_v26 = vld [vmem:[%s2112_s2 + $0x198] sm:$0xff]  }
  0x1b   : > { %v1743_v22 = vld [vmem:[%s2112_s2 + $0x208] sm:$0xff]   ;;  %v1742_v23 = vld [vmem:[%s2112_s2 + $0x190] sm:$0xff]  }
  0x1c   : > { %1524 = vmatpush3.bf16.msra.mxu0 %v1695_v27  ;;  %v1746_v25 = vld [vmem:[%s2112_s2 + $0x210] sm:$0xff]   ;;  %v1747_v27 = vld [vmem:[%s2112_s2 + $0x1e0] sm:$0xff]  }
  0x1d   : > { %1525 = vmatprep.subr.bf16.mxu0 %v1697_v28  ;;  %1617 = vmatpush3.bf16.msra.mxu1 %v1699_v29  ;;  %v1749_v28 = vld [vmem:[%s2112_s2 + $0x218] sm:$0xff]   ;;  %v1748_v29 = vld [vmem:[%s2112_s2 + $0x1a0] sm:$0xff]  }
  0x1e   : > { %1618 = vmatprep.subr.bf16.mxu1 %v1770_v4 }
  0x20   : > { %1526 = vmatpush3.bf16.msra.mxu0 %v1698_v30  ;;  %v309_v36 = vld [vmem:[#allocation2] sm:$0xf]  ;;  %v1750_v30 = vld [vmem:[%s2112_s2 + $0x1e8] sm:$0xff]  }
  0x21   : > { %1527 = vmatprep.subr.bf16.mxu0 %v1700_v31  ;;  %1619 = vmatpush3.bf16.msra.mxu1 %v1702_v32  ;;  %v1752_v31 = vld [vmem:[%s2112_s2 + $0x220] sm:$0xff]   ;;  %v1751_v32 = vld [vmem:[%s2112_s2 + $0x1a8] sm:$0xff]  }
  0x22   : > { %1620 = vmatprep.subr.bf16.mxu1 %v1770_v4 }
  0x24   : > { %1528 = vmatpush3.bf16.msra.mxu0 %v1701_v33  ;;  %v1753_v33 = vld [vmem:[%s2112_s2 + $0x1f0] sm:$0xff]  }
  0x25   : > { %1544 = vmatprep.subr.bf16.mxu0 %v1705_v34  ;;  %1621 = vmatpush3.bf16.msra.mxu1 %v1706_v35  ;;  %v1755_v34 = vld [vmem:[%s2112_s2 + $0x228] sm:$0xff]   ;;  %v1754_v35 = vld [vmem:[%s2112_s2 + $0x1b0] sm:$0xff]  }
  0x26   : > { %1626 = vmatprep.subr.bf16.mxu1 %v1770_v4 }
  0x28   : > { %1623 = vmatmul.mubr.bf16.vlgmr.msra.gmra.mrb[0].mxu1 %v454_v53 }
  0x29   : > { %1627 = vmatpush3.bf16.msra.mxu1 %v1713_v52  ;;  %1642 = vmatprep.mubr.msk.bf16.mxu1 %vm1772_vm0, %v1770_v4 }
  0x2a   : > { %1628 = vmatprep.subr.bf16.mxu1 %v1770_v4 }
  0x2d   : > { %1629 = vmatpush3.bf16.msra.mxu1 %v1716_v56 }
  0x2e   : > { %1630 = vmatprep.subr.bf16.mxu1 %v1770_v4 }
  0x31   : > { %1631 = vmatpush3.bf16.msra.mxu1 %v1719_v59 }
  0x32   : > { %1632 = vmatprep.subr.bf16.mxu1 %v1770_v4 }
  0x35   : > { %1633 = vmatpush3.bf16.msra.mxu1 %v1722_v62 }
  0x36   : > { %1634 = vmatprep.subr.bf16.mxu1 %v1770_v4 }
  0x39   : > { %1635 = vmatpush3.bf16.msra.mxu1 %v1725_v1 }
  0x3a   : > { %1636 = vmatprep.subr.bf16.mxu1 %v1770_v4 }
  0x3d   : > { %1637 = vmatpush3.bf16.msra.mxu1 %v1728_v5 }
  0x3e   : > { %1638 = vmatprep.subr.bf16.mxu1 %v1770_v4 }
  0x41   : > { %1639 = vmatpush3.bf16.msra.mxu1 %v1731_v8 }
  0x42   : > { %1640 = vmatprep.subr.bf16.mxu1 %v1770_v4 }
  0x45   : > { %1641 = vmatpush3.bf16.msra.mxu1 %v1733_v13 }
  0x46   : > { %1646 = vmatprep.subr.bf16.mxu1 %v1770_v4 }
  0x48   : > { %1643 = vmatmul.mubr.bf16.vlgmr.msra.gmra.mrb[4].mxu1 %v1737_v19 }
  0x49   : > { %1647 = vmatpush3.bf16.msra.mxu1 %v1740_v18  ;;  %1662 = vmatprep.mubr.msk.bf16.mxu1 %vm1772_vm0, %v1770_v4 }
  0x4a   : > { %1648 = vmatprep.subr.bf16.mxu1 %v1770_v4 }
  0x4d   : > { %1649 = vmatpush3.bf16.msra.mxu1 %v1743_v22 }
  0x4e   : > { %1650 = vmatprep.subr.bf16.mxu1 %v1770_v4 }
  0x51   : > { %1651 = vmatpush3.bf16.msra.mxu1 %v1746_v25 }
  0x52   : > { %1652 = vmatprep.subr.bf16.mxu1 %v1770_v4 }
  0x55   : > { %1653 = vmatpush3.bf16.msra.mxu1 %v1749_v28 }
  0x56   : > { %1654 = vmatprep.subr.bf16.mxu1 %v1770_v4 }
  0x59   : > { %1655 = vmatpush3.bf16.msra.mxu1 %v1752_v31 }
  0x5a   : > { %1656 = vmatprep.subr.bf16.mxu1 %v1770_v4 }
  0x5d   : > { %1657 = vmatpush3.bf16.msra.mxu1 %v1755_v34 }
  0x5e   : > { %1658 = vmatprep.subr.bf16.mxu1 %v1770_v4 }
  0x86   : > { %v313_v37 = vpop.permute.xlu0 %312 }
  0x87   : > { %v315_v38 = vmul.f32 %v313_v37, %v309_v36  ;;  %v1756_v36 = vld [vmem:[%s2112_s2 + $0x1f8] sm:$0xff]   ;;  %v1758_v37 = vld [vmem:[%s2112_s2 + $0x230] sm:$0xff]  }
  0x88   : > { %1659 = vmatpush3.bf16.msra.mxu1 %v1758_v37 }
  0x89   : > { %v1511_v39 = vpack.c.bf16 %v304_v24, %v315_v38  ;;  %v1744_v24 = vld [vmem:[%s2112_s2 + $0x1d8] sm:$0xff]   ;;  %1660 = vmatprep.subr.bf16.mxu1 %v1770_v4 }
  0x8a   : > { %v1757_v38 = vld [vmem:[%s2112_s2 + $0x1b8] sm:$0xff]  }
  0x8b   : > { %v337_v40 = vrot.slane %v1511_v39, 7  ;;  %v319_v41 = vpop.permute.xlu0 %318 }
  0x8c   : > { %v1760_v41 = vld [vmem:[#allocation3 + $0x8] ss:$0 sps:$4 sm:$0xcc]  }
  0x8d   : > { %341 = vst [vmem:[#allocation3] sm:$0x66] %v337_v40  ;;  %v1759_v40 = vld [vmem:[%s2112_s2 + $0x238] sm:$0xff]  }
  0x8e   : > { %1661 = vmatpush3.bf16.msra.mxu1 %v1759_v40 }
  0x94   : > { %v393_v42 = vld [vmem:[#allocation3] sm:$0x66] }
  0x95   : > { %v1379_v43 = vcombine.low %v393_v42, %v393_v42  ;;  %v1380_v44 = vcombine.high %v393_v42, %v393_v42  ;;  %v1924_v45 = vld [vmem:[#allocation3] sm:$0x33]  ;;  %v1998_v9 = vld [vmem:[#allocation3] sm:$0xcc] }
  0x96   : > { %v1407_v50 = vcombine.high %v1924_v45, %v1924_v45  ;;  %v1482_v12 = vcombine.high %v1998_v9, %v1998_v9  ;;  %v1406_v15 = vcombine.low %v1924_v45, %v1924_v45  ;;  %v1481_v39 = vcombine.low %v1998_v9, %v1998_v9  ;;  %v1508_v9 = vld [vmem:[%s2113_s3] ss:$0 sm:$0xff] }
  0x97   : > { %v452_v46 = vrot.slane %v1379_v43, 1  ;;  %v453_v47 = vrot.slane %v1380_v44, 1  ;;  %v978_v43 = vrot.slane %v1760_v41, 2 }
  0x98   : > { %v977_v17 = vrot.slane %v1482_v12, 2  ;;  %v976_v42 = vrot.slane %v1481_v39, 2 }
  0x99   : > { %634 = vmatprep.mubr.bf16.mxu0 %v453_v47  ;;  %1663 = vmatmul.mubr.bf16.vlgmr.msra.gmra.mrb[8].mxu1 %v978_v43 }
  0x9a   : > { %635 = vmatmul.mubr.bf16.vlgmr.msra.gmra.mrb[0].mxu0 %v452_v46 }
  0x9b   : > { %1545 = vmatpush3.bf16.msra.mxu0 %v1707_v48  ;;  %869 = vmatprep.mubr.bf16.mxu0 %v1407_v50 }
  0x9c   : > { %1546 = vmatprep.subr.bf16.mxu0 %v1710_v49 }
  0x9f   : > { %1547 = vmatpush3.bf16.msra.mxu0 %v1712_v54 }
  0xa0   : > { %1548 = vmatprep.subr.bf16.mxu0 %v1714_v55 }
  0xa3   : > { %1549 = vmatpush3.bf16.msra.mxu0 %v1715_v57 }
  0xa4   : > { %1550 = vmatprep.subr.bf16.mxu0 %v1717_v58 }
  0xa7   : > { %1551 = vmatpush3.bf16.msra.mxu0 %v1718_v60 }
  0xa8   : > { %1552 = vmatprep.subr.bf16.mxu0 %v1720_v61 }
  0xab   : > { %1553 = vmatpush3.bf16.msra.mxu0 %v1721_v63 }
  0xac   : > { %1554 = vmatprep.subr.bf16.mxu0 %v1723_v0 }
  0xaf   : > { %1555 = vmatpush3.bf16.msra.mxu0 %v1724_v2 }
  0xb0   : > { %1556 = vmatprep.subr.bf16.mxu0 %v1726_v3 }
  0xb3   : > { %1557 = vmatpush3.bf16.msra.mxu0 %v1727_v6 }
  0xb4   : > { %1558 = vmatprep.subr.bf16.mxu0 %v1729_v7 }
  0xb7   : > { %1559 = vmatpush3.bf16.msra.mxu0 %v1730_v10 }
  0xb8   : > { %1575 = vmatprep.subr.bf16.mxu0 %v1732_v11 }
  0xba   : > { %870 = vmatmul.mubr.bf16.vlgmr.msra.gmra.mrb[4].mxu0 %v1406_v15 }
  0xbb   : > { %1576 = vmatpush3.bf16.msra.mxu0 %v1734_v14  ;;  %1158 = vmatprep.mubr.bf16.mxu0 %v977_v17 }
  0xbc   : > { %1577 = vmatprep.subr.bf16.mxu0 %v1738_v16 }
  0xbf   : > { %1578 = vmatpush3.bf16.msra.mxu0 %v1739_v20 }
  0xc0   : > { %1579 = vmatprep.subr.bf16.mxu0 %v1741_v21 }
  0xc3   : > { %1580 = vmatpush3.bf16.msra.mxu0 %v1742_v23 }
  0xc4   : > { %1581 = vmatprep.subr.bf16.mxu0 %v1744_v24 }
  0xc7   : > { %1582 = vmatpush3.bf16.msra.mxu0 %v1745_v26 }
  0xc8   : > { %1583 = vmatprep.subr.bf16.mxu0 %v1747_v27 }
  0xcb   : > { %1584 = vmatpush3.bf16.msra.mxu0 %v1748_v29 }
  0xcc   : > { %1585 = vmatprep.subr.bf16.mxu0 %v1750_v30 }
  0xcf   : > { %1586 = vmatpush3.bf16.msra.mxu0 %v1751_v32 }
  0xd0   : > { %1587 = vmatprep.subr.bf16.mxu0 %v1753_v33 }
  0xd3   : > { %1588 = vmatpush3.bf16.msra.mxu0 %v1754_v35 }
  0xd4   : > { %1589 = vmatprep.subr.bf16.mxu0 %v1756_v36 }
  0xd7   : > { %1590 = vmatpush3.bf16.msra.mxu0 %v1757_v38 }
  0xda   : > { %1159 = vmatmul.mubr.bf16.vlgmr.msra.gmra.mrb[8].mxu0 %v976_v42 }
  0xfb   : > { %v676_v49 = vpop.f32.mrb[0].mxu1 }
  0xfc   : > { %v1624_v51 = vpop.f32.mrb[1].mxu1 }
  0xfd   : > { %v679_v52 = vpop.f32.mrb[2].mxu1 }
  0xfe   : > { %v1625_v53 = vpop.f32.mrb[3].mxu1 }
 0x11b   : > { %v911_v58 = vpop.f32.mrb[4].mxu1 }
 0x11c   : > { %v1644_v60 = vpop.f32.mrb[5].mxu1 }
 0x11d   : > { %v914_v61 = vpop.f32.mrb[6].mxu1 }
 0x11e   : > { %v1645_v63 = vpop.f32.mrb[7].mxu1 }
 0x16c   : > { %v1200_v6 = vpop.f32.mrb[8].mxu1 }
 0x16d   : > { %v1529_v44 = vpop.f32.mrb[0].mxu0  ;;  %v1664_v8 = vpop.f32.mrb[9].mxu1 }
 0x16e   : > { %v1530_v45 = vpop.f32.mrb[1].mxu0  ;;  %v1203_v10 = vpop.f32.mrb[10].mxu1 }
 0x16f   : > { %v1531_v46 = vadd.f32 %v1530_v45, %v1529_v44  ;;  %v1532_v47 = vpop.f32.mrb[2].mxu0  ;;  %v1665_v12 = vpop.f32.mrb[11].mxu1 }
 0x170   : > { %v1533_v48 = vpop.f32.mrb[3].mxu0 }
 0x171   : > { %v677_v50 = vadd.f32 %v1531_v46, %v676_v49 }
 0x18d   : > { %v1560_v54 = vpop.f32.mrb[4].mxu0 }
 0x18e   : > { %v1561_v55 = vpop.f32.mrb[5].mxu0 }
 0x18f   : > { %v1562_v56 = vadd.f32 %v1561_v55, %v1560_v54  ;;  %v1563_v4 = vpop.f32.mrb[6].mxu0 }
 0x190   : > { %v1564_v57 = vpop.f32.mrb[7].mxu0 }
 0x191   : > { %v872_v59 = vadd.f32 %v1562_v56, %v677_v50 }
 0x193   : > { %v912_v62 = vadd.f32 %v911_v58, %v872_v59 }
 0x1ad   : > { %v1591_v0 = vpop.f32.mrb[8].mxu0 }
 0x1ae   : > { %v1592_v1 = vpop.f32.mrb[9].mxu0 }
 0x1af   : > { %v1593_v2 = vadd.f32 %v1592_v1, %v1591_v0  ;;  %v1594_v3 = vpop.f32.mrb[10].mxu0 }
 0x1b0   : > { %v1595_v5 = vpop.f32.mrb[11].mxu0 }
 0x1b1   : > { %v1201_v7 = vadd.f32 %v1593_v2, %v1200_v6 }
 0x1b3   : > { %v1206_v11 = vadd.f32 %v1201_v7, %v912_v62 }
 0x1b5   : > { %v1214_v13 = vadd.f32 %v1508_v9, %v1206_v11 }
 0x1b7   : > { %v1215_v14 = vpack.c.bf16 %v1214_v13, %v1214_v13  ;;  %v1218_v15 = vsel %vm1217_vm1, %v1214_v13, 0.0  ;;  %v1226_v16 = vmul.f32 %v1214_v13, %v1214_v13 }
 0x1b8   : > { %v1219_v17 = vrot.slane %v1218_v15, 4 }
 0x1b9   : > { %1216 = vst [vmem:[%s280_s13] sm:$0x3] %v1215_v14  ;;  %v1227_v18 = vsel %vm1217_vm1, %v1226_v16, 0.0 }
 0x1ba   : > { %v1220_v19 = vadd.f32 %v1219_v17, %v1218_v15  ;;  %v1228_v20 = vrot.slane %v1227_v18, 4 }
 0x1bc   : > { %v1221_v21 = vrot.slane %v1220_v19, 2  ;;  %v1229_v22 = vadd.f32 %v1228_v20, %v1227_v18 }
 0x1be   : > { %v1222_v23 = vadd.f32 %v1221_v21, %v1220_v19  ;;  %v1230_v24 = vrot.slane %v1229_v22, 2 }
 0x1c0   : > { %v1223_v25 = vrot.slane %v1222_v23, 1  ;;  %v1231_v26 = vadd.f32 %v1230_v24, %v1229_v22 }
 0x1c2   : > { %v1224_v27 = vadd.f32 %v1223_v25, %v1222_v23  ;;  %v1232_v28 = vrot.slane %v1231_v26, 1 }
 0x1c4   : > { %1225 = vst [vmem:[%s284_s16] sm:$0x1] %v1224_v27  ;;  %v1233_v29 = vadd.f32 %v1232_v28, %v1231_v26 }
 0x1c6   : > { %1234 = vst [vmem:[%s284_s16 + $0x1] sm:$0x1] %v1233_v29 }
 0x1c7 PF: > { %s18_s24 = sadd.s32 1, %s1767_s24  }
 0x1c8   : > { %p15_p4 = scmp.ge.s32.totalorder %s18_s24, 4  }
 0x1ca   :  { %17 = sbr.rel (!%p15_p4) target bundleno = 1 (0x1), region = 88 }

// kernel: unet_encoder.17
= control target key start
LH: loop header
LB: loop body
LE: loop exit
PB: predicated region body
PF: predicated region fallthrough
CT: control target
= control target key end

     0   :  { %10 = vsyncpa [#allocation4], 0  ;;  %s674_s0 = inlined_call_operand.vmem [shape: bf16[2,4,128], index: 0, kind: input, shape index: {}]   ;;  %s675_s1 = inlined_call_operand.vmem [shape: f32[1,128], index: 1, kind: input, shape index: {}]   ;;  %s676_s2 = inlined_call_operand.vmem [shape: f32[1,128], index: 2, kind: input, shape index: {}]   ;;  %s677_s3 = inlined_call_operand.hbm [shape: f32[2,4,128], index: 3, kind: output, shape index: {0}]   ;;  %s678_s4 = inlined_call_operand.hbm [shape: f32[2,1,128], index: 4, kind: output, shape index: {1}]  }
   0x1   :  { %12 = vsyncpa [#allocation4 + $0x1], 0 }
   0x2   :  { %13 = vsyncpa [#allocation6], 0 }
   0x3   :  { %15 = vsyncpa [#allocation6 + $0x1], 0  ;;  %s533_s15 = smov 0   ;;  %s535_s16 = smov 0  }
   0x4   :  { %s537_s17 = smov 0   ;;  %s539_s18 = smov 0  }
   0x5 LB: > { %s554_s19 = sadd.s32 4294967295, %s504_s18   ;;  %s352_s20 = sadd.s32 4294967294, %s504_s18   ;;  %s504_s18 = sphi %s539_s18, %s684_s18   ;;  %s500_s17 = sphi %s537_s17, %s683_s17   ;;  %s496_s16 = sphi %s535_s16, %s682_s16   ;;  %s492_s15 = sphi %s533_s15, %s681_s15  }
   0x6   : > { %s558_s21 = sadd.s32 1, %s504_s18   ;;  %s96_s22 = sadd.s32 1, %s500_s17 }
   0x7   : > { %s93_s23 = ssub.s32 %s504_s18, %s558_s21  ;;  %p106_p0 = scmp.ne.s32.totalorder %s500_s17, %s496_s16 }
   0x8   : > { %p94_p1 = scmp.eq.s32.totalorder %s93_s23, 0  ;;  %p107_p2 = scmp.eq.s32.totalorder %s554_s19, 1 }
   0x9   : > { %p112_p3 = scmp.ne.s32.totalorder %s496_s16, %s492_s15  ;;  %p113_p4 = scmp.eq.s32.totalorder %s352_s20, 1 }
   0xa   : > { %s569_s24 = scalar_select %p94_p1, %s500_s17, %s96_s22  }
   0xb   : > { %p571_p5 = por %p107_p2, %p106_p0  ;;  %p575_p6 = por %p113_p4, %p112_p3 }
   0xc   : > { %p355_p7 = scmp.ge.s32.totalorder %s504_s18, 1  ;;  %p170_p8 = scmp.lt.s32.totalorder %s504_s18, 3 }
   0xe   : > { %p171_p9 = pnand %p355_p7, %p170_p8 }
   0xf   : > { %p199_p10 = scmp.lt.s32.totalorder (!%p171_p9), %s554_s19, 1  ;;  %s583_s27 = sand.u32 (!%p171_p9), 1, %s496_s16   ;;  %v358_v1 = vld [vmem:[%s675_s1] ss:$0 sm:$0xff] (!%p171_p9) }
  0x10   : > { %174 = sbr.rel (%p171_p9) target bundleno = 75 (0x4b), region = 32  ;;  %s356_s29 = sshll.u32 (!%p171_p9), %s583_s27, 2  ;;  %v359_v3 = vld [vmem:[%s676_s2] ss:$0 sm:$0xff] (!%p171_p9) }
  0x11   : > { %s192_s12 = scalar_lea.vmem (!%p171_p9), [#allocation3], %s356_s29  ;;  %s362_s14 = sshll.u32 (!%p171_p9), %s554_s19, 6 }
  0x12   : > { %s252_s13 = sshll.u32 (!%p171_p9), %s192_s12, 4  ;;  %s602_s23 = scalar_lea.hbm (!%p171_p9), %s677_s3, %s362_s14  ;;  %s597_s13 = int_to_ptr.vmem [resolvable:$true] %s252_s13 }
  0x13   : > { %s506_s29 = smov (!%p171_p9), [#allocation3]  }
  0x14   : > { %s414_s5 = sshll.u32 (!%p171_p9), %s506_s29, 4  ;;  %s415_s5 = int_to_ptr.vmem [resolvable:$false] %s414_s5 }
  0x15   : > { %s416_s6 = scalar_lea.vmem (!%p171_p9), %s415_s5, 128  ;;  %p417_p0 = scmp.lt.s32.totalorder (!%p171_p9), %s597_s13, %s415_s5 }
  0x17   : > { %s200_s28 = scalar_select %p199_p10, %s554_s19, 1 }
  0x19   : > { %s357_s30 = sshll.u32 %s200_s28, 1  ;;  %s235_s28 = scalar_lea.sflag [#allocation4], %s583_s27 }
  0x1a   : > { %s202_s7 = scalar_lea.vmem %s674_s0, %s357_s30  ;;  %s410_s30 = scalar_lea.vmem %s597_s13, 64 }
  0x1b   : > { %v203_v0 = vld [vmem:[%s202_s7] sm:$0x3]  ;;  %p411_p11 = scmp.ne.s32.totalorder %s597_s13, %s410_s30  ;;  %p418_p1 = scmp.lt.s32.totalorder %s416_s6, %s410_s30 }
  0x1c   : > { %v204_v2 = vunpack.c.l.bf16 %v203_v0 }
  0x1d   : > { %p412_p12 = pnand %p411_p11, %p571_p5  ;;  %p419_p2 = por %p418_p1, %p417_p0 }
  0x1e   : > { %v212_v4 = vmul.f32 %v358_v1, %v204_v2 }
  0x1f   : > { %p413_p13 = pneg %p412_p12 }
  0x20   : > { %v220_v5 = vadd.f32 %v359_v3, %v212_v4 }
  0x21   : > { %p420_p3 = pnand %p419_p2, %p413_p13 }
  0x22   : > { %v221_v6 = vmax.f32 %v220_v5, 0.0 }
  0x24   : > { %v360_v7 = vrot.slane %v221_v6, 10  ;;  %222 = vst [vmem:[%s192_s12] sm:$0xf] %v221_v6 }
  0x25   : > { %423 = shalt.err (!%p420_p3)
}
  0x26   : > { %s424_s7 = scalar_lea.hbm %s602_s23, 64  ;;  %s428_s10 = scalar_lea.hbm %s677_s3, 128 }
  0x27   : > { %p425_p4 = scmp.ne.s32.totalorder %s602_s23, %s424_s7  ;;  %p429_p9 = scmp.lt.u32.totalorder %s602_s23, %s677_s3 }
  0x28   : > { %p430_p10 = scmp.lt.u32.totalorder %s428_s10, %s424_s7  ;;  %p432_p12 = scmp.lt.u32.totalorder %s424_s7, %s602_s23 }
  0x29   : > { %p426_p7 = pnand %p425_p4, %p571_p5 }
  0x2a   : > { %p431_p11 = por %p430_p10, %p429_p9 }
  0x2b   : > { %p427_p8 = pneg %p426_p7 }
  0x2c   : > { %p433_p13 = por %p432_p12, %p431_p11 }
  0x2e   : > { %p434_p0 = pnand %p433_p13, %p427_p8 }
  0x30   : > { %437 = shalt.err (!%p434_p0)
}
  0x31   : > { %366 = dma.vmem_to_hbm [thread:$0]  (%p571_p5), %s597_s13, 64, %s602_s23, %s235_s28   ;;  %v227_v8 = vmax.f32 %v221_v6, %v360_v7 }
  0x32   : > { %s198_s14 = scalar_lea.vmem [#allocation5], %s583_s27  ;;  %s363_s22 = sshll.u32 %s554_s19, 4 }
  0x33   : > { %228 = vst [vmem:[#allocation2] sm:$0x3] %v227_v8  ;;  %s265_s20 = sshll.u32 %s198_s14, 4  ;;  %s633_s5 = scalar_lea.hbm %s678_s4, %s363_s22  ;;  %s628_s20 = int_to_ptr.vmem [resolvable:$true] %s265_s20 }
  0x34   : > { %s240_s13 = scalar_lea.sflag [#allocation6], %s583_s27  ;;  %s438_s23 = scalar_lea.vmem %s628_s20, 16 }
  0x35   : > { %p439_p1 = scmp.ne.s32.totalorder %s628_s20, %s438_s23  ;;  %s507_s19 = smov [#allocation5]  }
  0x36   : > { %s442_s28 = sshll.u32 %s507_s19, 4  ;;  %s443_s28 = int_to_ptr.vmem [resolvable:$false] %s442_s28 }
  0x37   : > { %p440_p2 = pnand %p439_p1, %p571_p5  ;;  %s444_s6 = scalar_lea.vmem %s443_s28, 32 }
  0x38   : > { %p445_p4 = scmp.lt.s32.totalorder %s628_s20, %s443_s28  ;;  %p446_p7 = scmp.lt.s32.totalorder %s444_s6, %s438_s23 }
  0x39   : > { %p441_p3 = pneg %p440_p2 }
  0x3a   : > { %v229_v9 = vld [vmem:[#allocation2] ss:$2 sm:$0x1]  ;;  %v231_v10 = vld [vmem:[#allocation2 + $0x1] ss:$2 sm:$0x1]  ;;  %p447_p8 = por %p446_p7, %p445_p4 }
  0x3b   : > { %v232_v11 = vmax.f32 %v229_v9, %v231_v10 }
  0x3c   : > { %p448_p9 = pnand %p447_p8, %p441_p3 }
  0x3d   : > { %233 = vst [vmem:[%s198_s14] sm:$0x1] %v232_v11 }
  0x3e   : > { %451 = shalt.err (!%p448_p9)
}
  0x3f   : > { %s452_s27 = scalar_lea.hbm %s633_s5, 16  ;;  %s456_s9 = scalar_lea.hbm %s678_s4, 32 }
  0x40   : > { %p453_p10 = scmp.ne.s32.totalorder %s633_s5, %s452_s27  ;;  %p457_p13 = scmp.lt.u32.totalorder %s633_s5, %s678_s4 }
  0x41   : > { %p458_p0 = scmp.lt.u32.totalorder %s456_s9, %s452_s27  ;;  %p460_p2 = scmp.lt.u32.totalorder %s452_s27, %s633_s5 }
  0x42   : > { %p454_p11 = pnand %p453_p10, %p571_p5 }
  0x43   : > { %p459_p1 = por %p458_p0, %p457_p13 }
  0x44   : > { %p455_p12 = pneg %p454_p11 }
  0x45   : > { %p461_p3 = por %p460_p2, %p459_p1 }
  0x47   : > { %p462_p4 = pnand %p461_p3, %p455_p12 }
  0x49   : > { %465 = shalt.err (!%p462_p4)
}
  0x4a   : > { %367 = dma.vmem_to_hbm [thread:$0]  (%p571_p5), %s628_s20, 16, %s633_s5, %s240_s13  }
  0x4b PF: > { %p377_p7 = scmp.ge.s32.totalorder %s504_s18, 2  ;;  %s277_s12 = sand.u32 1, %s492_s15  }
  0x4c   : > { %s278_s14 = scalar_lea.sflag [#allocation4], %s277_s12 }
  0x4d   : > { %p371_p8 = pnand %p377_p7, %p575_p6 }
  0x4f   : > { %483 = dma.done.wait (!%p371_p8), %s278_s14, 64  }
  0x50   : > { %485 = vsyncadd (!%p371_p8), %s278_s14, 4294967232  ;;  %s287_s22 = scalar_lea.sflag [#allocation6], %s277_s12 }
  0x51   : > { %487 = dma.done.wait (!%p371_p8), %s287_s22, 16  }
  0x52   : > { %489 = vsyncadd (!%p371_p8), %s287_s22, 4294967280  ;;  %p18_p5 = scmp.ge.s32.totalorder %s558_s21, 4   ;;  %s681_s15 = smov %s496_s16 }
  0x53   : > { %s682_s16 = smov %s500_s17  ;;  %s683_s17 = smov %s569_s24 }
  0x54   : > { %s684_s18 = smov %s558_s21  ;;  %20 = sbr.rel (!%p18_p5) target bundleno = 5 (0x5), region = 85 }
  0x5b   :  { %291 = vsyncpa [#allocation4], 1 }
  0x5c   :  { %293 = vsyncpa [#allocation4 + $0x1], 1 }
  0x5d   :  { %294 = vsyncpa [#allocation6], 1 }
  0x5e   :  { %296 = vsyncpa [#allocation6 + $0x1], 1 }

</bundles_post_ra>
